<compile_context>
chip_gen: v6e
topology: v6e:2x2x1
jax: 0.10.0
libtpu: 0.0.40
codegen_flags: <defaults>
</compile_context>

<pallas_src>
import functools

import jax
import jax.numpy as jnp
from jax.experimental import pallas as pl
from jax.experimental.pallas import tpu as pltpu


# Layer sizes from FC_2.__init__: Linear(784,784), Linear(784,1024),
# Linear(1024,20), Linear(20,20), Linear(20,20), Linear(20,10)
_LAYER_DIMS = [(784, 784), (784, 1024), (1024, 20), (20, 20), (20, 20), (20, 10)]
_IN_RAW = 784
_IN_PAD = 896          # 784 padded up to a multiple of 128 (7 * 128)
_OUT_RAW = 10
_OUT_PAD = 128         # logits padded to a full 128-lane block (lane-dense store)


def _round_up(x, m):
    return (x + m - 1) // m * m


def _max_tile_b():
    """Generation-dependent batch tile: 128 on v5e, 256 on v6e/v7x/other."""
    try:
        kind = jax.devices()[0].device_kind.lower()
    except Exception:
        return 256
    if ("v5 lite" in kind) or ("v5e" in kind) or ("v5litepod" in kind):
        return 128
    return 256


def _fc2_fused_kernel(x_ref,
                      w1_ref, b1_ref, w2_ref, b2_ref, w3_ref, b3_ref,
                      w4_ref, b4_ref, w5_ref, b5_ref, w6_ref, b6_ref,
                      o_ref):
    """One batch tile: chain all 6 Linear(+ReLU) layers, everything VMEM-resident."""
    # Layer 1: bf16 x bf16 -> f32 accumulate; fused bias+ReLU+cast back to bf16.
    h = jnp.dot(x_ref[...], w1_ref[...], preferred_element_type=jnp.float32)
    h = jnp.maximum(h + b1_ref[...], 0.0).astype(jnp.bfloat16)
    # Layer 2: same pattern.
    h = jnp.dot(h, w2_ref[...], preferred_element_type=jnp.float32)
    h = jnp.maximum(h + b2_ref[...], 0.0).astype(jnp.bfloat16)
    # Layer 3: bf16 weights, f32 accumulate; output is only 20 wide -> keep f32.
    h = jnp.maximum(
        jnp.dot(h, w3_ref[...], preferred_element_type=jnp.float32) + b3_ref[...], 0.0)
    # Layers 4-5 (tiny, f32 weights) with ReLU.
    h = jnp.maximum(
        jnp.dot(h, w4_ref[...], preferred_element_type=jnp.float32) + b4_ref[...], 0.0)
    h = jnp.maximum(
        jnp.dot(h, w5_ref[...], preferred_element_type=jnp.float32) + b5_ref[...], 0.0)
    # Layer 6: no activation. W6/b6 are zero-padded to 128 lanes -> unmasked store.
    y = jnp.dot(h, w6_ref[...], preferred_element_type=jnp.float32) + b6_ref[...]
    o_ref[...] = y.astype(o_ref.dtype)


def init_params(key):
    """Deterministic init mimicking torch.nn.Linear default (U[-1/sqrt(in), 1/sqrt(in)]).

    Weights stored as [in, out] (transposed vs. torch's [out, in]) so y = x @ W + b.
    """
    params = []
    for (din, dout) in _LAYER_DIMS:
        key, kw, kb = jax.random.split(key, 3)
        bound = 1.0 / (din ** 0.5)
        w = jax.random.uniform(kw, (din, dout), jnp.float32, -bound, bound)
        b = jax.random.uniform(kb, (1, dout), jnp.float32, -bound, bound)
        params.append((w, b))
    return params


def prepare_params(params):
    """Pad 784 dims to 896, pad the logit dim to 128, cast W1/W2/W3 to bf16."""
    (w1, b1), (w2, b2), (w3, b3), (w4, b4), (w5, b5), (w6, b6) = params
    pad_in = _IN_PAD - _IN_RAW
    pad_out = _OUT_PAD - _OUT_RAW
    w1p = jnp.pad(w1, ((0, pad_in), (0, pad_in))).astype(jnp.bfloat16)
    b1p = jnp.pad(b1, ((0, 0), (0, pad_in)))                     # f32 bias
    w2p = jnp.pad(w2, ((0, pad_in), (0, 0))).astype(jnp.bfloat16)
    w3p = w3.astype(jnp.bfloat16)
    w6p = jnp.pad(w6, ((0, 0), (0, pad_out)))                    # lane-dense output
    b6p = jnp.pad(b6, ((0, 0), (0, pad_out)))
    return [(w1p, b1p), (w2p, b2), (w3p, b3), (w4, b4), (w5, b5), (w6p, b6p)]


def _forward_impl(x_nchw, prepared, *, single_buffer_weights):
    """Forward pass of FC_2. x_nchw: [B, 1, 28, 28] -> padded logits sliced to [B, 10]."""
    B = x_nchw.shape[0]
    # x.view(x.size(0), -1); cast to bf16 BEFORE padding (no f32 padded intermediate).
    x = x_nchw.reshape(B, -1).astype(jnp.bfloat16)

    # Batch tiling: pad B to a multiple of 16 (native bf16 (16,128) tile) and tile.
    b16 = _round_up(max(B, 1), 16)
    tile_b = min(_max_tile_b(), b16)
    b_pad = _round_up(b16, tile_b)
    nb = b_pad // tile_b

    x_pad = jnp.pad(x, ((0, b_pad - B), (0, _IN_PAD - _IN_RAW)))

    (w1, b1), (w2, b2), (w3, b3), (w4, b4), (w5, b5), (w6, b6) = prepared
    weights = (w1, b1, w2, b2, w3, b3, w4, b4, w5, b5, w6, b6)

    def resident(arr):
        # Whole array, same block for every batch tile -> stays VMEM-resident.
        # Constant index_map means the second pipeline buffer is wasted, so
        # request single-buffering when supported.
        if single_buffer_weights:
            return pl.BlockSpec(arr.shape, lambda i: (0, 0),
                                pipeline_mode=pl.Buffered(buffer_count=1))
        return pl.BlockSpec(arr.shape, lambda i: (0, 0))

    # Only shard the batch axis across TensorCores when there is enough work;
    # otherwise the duplicated resident-weight DMA on v7x cancels the gain.
    semantics = ("parallel",) if nb >= 4 else ("arbitrary",)

    out = pl.pallas_call(
        _fc2_fused_kernel,
        out_shape=jax.ShapeDtypeStruct((b_pad, _OUT_PAD), jnp.float32),
        grid_spec=pltpu.PrefetchScalarGridSpec(
            num_scalar_prefetch=0,
            grid=(nb,),
            in_specs=[pl.BlockSpec((tile_b, _IN_PAD), lambda i: (i, 0))]
                     + [resident(a) for a in weights],
            out_specs=pl.BlockSpec((tile_b, _OUT_PAD), lambda i: (i, 0)),
        ),
        compiler_params=pltpu.CompilerParams(
            dimension_semantics=semantics,
            vmem_limit_bytes=32 * 1024 * 1024,
        ),
    )(x_pad, *weights)
    return out[:B, :_OUT_RAW]


_fc2_forward_single_buf = jax.jit(
    functools.partial(_forward_impl, single_buffer_weights=True))
_fc2_forward_double_buf = jax.jit(
    functools.partial(_forward_impl, single_buffer_weights=False))

_USE_SINGLE_BUFFER = None  # resolved on first call


def fc2_forward(x_nchw, prepared):
    """Public entry point. Prefers single-buffered resident weights, falls back cleanly."""
    global _USE_SINGLE_BUFFER
    if _USE_SINGLE_BUFFER is None:
        try:
            out = _fc2_forward_single_buf(x_nchw, prepared)
            jax.block_until_ready(out)
            _USE_SINGLE_BUFFER = True
            return out
        except Exception:
            # pipeline_mode=pl.Buffered(1) rejected by this jax/Mosaic version;
            # use the default (double-buffered) pipeline instead.
            _USE_SINGLE_BUFFER = False
    fn = _fc2_forward_single_buf if _USE_SINGLE_BUFFER else _fc2_forward_double_buf
    return fn(x_nchw, prepared)


def _reference_forward_mirrored(x_nchw, prepared):
    """Pure-JAX reference using the SAME padded/bf16 weights + bf16 activations."""
    B = x_nchw.shape[0]
    x = jnp.pad(x_nchw.reshape(B, -1).astype(jnp.bfloat16),
                ((0, 0), (0, _IN_PAD - _IN_RAW)))
    (w1, b1), (w2, b2), (w3, b3), (w4, b4), (w5, b5), (w6, b6) = prepared
    h = jnp.maximum(jnp.dot(x, w1, preferred_element_type=jnp.float32) + b1,
                    0.0).astype(jnp.bfloat16)
    h = jnp.maximum(jnp.dot(h, w2, preferred_element_type=jnp.float32) + b2,
                    0.0).astype(jnp.bfloat16)
    h = jnp.maximum(jnp.dot(h, w3, preferred_element_type=jnp.float32) + b3, 0.0)
    h = jnp.maximum(jnp.dot(h, w4, preferred_element_type=jnp.float32) + b4, 0.0)
    h = jnp.maximum(jnp.dot(h, w5, preferred_element_type=jnp.float32) + b5, 0.0)
    y = jnp.dot(h, w6, preferred_element_type=jnp.float32) + b6
    return y[:, :_OUT_RAW]


def _reference_forward_fp32(x_nchw, params):
    """Full-fp32 reference with the raw (unpadded) weights — sanity check."""
    x = x_nchw.reshape(x_nchw.shape[0], -1).astype(jnp.float32)
    n = len(params)
    for i, (w, b) in enumerate(params):
        x = x @ w + b
        if i < n - 1:
            x = jnp.maximum(x, 0.0)
    return x


if __name__ == "__main__":
    key = jax.random.PRNGKey(0)
    key, kx = jax.random.split(key)

    # MNIST-shaped input (NCHW), small batch.
    x = jax.random.normal(kx, (8, 1, 28, 28), dtype=jnp.float32)
    raw_params = init_params(key)
    prepared = prepare_params(raw_params)

    y = fc2_forward(x, prepared)
    y = jax.block_until_ready(y)
    assert y.shape == (8, 10), y.shape

    # Tight check against a reference that mirrors the kernel's bf16/padding.
    y_ref = _reference_forward_mirrored(x, prepared)
    assert jnp.allclose(y, y_ref, atol=1e-3, rtol=1e-3), "mismatch vs mirrored reference"

    # Loose sanity check against the full-fp32 unpadded reference.
    y_fp32 = _reference_forward_fp32(x, raw_params)
    assert jnp.allclose(y, y_fp32, atol=1e-1, rtol=1e-1), "mismatch vs fp32 reference"

    print("KERNEL_OK")
</pallas_src>

<mosaic_0001>
module attributes {stable_mosaic.version = 11 : i64} {
  func.func @_fc2_fused_kernel(%arg0: i32, %arg1: memref<16x896xbf16, #tpu.memory_space<vmem>>, %arg2: memref<896x896xbf16, #tpu.memory_space<vmem>>, %arg3: memref<1x896xf32, #tpu.memory_space<vmem>>, %arg4: memref<896x1024xbf16, #tpu.memory_space<vmem>>, %arg5: memref<1x1024xf32, #tpu.memory_space<vmem>>, %arg6: memref<1024x20xbf16, #tpu.memory_space<vmem>>, %arg7: memref<1x20xf32, #tpu.memory_space<vmem>>, %arg8: memref<20x20xf32, #tpu.memory_space<vmem>>, %arg9: memref<1x20xf32, #tpu.memory_space<vmem>>, %arg10: memref<20x20xf32, #tpu.memory_space<vmem>>, %arg11: memref<1x20xf32, #tpu.memory_space<vmem>>, %arg12: memref<20x128xf32, #tpu.memory_space<vmem>>, %arg13: memref<1x128xf32, #tpu.memory_space<vmem>>, %arg14: memref<16x128xf32, #tpu.memory_space<vmem>>) attributes {dimension_semantics = [#tpu.dimension_semantics<arbitrary>], iteration_bounds = array<i64: 1>, scalar_prefetch = 0 : i64, scratch_operands = 0 : i64, tpu.core_type = #tpu.core_type<tc>, window_params = [{transform_indices = @transform_0, window_bounds = array<i64: 16, 896>}, {pipeline_mode = #tpu.pipeline_mode<synchronous>, transform_indices = @transform_1, window_bounds = array<i64: 896, 896>}, {pipeline_mode = #tpu.pipeline_mode<synchronous>, transform_indices = @transform_2, window_bounds = array<i64: 1, 896>}, {pipeline_mode = #tpu.pipeline_mode<synchronous>, transform_indices = @transform_3, window_bounds = array<i64: 896, 1024>}, {pipeline_mode = #tpu.pipeline_mode<synchronous>, transform_indices = @transform_4, window_bounds = array<i64: 1, 1024>}, {pipeline_mode = #tpu.pipeline_mode<synchronous>, transform_indices = @transform_5, window_bounds = array<i64: 1024, 20>}, {pipeline_mode = #tpu.pipeline_mode<synchronous>, transform_indices = @transform_6, window_bounds = array<i64: 1, 20>}, {pipeline_mode = #tpu.pipeline_mode<synchronous>, transform_indices = @transform_7, window_bounds = array<i64: 20, 20>}, {pipeline_mode = #tpu.pipeline_mode<synchronous>, transform_indices = @transform_8, window_bounds = array<i64: 1, 20>}, {pipeline_mode = #tpu.pipeline_mode<synchronous>, transform_indices = @transform_9, window_bounds = array<i64: 20, 20>}, {pipeline_mode = #tpu.pipeline_mode<synchronous>, transform_indices = @transform_10, window_bounds = array<i64: 1, 20>}, {pipeline_mode = #tpu.pipeline_mode<synchronous>, transform_indices = @transform_11, window_bounds = array<i64: 20, 128>}, {pipeline_mode = #tpu.pipeline_mode<synchronous>, transform_indices = @transform_12, window_bounds = array<i64: 1, 128>}, {transform_indices = @transform_13, window_bounds = array<i64: 16, 128>}]} {
    %c0 = arith.constant 0 : index
    %c0_0 = arith.constant 0 : index
    %0 = vector.load %arg1[%c0, %c0_0] : memref<16x896xbf16, #tpu.memory_space<vmem>>, vector<16x896xbf16>
    %c0_1 = arith.constant 0 : index
    %c0_2 = arith.constant 0 : index
    %1 = vector.load %arg2[%c0_1, %c0_2] : memref<896x896xbf16, #tpu.memory_space<vmem>>, vector<896x896xbf16>
    %cst = arith.constant dense<0.000000e+00> : vector<16x896xf32>
    %2 = tpu.matmul %0, %1, %cst {dimension_numbers = #tpu.dot_dimension_numbers<[1], [0], [0], [1], [0, 0, 1, 1], [], []>} : vector<16x896xbf16>, vector<896x896xbf16>, vector<16x896xf32> -> vector<16x896xf32>
    %c0_3 = arith.constant 0 : index
    %c0_4 = arith.constant 0 : index
    %3 = vector.load %arg3[%c0_3, %c0_4] : memref<1x896xf32, #tpu.memory_space<vmem>>, vector<1x896xf32>
    %4 = vector.broadcast %3 : vector<1x896xf32> to vector<16x896xf32>
    %5 = arith.addf %2, %4 : vector<16x896xf32>
    %cst_5 = arith.constant 0.000000e+00 : f32
    %6 = vector.broadcast %cst_5 : f32 to vector<16x896xf32>
    %7 = arith.maximumf %5, %6 : vector<16x896xf32>
    %8 = arith.truncf %7 : vector<16x896xf32> to vector<16x896xbf16>
    %c0_6 = arith.constant 0 : index
    %c0_7 = arith.constant 0 : index
    %9 = vector.load %arg4[%c0_6, %c0_7] : memref<896x1024xbf16, #tpu.memory_space<vmem>>, vector<896x1024xbf16>
    %cst_8 = arith.constant dense<0.000000e+00> : vector<16x1024xf32>
    %10 = tpu.matmul %8, %9, %cst_8 {dimension_numbers = #tpu.dot_dimension_numbers<[1], [0], [0], [1], [0, 0, 1, 1], [], []>} : vector<16x896xbf16>, vector<896x1024xbf16>, vector<16x1024xf32> -> vector<16x1024xf32>
    %c0_9 = arith.constant 0 : index
    %c0_10 = arith.constant 0 : index
    %11 = vector.load %arg5[%c0_9, %c0_10] : memref<1x1024xf32, #tpu.memory_space<vmem>>, vector<1x1024xf32>
    %12 = vector.broadcast %11 : vector<1x1024xf32> to vector<16x1024xf32>
    %13 = arith.addf %10, %12 : vector<16x1024xf32>
    %cst_11 = arith.constant 0.000000e+00 : f32
    %14 = vector.broadcast %cst_11 : f32 to vector<16x1024xf32>
    %15 = arith.maximumf %13, %14 : vector<16x1024xf32>
    %16 = arith.truncf %15 : vector<16x1024xf32> to vector<16x1024xbf16>
    %c0_12 = arith.constant 0 : index
    %c0_13 = arith.constant 0 : index
    %17 = vector.load %arg6[%c0_12, %c0_13] : memref<1024x20xbf16, #tpu.memory_space<vmem>>, vector<1024x20xbf16>
    %cst_14 = arith.constant dense<0.000000e+00> : vector<16x20xf32>
    %18 = tpu.matmul %16, %17, %cst_14 {dimension_numbers = #tpu.dot_dimension_numbers<[1], [0], [0], [1], [0, 0, 1, 1], [], []>} : vector<16x1024xbf16>, vector<1024x20xbf16>, vector<16x20xf32> -> vector<16x20xf32>
    %c0_15 = arith.constant 0 : index
    %c0_16 = arith.constant 0 : index
    %19 = vector.load %arg7[%c0_15, %c0_16] : memref<1x20xf32, #tpu.memory_space<vmem>>, vector<1x20xf32>
    %20 = vector.broadcast %19 : vector<1x20xf32> to vector<16x20xf32>
    %21 = arith.addf %18, %20 : vector<16x20xf32>
    %cst_17 = arith.constant 0.000000e+00 : f32
    %22 = vector.broadcast %cst_17 : f32 to vector<16x20xf32>
    %23 = arith.maximumf %21, %22 : vector<16x20xf32>
    %c0_18 = arith.constant 0 : index
    %c0_19 = arith.constant 0 : index
    %24 = vector.load %arg8[%c0_18, %c0_19] : memref<20x20xf32, #tpu.memory_space<vmem>>, vector<20x20xf32>
    %cst_20 = arith.constant dense<0.000000e+00> : vector<16x20xf32>
    %25 = tpu.matmul %23, %24, %cst_20 {dimension_numbers = #tpu.dot_dimension_numbers<[1], [0], [0], [1], [0, 0, 1, 1], [], []>} : vector<16x20xf32>, vector<20x20xf32>, vector<16x20xf32> -> vector<16x20xf32>
    %c0_21 = arith.constant 0 : index
    %c0_22 = arith.constant 0 : index
    %26 = vector.load %arg9[%c0_21, %c0_22] : memref<1x20xf32, #tpu.memory_space<vmem>>, vector<1x20xf32>
    %27 = vector.broadcast %26 : vector<1x20xf32> to vector<16x20xf32>
    %28 = arith.addf %25, %27 : vector<16x20xf32>
    %cst_23 = arith.constant 0.000000e+00 : f32
    %29 = vector.broadcast %cst_23 : f32 to vector<16x20xf32>
    %30 = arith.maximumf %28, %29 : vector<16x20xf32>
    %c0_24 = arith.constant 0 : index
    %c0_25 = arith.constant 0 : index
    %31 = vector.load %arg10[%c0_24, %c0_25] : memref<20x20xf32, #tpu.memory_space<vmem>>, vector<20x20xf32>
    %cst_26 = arith.constant dense<0.000000e+00> : vector<16x20xf32>
    %32 = tpu.matmul %30, %31, %cst_26 {dimension_numbers = #tpu.dot_dimension_numbers<[1], [0], [0], [1], [0, 0, 1, 1], [], []>} : vector<16x20xf32>, vector<20x20xf32>, vector<16x20xf32> -> vector<16x20xf32>
    %c0_27 = arith.constant 0 : index
    %c0_28 = arith.constant 0 : index
    %33 = vector.load %arg11[%c0_27, %c0_28] : memref<1x20xf32, #tpu.memory_space<vmem>>, vector<1x20xf32>
    %34 = vector.broadcast %33 : vector<1x20xf32> to vector<16x20xf32>
    %35 = arith.addf %32, %34 : vector<16x20xf32>
    %cst_29 = arith.constant 0.000000e+00 : f32
    %36 = vector.broadcast %cst_29 : f32 to vector<16x20xf32>
    %37 = arith.maximumf %35, %36 : vector<16x20xf32>
    %c0_30 = arith.constant 0 : index
    %c0_31 = arith.constant 0 : index
    %38 = vector.load %arg12[%c0_30, %c0_31] : memref<20x128xf32, #tpu.memory_space<vmem>>, vector<20x128xf32>
    %cst_32 = arith.constant dense<0.000000e+00> : vector<16x128xf32>
    %39 = tpu.matmul %37, %38, %cst_32 {dimension_numbers = #tpu.dot_dimension_numbers<[1], [0], [0], [1], [0, 0, 1, 1], [], []>} : vector<16x20xf32>, vector<20x128xf32>, vector<16x128xf32> -> vector<16x128xf32>
    %c0_33 = arith.constant 0 : index
    %c0_34 = arith.constant 0 : index
    %40 = vector.load %arg13[%c0_33, %c0_34] : memref<1x128xf32, #tpu.memory_space<vmem>>, vector<1x128xf32>
    %41 = vector.broadcast %40 : vector<1x128xf32> to vector<16x128xf32>
    %42 = arith.addf %39, %41 : vector<16x128xf32>
    %c0_35 = arith.constant 0 : index
    %c0_36 = arith.constant 0 : index
    %43 = vector.load %arg14[%c0_35, %c0_36] : memref<16x128xf32, #tpu.memory_space<vmem>>, vector<16x128xf32>
    tpu.vector_store %arg14[%c0_35, %c0_36], %42 {strides = array<i32>} : memref<16x128xf32, #tpu.memory_space<vmem>>, vector<16x128xf32>,
    return
  }
  func.func @transform_0(%arg0: i32) -> (i32, i32) {
    %c0_i32 = arith.constant 0 : i32
    %c0_i32_0 = arith.constant 0 : i32
    return %arg0, %c0_i32 : i32, i32
  }
  func.func @transform_1(%arg0: i32) -> (i32, i32) {
    %c0_i32 = arith.constant 0 : i32
    %c0_i32_0 = arith.constant 0 : i32
    %c0_i32_1 = arith.constant 0 : i32
    return %c0_i32, %c0_i32_0 : i32, i32
  }
  func.func @transform_2(%arg0: i32) -> (i32, i32) {
    %c0_i32 = arith.constant 0 : i32
    %c0_i32_0 = arith.constant 0 : i32
    %c0_i32_1 = arith.constant 0 : i32
    return %c0_i32, %c0_i32_0 : i32, i32
  }
  func.func @transform_3(%arg0: i32) -> (i32, i32) {
    %c0_i32 = arith.constant 0 : i32
    %c0_i32_0 = arith.constant 0 : i32
    %c0_i32_1 = arith.constant 0 : i32
    return %c0_i32, %c0_i32_0 : i32, i32
  }
  func.func @transform_4(%arg0: i32) -> (i32, i32) {
    %c0_i32 = arith.constant 0 : i32
    %c0_i32_0 = arith.constant 0 : i32
    %c0_i32_1 = arith.constant 0 : i32
    return %c0_i32, %c0_i32_0 : i32, i32
  }
  func.func @transform_5(%arg0: i32) -> (i32, i32) {
    %c0_i32 = arith.constant 0 : i32
    %c0_i32_0 = arith.constant 0 : i32
    %c0_i32_1 = arith.constant 0 : i32
    return %c0_i32, %c0_i32_0 : i32, i32
  }
  func.func @transform_6(%arg0: i32) -> (i32, i32) {
    %c0_i32 = arith.constant 0 : i32
    %c0_i32_0 = arith.constant 0 : i32
    %c0_i32_1 = arith.constant 0 : i32
    return %c0_i32, %c0_i32_0 : i32, i32
  }
  func.func @transform_7(%arg0: i32) -> (i32, i32) {
    %c0_i32 = arith.constant 0 : i32
    %c0_i32_0 = arith.constant 0 : i32
    %c0_i32_1 = arith.constant 0 : i32
    return %c0_i32, %c0_i32_0 : i32, i32
  }
  func.func @transform_8(%arg0: i32) -> (i32, i32) {
    %c0_i32 = arith.constant 0 : i32
    %c0_i32_0 = arith.constant 0 : i32
    %c0_i32_1 = arith.constant 0 : i32
    return %c0_i32, %c0_i32_0 : i32, i32
  }
  func.func @transform_9(%arg0: i32) -> (i32, i32) {
    %c0_i32 = arith.constant 0 : i32
    %c0_i32_0 = arith.constant 0 : i32
    %c0_i32_1 = arith.constant 0 : i32
    return %c0_i32, %c0_i32_0 : i32, i32
  }
  func.func @transform_10(%arg0: i32) -> (i32, i32) {
    %c0_i32 = arith.constant 0 : i32
    %c0_i32_0 = arith.constant 0 : i32
    %c0_i32_1 = arith.constant 0 : i32
    return %c0_i32, %c0_i32_0 : i32, i32
  }
  func.func @transform_11(%arg0: i32) -> (i32, i32) {
    %c0_i32 = arith.constant 0 : i32
    %c0_i32_0 = arith.constant 0 : i32
    %c0_i32_1 = arith.constant 0 : i32
    return %c0_i32, %c0_i32_0 : i32, i32
  }
  func.func @transform_12(%arg0: i32) -> (i32, i32) {
    %c0_i32 = arith.constant 0 : i32
    %c0_i32_0 = arith.constant 0 : i32
    %c0_i32_1 = arith.constant 0 : i32
    return %c0_i32, %c0_i32_0 : i32, i32
  }
  func.func @transform_13(%arg0: i32) -> (i32, i32) {
    %c0_i32 = arith.constant 0 : i32
    %c0_i32_0 = arith.constant 0 : i32
    return %arg0, %c0_i32 : i32, i32
  }
}

module attributes {stable_mosaic.version = 11 : i64} {
  func.func @_fc2_fused_kernel(%arg0: i32, %arg1: memref<16x896xbf16, #tpu.memory_space<vmem>>, %arg2: memref<896x896xbf16, #tpu.memory_space<vmem>>, %arg3: memref<1x896xf32, #tpu.memory_space<vmem>>, %arg4: memref<896x1024xbf16, #tpu.memory_space<vmem>>, %arg5: memref<1x1024xf32, #tpu.memory_space<vmem>>, %arg6: memref<1024x20xbf16, #tpu.memory_space<vmem>>, %arg7: memref<1x20xf32, #tpu.memory_space<vmem>>, %arg8: memref<20x20xf32, #tpu.memory_space<vmem>>, %arg9: memref<1x20xf32, #tpu.memory_space<vmem>>, %arg10: memref<20x20xf32, #tpu.memory_space<vmem>>, %arg11: memref<1x20xf32, #tpu.memory_space<vmem>>, %arg12: memref<20x128xf32, #tpu.memory_space<vmem>>, %arg13: memref<1x128xf32, #tpu.memory_space<vmem>>, %arg14: memref<16x128xf32, #tpu.memory_space<vmem>>) attributes {dimension_semantics = [#tpu.dimension_semantics<arbitrary>], iteration_bounds = array<i64: 1>, scalar_prefetch = 0 : i64, scratch_operands = 0 : i64, tpu.core_type = #tpu.core_type<tc>, window_params = [{transform_indices = @transform_0, window_bounds = array<i64: 16, 896>}, {pipeline_mode = #tpu.pipeline_mode<synchronous>, transform_indices = @transform_1, window_bounds = array<i64: 896, 896>}, {pipeline_mode = #tpu.pipeline_mode<synchronous>, transform_indices = @transform_2, window_bounds = array<i64: 1, 896>}, {pipeline_mode = #tpu.pipeline_mode<synchronous>, transform_indices = @transform_3, window_bounds = array<i64: 896, 1024>}, {pipeline_mode = #tpu.pipeline_mode<synchronous>, transform_indices = @transform_4, window_bounds = array<i64: 1, 1024>}, {pipeline_mode = #tpu.pipeline_mode<synchronous>, transform_indices = @transform_5, window_bounds = array<i64: 1024, 20>}, {pipeline_mode = #tpu.pipeline_mode<synchronous>, transform_indices = @transform_6, window_bounds = array<i64: 1, 20>}, {pipeline_mode = #tpu.pipeline_mode<synchronous>, transform_indices = @transform_7, window_bounds = array<i64: 20, 20>}, {pipeline_mode = #tpu.pipeline_mode<synchronous>, transform_indices = @transform_8, window_bounds = array<i64: 1, 20>}, {pipeline_mode = #tpu.pipeline_mode<synchronous>, transform_indices = @transform_9, window_bounds = array<i64: 20, 20>}, {pipeline_mode = #tpu.pipeline_mode<synchronous>, transform_indices = @transform_10, window_bounds = array<i64: 1, 20>}, {pipeline_mode = #tpu.pipeline_mode<synchronous>, transform_indices = @transform_11, window_bounds = array<i64: 20, 128>}, {pipeline_mode = #tpu.pipeline_mode<synchronous>, transform_indices = @transform_12, window_bounds = array<i64: 1, 128>}, {transform_indices = @transform_13, window_bounds = array<i64: 16, 128>}]} {
    %c0 = arith.constant 0 : index
    %c0_0 = arith.constant 0 : index
    %0 = vector.load %arg1[%c0, %c0_0] : memref<16x896xbf16, #tpu.memory_space<vmem>>, vector<16x896xbf16>
    %c0_1 = arith.constant 0 : index
    %c0_2 = arith.constant 0 : index
    %1 = vector.load %arg2[%c0_1, %c0_2] : memref<896x896xbf16, #tpu.memory_space<vmem>>, vector<896x896xbf16>
    %cst = arith.constant dense<0.000000e+00> : vector<16x896xf32>
    %2 = tpu.matmul %0, %1, %cst {dimension_numbers = #tpu.dot_dimension_numbers<[1], [0], [0], [1], [0, 0, 1, 1], [], []>} : vector<16x896xbf16>, vector<896x896xbf16>, vector<16x896xf32> -> vector<16x896xf32>
    %c0_3 = arith.constant 0 : index
    %c0_4 = arith.constant 0 : index
    %3 = vector.load %arg3[%c0_3, %c0_4] : memref<1x896xf32, #tpu.memory_space<vmem>>, vector<1x896xf32>
    %4 = vector.broadcast %3 : vector<1x896xf32> to vector<16x896xf32>
    %5 = arith.addf %2, %4 : vector<16x896xf32>
    %cst_5 = arith.constant 0.000000e+00 : f32
    %6 = vector.broadcast %cst_5 : f32 to vector<16x896xf32>
    %7 = arith.maximumf %5, %6 : vector<16x896xf32>
    %8 = arith.truncf %7 : vector<16x896xf32> to vector<16x896xbf16>
    %c0_6 = arith.constant 0 : index
    %c0_7 = arith.constant 0 : index
    %9 = vector.load %arg4[%c0_6, %c0_7] : memref<896x1024xbf16, #tpu.memory_space<vmem>>, vector<896x1024xbf16>
    %cst_8 = arith.constant dense<0.000000e+00> : vector<16x1024xf32>
    %10 = tpu.matmul %8, %9, %cst_8 {dimension_numbers = #tpu.dot_dimension_numbers<[1], [0], [0], [1], [0, 0, 1, 1], [], []>} : vector<16x896xbf16>, vector<896x1024xbf16>, vector<16x1024xf32> -> vector<16x1024xf32>
    %c0_9 = arith.constant 0 : index
    %c0_10 = arith.constant 0 : index
    %11 = vector.load %arg5[%c0_9, %c0_10] : memref<1x1024xf32, #tpu.memory_space<vmem>>, vector<1x1024xf32>
    %12 = vector.broadcast %11 : vector<1x1024xf32> to vector<16x1024xf32>
    %13 = arith.addf %10, %12 : vector<16x1024xf32>
    %cst_11 = arith.constant 0.000000e+00 : f32
    %14 = vector.broadcast %cst_11 : f32 to vector<16x1024xf32>
    %15 = arith.maximumf %13, %14 : vector<16x1024xf32>
    %16 = arith.truncf %15 : vector<16x1024xf32> to vector<16x1024xbf16>
    %c0_12 = arith.constant 0 : index
    %c0_13 = arith.constant 0 : index
    %17 = vector.load %arg6[%c0_12, %c0_13] : memref<1024x20xbf16, #tpu.memory_space<vmem>>, vector<1024x20xbf16>
    %cst_14 = arith.constant dense<0.000000e+00> : vector<16x20xf32>
    %18 = tpu.matmul %16, %17, %cst_14 {dimension_numbers = #tpu.dot_dimension_numbers<[1], [0], [0], [1], [0, 0, 1, 1], [], []>} : vector<16x1024xbf16>, vector<1024x20xbf16>, vector<16x20xf32> -> vector<16x20xf32>
    %c0_15 = arith.constant 0 : index
    %c0_16 = arith.constant 0 : index
    %19 = vector.load %arg7[%c0_15, %c0_16] : memref<1x20xf32, #tpu.memory_space<vmem>>, vector<1x20xf32>
    %20 = vector.broadcast %19 : vector<1x20xf32> to vector<16x20xf32>
    %21 = arith.addf %18, %20 : vector<16x20xf32>
    %cst_17 = arith.constant 0.000000e+00 : f32
    %22 = vector.broadcast %cst_17 : f32 to vector<16x20xf32>
    %23 = arith.maximumf %21, %22 : vector<16x20xf32>
    %c0_18 = arith.constant 0 : index
    %c0_19 = arith.constant 0 : index
    %24 = vector.load %arg8[%c0_18, %c0_19] : memref<20x20xf32, #tpu.memory_space<vmem>>, vector<20x20xf32>
    %cst_20 = arith.constant dense<0.000000e+00> : vector<16x20xf32>
    %25 = tpu.matmul %23, %24, %cst_20 {dimension_numbers = #tpu.dot_dimension_numbers<[1], [0], [0], [1], [0, 0, 1, 1], [], []>} : vector<16x20xf32>, vector<20x20xf32>, vector<16x20xf32> -> vector<16x20xf32>
    %c0_21 = arith.constant 0 : index
    %c0_22 = arith.constant 0 : index
    %26 = vector.load %arg9[%c0_21, %c0_22] : memref<1x20xf32, #tpu.memory_space<vmem>>, vector<1x20xf32>
    %27 = vector.broadcast %26 : vector<1x20xf32> to vector<16x20xf32>
    %28 = arith.addf %25, %27 : vector<16x20xf32>
    %cst_23 = arith.constant 0.000000e+00 : f32
    %29 = vector.broadcast %cst_23 : f32 to vector<16x20xf32>
    %30 = arith.maximumf %28, %29 : vector<16x20xf32>
    %c0_24 = arith.constant 0 : index
    %c0_25 = arith.constant 0 : index
    %31 = vector.load %arg10[%c0_24, %c0_25] : memref<20x20xf32, #tpu.memory_space<vmem>>, vector<20x20xf32>
    %cst_26 = arith.constant dense<0.000000e+00> : vector<16x20xf32>
    %32 = tpu.matmul %30, %31, %cst_26 {dimension_numbers = #tpu.dot_dimension_numbers<[1], [0], [0], [1], [0, 0, 1, 1], [], []>} : vector<16x20xf32>, vector<20x20xf32>, vector<16x20xf32> -> vector<16x20xf32>
    %c0_27 = arith.constant 0 : index
    %c0_28 = arith.constant 0 : index
    %33 = vector.load %arg11[%c0_27, %c0_28] : memref<1x20xf32, #tpu.memory_space<vmem>>, vector<1x20xf32>
    %34 = vector.broadcast %33 : vector<1x20xf32> to vector<16x20xf32>
    %35 = arith.addf %32, %34 : vector<16x20xf32>
    %cst_29 = arith.constant 0.000000e+00 : f32
    %36 = vector.broadcast %cst_29 : f32 to vector<16x20xf32>
    %37 = arith.maximumf %35, %36 : vector<16x20xf32>
    %c0_30 = arith.constant 0 : index
    %c0_31 = arith.constant 0 : index
    %38 = vector.load %arg12[%c0_30, %c0_31] : memref<20x128xf32, #tpu.memory_space<vmem>>, vector<20x128xf32>
    %cst_32 = arith.constant dense<0.000000e+00> : vector<16x128xf32>
    %39 = tpu.matmul %37, %38, %cst_32 {dimension_numbers = #tpu.dot_dimension_numbers<[1], [0], [0], [1], [0, 0, 1, 1], [], []>} : vector<16x20xf32>, vector<20x128xf32>, vector<16x128xf32> -> vector<16x128xf32>
    %c0_33 = arith.constant 0 : index
    %c0_34 = arith.constant 0 : index
    %40 = vector.load %arg13[%c0_33, %c0_34] : memref<1x128xf32, #tpu.memory_space<vmem>>, vector<1x128xf32>
    %41 = vector.broadcast %40 : vector<1x128xf32> to vector<16x128xf32>
    %42 = arith.addf %39, %41 : vector<16x128xf32>
    %c0_35 = arith.constant 0 : index
    %c0_36 = arith.constant 0 : index
    %43 = vector.load %arg14[%c0_35, %c0_36] : memref<16x128xf32, #tpu.memory_space<vmem>>, vector<16x128xf32>
    tpu.vector_store %arg14[%c0_35, %c0_36], %42 {strides = array<i32>} : memref<16x128xf32, #tpu.memory_space<vmem>>, vector<16x128xf32>,
    return
  }
  func.func @transform_0(%arg0: i32) -> (i32, i32) {
    %c0_i32 = arith.constant 0 : i32
    %c0_i32_0 = arith.constant 0 : i32
    return %arg0, %c0_i32 : i32, i32
  }
  func.func @transform_1(%arg0: i32) -> (i32, i32) {
    %c0_i32 = arith.constant 0 : i32
    %c0_i32_0 = arith.constant 0 : i32
    %c0_i32_1 = arith.constant 0 : i32
    return %c0_i32, %c0_i32_0 : i32, i32
  }
  func.func @transform_2(%arg0: i32) -> (i32, i32) {
    %c0_i32 = arith.constant 0 : i32
    %c0_i32_0 = arith.constant 0 : i32
    %c0_i32_1 = arith.constant 0 : i32
    return %c0_i32, %c0_i32_0 : i32, i32
  }
  func.func @transform_3(%arg0: i32) -> (i32, i32) {
    %c0_i32 = arith.constant 0 : i32
    %c0_i32_0 = arith.constant 0 : i32
    %c0_i32_1 = arith.constant 0 : i32
    return %c0_i32, %c0_i32_0 : i32, i32
  }
  func.func @transform_4(%arg0: i32) -> (i32, i32) {
    %c0_i32 = arith.constant 0 : i32
    %c0_i32_0 = arith.constant 0 : i32
    %c0_i32_1 = arith.constant 0 : i32
    return %c0_i32, %c0_i32_0 : i32, i32
  }
  func.func @transform_5(%arg0: i32) -> (i32, i32) {
    %c0_i32 = arith.constant 0 : i32
    %c0_i32_0 = arith.constant 0 : i32
    %c0_i32_1 = arith.constant 0 : i32
    return %c0_i32, %c0_i32_0 : i32, i32
  }
  func.func @transform_6(%arg0: i32) -> (i32, i32) {
    %c0_i32 = arith.constant 0 : i32
    %c0_i32_0 = arith.constant 0 : i32
    %c0_i32_1 = arith.constant 0 : i32
    return %c0_i32, %c0_i32_0 : i32, i32
  }
  func.func @transform_7(%arg0: i32) -> (i32, i32) {
    %c0_i32 = arith.constant 0 : i32
    %c0_i32_0 = arith.constant 0 : i32
    %c0_i32_1 = arith.constant 0 : i32
    return %c0_i32, %c0_i32_0 : i32, i32
  }
  func.func @transform_8(%arg0: i32) -> (i32, i32) {
    %c0_i32 = arith.constant 0 : i32
    %c0_i32_0 = arith.constant 0 : i32
    %c0_i32_1 = arith.constant 0 : i32
    return %c0_i32, %c0_i32_0 : i32, i32
  }
  func.func @transform_9(%arg0: i32) -> (i32, i32) {
    %c0_i32 = arith.constant 0 : i32
    %c0_i32_0 = arith.constant 0 : i32
    %c0_i32_1 = arith.constant 0 : i32
    return %c0_i32, %c0_i32_0 : i32, i32
  }
  func.func @transform_10(%arg0: i32) -> (i32, i32) {
    %c0_i32 = arith.constant 0 : i32
    %c0_i32_0 = arith.constant 0 : i32
    %c0_i32_1 = arith.constant 0 : i32
    return %c0_i32, %c0_i32_0 : i32, i32
  }
  func.func @transform_11(%arg0: i32) -> (i32, i32) {
    %c0_i32 = arith.constant 0 : i32
    %c0_i32_0 = arith.constant 0 : i32
    %c0_i32_1 = arith.constant 0 : i32
    return %c0_i32, %c0_i32_0 : i32, i32
  }
  func.func @transform_12(%arg0: i32) -> (i32, i32) {
    %c0_i32 = arith.constant 0 : i32
    %c0_i32_0 = arith.constant 0 : i32
    %c0_i32_1 = arith.constant 0 : i32
    return %c0_i32, %c0_i32_0 : i32, i32
  }
  func.func @transform_13(%arg0: i32) -> (i32, i32) {
    %c0_i32 = arith.constant 0 : i32
    %c0_i32_0 = arith.constant 0 : i32
    return %arg0, %c0_i32 : i32, i32
  }
}

</mosaic_0001>

<bundles_post_ra>
// kernel: _forward_impl.1
= control target key start
LH: loop header
LB: loop body
LE: loop exit
PB: predicated region body
PF: predicated region fallthrough
CT: control target
= control target key end

     0   :  { %18 = vsyncpa [#allocation3], 0  ;;  %s10564_s0 = inlined_call_operand.vmem [shape: bf16[16,896], index: 0, kind: input, shape index: {}]   ;;  %s10565_s1 = inlined_call_operand.hbm [shape: bf16[896,896], index: 1, kind: input, shape index: {}]   ;;  %s10566_s2 = inlined_call_operand.hbm [shape: f32[1,896], index: 2, kind: input, shape index: {}]   ;;  %s10567_s3 = inlined_call_operand.hbm [shape: bf16[896,1024], index: 3, kind: input, shape index: {}]   ;;  %s10568_s4 = inlined_call_operand.hbm [shape: f32[1,1024], index: 4, kind: input, shape index: {}]   ;;  %s10569_s5 = inlined_call_operand.vmem [shape: bf16[1024,20], index: 5, kind: input, shape index: {}]   ;;  %s10570_s6 = inlined_call_operand.hbm [shape: f32[1,20], index: 6, kind: input, shape index: {}]   ;;  %s10571_s7 = inlined_call_operand.hbm [shape: f32[20,20], index: 7, kind: input, shape index: {}]   ;;  %s10572_s8 = inlined_call_operand.hbm [shape: f32[1,20], index: 8, kind: input, shape index: {}]   ;;  %s10573_s9 = inlined_call_operand.hbm [shape: f32[20,20], index: 9, kind: input, shape index: {}]   ;;  %s10574_s10 = inlined_call_operand.hbm [shape: f32[1,20], index: 10, kind: input, shape index: {}]   ;;  %s10575_s11 = inlined_call_operand.hbm [shape: f32[20,128], index: 11, kind: input, shape index: {}]   ;;  %s10576_s12 = inlined_call_operand.hbm [shape: f32[1,128], index: 12, kind: input, shape index: {}]   ;;  %s10577_s13 = inlined_call_operand.vmem [shape: f32[16,128], index: 13, kind: output, shape index: {}]  }
   0x1   :  { %19 = vsyncpa [#allocation5], 0 }
   0x2   :  { %20 = vsyncpa [#allocation8], 0 }
   0x3   :  { %21 = vsyncpa [#allocation11], 0 }
   0x4   :  { %22 = vsyncpa [#allocation14], 0 }
   0x5   :  { %23 = vsyncpa [#allocation17], 0  ;;  %s9899_s25 = smov [#allocation4]   ;;  %s9900_s27 = smov [#allocation7]  }
   0x6   :  { %s44_s26 = sshll.u32 %s9899_s25, 4  ;;  %s66_s28 = sshll.u32 %s9900_s27, 4  ;;  %s45_s26 = int_to_ptr.vmem [resolvable:$true] %s44_s26  ;;  %s67_s28 = int_to_ptr.vmem [resolvable:$true] %s66_s28 }
   0x7   :  { %s9675_s29 = scalar_lea.vmem %s45_s26, 112  ;;  %s9679_s30 = scalar_lea.vmem %s45_s26, 128 }
   0x8   :  { %p9676_p0 = scmp.ne.s32.totalorder %s45_s26, %s9675_s29  ;;  %p9680_p1 = scmp.lt.s32.totalorder %s45_s26, %s45_s26 }
   0x9   :  { %p9681_p2 = scmp.lt.s32.totalorder %s9679_s30, %s9675_s29 }
   0xb   :  { %p9682_p3 = por %p9681_p2, %p9680_p1 }
   0xd   :  { %p9683_p4 = pnand %p9682_p3, %p9676_p0 }
   0xf   :  { %9686 = shalt.err (!%p9683_p4)
}
  0x10   :  { %47 = dma.hbm_to_vmem [thread:$0]  %s10566_s2, 112, %s45_s26, [#allocation5]  }
  0x11   :  { %s9695_s16 = scalar_lea.vmem %s67_s28, 128  ;;  %p9700_p6 = scmp.lt.s32.totalorder %s67_s28, %s67_s28 }
  0x12   :  { %p9696_p5 = scmp.ne.s32.totalorder %s67_s28, %s9695_s16  ;;  %p9701_p7 = scmp.lt.s32.totalorder %s9695_s16, %s9695_s16 }
  0x14   :  { %p9702_p8 = por %p9701_p7, %p9700_p6 }
  0x16   :  { %p9703_p9 = pnand %p9702_p8, %p9696_p5 }
  0x18   :  { %9706 = shalt.err (!%p9703_p9)
}
  0x19   :  { %69 = dma.hbm_to_vmem [thread:$0]  %s10568_s4, 128, %s67_s28, [#allocation8]  }
  0x1a   :  { %s9901_s19 = smov [#allocation10]  }
  0x1b   :  { %s87_s20 = sshll.u32 %s9901_s19, 4  ;;  %s88_s20 = int_to_ptr.vmem [resolvable:$true] %s87_s20 }
  0x1c   :  { %s9715_s21 = scalar_lea.vmem %s88_s20, 384  ;;  %p9720_p11 = scmp.lt.s32.totalorder %s88_s20, %s88_s20 }
  0x1d   :  { %p9716_p10 = scmp.ne.s32.totalorder %s88_s20, %s9715_s21  ;;  %p9721_p12 = scmp.lt.s32.totalorder %s9715_s21, %s9715_s21 }
  0x1f   :  { %p9722_p13 = por %p9721_p12, %p9720_p11 }
  0x21   :  { %p9723_p0 = pnand %p9722_p13, %p9716_p10 }
  0x23   :  { %9726 = shalt.err (!%p9723_p0)
}
  0x24   :  { %s9902_s2 = smov 128   ;;  %s9903_s22 = smov 8  }
  0x25   :  { %93 = dma.hbm_to_vmem [thread:$0]  %s10571_s7, 384, %s88_s20, [#allocation11], %s9902_s2, %s9902_s2, %s9903_s22  }
  0x26   :  { %s9904_s25 = smov [#allocation13]   ;;  %s9905_s4 = smov [#allocation16]  }
  0x27   :  { %s109_s26 = sshll.u32 %s9904_s25, 4  ;;  %s131_s27 = sshll.u32 %s9905_s4, 4  ;;  %s110_s26 = int_to_ptr.vmem [resolvable:$true] %s109_s26  ;;  %s132_s27 = int_to_ptr.vmem [resolvable:$true] %s131_s27 }
  0x28   :  { %s9735_s28 = scalar_lea.vmem %s110_s26, 384  ;;  %p9740_p2 = scmp.lt.s32.totalorder %s110_s26, %s110_s26 }
  0x29   :  { %p9736_p1 = scmp.ne.s32.totalorder %s110_s26, %s9735_s28  ;;  %p9741_p3 = scmp.lt.s32.totalorder %s9735_s28, %s9735_s28 }
  0x2b   :  { %p9742_p4 = por %p9741_p3, %p9740_p2 }
  0x2d   :  { %p9743_p5 = pnand %p9742_p4, %p9736_p1 }
  0x2f   :  { %9746 = shalt.err (!%p9743_p5)
}
  0x30   :  { %115 = dma.hbm_to_vmem [thread:$0]  %s10573_s9, 384, %s110_s26, [#allocation14], %s9902_s2, %s9902_s2, %s9903_s22  }
  0x31   :  { %s9755_s14 = scalar_lea.vmem %s132_s27, 384  ;;  %p9760_p7 = scmp.lt.s32.totalorder %s132_s27, %s132_s27 }
  0x32   :  { %p9756_p6 = scmp.ne.s32.totalorder %s132_s27, %s9755_s14  ;;  %p9761_p8 = scmp.lt.s32.totalorder %s9755_s14, %s9755_s14 }
  0x34   :  { %p9762_p9 = por %p9761_p8, %p9760_p7 }
  0x36   :  { %p9763_p10 = pnand %p9762_p9, %p9756_p6 }
  0x38   :  { %9766 = shalt.err (!%p9763_p10)
}
  0x39   :  { %137 = dma.hbm_to_vmem [thread:$0]  %s10575_s11, 384, %s132_s27, [#allocation17], %s9902_s2, %s9902_s2, %s9903_s22  }
  0x3a   :  { %s9906_s16 = smov [#allocation2]  }
  0x3b   :  { %s31_s17 = sshll.u32 %s9906_s16, 4  ;;  %s32_s17 = int_to_ptr.vmem [resolvable:$true] %s31_s17 }
  0x3c   :  { %s9775_s18 = scalar_lea.vmem %s32_s17, 50176  ;;  %p9780_p12 = scmp.lt.s32.totalorder %s32_s17, %s32_s17 }
  0x3d   :  { %p9776_p11 = scmp.ne.s32.totalorder %s32_s17, %s9775_s18  ;;  %p9781_p13 = scmp.lt.s32.totalorder %s9775_s18, %s9775_s18 }
  0x3f   :  { %p9782_p0 = por %p9781_p13, %p9780_p12 }
  0x41   :  { %p9783_p1 = pnand %p9782_p0, %p9776_p11 }
  0x43   :  { %9786 = shalt.err (!%p9783_p1)
}
  0x44   :  { %s9907_s9 = smov 448   ;;  %s9908_s19 = smov 28  }
  0x45   :  { %37 = dma.hbm_to_vmem [thread:$0]  %s10565_s1, 50176, %s32_s17, [#allocation3], %s9907_s9, %s9907_s9, %s9908_s19  }
  0x46   :  { %s9909_s23 = smov [#allocation6]  }
  0x47   :  { %s53_s24 = sshll.u32 %s9909_s23, 4  ;;  %s54_s24 = int_to_ptr.vmem [resolvable:$true] %s53_s24 }
  0x48   :  { %s9795_s11 = scalar_lea.vmem %s54_s24, 57344  ;;  %p9800_p3 = scmp.lt.s32.totalorder %s54_s24, %s54_s24 }
  0x49   :  { %p9796_p2 = scmp.ne.s32.totalorder %s54_s24, %s9795_s11  ;;  %p9801_p4 = scmp.lt.s32.totalorder %s9795_s11, %s9795_s11 }
  0x4b   :  { %p9802_p5 = por %p9801_p4, %p9800_p3 }
  0x4d   :  { %p9803_p6 = pnand %p9802_p5, %p9796_p2 }
  0x4f   :  { %9806 = shalt.err (!%p9803_p6)
}
  0x50   :  { %s9910_s2 = smov 512   ;;  %s9911_s22 = smov 32  }
  0x51   :  { %59 = dma.hbm_to_vmem [thread:$0]  %s10567_s3, 57344, %s54_s24, [#allocation5], %s9910_s2, %s9910_s2, %s9911_s22  }
  0x52   :  { %s9912_s4 = smov [#allocation9]   ;;  %s9913_s1 = smov [#allocation12]  }
  0x53   :  { %s78_s27 = sshll.u32 %s9912_s4, 4  ;;  %s100_s28 = sshll.u32 %s9913_s1, 4  ;;  %s79_s27 = int_to_ptr.vmem [resolvable:$true] %s78_s27  ;;  %s101_s28 = int_to_ptr.vmem [resolvable:$true] %s100_s28 }
  0x54   :  { %s9815_s29 = scalar_lea.vmem %s79_s27, 16  ;;  %s9819_s30 = scalar_lea.vmem %s79_s27, 32 }
  0x55   :  { %p9816_p7 = scmp.ne.s32.totalorder %s79_s27, %s9815_s29  ;;  %p9820_p8 = scmp.lt.s32.totalorder %s79_s27, %s79_s27 }
  0x56   :  { %p9821_p9 = scmp.lt.s32.totalorder %s9819_s30, %s9815_s29 }
  0x58   :  { %p9822_p10 = por %p9821_p9, %p9820_p8 }
  0x5a   :  { %p9823_p11 = pnand %p9822_p10, %p9816_p7 }
  0x5c   :  { %9826 = shalt.err (!%p9823_p11)
}
  0x5d   :  { %81 = dma.hbm_to_vmem [thread:$0]  %s10570_s6, 16, %s79_s27, [#allocation8]  }
  0x5e   :  { %s9835_s15 = scalar_lea.vmem %s101_s28, 16  ;;  %s9839_s3 = scalar_lea.vmem %s101_s28, 32 }
  0x5f   :  { %p9836_p12 = scmp.ne.s32.totalorder %s101_s28, %s9835_s15  ;;  %p9840_p13 = scmp.lt.s32.totalorder %s101_s28, %s101_s28 }
  0x60   :  { %p9841_p0 = scmp.lt.s32.totalorder %s9839_s3, %s9835_s15 }
  0x62   :  { %p9842_p1 = por %p9841_p0, %p9840_p13 }
  0x64   :  { %p9843_p2 = pnand %p9842_p1, %p9836_p12 }
  0x66   :  { %9846 = shalt.err (!%p9843_p2)
}
  0x67   :  { %103 = dma.hbm_to_vmem [thread:$0]  %s10572_s8, 16, %s101_s28, [#allocation11]  }
  0x68   :  { %s9914_s18 = smov [#allocation15]   ;;  %s9915_s19 = smov [#allocation18]  }
  0x69   :  { %s122_s9 = sshll.u32 %s9914_s18, 4  ;;  %s144_s20 = sshll.u32 %s9915_s19, 4  ;;  %s123_s9 = int_to_ptr.vmem [resolvable:$true] %s122_s9  ;;  %s145_s20 = int_to_ptr.vmem [resolvable:$true] %s144_s20 }
  0x6a   :  { %s9855_s21 = scalar_lea.vmem %s123_s9, 16  ;;  %s9859_s6 = scalar_lea.vmem %s123_s9, 32 }
  0x6b   :  { %p9856_p3 = scmp.ne.s32.totalorder %s123_s9, %s9855_s21  ;;  %p9860_p4 = scmp.lt.s32.totalorder %s123_s9, %s123_s9 }
  0x6c   :  { %p9861_p5 = scmp.lt.s32.totalorder %s9859_s6, %s9855_s21 }
  0x6e   :  { %p9862_p6 = por %p9861_p5, %p9860_p4 }
  0x70   :  { %p9863_p7 = pnand %p9862_p6, %p9856_p3 }
  0x72   :  { %9866 = shalt.err (!%p9863_p7)
}
  0x73   :  { %125 = dma.hbm_to_vmem [thread:$0]  %s10574_s10, 16, %s123_s9, [#allocation14]  }
  0x74   :  { %s9875_s11 = scalar_lea.vmem %s145_s20, 16  ;;  %s9879_s8 = scalar_lea.vmem %s145_s20, 32 }
  0x75   :  { %p9876_p8 = scmp.ne.s32.totalorder %s145_s20, %s9875_s11  ;;  %p9880_p9 = scmp.lt.s32.totalorder %s145_s20, %s145_s20 }
  0x76   :  { %p9881_p10 = scmp.lt.s32.totalorder %s9879_s8, %s9875_s11 }
  0x78   :  { %p9882_p11 = por %p9881_p10, %p9880_p9 }
  0x7a   :  { %p9883_p12 = pnand %p9882_p11, %p9876_p8 }
  0x7c   :  { %9886 = shalt.err (!%p9883_p12)
}
  0x7d   :  { %147 = dma.hbm_to_vmem [thread:$0]  %s10576_s12, 16, %s145_s20, [#allocation17]  }
  0x7e   :  { %9887 = dma.done.wait [#allocation3], 50176  }
  0x7f   :  { %9888 = vsyncadd [#allocation3], 4294917120 }
  0x80   :  { %9889 = dma.done.wait [#allocation5], 57456  }
  0x81   :  { %9890 = vsyncadd [#allocation5], 4294909840 }
  0x82   :  { %9891 = dma.done.wait [#allocation8], 144  }
  0x83   :  { %9892 = vsyncadd [#allocation8], 4294967152 }
  0x84   :  { %9893 = dma.done.wait [#allocation11], 400  }
  0x85   :  { %9894 = vsyncadd [#allocation11], 4294966896 }
  0x86   :  { %9895 = dma.done.wait [#allocation14], 400  }
  0x87   :  { %9896 = vsyncadd [#allocation14], 4294966896 }
  0x88   :  { %9897 = dma.done.wait [#allocation17], 400  }
  0x89   :  { %9898 = vsyncadd [#allocation17], 4294966896  ;;  %v9024_v0 = vld [vmem:[#allocation2 + $0x18c] ss:$28 sps:$4 sm:$0xff]   ;;  %v9030_v4 = vld [vmem:[#allocation2 + $0x154] ss:$28 sps:$4 sm:$0xff]  }
  0x8a   :  { %v9026_v1 = vld [vmem:[#allocation2 + $0x50c] ss:$28 sps:$4 sm:$0xff]   ;;  %2727 = vmatprep.subr.bf16.mxu0 %v9024_v0  ;;  %v9032_v5 = vld [vmem:[#allocation2 + $0x4d4] ss:$28 sps:$4 sm:$0xff]   ;;  %v9036_v8 = vld [vmem:[#allocation2 + $0x11c] ss:$28 sps:$4 sm:$0xff]  }
  0x8b   :  { %v9028_v2 = vld [vmem:[#allocation2 + $0x188] ss:$28 sps:$4 sm:$0xff]   ;;  %2770 = vmatprep.subr.bf16.mxu1 %v9026_v1  ;;  %v9034_v6 = vld [vmem:[#allocation2 + $0x150] ss:$28 sps:$4 sm:$0xff]   ;;  %v9038_v9 = vld [vmem:[#allocation2 + $0x49c] ss:$28 sps:$4 sm:$0xff]  }
  0x8c   :  { %v9029_v3 = vld [vmem:[#allocation2 + $0x508] ss:$28 sps:$4 sm:$0xff]   ;;  %2728 = vmatpush1.bf16.msra.mxu0 %v9028_v2  ;;  %v9035_v7 = vld [vmem:[#allocation2 + $0x4d0] ss:$28 sps:$4 sm:$0xff]   ;;  %v9040_v10 = vld [vmem:[#allocation2 + $0x118] ss:$28 sps:$4 sm:$0xff]  }
  0x8d   :  { %2771 = vmatpush1.bf16.msra.mxu1 %v9029_v3  ;;  %2729 = vmatprep.subr.bf16.mxu0 %v9030_v4  ;;  %v9041_v11 = vld [vmem:[#allocation2 + $0x498] ss:$28 sps:$4 sm:$0xff]   ;;  %v9042_v12 = vld [vmem:[#allocation2 + $0xe4] ss:$28 sps:$4 sm:$0xff]   ;;  %v9048_v16 = vld [vmem:[#allocation2 + $0xac] ss:$28 sps:$4 sm:$0xff]  }
  0x8e   :  { %2772 = vmatprep.subr.bf16.mxu1 %v9032_v5  ;;  %v9044_v13 = vld [vmem:[#allocation2 + $0x464] ss:$28 sps:$4 sm:$0xff]   ;;  %v9050_v17 = vld [vmem:[#allocation2 + $0x42c] ss:$28 sps:$4 sm:$0xff]   ;;  %v9054_v20 = vld [vmem:[#allocation2 + $0x74] ss:$28 sps:$4 sm:$0xff]  }
  0x8f   :  { %v9046_v14 = vld [vmem:[#allocation2 + $0xe0] ss:$28 sps:$4 sm:$0xff]   ;;  %v9052_v18 = vld [vmem:[#allocation2 + $0xa8] ss:$28 sps:$4 sm:$0xff]   ;;  %v9056_v21 = vld [vmem:[#allocation2 + $0x3f4] ss:$28 sps:$4 sm:$0xff]  }
  0x90   :  { %2730 = vmatpush1.bf16.msra.mxu0 %v9034_v6  ;;  %v9047_v15 = vld [vmem:[#allocation2 + $0x460] ss:$28 sps:$4 sm:$0xff]   ;;  %v9053_v19 = vld [vmem:[#allocation2 + $0x428] ss:$28 sps:$4 sm:$0xff]   ;;  %v9058_v22 = vld [vmem:[#allocation2 + $0x70] ss:$28 sps:$4 sm:$0xff]  }
  0x91   :  { %2773 = vmatpush1.bf16.msra.mxu1 %v9035_v7  ;;  %2731 = vmatprep.subr.bf16.mxu0 %v9036_v8  ;;  %v9059_v23 = vld [vmem:[#allocation2 + $0x3f0] ss:$28 sps:$4 sm:$0xff]   ;;  %v9060_v24 = vld [vmem:[#allocation2 + $0x3c] ss:$28 sps:$4 sm:$0xff]   ;;  %v9066_v28 = vld [vmem:[#allocation2 + $0x4] ss:$28 sps:$4 sm:$0xff]  }
  0x92   :  { %2774 = vmatprep.subr.bf16.mxu1 %v9038_v9  ;;  %v9062_v25 = vld [vmem:[#allocation2 + $0x3bc] ss:$28 sps:$4 sm:$0xff]   ;;  %v9068_v29 = vld [vmem:[#allocation2 + $0x384] ss:$28 sps:$4 sm:$0xff]   ;;  %v9072_v32 = vld [vmem:[#allocation2 + $0x34c] ss:$28 sps:$4 sm:$0xff]  }
  0x93   :  { %v9064_v26 = vld [vmem:[#allocation2 + $0x38] ss:$28 sps:$4 sm:$0xff]   ;;  %v9070_v30 = vld [vmem:[#allocation2] ss:$28 sps:$4 sm:$0xff]   ;;  %v9074_v33 = vld [vmem:[#allocation2 + $0x6cc] ss:$28 sps:$4 sm:$0xff]  }
  0x94   :  { %2732 = vmatpush1.bf16.msra.mxu0 %v9040_v10  ;;  %v9065_v27 = vld [vmem:[#allocation2 + $0x3b8] ss:$28 sps:$4 sm:$0xff]   ;;  %v9071_v31 = vld [vmem:[#allocation2 + $0x380] ss:$28 sps:$4 sm:$0xff]   ;;  %v9076_v34 = vld [vmem:[#allocation2 + $0x348] ss:$28 sps:$4 sm:$0xff]  }
  0x95   :  { %2775 = vmatpush1.bf16.msra.mxu1 %v9041_v11  ;;  %2733 = vmatprep.subr.bf16.mxu0 %v9042_v12  ;;  %v9077_v35 = vld [vmem:[#allocation2 + $0x6c8] ss:$28 sps:$4 sm:$0xff]   ;;  %v9078_v36 = vld [vmem:[#allocation2 + $0x314] ss:$28 sps:$4 sm:$0xff]   ;;  %v9084_v40 = vld [vmem:[#allocation2 + $0x2dc] ss:$28 sps:$4 sm:$0xff]  }
  0x96   :  { %2776 = vmatprep.subr.bf16.mxu1 %v9044_v13  ;;  %v9080_v37 = vld [vmem:[#allocation2 + $0x694] ss:$28 sps:$4 sm:$0xff]   ;;  %v9086_v41 = vld [vmem:[#allocation2 + $0x65c] ss:$28 sps:$4 sm:$0xff]   ;;  %v9090_v44 = vld [vmem:[#allocation2 + $0x2a4] ss:$28 sps:$4 sm:$0xff]  }
  0x97   :  { %v9082_v38 = vld [vmem:[#allocation2 + $0x310] ss:$28 sps:$4 sm:$0xff]   ;;  %v9088_v42 = vld [vmem:[#allocation2 + $0x2d8] ss:$28 sps:$4 sm:$0xff]   ;;  %v9092_v45 = vld [vmem:[#allocation2 + $0x624] ss:$28 sps:$4 sm:$0xff]  }
  0x98   :  { %2734 = vmatpush1.bf16.msra.mxu0 %v9046_v14  ;;  %v9083_v39 = vld [vmem:[#allocation2 + $0x690] ss:$28 sps:$4 sm:$0xff]   ;;  %v9089_v43 = vld [vmem:[#allocation2 + $0x658] ss:$28 sps:$4 sm:$0xff]   ;;  %v9094_v46 = vld [vmem:[#allocation2 + $0x2a0] ss:$28 sps:$4 sm:$0xff]  }
  0x99   :  { %2777 = vmatpush1.bf16.msra.mxu1 %v9047_v15  ;;  %2735 = vmatprep.subr.bf16.mxu0 %v9048_v16  ;;  %v9095_v47 = vld [vmem:[#allocation2 + $0x620] ss:$28 sps:$4 sm:$0xff]   ;;  %v9096_v48 = vld [vmem:[#allocation2 + $0x26c] ss:$28 sps:$4 sm:$0xff]   ;;  %v9102_v54 = vld [vmem:[#allocation2 + $0x234] ss:$28 sps:$4 sm:$0xff]  }
  0x9a   :  { %2778 = vmatprep.subr.bf16.mxu1 %v9050_v17  ;;  %v10025_v49 = vld [vmem:[%s10564_s0 + $0x4] ss:$28 sps:$4 sm:$0xff]   ;;  %v10030_v50 = vld [vmem:[%s10564_s0 + $0xc] ss:$28 sps:$4 sm:$0xff]   ;;  %v9104_v55 = vld [vmem:[#allocation2 + $0x5b4] ss:$28 sps:$4 sm:$0xff]  }
  0x9b   :  { %v9098_v51 = vld [vmem:[#allocation2 + $0x5ec] ss:$28 sps:$4 sm:$0xff]   ;;  %2759 = vmatprep.mubr.bf16.mxu0 %v10025_v49  ;;  %2802 = vmatprep.mubr.bf16.mxu1 %v10030_v50  ;;  %v9108_v58 = vld [vmem:[#allocation2 + $0x1fc] ss:$28 sps:$4 sm:$0xff]   ;;  %v9114_v62 = vld [vmem:[#allocation2 + $0x1c4] ss:$28 sps:$4 sm:$0xff]  }
  0x9c   :  { %2736 = vmatpush1.bf16.msra.mxu0 %v9052_v18  ;;  %v9100_v52 = vld [vmem:[#allocation2 + $0x268] ss:$28 sps:$4 sm:$0xff]   ;;  %v9106_v56 = vld [vmem:[#allocation2 + $0x230] ss:$28 sps:$4 sm:$0xff]   ;;  %v9110_v59 = vld [vmem:[#allocation2 + $0x57c] ss:$28 sps:$4 sm:$0xff]  }
  0x9d   :  { %2779 = vmatpush1.bf16.msra.mxu1 %v9053_v19  ;;  %2737 = vmatprep.subr.bf16.mxu0 %v9054_v20  ;;  %v9101_v53 = vld [vmem:[#allocation2 + $0x5e8] ss:$28 sps:$4 sm:$0xff]   ;;  %v9107_v57 = vld [vmem:[#allocation2 + $0x5b0] ss:$28 sps:$4 sm:$0xff]   ;;  %v9112_v60 = vld [vmem:[#allocation2 + $0x1f8] ss:$28 sps:$4 sm:$0xff]  }
  0x9e   :  { %2780 = vmatprep.subr.bf16.mxu1 %v9056_v21  ;;  %v9113_v61 = vld [vmem:[#allocation2 + $0x578] ss:$28 sps:$4 sm:$0xff]   ;;  %v9116_v63 = vld [vmem:[#allocation2 + $0x544] ss:$28 sps:$4 sm:$0xff]   ;;  %v9127_v2 = vld [vmem:[#allocation2 + $0x88c] ss:$28 sps:$4 sm:$0xff]  }
  0x9f   :  { %v9118_v0 = vld [vmem:[#allocation2 + $0x1c0] ss:$28 sps:$4 sm:$0xff]   ;;  %v9130_v3 = vld [vmem:[#allocation2 + $0xc0c] ss:$28 sps:$4 sm:$0xff]   ;;  %v9134_v8 = vld [vmem:[#allocation2 + $0x854] ss:$28 sps:$4 sm:$0xff]  }
  0xa0   :  { %2738 = vmatpush1.bf16.msra.mxu0 %v9058_v22  ;;  %v9119_v1 = vld [vmem:[#allocation2 + $0x540] ss:$28 sps:$4 sm:$0xff]   ;;  %v9125_v5 = vld [vmem:[#allocation2 + $0x888] ss:$28 sps:$4 sm:$0xff]   ;;  %v9137_v9 = vld [vmem:[#allocation2 + $0xbd4] ss:$28 sps:$4 sm:$0xff]  }
  0xa1   :  { %2781 = vmatpush1.bf16.msra.mxu1 %v9059_v23  ;;  %2739 = vmatprep.subr.bf16.mxu0 %v9060_v24  ;;  %v10037_v4 = vld [vmem:[%s10564_s0] ss:$28 sps:$4 sm:$0xff]   ;;  %v9128_v6 = vld [vmem:[#allocation2 + $0xc08] ss:$28 sps:$4 sm:$0xff]   ;;  %v9132_v10 = vld [vmem:[#allocation2 + $0x850] ss:$28 sps:$4 sm:$0xff]  }
  0xa2   :  { %2782 = vmatprep.subr.bf16.mxu1 %v9062_v25  ;;  %v10042_v7 = vld [vmem:[%s10564_s0 + $0x8] ss:$28 sps:$4 sm:$0xff]   ;;  %v9135_v11 = vld [vmem:[#allocation2 + $0xbd0] ss:$28 sps:$4 sm:$0xff]   ;;  %v9140_v12 = vld [vmem:[#allocation2 + $0x81c] ss:$28 sps:$4 sm:$0xff]  }
  0xa3   :  { %v9143_v13 = vld [vmem:[#allocation2 + $0xb9c] ss:$28 sps:$4 sm:$0xff]   ;;  %v9916_v14 = vmov 0   ;;  %v9146_v17 = vld [vmem:[#allocation2 + $0x7e4] ss:$28 sps:$4 sm:$0xff]   ;;  %vm9918_vm0 = vmmov 0  }
  0xa4   :  { %2740 = vmatpush1.bf16.msra.mxu0 %v9064_v26  ;;  %v9138_v15 = vld [vmem:[#allocation2 + $0x818] ss:$28 sps:$4 sm:$0xff]   ;;  %v9149_v18 = vld [vmem:[#allocation2 + $0xb64] ss:$28 sps:$4 sm:$0xff]   ;;  %v9152_v21 = vld [vmem:[#allocation2 + $0x7ac] ss:$28 sps:$4 sm:$0xff]  }
  0xa5   :  { %2783 = vmatpush1.bf16.msra.mxu1 %v9065_v27  ;;  %2741 = vmatprep.subr.bf16.mxu0 %v9066_v28  ;;  %v9141_v16 = vld [vmem:[#allocation2 + $0xb98] ss:$28 sps:$4 sm:$0xff]   ;;  %v9144_v19 = vld [vmem:[#allocation2 + $0x7e0] ss:$28 sps:$4 sm:$0xff]   ;;  %v9155_v22 = vld [vmem:[#allocation2 + $0xb2c] ss:$28 sps:$4 sm:$0xff]  }
  0xa6   :  { %2784 = vmatprep.subr.bf16.mxu1 %v9068_v29  ;;  %v9147_v20 = vld [vmem:[#allocation2 + $0xb60] ss:$28 sps:$4 sm:$0xff]   ;;  %v9150_v23 = vld [vmem:[#allocation2 + $0x7a8] ss:$28 sps:$4 sm:$0xff]   ;;  %v9158_v25 = vld [vmem:[#allocation2 + $0x774] ss:$28 sps:$4 sm:$0xff]  }
  0xa7   :  { %v9153_v24 = vld [vmem:[#allocation2 + $0xb28] ss:$28 sps:$4 sm:$0xff]   ;;  %v9161_v26 = vld [vmem:[#allocation2 + $0xaf4] ss:$28 sps:$4 sm:$0xff]   ;;  %v9164_v29 = vld [vmem:[#allocation2 + $0x73c] ss:$28 sps:$4 sm:$0xff]  }
  0xa8   :  { %2742 = vmatpush1.bf16.msra.mxu0 %v9070_v30  ;;  %v9156_v27 = vld [vmem:[#allocation2 + $0x770] ss:$28 sps:$4 sm:$0xff]   ;;  %v9167_v30 = vld [vmem:[#allocation2 + $0xabc] ss:$28 sps:$4 sm:$0xff]   ;;  %vm7572_vm1 = vcmask 1043456   ;;  %vm7565_vm2 = vcmask 162816  }
  0xa9   :  { %2785 = vmatpush1.bf16.msra.mxu1 %v9071_v31  ;;  %2743 = vmatprep.subr.bf16.mxu0 %v9072_v32  ;;  %v9159_v28 = vld [vmem:[#allocation2 + $0xaf0] ss:$28 sps:$4 sm:$0xff]   ;;  %v9162_v31 = vld [vmem:[#allocation2 + $0x738] ss:$28 sps:$4 sm:$0xff]  }
  0xaa   :  { %2786 = vmatprep.subr.bf16.mxu1 %v9074_v33  ;;  %v9165_v32 = vld [vmem:[#allocation2 + $0xab8] ss:$28 sps:$4 sm:$0xff]   ;;  %v9170_v33 = vld [vmem:[#allocation2 + $0x704] ss:$28 sps:$4 sm:$0xff]  }
  0xac   :  { %2744 = vmatpush2.bf16.msra.mxu0 %v9076_v34  ;;  %v9173_v34 = vld [vmem:[#allocation2 + $0xa84] ss:$28 sps:$4 sm:$0xff]  }
  0xad   :  { %2787 = vmatpush2.bf16.msra.mxu1 %v9077_v35  ;;  %2745 = vmatprep.subr.bf16.mxu0 %v9078_v36  ;;  %v10050_v35 = vld [vmem:[%s10564_s0 + $0x14] ss:$28 sps:$4 sm:$0xff]   ;;  %v9168_v36 = vld [vmem:[#allocation2 + $0x700] ss:$28 sps:$4 sm:$0xff]  }
  0xae   :  { %2788 = vmatprep.subr.bf16.mxu1 %v9080_v37  ;;  %v9171_v37 = vld [vmem:[#allocation2 + $0xa80] ss:$28 sps:$4 sm:$0xff]  }
  0xb0   :  { %2746 = vmatpush2.bf16.msra.mxu0 %v9082_v38  ;;  %v9176_v38 = vld [vmem:[#allocation2 + $0xa4c] ss:$28 sps:$4 sm:$0xff]  }
  0xb1   :  { %2789 = vmatpush2.bf16.msra.mxu1 %v9083_v39  ;;  %2747 = vmatprep.subr.bf16.mxu0 %v9084_v40  ;;  %v9179_v39 = vld [vmem:[#allocation2 + $0x194] ss:$28 sps:$4 sm:$0xff]   ;;  %v9174_v40 = vld [vmem:[#allocation2 + $0xa48] ss:$28 sps:$4 sm:$0xff]  }
  0xb2   :  { %2790 = vmatprep.subr.bf16.mxu1 %v9086_v41  ;;  %v10056_v41 = vld [vmem:[%s10564_s0 + $0x18] ss:$28 sps:$4 sm:$0xff]  }
  0xb4   :  { %2748 = vmatpush2.bf16.msra.mxu0 %v9088_v42  ;;  %v9177_v42 = vld [vmem:[#allocation2 + $0x190] ss:$28 sps:$4 sm:$0xff]  }
  0xb5   :  { %2791 = vmatpush2.bf16.msra.mxu1 %v9089_v43  ;;  %2749 = vmatprep.subr.bf16.mxu0 %v9090_v44  ;;  %v9183_v43 = vld [vmem:[#allocation2 + $0xa14] ss:$28 sps:$4 sm:$0xff]   ;;  %v9186_v44 = vld [vmem:[#allocation2 + $0x15c] ss:$28 sps:$4 sm:$0xff]  }
  0xb6   :  { %2792 = vmatprep.subr.bf16.mxu1 %v9092_v45  ;;  %v9181_v45 = vld [vmem:[#allocation2 + $0xa10] ss:$28 sps:$4 sm:$0xff]  }
  0xb8   :  { %2750 = vmatpush2.bf16.msra.mxu0 %v9094_v46  ;;  %v9184_v46 = vld [vmem:[#allocation2 + $0x158] ss:$28 sps:$4 sm:$0xff]  }
  0xb9   :  { %2793 = vmatpush2.bf16.msra.mxu1 %v9095_v47  ;;  %2751 = vmatprep.subr.bf16.mxu0 %v9096_v48  ;;  %v9189_v47 = vld [vmem:[#allocation2 + $0x9dc] ss:$28 sps:$4 sm:$0xff]   ;;  %v9192_v48 = vld [vmem:[#allocation2 + $0x124] ss:$28 sps:$4 sm:$0xff]  }
  0xba   :  { %2794 = vmatprep.subr.bf16.mxu1 %v9098_v51  ;;  %v9187_v51 = vld [vmem:[#allocation2 + $0x9d8] ss:$28 sps:$4 sm:$0xff]  }
  0xbc   :  { %2752 = vmatpush2.bf16.msra.mxu0 %v9100_v52  ;;  %v9190_v52 = vld [vmem:[#allocation2 + $0x120] ss:$28 sps:$4 sm:$0xff]  }
  0xbd   :  { %2795 = vmatpush2.bf16.msra.mxu1 %v9101_v53  ;;  %2753 = vmatprep.subr.bf16.mxu0 %v9102_v54  ;;  %v9195_v53 = vld [vmem:[#allocation2 + $0x9a4] ss:$28 sps:$4 sm:$0xff]   ;;  %v9198_v54 = vld [vmem:[#allocation2 + $0xec] ss:$28 sps:$4 sm:$0xff]  }
  0xbe   :  { %2796 = vmatprep.subr.bf16.mxu1 %v9104_v55  ;;  %v9193_v55 = vld [vmem:[#allocation2 + $0x9a0] ss:$28 sps:$4 sm:$0xff]  }
  0xc0   :  { %2754 = vmatpush2.bf16.msra.mxu0 %v9106_v56  ;;  %v9196_v56 = vld [vmem:[#allocation2 + $0xe8] ss:$28 sps:$4 sm:$0xff]  }
  0xc1   :  { %2797 = vmatpush2.bf16.msra.mxu1 %v9107_v57  ;;  %2755 = vmatprep.subr.bf16.mxu0 %v9108_v58  ;;  %v9201_v57 = vld [vmem:[#allocation2 + $0x96c] ss:$28 sps:$4 sm:$0xff]   ;;  %v9204_v58 = vld [vmem:[#allocation2 + $0xb4] ss:$28 sps:$4 sm:$0xff]  }
  0xc2   :  { %2798 = vmatprep.subr.bf16.mxu1 %v9110_v59  ;;  %v9199_v59 = vld [vmem:[#allocation2 + $0x968] ss:$28 sps:$4 sm:$0xff]  }
  0xc4   :  { %2756 = vmatpush2.bf16.msra.mxu0 %v9112_v60  ;;  %v9207_v60 = vld [vmem:[#allocation2 + $0x934] ss:$28 sps:$4 sm:$0xff]  }
  0xc5   :  { %2799 = vmatpush2.bf16.msra.mxu1 %v9113_v61  ;;  %2757 = vmatprep.subr.bf16.mxu0 %v9114_v62  ;;  %v9210_v61 = vld [vmem:[#allocation2 + $0x7c] ss:$28 sps:$4 sm:$0xff]   ;;  %v9205_v62 = vld [vmem:[#allocation2 + $0x930] ss:$28 sps:$4 sm:$0xff]  }
  0xc6   :  { %2800 = vmatprep.subr.bf16.mxu1 %v9116_v63  ;;  %v9208_v63 = vld [vmem:[#allocation2 + $0x78] ss:$28 sps:$4 sm:$0xff]  }
  0xc8   :  { %2758 = vmatpush2.bf16.msra.mxu0 %v9118_v0  ;;  %v9213_v0 = vld [vmem:[#allocation2 + $0x8fc] ss:$28 sps:$4 sm:$0xff]  }
  0xc9   :  { %2801 = vmatpush2.bf16.msra.mxu1 %v9119_v1  ;;  %2813 = vmatprep.subr.bf16.mxu0 %v9127_v2  ;;  %v9216_v1 = vld [vmem:[#allocation2 + $0x44] ss:$28 sps:$4 sm:$0xff]   ;;  %v9211_v2 = vld [vmem:[#allocation2 + $0x8f8] ss:$28 sps:$4 sm:$0xff]  }
  0xca   :  { %2856 = vmatprep.subr.bf16.mxu1 %v9130_v3  ;;  %v9214_v3 = vld [vmem:[#allocation2 + $0x40] ss:$28 sps:$4 sm:$0xff]  }
  0xcb   :  { %2760 = vmatmul.mubr.bf16.vlgmr.msra.gmra.mxu0 %v10037_v4 }
  0xcc   :  { %2803 = vmatmul.mubr.bf16.vlgmr.msra.gmra.mxu1 %v10042_v7  ;;  %2814 = vmatpush1.bf16.msra.mxu0 %v9125_v5  ;;  %v9219_v5 = vld [vmem:[#allocation2 + $0x8c4] ss:$28 sps:$4 sm:$0xff]  }
  0xcd   :  { %2857 = vmatpush1.bf16.msra.mxu1 %v9128_v6  ;;  %2815 = vmatprep.subr.bf16.mxu0 %v9134_v8  ;;  %v9222_v6 = vld [vmem:[#allocation2 + $0xc] ss:$28 sps:$4 sm:$0xff]   ;;  %v9217_v8 = vld [vmem:[#allocation2 + $0x8c0] ss:$28 sps:$4 sm:$0xff]  }
  0xce   :  { %2858 = vmatprep.subr.bf16.mxu1 %v9137_v9  ;;  %2888 = vmatprep.mubr.bf16.mxu1 %v9916_v14  ;;  %v9220_v9 = vld [vmem:[#allocation2 + $0x8] ss:$28 sps:$4 sm:$0xff]  }
  0xcf   :  { %2845 = vmatprep.mubr.bf16.mxu0 %v10050_v35 }
  0xd0   :  { %2816 = vmatpush1.bf16.msra.mxu0 %v9132_v10  ;;  %v9228_v10 = vld [vmem:[#allocation2 + $0x354] ss:$28 sps:$4 sm:$0xff]  }
  0xd1   :  { %2859 = vmatpush1.bf16.msra.mxu1 %v9135_v11  ;;  %2817 = vmatprep.subr.bf16.mxu0 %v9140_v12  ;;  %v9231_v11 = vld [vmem:[#allocation2 + $0x514] ss:$28 sps:$4 sm:$0xff]  }
  0xd2   :  { %2860 = vmatprep.subr.bf16.mxu1 %v9143_v13  ;;  %v10063_v12 = vld [vmem:[%s10564_s0 + $0x10] ss:$28 sps:$4 sm:$0xff]  }
  0xd3   :  { %v9226_v13 = vld [vmem:[#allocation2 + $0x350] ss:$28 sps:$4 sm:$0xff]  }
  0xd4   :  { %2818 = vmatpush1.bf16.msra.mxu0 %v9138_v15  ;;  %v9229_v15 = vld [vmem:[#allocation2 + $0x510] ss:$28 sps:$4 sm:$0xff]  }
  0xd5   :  { %2861 = vmatpush1.bf16.msra.mxu1 %v9141_v16  ;;  %2819 = vmatprep.subr.bf16.mxu0 %v9146_v17  ;;  %v9234_v16 = vld [vmem:[#allocation2 + $0x31c] ss:$28 sps:$4 sm:$0xff]  }
  0xd6   :  { %2862 = vmatprep.subr.bf16.mxu1 %v9149_v18  ;;  %v9237_v17 = vld [vmem:[#allocation2 + $0x4dc] ss:$28 sps:$4 sm:$0xff]  }
  0xd7   :  { %v9232_v18 = vld [vmem:[#allocation2 + $0x318] ss:$28 sps:$4 sm:$0xff]  }
  0xd8   :  { %2820 = vmatpush1.bf16.msra.mxu0 %v9144_v19  ;;  %v9235_v19 = vld [vmem:[#allocation2 + $0x4d8] ss:$28 sps:$4 sm:$0xff]  }
  0xd9   :  { %2863 = vmatpush1.bf16.msra.mxu1 %v9147_v20  ;;  %2821 = vmatprep.subr.bf16.mxu0 %v9152_v21  ;;  %v9240_v20 = vld [vmem:[#allocation2 + $0x2e4] ss:$28 sps:$4 sm:$0xff]  }
  0xda   :  { %2864 = vmatprep.subr.bf16.mxu1 %v9155_v22  ;;  %v9243_v21 = vld [vmem:[#allocation2 + $0x4a4] ss:$28 sps:$4 sm:$0xff]  }
  0xdb   :  { %v9238_v22 = vld [vmem:[#allocation2 + $0x2e0] ss:$28 sps:$4 sm:$0xff]  }
  0xdc   :  { %2822 = vmatpush1.bf16.msra.mxu0 %v9150_v23  ;;  %v9241_v23 = vld [vmem:[#allocation2 + $0x4a0] ss:$28 sps:$4 sm:$0xff]  }
  0xdd   :  { %2865 = vmatpush1.bf16.msra.mxu1 %v9153_v24  ;;  %2823 = vmatprep.subr.bf16.mxu0 %v9158_v25  ;;  %v9246_v24 = vld [vmem:[#allocation2 + $0x2ac] ss:$28 sps:$4 sm:$0xff]  }
  0xde   :  { %2866 = vmatprep.subr.bf16.mxu1 %v9161_v26  ;;  %v9249_v25 = vld [vmem:[#allocation2 + $0x46c] ss:$28 sps:$4 sm:$0xff]  }
  0xdf   :  { %v9244_v26 = vld [vmem:[#allocation2 + $0x2a8] ss:$28 sps:$4 sm:$0xff]  }
  0xe0   :  { %2824 = vmatpush1.bf16.msra.mxu0 %v9156_v27  ;;  %v9247_v27 = vld [vmem:[#allocation2 + $0x468] ss:$28 sps:$4 sm:$0xff]  }
  0xe1   :  { %2867 = vmatpush1.bf16.msra.mxu1 %v9159_v28  ;;  %2825 = vmatprep.subr.bf16.mxu0 %v9164_v29  ;;  %v9252_v28 = vld [vmem:[#allocation2 + $0x274] ss:$28 sps:$4 sm:$0xff]  }
  0xe2   :  { %2868 = vmatprep.subr.bf16.mxu1 %v9167_v30  ;;  %v9255_v29 = vld [vmem:[#allocation2 + $0x434] ss:$28 sps:$4 sm:$0xff]  }
  0xe3   :  { %v9250_v30 = vld [vmem:[#allocation2 + $0x270] ss:$28 sps:$4 sm:$0xff]  }
  0xe4   :  { %2826 = vmatpush1.bf16.msra.mxu0 %v9162_v31  ;;  %v9258_v31 = vld [vmem:[#allocation2 + $0x23c] ss:$28 sps:$4 sm:$0xff]  }
  0xe5   :  { %2869 = vmatpush1.bf16.msra.mxu1 %v9165_v32  ;;  %2827 = vmatprep.subr.bf16.mxu0 %v9170_v33  ;;  %v9261_v32 = vld [vmem:[#allocation2 + $0x3fc] ss:$28 sps:$4 sm:$0xff]  }
  0xe6   :  { %2870 = vmatprep.subr.bf16.mxu1 %v9173_v34  ;;  %v9256_v33 = vld [vmem:[#allocation2 + $0x238] ss:$28 sps:$4 sm:$0xff]  }
  0xe7   :  { %v9259_v34 = vld [vmem:[#allocation2 + $0x3f8] ss:$28 sps:$4 sm:$0xff]  }
  0xe8   :  { %2828 = vmatpush1.bf16.msra.mxu0 %v9168_v36  ;;  %v9264_v36 = vld [vmem:[#allocation2 + $0x204] ss:$28 sps:$4 sm:$0xff]  }
  0xe9   :  { %2871 = vmatpush1.bf16.msra.mxu1 %v9171_v37  ;;  %2829 = vmatprep.subr.bf16.mxu0 %v9176_v38  ;;  %v9267_v37 = vld [vmem:[#allocation2 + $0x3c4] ss:$28 sps:$4 sm:$0xff]  }
  0xea   :  { %2899 = vmatprep.subr.bf16.mxu1 %v9179_v39  ;;  %v9262_v38 = vld [vmem:[#allocation2 + $0x200] ss:$28 sps:$4 sm:$0xff]  }
  0xeb   :  { %v9265_v39 = vld [vmem:[#allocation2 + $0x3c0] ss:$28 sps:$4 sm:$0xff]  }
  0xec   :  { %2889 = vmatmul.mubr.bf16.vlgmr.msra.gmra.mxu1 %v10056_v41  ;;  %2830 = vmatpush2.bf16.msra.mxu0 %v9174_v40  ;;  %v9270_v40 = vld [vmem:[#allocation2 + $0x1cc] ss:$28 sps:$4 sm:$0xff]  }
  0xed   :  { %2900 = vmatpush1.bf16.msra.mxu1 %v9177_v42  ;;  %2831 = vmatprep.subr.bf16.mxu0 %v9183_v43  ;;  %v9273_v42 = vld [vmem:[#allocation2 + $0x38c] ss:$28 sps:$4 sm:$0xff]  }
  0xee   :  { %2901 = vmatprep.subr.bf16.mxu1 %v9186_v44  ;;  %2931 = vmatprep.mubr.bf16.mxu1 %v10025_v49  ;;  %v9202_v49 = vld [vmem:[#allocation2 + $0xb0] ss:$28 sps:$4 sm:$0xff]   ;;  %v9268_v43 = vld [vmem:[#allocation2 + $0x1c8] ss:$28 sps:$4 sm:$0xff]  }
  0xef   :  { %v9271_v44 = vld [vmem:[#allocation2 + $0x388] ss:$28 sps:$4 sm:$0xff]  }
  0xf0   :  { %2832 = vmatpush2.bf16.msra.mxu0 %v9181_v45  ;;  %v9276_v45 = vld [vmem:[#allocation2 + $0x6d4] ss:$28 sps:$4 sm:$0xff]  }
  0xf1   :  { %2902 = vmatpush1.bf16.msra.mxu1 %v9184_v46  ;;  %2833 = vmatprep.subr.bf16.mxu0 %v9189_v47  ;;  %v9279_v46 = vld [vmem:[#allocation2 + $0x894] ss:$28 sps:$4 sm:$0xff]  }
  0xf2   :  { %2903 = vmatprep.subr.bf16.mxu1 %v9192_v48  ;;  %v9274_v47 = vld [vmem:[#allocation2 + $0x6d0] ss:$28 sps:$4 sm:$0xff]  }
  0xf3   :  { %v9277_v48 = vld [vmem:[#allocation2 + $0x890] ss:$28 sps:$4 sm:$0xff]  }
  0xf4   :  { %2834 = vmatpush2.bf16.msra.mxu0 %v9187_v51  ;;  %v9282_v51 = vld [vmem:[#allocation2 + $0x69c] ss:$28 sps:$4 sm:$0xff]  }
  0xf5   :  { %2904 = vmatpush1.bf16.msra.mxu1 %v9190_v52  ;;  %2835 = vmatprep.subr.bf16.mxu0 %v9195_v53  ;;  %v9285_v52 = vld [vmem:[#allocation2 + $0x85c] ss:$28 sps:$4 sm:$0xff]  }
  0xf6   :  { %2905 = vmatprep.subr.bf16.mxu1 %v9198_v54  ;;  %v9280_v53 = vld [vmem:[#allocation2 + $0x698] ss:$28 sps:$4 sm:$0xff]  }
  0xf7   :  { %v9283_v54 = vld [vmem:[#allocation2 + $0x858] ss:$28 sps:$4 sm:$0xff]  }
  0xf8   :  { %2836 = vmatpush2.bf16.msra.mxu0 %v9193_v55  ;;  %v9288_v55 = vld [vmem:[#allocation2 + $0x664] ss:$28 sps:$4 sm:$0xff]  }
  0xf9   :  { %2906 = vmatpush1.bf16.msra.mxu1 %v9196_v56  ;;  %2837 = vmatprep.subr.bf16.mxu0 %v9201_v57  ;;  %v9291_v56 = vld [vmem:[#allocation2 + $0x824] ss:$28 sps:$4 sm:$0xff]  }
  0xfa   :  { %2907 = vmatprep.subr.bf16.mxu1 %v9204_v58  ;;  %v9286_v57 = vld [vmem:[#allocation2 + $0x660] ss:$28 sps:$4 sm:$0xff]  }
  0xfb   :  { %v9289_v58 = vld [vmem:[#allocation2 + $0x820] ss:$28 sps:$4 sm:$0xff]  }
  0xfc   :  { %2838 = vmatpush2.bf16.msra.mxu0 %v9199_v59  ;;  %v9294_v59 = vld [vmem:[#allocation2 + $0x62c] ss:$28 sps:$4 sm:$0xff]  }
  0xfd   :  { %2908 = vmatpush1.bf16.msra.mxu1 %v9202_v49  ;;  %2839 = vmatprep.subr.bf16.mxu0 %v9207_v60  ;;  %v9297_v49 = vld [vmem:[#allocation2 + $0x7ec] ss:$28 sps:$4 sm:$0xff]  }
  0xfe   :  { %2909 = vmatprep.subr.bf16.mxu1 %v9210_v61  ;;  %v9292_v60 = vld [vmem:[#allocation2 + $0x628] ss:$28 sps:$4 sm:$0xff]   ;;  %v9300_v61 = vld [vmem:[#allocation2 + $0x5f4] ss:$28 sps:$4 sm:$0xff]  }
 0x100   :  { %2840 = vmatpush2.bf16.msra.mxu0 %v9205_v62  ;;  %v9303_v62 = vld [vmem:[#allocation2 + $0x7b4] ss:$28 sps:$4 sm:$0xff]  }
 0x101   :  { %2910 = vmatpush1.bf16.msra.mxu1 %v9208_v63  ;;  %2841 = vmatprep.subr.bf16.mxu0 %v9213_v0  ;;  %v9298_v63 = vld [vmem:[#allocation2 + $0x5f0] ss:$28 sps:$4 sm:$0xff]  }
 0x102   :  { %2911 = vmatprep.subr.bf16.mxu1 %v9216_v1  ;;  %v9301_v0 = vld [vmem:[#allocation2 + $0x7b0] ss:$28 sps:$4 sm:$0xff]   ;;  %v9309_v1 = vld [vmem:[#allocation2 + $0x77c] ss:$28 sps:$4 sm:$0xff]  }
 0x104   :  { %2842 = vmatpush2.bf16.msra.mxu0 %v9211_v2  ;;  %v9304_v2 = vld [vmem:[#allocation2 + $0x5b8] ss:$28 sps:$4 sm:$0xff]  }
 0x105   :  { %2912 = vmatpush1.bf16.msra.mxu1 %v9214_v3  ;;  %2843 = vmatprep.subr.bf16.mxu0 %v9219_v5  ;;  %v9307_v3 = vld [vmem:[#allocation2 + $0x778] ss:$28 sps:$4 sm:$0xff]   ;;  %v9312_v5 = vld [vmem:[#allocation2 + $0x584] ss:$28 sps:$4 sm:$0xff]  }
 0x106   :  { %2913 = vmatprep.subr.bf16.mxu1 %v9222_v6  ;;  %v9315_v6 = vld [vmem:[#allocation2 + $0x744] ss:$28 sps:$4 sm:$0xff]  }
 0x108   :  { %2844 = vmatpush2.bf16.msra.mxu0 %v9217_v8  ;;  %v9310_v8 = vld [vmem:[#allocation2 + $0x580] ss:$28 sps:$4 sm:$0xff]  }
 0x109   :  { %2914 = vmatpush1.bf16.msra.mxu1 %v9220_v9  ;;  %2942 = vmatprep.subr.bf16.mxu0 %v9231_v11  ;;  %v9313_v9 = vld [vmem:[#allocation2 + $0x740] ss:$28 sps:$4 sm:$0xff]   ;;  %v9321_v11 = vld [vmem:[#allocation2 + $0x70c] ss:$28 sps:$4 sm:$0xff]  }
 0x10a   :  { %2915 = vmatprep.subr.bf16.mxu1 %v9228_v10  ;;  %v9318_v10 = vld [vmem:[#allocation2 + $0x54c] ss:$28 sps:$4 sm:$0xff]  }
 0x10b   :  { %2846 = vmatmul.mubr.bf16.vlgmr.msra.gmra.mxu0 %v10063_v12 }
 0x10c   :  { %2943 = vmatpush1.bf16.msra.mxu0 %v9229_v15  ;;  %2974 = vmatprep.mubr.bf16.mxu0 %v10030_v50  ;;  %v9253_v50 = vld [vmem:[#allocation2 + $0x430] ss:$28 sps:$4 sm:$0xff]   ;;  %v9319_v15 = vld [vmem:[#allocation2 + $0x708] ss:$28 sps:$4 sm:$0xff]  }
 0x10d   :  { %2916 = vmatpush2.bf16.msra.mxu1 %v9226_v13  ;;  %2944 = vmatprep.subr.bf16.mxu0 %v9237_v17  ;;  %v9316_v13 = vld [vmem:[#allocation2 + $0x548] ss:$28 sps:$4 sm:$0xff]   ;;  %v9327_v17 = vld [vmem:[#allocation2 + $0xc14] ss:$28 sps:$4 sm:$0xff]  }
 0x10e   :  { %2917 = vmatprep.subr.bf16.mxu1 %v9234_v16  ;;  %v9324_v16 = vld [vmem:[#allocation2 + $0xa54] ss:$28 sps:$4 sm:$0xff]  }
 0x110   :  { %2945 = vmatpush1.bf16.msra.mxu0 %v9235_v19  ;;  %v9325_v19 = vld [vmem:[#allocation2 + $0xc10] ss:$28 sps:$4 sm:$0xff]  }
 0x111   :  { %2918 = vmatpush2.bf16.msra.mxu1 %v9232_v18  ;;  %2946 = vmatprep.subr.bf16.mxu0 %v9243_v21  ;;  %v9322_v18 = vld [vmem:[#allocation2 + $0xa50] ss:$28 sps:$4 sm:$0xff]   ;;  %v9333_v21 = vld [vmem:[#allocation2 + $0xbdc] ss:$28 sps:$4 sm:$0xff]  }
 0x112   :  { %2919 = vmatprep.subr.bf16.mxu1 %v9240_v20  ;;  %v9330_v20 = vld [vmem:[#allocation2 + $0xa1c] ss:$28 sps:$4 sm:$0xff]  }
 0x114   :  { %2947 = vmatpush1.bf16.msra.mxu0 %v9241_v23  ;;  %v9331_v23 = vld [vmem:[#allocation2 + $0xbd8] ss:$28 sps:$4 sm:$0xff]  }
 0x115   :  { %2920 = vmatpush2.bf16.msra.mxu1 %v9238_v22  ;;  %2948 = vmatprep.subr.bf16.mxu0 %v9249_v25  ;;  %v9328_v22 = vld [vmem:[#allocation2 + $0xa18] ss:$28 sps:$4 sm:$0xff]   ;;  %v9339_v25 = vld [vmem:[#allocation2 + $0xba4] ss:$28 sps:$4 sm:$0xff]  }
 0x116   :  { %2921 = vmatprep.subr.bf16.mxu1 %v9246_v24  ;;  %v9336_v24 = vld [vmem:[#allocation2 + $0x9e4] ss:$28 sps:$4 sm:$0xff]  }
 0x118   :  { %2949 = vmatpush1.bf16.msra.mxu0 %v9247_v27  ;;  %v9337_v27 = vld [vmem:[#allocation2 + $0xba0] ss:$28 sps:$4 sm:$0xff]  }
 0x119   :  { %2922 = vmatpush2.bf16.msra.mxu1 %v9244_v26  ;;  %2950 = vmatprep.subr.bf16.mxu0 %v9255_v29  ;;  %v9334_v26 = vld [vmem:[#allocation2 + $0x9e0] ss:$28 sps:$4 sm:$0xff]   ;;  %v9345_v29 = vld [vmem:[#allocation2 + $0xb6c] ss:$28 sps:$4 sm:$0xff]  }
 0x11a   :  { %2923 = vmatprep.subr.bf16.mxu1 %v9252_v28  ;;  %v9342_v28 = vld [vmem:[#allocation2 + $0x9ac] ss:$28 sps:$4 sm:$0xff]  }
 0x11c   :  { %2951 = vmatpush1.bf16.msra.mxu0 %v9253_v50  ;;  %v9348_v50 = vld [vmem:[#allocation2 + $0x974] ss:$28 sps:$4 sm:$0xff]  }
 0x11d   :  { %2924 = vmatpush2.bf16.msra.mxu1 %v9250_v30  ;;  %2952 = vmatprep.subr.bf16.mxu0 %v9261_v32  ;;  %v9340_v30 = vld [vmem:[#allocation2 + $0x9a8] ss:$28 sps:$4 sm:$0xff]   ;;  %v9346_v32 = vld [vmem:[#allocation2 + $0x970] ss:$28 sps:$4 sm:$0xff]  }
 0x11e   :  { %2925 = vmatprep.subr.bf16.mxu1 %v9258_v31  ;;  %v9351_v31 = vld [vmem:[#allocation2 + $0xb34] ss:$28 sps:$4 sm:$0xff]  }
 0x120   :  { %2953 = vmatpush1.bf16.msra.mxu0 %v9259_v34  ;;  %v9354_v34 = vld [vmem:[#allocation2 + $0x93c] ss:$28 sps:$4 sm:$0xff]  }
 0x121   :  { %2926 = vmatpush2.bf16.msra.mxu1 %v9256_v33  ;;  %2954 = vmatprep.subr.bf16.mxu0 %v9267_v37  ;;  %v9349_v33 = vld [vmem:[#allocation2 + $0xb30] ss:$28 sps:$4 sm:$0xff]   ;;  %v9352_v37 = vld [vmem:[#allocation2 + $0x938] ss:$28 sps:$4 sm:$0xff]  }
 0x122   :  { %2927 = vmatprep.subr.bf16.mxu1 %v9264_v36  ;;  %v9357_v36 = vld [vmem:[#allocation2 + $0xafc] ss:$28 sps:$4 sm:$0xff]  }
 0x124   :  { %2955 = vmatpush1.bf16.msra.mxu0 %v9265_v39  ;;  %v9360_v39 = vld [vmem:[#allocation2 + $0x904] ss:$28 sps:$4 sm:$0xff]  }
 0x125   :  { %2928 = vmatpush2.bf16.msra.mxu1 %v9262_v38  ;;  %2956 = vmatprep.subr.bf16.mxu0 %v9273_v42  ;;  %v9355_v38 = vld [vmem:[#allocation2 + $0xaf8] ss:$28 sps:$4 sm:$0xff]   ;;  %v9358_v42 = vld [vmem:[#allocation2 + $0x900] ss:$28 sps:$4 sm:$0xff]  }
 0x126   :  { %2929 = vmatprep.subr.bf16.mxu1 %v9270_v40  ;;  %v9363_v40 = vld [vmem:[#allocation2 + $0xac4] ss:$28 sps:$4 sm:$0xff]  }
 0x128   :  { %2957 = vmatpush1.bf16.msra.mxu0 %v9271_v44  ;;  %v9366_v44 = vld [vmem:[#allocation2 + $0x8cc] ss:$28 sps:$4 sm:$0xff]  }
 0x129   :  { %2930 = vmatpush2.bf16.msra.mxu1 %v9268_v43  ;;  %2958 = vmatprep.subr.bf16.mxu0 %v9276_v45  ;;  %v9361_v43 = vld [vmem:[#allocation2 + $0xac0] ss:$28 sps:$4 sm:$0xff]   ;;  %v9369_v45 = vld [vmem:[#allocation2 + $0xa8c] ss:$28 sps:$4 sm:$0xff]  }
 0x12a   :  { %2985 = vmatprep.subr.bf16.mxu1 %v9279_v46  ;;  %v9364_v46 = vld [vmem:[#allocation2 + $0x8c8] ss:$28 sps:$4 sm:$0xff]  }
 0x12c   :  { %2932 = vmatmul.mubr.bf16.vlgmr.msra.gmra.mxu1 %v10037_v4  ;;  %2959 = vmatpush2.bf16.msra.mxu0 %v9274_v47  ;;  %v9295_v4 = vld [vmem:[#allocation2 + $0x7e8] ss:$28 sps:$4 sm:$0xff]  }
 0x12d   :  { %2986 = vmatpush1.bf16.msra.mxu1 %v9277_v48  ;;  %2960 = vmatprep.subr.bf16.mxu0 %v9282_v51  ;;  %v9367_v47 = vld [vmem:[#allocation2 + $0xa88] ss:$28 sps:$4 sm:$0xff]   ;;  %v9372_v48 = vld [vmem:[#allocation2 + $0x19c] ss:$28 sps:$4 sm:$0xff]  }
 0x12e   :  { %2987 = vmatprep.subr.bf16.mxu1 %v9285_v52  ;;  %3017 = vmatprep.mubr.bf16.mxu1 %v10050_v35  ;;  %v9306_v35 = vld [vmem:[#allocation2 + $0x5bc] ss:$28 sps:$4 sm:$0xff]  }
 0x12f   :  { %v9375_v51 = vld [vmem:[#allocation2 + $0x51c] ss:$28 sps:$4 sm:$0xff]  }
 0x130   :  { %2961 = vmatpush2.bf16.msra.mxu0 %v9280_v53  ;;  %v9370_v52 = vld [vmem:[#allocation2 + $0x198] ss:$28 sps:$4 sm:$0xff]  }
 0x131   :  { %2988 = vmatpush1.bf16.msra.mxu1 %v9283_v54  ;;  %2962 = vmatprep.subr.bf16.mxu0 %v9288_v55  ;;  %v9373_v53 = vld [vmem:[#allocation2 + $0x518] ss:$28 sps:$4 sm:$0xff]   ;;  %v9378_v54 = vld [vmem:[#allocation2 + $0x164] ss:$28 sps:$4 sm:$0xff]  }
 0x132   :  { %2989 = vmatprep.subr.bf16.mxu1 %v9291_v56  ;;  %v9381_v55 = vld [vmem:[#allocation2 + $0x4e4] ss:$28 sps:$4 sm:$0xff]  }
 0x133   :  { %v9376_v56 = vld [vmem:[#allocation2 + $0x160] ss:$28 sps:$4 sm:$0xff]  }
 0x134   :  { %2963 = vmatpush2.bf16.msra.mxu0 %v9286_v57  ;;  %v9379_v57 = vld [vmem:[#allocation2 + $0x4e0] ss:$28 sps:$4 sm:$0xff]  }
 0x135   :  { %2990 = vmatpush1.bf16.msra.mxu1 %v9289_v58  ;;  %2964 = vmatprep.subr.bf16.mxu0 %v9294_v59  ;;  %v9384_v58 = vld [vmem:[#allocation2 + $0x12c] ss:$28 sps:$4 sm:$0xff]  }
 0x136   :  { %2991 = vmatprep.subr.bf16.mxu1 %v9297_v49  ;;  %v9387_v59 = vld [vmem:[#allocation2 + $0x4ac] ss:$28 sps:$4 sm:$0xff]  }
 0x137   :  { %v9382_v49 = vld [vmem:[#allocation2 + $0x128] ss:$28 sps:$4 sm:$0xff]  }
 0x138   :  { %2965 = vmatpush2.bf16.msra.mxu0 %v9292_v60  ;;  %v10076_v60 = vld [vmem:[%s10564_s0 + $0x4] ss:$28 sps:$4 sm:$0xff]  }
 0x139   :  { %2992 = vmatpush1.bf16.msra.mxu1 %v9295_v4  ;;  %2966 = vmatprep.subr.bf16.mxu0 %v9300_v61  ;;  %v9390_v4 = vld [vmem:[#allocation2 + $0xf4] ss:$28 sps:$4 sm:$0xff]  }
 0x13a   :  { %2993 = vmatprep.subr.bf16.mxu1 %v9303_v62  ;;  %v9393_v61 = vld [vmem:[#allocation2 + $0x474] ss:$28 sps:$4 sm:$0xff]  }
 0x13b   :  { %v9388_v62 = vld [vmem:[#allocation2 + $0xf0] ss:$28 sps:$4 sm:$0xff]  }
 0x13c   :  { %2967 = vmatpush2.bf16.msra.mxu0 %v9298_v63  ;;  %v9391_v63 = vld [vmem:[#allocation2 + $0x470] ss:$28 sps:$4 sm:$0xff]  }
 0x13d   :  { %2994 = vmatpush1.bf16.msra.mxu1 %v9301_v0  ;;  %2968 = vmatprep.subr.bf16.mxu0 %v9306_v35  ;;  %v9396_v0 = vld [vmem:[#allocation2 + $0xbc] ss:$28 sps:$4 sm:$0xff]  }
 0x13e   :  { %2995 = vmatprep.subr.bf16.mxu1 %v9309_v1  ;;  %v9399_v35 = vld [vmem:[#allocation2 + $0x43c] ss:$28 sps:$4 sm:$0xff]   ;;  %v640_v1 = vlaneseq }
 0x140   :  { %2969 = vmatpush2.bf16.msra.mxu0 %v9304_v2  ;;  %v9394_v2 = vld [vmem:[#allocation2 + $0xb8] ss:$28 sps:$4 sm:$0xff]  }
 0x141   :  { %2996 = vmatpush1.bf16.msra.mxu1 %v9307_v3  ;;  %2970 = vmatprep.subr.bf16.mxu0 %v9312_v5  ;;  %v9397_v3 = vld [vmem:[#allocation2 + $0x438] ss:$28 sps:$4 sm:$0xff]   ;;  %v9402_v5 = vld [vmem:[#allocation2 + $0x84] ss:$28 sps:$4 sm:$0xff]  }
 0x142   :  { %2997 = vmatprep.subr.bf16.mxu1 %v9315_v6  ;;  %v9405_v6 = vld [vmem:[#allocation2 + $0x404] ss:$28 sps:$4 sm:$0xff]  }
 0x144   :  { %2971 = vmatpush2.bf16.msra.mxu0 %v9310_v8  ;;  %v9400_v8 = vld [vmem:[#allocation2 + $0x80] ss:$28 sps:$4 sm:$0xff]  }
 0x145   :  { %2998 = vmatpush1.bf16.msra.mxu1 %v9313_v9  ;;  %2972 = vmatprep.subr.bf16.mxu0 %v9318_v10  ;;  %v10082_v9 = vshrl.u32 %v640_v1, 7  ;;  %v9403_v10 = vld [vmem:[#allocation2 + $0x400] ss:$28 sps:$4 sm:$0xff]  }
 0x146   :  { %2999 = vmatprep.subr.bf16.mxu1 %v9321_v11  ;;  %v9408_v11 = vld [vmem:[#allocation2 + $0x4c] ss:$28 sps:$4 sm:$0xff]   ;;  %v9471_v1 = vld [vmem:[#allocation2 + $0xc1c] ss:$28 sps:$4 sm:$0xff]  }
 0x148   :  { %2973 = vmatpush2.bf16.msra.mxu0 %v9316_v13  ;;  %v9411_v13 = vld [vmem:[#allocation2 + $0x3cc] ss:$28 sps:$4 sm:$0xff]  }
 0x149   :  { %3000 = vmatpush1.bf16.msra.mxu1 %v9319_v15  ;;  %3028 = vmatprep.subr.bf16.mxu0 %v9327_v17  ;;  %v9406_v15 = vld [vmem:[#allocation2 + $0x48] ss:$28 sps:$4 sm:$0xff]   ;;  %v9414_v17 = vld [vmem:[#allocation2 + $0x14] ss:$28 sps:$4 sm:$0xff]  }
 0x14a   :  { %3001 = vmatprep.subr.bf16.mxu1 %v9324_v16  ;;  %v9409_v16 = vld [vmem:[#allocation2 + $0x3c8] ss:$28 sps:$4 sm:$0xff]  }
 0x14b   :  { %2975 = vmatmul.mubr.bf16.vlgmr.msra.gmra.mxu0 %v10042_v7  ;;  %v9343_v7 = vld [vmem:[#allocation2 + $0xb68] ss:$28 sps:$4 sm:$0xff]  }
 0x14c   :  { %3029 = vmatpush1.bf16.msra.mxu0 %v9325_v19  ;;  %3060 = vmatprep.mubr.bf16.mxu0 %v9916_v14  ;;  %v9412_v19 = vld [vmem:[#allocation2 + $0x10] ss:$28 sps:$4 sm:$0xff]  }
 0x14d   :  { %3002 = vmatpush2.bf16.msra.mxu1 %v9322_v18  ;;  %3030 = vmatprep.subr.bf16.mxu0 %v9333_v21  ;;  %v9417_v18 = vld [vmem:[#allocation2 + $0x394] ss:$28 sps:$4 sm:$0xff]   ;;  %v10084_v21 = vld [vmem:[#allocation4] sm:$0xff] }
 0x14e   :  { %3003 = vmatprep.subr.bf16.mxu1 %v9330_v20  ;;  %v9415_v20 = vld [vmem:[#allocation2 + $0x390] ss:$28 sps:$4 sm:$0xff]  }
 0x150   :  { %3031 = vmatpush1.bf16.msra.mxu0 %v9331_v23  ;;  %v9420_v23 = vld [vmem:[#allocation2 + $0x35c] ss:$28 sps:$4 sm:$0xff]  }
 0x151   :  { %3004 = vmatpush2.bf16.msra.mxu1 %v9328_v22  ;;  %3032 = vmatprep.subr.bf16.mxu0 %v9339_v25  ;;  %v642_v22 = vsub.s32 0, %v10082_v9  ;;  %v9418_v25 = vld [vmem:[#allocation2 + $0x358] ss:$28 sps:$4 sm:$0xff]  }
 0x152   :  { %3005 = vmatprep.subr.bf16.mxu1 %v9336_v24  ;;  %v9423_v24 = vld [vmem:[#allocation2 + $0x6dc] ss:$28 sps:$4 sm:$0xff]  }
 0x154   :  { %3033 = vmatpush1.bf16.msra.mxu0 %v9337_v27  ;;  %v643_v27 = vrot.slane %v10084_v21, %v642_v22 }
 0x155   :  { %3006 = vmatpush2.bf16.msra.mxu1 %v9334_v26  ;;  %3034 = vmatprep.subr.bf16.mxu0 %v9345_v29  ;;  %v9421_v26 = vld [vmem:[#allocation2 + $0x6d8] ss:$28 sps:$4 sm:$0xff]   ;;  %v9429_v29 = vld [vmem:[#allocation2 + $0x6a4] ss:$28 sps:$4 sm:$0xff]  }
 0x156   :  { %3007 = vmatprep.subr.bf16.mxu1 %v9342_v28  ;;  %v9426_v28 = vld [vmem:[#allocation2 + $0x324] ss:$28 sps:$4 sm:$0xff]  }
 0x158   :  { %3035 = vmatpush1.bf16.msra.mxu0 %v9343_v7 }
 0x159   :  { %3008 = vmatpush2.bf16.msra.mxu1 %v9340_v30  ;;  %3036 = vmatprep.subr.bf16.mxu0 %v9351_v31  ;;  %v9424_v30 = vld [vmem:[#allocation2 + $0x320] ss:$28 sps:$4 sm:$0xff]  }
 0x15a   :  { %3009 = vmatprep.subr.bf16.mxu1 %v9348_v50  ;;  %v9427_v31 = vld [vmem:[#allocation2 + $0x6a0] ss:$28 sps:$4 sm:$0xff]  }
 0x15c   :  { %3037 = vmatpush1.bf16.msra.mxu0 %v9349_v33  ;;  %v9432_v33 = vld [vmem:[#allocation2 + $0x2ec] ss:$28 sps:$4 sm:$0xff]  }
 0x15d   :  { %3010 = vmatpush2.bf16.msra.mxu1 %v9346_v32  ;;  %3038 = vmatprep.subr.bf16.mxu0 %v9357_v36 }
 0x15e   :  { %3011 = vmatprep.subr.bf16.mxu1 %v9354_v34 }
 0x160   :  { %3039 = vmatpush1.bf16.msra.mxu0 %v9355_v38 }
 0x161   :  { %3012 = vmatpush2.bf16.msra.mxu1 %v9352_v37  ;;  %3040 = vmatprep.subr.bf16.mxu0 %v9363_v40  ;;  %v9435_v37 = vld [vmem:[#allocation2 + $0x66c] ss:$28 sps:$4 sm:$0xff]  }
 0x162   :  { %3013 = vmatprep.subr.bf16.mxu1 %v9360_v39  ;;  %v9430_v39 = vld [vmem:[#allocation2 + $0x2e8] ss:$28 sps:$4 sm:$0xff]  }
 0x164   :  { %3041 = vmatpush1.bf16.msra.mxu0 %v9361_v43  ;;  %v9433_v43 = vld [vmem:[#allocation2 + $0x668] ss:$28 sps:$4 sm:$0xff]  }
 0x165   :  { %3014 = vmatpush2.bf16.msra.mxu1 %v9358_v42  ;;  %3042 = vmatprep.subr.bf16.mxu0 %v9369_v45  ;;  %v9438_v45 = vld [vmem:[#allocation2 + $0x2b4] ss:$28 sps:$4 sm:$0xff]  }
 0x166   :  { %3015 = vmatprep.subr.bf16.mxu1 %v9366_v44 }
 0x168   :  { %3043 = vmatpush1.bf16.msra.mxu0 %v9367_v47 }
 0x169   :  { %3016 = vmatpush2.bf16.msra.mxu1 %v9364_v46  ;;  %3071 = vmatprep.subr.bf16.mxu0 %v9372_v48  ;;  %v9441_v46 = vld [vmem:[#allocation2 + $0x634] ss:$28 sps:$4 sm:$0xff]  }
 0x16a   :  { %3114 = vmatprep.subr.bf16.mxu1 %v9375_v51  ;;  %v9436_v48 = vld [vmem:[#allocation2 + $0x2b0] ss:$28 sps:$4 sm:$0xff]  }
 0x16b   :  { %3061 = vmatmul.mubr.bf16.vlgmr.msra.gmra.mxu0 %v10056_v41  ;;  %v9659_v41 = vld [vmem:[%s10564_s0 + $0xc] ss:$28 sps:$4 sm:$0xff]  }
 0x16c   :  { %3018 = vmatmul.mubr.bf16.vlgmr.msra.gmra.mxu1 %v10063_v12  ;;  %3072 = vmatpush1.bf16.msra.mxu0 %v9370_v52  ;;  %v9385_v12 = vld [vmem:[#allocation2 + $0x4a8] ss:$28 sps:$4 sm:$0xff]   ;;  %v9439_v51 = vld [vmem:[#allocation2 + $0x630] ss:$28 sps:$4 sm:$0xff]   ;;  %v9444_v52 = vld [vmem:[#allocation2 + $0x27c] ss:$28 sps:$4 sm:$0xff]  }
 0x16d   :  { %3115 = vmatpush1.bf16.msra.mxu1 %v9373_v53  ;;  %3073 = vmatprep.subr.bf16.mxu0 %v9378_v54  ;;  %v9447_v53 = vld [vmem:[#allocation2 + $0x5fc] ss:$28 sps:$4 sm:$0xff]  }
 0x16e   :  { %3116 = vmatprep.subr.bf16.mxu1 %v9381_v55  ;;  %3103 = vmatprep.mubr.bf16.mxu0 %v10076_v60  ;;  %v9442_v54 = vld [vmem:[#allocation2 + $0x278] ss:$28 sps:$4 sm:$0xff]  }
 0x16f   :  { %3146 = vmatprep.mubr.bf16.mxu1 %v9659_v41  ;;  %v9445_v55 = vld [vmem:[#allocation2 + $0x5f8] ss:$28 sps:$4 sm:$0xff]   ;;  %v9459_v41 = vld [vmem:[#allocation2 + $0x58c] ss:$28 sps:$4 sm:$0xff]  }
 0x170   :  { %3074 = vmatpush1.bf16.msra.mxu0 %v9376_v56  ;;  %v9450_v56 = vld [vmem:[#allocation2 + $0x244] ss:$28 sps:$4 sm:$0xff]  }
 0x171   :  { %3117 = vmatpush1.bf16.msra.mxu1 %v9379_v57  ;;  %3075 = vmatprep.subr.bf16.mxu0 %v9384_v58  ;;  %v9453_v57 = vld [vmem:[#allocation2 + $0x5c4] ss:$28 sps:$4 sm:$0xff]  }
 0x172   :  { %3118 = vmatprep.subr.bf16.mxu1 %v9387_v59  ;;  %v9448_v58 = vld [vmem:[#allocation2 + $0x240] ss:$28 sps:$4 sm:$0xff]  }
 0x173   :  { %v9451_v59 = vld [vmem:[#allocation2 + $0x5c0] ss:$28 sps:$4 sm:$0xff]  }
 0x174   :  { %3076 = vmatpush1.bf16.msra.mxu0 %v9382_v49  ;;  %v9456_v49 = vld [vmem:[#allocation2 + $0x20c] ss:$28 sps:$4 sm:$0xff]  }
 0x175   :  { %3119 = vmatpush1.bf16.msra.mxu1 %v9385_v12  ;;  %3077 = vmatprep.subr.bf16.mxu0 %v9390_v4  ;;  %v9454_v12 = vld [vmem:[#allocation2 + $0x208] ss:$28 sps:$4 sm:$0xff]  }
 0x176   :  { %3120 = vmatprep.subr.bf16.mxu1 %v9393_v61  ;;  %v9457_v4 = vld [vmem:[#allocation2 + $0x588] ss:$28 sps:$4 sm:$0xff]   ;;  %v9462_v61 = vld [vmem:[#allocation2 + $0x1d4] ss:$28 sps:$4 sm:$0xff]  }
 0x178   :  { %3078 = vmatpush1.bf16.msra.mxu0 %v9388_v62  ;;  %v9465_v62 = vld [vmem:[#allocation2 + $0x554] ss:$28 sps:$4 sm:$0xff]  }
 0x179   :  { %3121 = vmatpush1.bf16.msra.mxu1 %v9391_v63  ;;  %3079 = vmatprep.subr.bf16.mxu0 %v9396_v0  ;;  %v9460_v63 = vld [vmem:[#allocation2 + $0x1d0] ss:$28 sps:$4 sm:$0xff]  }
 0x17a   :  { %3122 = vmatprep.subr.bf16.mxu1 %v9399_v35  ;;  %v9463_v0 = vld [vmem:[#allocation2 + $0x550] ss:$28 sps:$4 sm:$0xff]   ;;  %v9468_v35 = vld [vmem:[#allocation2 + $0x89c] ss:$28 sps:$4 sm:$0xff]  }
 0x17c   :  { %3080 = vmatpush1.bf16.msra.mxu0 %v9394_v2  ;;  %v9466_v2 = vld [vmem:[#allocation2 + $0x898] ss:$28 sps:$4 sm:$0xff]  }
 0x17d   :  { %3123 = vmatpush1.bf16.msra.mxu1 %v9397_v3  ;;  %3081 = vmatprep.subr.bf16.mxu0 %v9402_v5  ;;  %v9469_v3 = vld [vmem:[#allocation2 + $0xc18] ss:$28 sps:$4 sm:$0xff]   ;;  %v9474_v5 = vld [vmem:[#allocation2 + $0x864] ss:$28 sps:$4 sm:$0xff]  }
 0x17e   :  { %3124 = vmatprep.subr.bf16.mxu1 %v9405_v6  ;;  %v9477_v6 = vld [vmem:[#allocation2 + $0xbe4] ss:$28 sps:$4 sm:$0xff]  }
 0x180   :  { %3082 = vmatpush1.bf16.msra.mxu0 %v9400_v8  ;;  %v10101_v8 = vld [vmem:[%s10564_s0] ss:$28 sps:$4 sm:$0xff]  }
 0x181   :  { %3125 = vmatpush1.bf16.msra.mxu1 %v9403_v10  ;;  %3083 = vmatprep.subr.bf16.mxu0 %v9408_v11  ;;  %v10107_v10 = vld [vmem:[%s10564_s0 + $0x8] ss:$28 sps:$4 sm:$0xff]   ;;  %v9472_v11 = vld [vmem:[#allocation2 + $0x860] ss:$28 sps:$4 sm:$0xff]  }
 0x182   :  { %3126 = vmatprep.subr.bf16.mxu1 %v9411_v13  ;;  %v9475_v13 = vld [vmem:[#allocation2 + $0xbe0] ss:$28 sps:$4 sm:$0xff]  }
 0x184   :  { %3084 = vmatpush1.bf16.msra.mxu0 %v9406_v15  ;;  %v9480_v15 = vld [vmem:[#allocation2 + $0x82c] ss:$28 sps:$4 sm:$0xff]  }
 0x185   :  { %3127 = vmatpush1.bf16.msra.mxu1 %v9409_v16  ;;  %3085 = vmatprep.subr.bf16.mxu0 %v9414_v17  ;;  %v9483_v16 = vld [vmem:[#allocation2 + $0xbac] ss:$28 sps:$4 sm:$0xff]  }
 0x186   :  { %3128 = vmatprep.subr.bf16.mxu1 %v9417_v18  ;;  %v9478_v17 = vld [vmem:[#allocation2 + $0x828] ss:$28 sps:$4 sm:$0xff]  }
 0x187   :  { %v9481_v18 = vld [vmem:[#allocation2 + $0xba8] ss:$28 sps:$4 sm:$0xff]  }
 0x188   :  { %3086 = vmatpush1.bf16.msra.mxu0 %v9412_v19  ;;  %v10114_v19 = vld [vmem:[%s10564_s0 + $0x14] ss:$28 sps:$4 sm:$0xff]  }
 0x189   :  { %3129 = vmatpush1.bf16.msra.mxu1 %v9415_v20  ;;  %3087 = vmatprep.subr.bf16.mxu0 %v9420_v23  ;;  %v9486_v20 = vld [vmem:[#allocation2 + $0x7f4] ss:$28 sps:$4 sm:$0xff]  }
 0x18a   :  { %3130 = vmatprep.subr.bf16.mxu1 %v9423_v24  ;;  %v9489_v23 = vld [vmem:[#allocation2 + $0xb74] ss:$28 sps:$4 sm:$0xff]  }
 0x18b   :  { %v2761_v7 = vpop.f32.mrf.mxu0  ;;  %v9484_v24 = vld [vmem:[#allocation2 + $0x7f0] ss:$28 sps:$4 sm:$0xff]  }
 0x18c   :  { %v2804_v50 = vpop.f32.mrf.mxu1  ;;  %v2762_v32 = vadd.f32 %v2761_v7, %v643_v27  ;;  %3088 = vmatpush2.bf16.msra.mxu0 %v9418_v25  ;;  %v9487_v25 = vld [vmem:[#allocation2 + $0xb70] ss:$28 sps:$4 sm:$0xff]   ;;  %v9501_v7 = vld [vmem:[#allocation2 + $0xb04] ss:$28 sps:$4 sm:$0xff]  }
 0x18d   :  { %3131 = vmatpush2.bf16.msra.mxu1 %v9421_v26  ;;  %v10090_v34 = vpop.f32.mrf.mxu0  ;;  %3089 = vmatprep.subr.bf16.mxu0 %v9426_v28  ;;  %v9492_v26 = vld [vmem:[#allocation2 + $0x7bc] ss:$28 sps:$4 sm:$0xff]  }
 0x18e   :  { %v10092_v36 = vpop.f32.mrf.mxu1  ;;  %3132 = vmatprep.subr.bf16.mxu1 %v9429_v29  ;;  %v10094_v38 = vadd.f32 %v2804_v50, %v2762_v32  ;;  %v9490_v28 = vld [vmem:[#allocation2 + $0x7b8] ss:$28 sps:$4 sm:$0xff]   ;;  %v9496_v50 = vld [vmem:[#allocation2 + $0x780] ss:$28 sps:$4 sm:$0xff]   ;;  %v9504_v32 = vld [vmem:[#allocation2 + $0x74c] ss:$28 sps:$4 sm:$0xff]  }
 0x18f   :  { %v2765_v40 = vpop.f32.mrf.mxu0  ;;  %v9493_v29 = vld [vmem:[#allocation2 + $0xb38] ss:$28 sps:$4 sm:$0xff]  }
 0x190   :  { %v2808_v42 = vpop.f32.mrf.mxu1  ;;  %v2766_v44 = vadd.f32 %v2765_v40, %v643_v27  ;;  %3090 = vmatpush2.bf16.msra.mxu0 %v9424_v30  ;;  %v9495_v27 = vld [vmem:[#allocation2 + $0xb3c] ss:$28 sps:$4 sm:$0xff]   ;;  %v9498_v30 = vld [vmem:[#allocation2 + $0x784] ss:$28 sps:$4 sm:$0xff]   ;;  %v9510_v40 = vld [vmem:[#allocation2 + $0x714] ss:$28 sps:$4 sm:$0xff]  }
 0x191   :  { %3133 = vmatpush2.bf16.msra.mxu1 %v9427_v31  ;;  %3091 = vmatprep.subr.bf16.mxu0 %v9432_v33  ;;  %v9499_v31 = vld [vmem:[#allocation2 + $0xb00] ss:$28 sps:$4 sm:$0xff]   ;;  %v9507_v33 = vld [vmem:[#allocation2 + $0xacc] ss:$28 sps:$4 sm:$0xff]  }
 0x192   :  { %3134 = vmatprep.subr.bf16.mxu1 %v9435_v37  ;;  %v10096_v47 = vadd.f32 %v2808_v42, %v2766_v44  ;;  %v9502_v37 = vld [vmem:[#allocation2 + $0x748] ss:$28 sps:$4 sm:$0xff]   ;;  %v9513_v42 = vld [vmem:[#allocation2 + $0xa94] ss:$28 sps:$4 sm:$0xff]  }
 0x193   :  { %v9511_v44 = vld [vmem:[#allocation2 + $0xa90] ss:$28 sps:$4 sm:$0xff]  }
 0x194   :  { %3092 = vmatpush2.bf16.msra.mxu0 %v9430_v39  ;;  %v9505_v39 = vld [vmem:[#allocation2 + $0xac8] ss:$28 sps:$4 sm:$0xff]  }
 0x195   :  { %3135 = vmatpush2.bf16.msra.mxu1 %v9433_v43  ;;  %3093 = vmatprep.subr.bf16.mxu0 %v9438_v45  ;;  %v9508_v43 = vld [vmem:[#allocation2 + $0x710] ss:$28 sps:$4 sm:$0xff]   ;;  %v9516_v45 = vld [vmem:[#allocation2 + $0xa5c] ss:$28 sps:$4 sm:$0xff]  }
 0x196   :  { %3136 = vmatprep.subr.bf16.mxu1 %v9441_v46  ;;  %v9517_v46 = vld [vmem:[#allocation2 + $0x360] ss:$28 sps:$4 sm:$0xff]  }
 0x198   :  { %3094 = vmatpush2.bf16.msra.mxu0 %v9436_v48  ;;  %v9514_v48 = vld [vmem:[#allocation2 + $0xa58] ss:$28 sps:$4 sm:$0xff]  }
 0x199   :  { %3137 = vmatpush2.bf16.msra.mxu1 %v9439_v51  ;;  %3095 = vmatprep.subr.bf16.mxu0 %v9444_v52  ;;  %v9518_v51 = vld [vmem:[#allocation2 + $0x1a0] ss:$28 sps:$4 sm:$0xff]   ;;  %v10117_v52 = vpop.f32.mrf.mxu1 }
 0x19a   :  { %3138 = vmatprep.subr.bf16.mxu1 %v9447_v53  ;;  %v10119_v53 = vpop.f32.mrf.mxu0 }
 0x19c   :  { %3096 = vmatpush2.bf16.msra.mxu0 %v9442_v54 }
 0x19d   :  { %3139 = vmatpush2.bf16.msra.mxu1 %v9445_v55  ;;  %3097 = vmatprep.subr.bf16.mxu0 %v9450_v56  ;;  %v9521_v55 = vld [vmem:[#allocation2 + $0xa24] ss:$28 sps:$4 sm:$0xff]  }
 0x19e   :  { %3140 = vmatprep.subr.bf16.mxu1 %v9453_v57  ;;  %v9522_v56 = vld [vmem:[#allocation2 + $0x328] ss:$28 sps:$4 sm:$0xff]   ;;  %v9519_v57 = vld [vmem:[#allocation2 + $0xa20] ss:$28 sps:$4 sm:$0xff]  }
 0x1a0   :  { %3098 = vmatpush2.bf16.msra.mxu0 %v9448_v58  ;;  %v9523_v58 = vld [vmem:[#allocation2 + $0x168] ss:$28 sps:$4 sm:$0xff]  }
 0x1a1   :  { %3141 = vmatpush2.bf16.msra.mxu1 %v9451_v59  ;;  %3099 = vmatprep.subr.bf16.mxu0 %v9456_v49  ;;  %v10124_v49 = vld [vmem:[%s10564_s0 + $0x18] ss:$28 sps:$4 sm:$0xff]  }
 0x1a2   :  { %3142 = vmatprep.subr.bf16.mxu1 %v9459_v41 }
 0x1a4   :  { %3100 = vmatpush2.bf16.msra.mxu0 %v9454_v12  ;;  %v9526_v12 = vld [vmem:[#allocation2 + $0x9ec] ss:$28 sps:$4 sm:$0xff]  }
 0x1a5   :  { %3143 = vmatpush2.bf16.msra.mxu1 %v9457_v4  ;;  %3101 = vmatprep.subr.bf16.mxu0 %v9462_v61  ;;  %v9527_v4 = vld [vmem:[#allocation2 + $0x2f0] ss:$28 sps:$4 sm:$0xff]  }
 0x1a6   :  { %3144 = vmatprep.subr.bf16.mxu1 %v9465_v62 }
 0x1a8   :  { %3102 = vmatpush2.bf16.msra.mxu0 %v9460_v63 }
 0x1a9   :  { %3145 = vmatpush2.bf16.msra.mxu1 %v9463_v0  ;;  %3157 = vmatprep.subr.bf16.mxu0 %v9468_v35  ;;  %v9524_v0 = vld [vmem:[#allocation2 + $0x9e8] ss:$28 sps:$4 sm:$0xff]   ;;  %v9528_v35 = vld [vmem:[#allocation2 + $0x130] ss:$28 sps:$4 sm:$0xff]  }
 0x1aa   :  { %3200 = vmatprep.subr.bf16.mxu1 %v9471_v1 }
 0x1ab   :  { %3104 = vmatmul.mubr.bf16.vlgmr.msra.gmra.mxu0 %v10101_v8 }
 0x1ac   :  { %3147 = vmatmul.mubr.bf16.vlgmr.msra.gmra.mxu1 %v10107_v10  ;;  %3158 = vmatpush1.bf16.msra.mxu0 %v9466_v2  ;;  %v2890_v54 = vpop.f32.mrf.mxu1 }
 0x1ad   :  { %3201 = vmatpush1.bf16.msra.mxu1 %v9469_v3  ;;  %3159 = vmatprep.subr.bf16.mxu0 %v9474_v5  ;;  %v9532_v3 = vld [vmem:[#allocation2 + $0x2b8] ss:$28 sps:$4 sm:$0xff]  }
 0x1ae   :  { %3202 = vmatprep.subr.bf16.mxu1 %v9477_v6  ;;  %3232 = vmatprep.mubr.bf16.mxu1 %v9916_v14  ;;  %v10128_v61 = vpop.f32.mrf.mxu1 }
 0x1af   :  { %3189 = vmatprep.mubr.bf16.mxu0 %v10114_v19 }
 0x1b0   :  { %3160 = vmatpush1.bf16.msra.mxu0 %v9472_v11  ;;  %v2894_v5 = vpop.f32.mrf.mxu1  ;;  %v9529_v11 = vld [vmem:[#allocation2 + $0x9b0] ss:$28 sps:$4 sm:$0xff]  }
 0x1b1   :  { %3203 = vmatpush1.bf16.msra.mxu1 %v9475_v13  ;;  %3161 = vmatprep.subr.bf16.mxu0 %v9480_v15  ;;  %v9533_v13 = vld [vmem:[#allocation2 + $0xf8] ss:$28 sps:$4 sm:$0xff]  }
 0x1b2   :  { %3204 = vmatprep.subr.bf16.mxu1 %v9483_v16  ;;  %v9536_v15 = vld [vmem:[#allocation2 + $0x97c] ss:$28 sps:$4 sm:$0xff]  }
 0x1b4   :  { %3162 = vmatpush1.bf16.msra.mxu0 %v9478_v17 }
 0x1b5   :  { %3205 = vmatpush1.bf16.msra.mxu1 %v9481_v18  ;;  %3163 = vmatprep.subr.bf16.mxu0 %v9486_v20  ;;  %v9537_v18 = vld [vmem:[#allocation2 + $0x280] ss:$28 sps:$4 sm:$0xff]  }
 0x1b6   :  { %3206 = vmatprep.subr.bf16.mxu1 %v9489_v23  ;;  %v9538_v20 = vld [vmem:[#allocation2 + $0xc0] ss:$28 sps:$4 sm:$0xff]  }
 0x1b7   :  { %v9541_v23 = vld [vmem:[#allocation2 + $0x944] ss:$28 sps:$4 sm:$0xff]  }
 0x1b8   :  { %3164 = vmatpush1.bf16.msra.mxu0 %v9484_v24  ;;  %v9542_v24 = vld [vmem:[#allocation2 + $0x248] ss:$28 sps:$4 sm:$0xff]  }
 0x1b9   :  { %3207 = vmatpush1.bf16.msra.mxu1 %v9487_v25  ;;  %3165 = vmatprep.subr.bf16.mxu0 %v9492_v26  ;;  %v9539_v25 = vld [vmem:[#allocation2 + $0x940] ss:$28 sps:$4 sm:$0xff]   ;;  %v9543_v26 = vld [vmem:[#allocation2 + $0x88] ss:$28 sps:$4 sm:$0xff]  }
 0x1ba   :  { %3208 = vmatprep.subr.bf16.mxu1 %v9495_v27  ;;  %v9546_v27 = vld [vmem:[#allocation2 + $0x90c] ss:$28 sps:$4 sm:$0xff]  }
 0x1bc   :  { %3166 = vmatpush1.bf16.msra.mxu0 %v9490_v28  ;;  %v9547_v28 = vld [vmem:[#allocation2 + $0x210] ss:$28 sps:$4 sm:$0xff]  }
 0x1bd   :  { %3209 = vmatpush1.bf16.msra.mxu1 %v9493_v29  ;;  %3167 = vmatprep.subr.bf16.mxu0 %v9498_v30  ;;  %v9544_v29 = vld [vmem:[#allocation2 + $0x908] ss:$28 sps:$4 sm:$0xff]   ;;  %v9548_v30 = vld [vmem:[#allocation2 + $0x50] ss:$28 sps:$4 sm:$0xff]  }
 0x1be   :  { %3210 = vmatprep.subr.bf16.mxu1 %v9501_v7  ;;  %v9551_v7 = vld [vmem:[#allocation2 + $0x8d4] ss:$28 sps:$4 sm:$0xff]  }
 0x1c0   :  { %3168 = vmatpush1.bf16.msra.mxu0 %v9496_v50  ;;  %v9552_v50 = vld [vmem:[#allocation2 + $0x1d8] ss:$28 sps:$4 sm:$0xff]  }
 0x1c1   :  { %3211 = vmatpush1.bf16.msra.mxu1 %v9499_v31  ;;  %3169 = vmatprep.subr.bf16.mxu0 %v9504_v32  ;;  %v9549_v31 = vld [vmem:[#allocation2 + $0x8d0] ss:$28 sps:$4 sm:$0xff]   ;;  %v9553_v32 = vld [vmem:[#allocation2 + $0x18] ss:$28 sps:$4 sm:$0xff]  }
 0x1c2   :  { %3212 = vmatprep.subr.bf16.mxu1 %v9507_v33  ;;  %v9554_v33 = vld [vmem:[#allocation2 + $0x6e0] ss:$28 sps:$4 sm:$0xff]  }
 0x1c4   :  { %3170 = vmatpush1.bf16.msra.mxu0 %v9502_v37  ;;  %v9555_v37 = vld [vmem:[#allocation2 + $0xa60] ss:$28 sps:$4 sm:$0xff]  }
 0x1c5   :  { %3213 = vmatpush1.bf16.msra.mxu1 %v9505_v39  ;;  %3171 = vmatprep.subr.bf16.mxu0 %v9510_v40  ;;  %v9556_v39 = vld [vmem:[#allocation2 + $0x520] ss:$28 sps:$4 sm:$0xff]  }
 0x1c6   :  { %3214 = vmatprep.subr.bf16.mxu1 %v9513_v42  ;;  %v9557_v40 = vld [vmem:[#allocation2 + $0x8a0] ss:$28 sps:$4 sm:$0xff]   ;;  %v9558_v42 = vld [vmem:[#allocation2 + $0x6a8] ss:$28 sps:$4 sm:$0xff]  }
 0x1c8   :  { %3172 = vmatpush1.bf16.msra.mxu0 %v9508_v43  ;;  %v9559_v43 = vld [vmem:[#allocation2 + $0xa28] ss:$28 sps:$4 sm:$0xff]  }
 0x1c9   :  { %3215 = vmatpush1.bf16.msra.mxu1 %v9511_v44  ;;  %3173 = vmatprep.subr.bf16.mxu0 %v9516_v45  ;;  %v10139_v44 = vld [vmem:[%s10564_s0 + $0x10] ss:$28 sps:$4 sm:$0xff]   ;;  %v9560_v45 = vld [vmem:[#allocation2 + $0x4e8] ss:$28 sps:$4 sm:$0xff]  }
 0x1ca   :  { %8779 = vmatprep.subr.bf16.mxu1 %v9517_v46  ;;  %v9561_v46 = vld [vmem:[#allocation2 + $0x868] ss:$28 sps:$4 sm:$0xff]  }
 0x1cb   :  { %v2847_v59 = vpop.f32.mrf.mxu0 }
 0x1cc   :  { %3233 = vmatmul.mubr.bf16.vlgmr.msra.gmra.mxu1 %v10124_v49  ;;  %v2848_v41 = vadd.f32 %v2847_v59, %v10094_v38  ;;  %3174 = vmatpush2.bf16.msra.mxu0 %v9514_v48  ;;  %v9531_v38 = vld [vmem:[#allocation2 + $0x9b4] ss:$28 sps:$4 sm:$0xff]  }
 0x1cd   :  { %8780 = vmatpush3.bf16.msra.mxu1 %v9518_v51  ;;  %v10130_v62 = vpop.f32.mrf.mxu0  ;;  %3175 = vmatprep.subr.bf16.mxu0 %v9521_v55  ;;  %v9562_v48 = vld [vmem:[#allocation2 + $0x670] ss:$28 sps:$4 sm:$0xff]   ;;  %v9568_v59 = vld [vmem:[#allocation2 + $0x478] ss:$28 sps:$4 sm:$0xff]  }
 0x1ce   :  { %8781 = vmatprep.subr.bf16.mxu1 %v9522_v56  ;;  %v2891_v63 = vadd.f32 %v2890_v54, %v2848_v41  ;;  %3275 = vmatprep.mubr.bf16.mxu1 %v10076_v60  ;;  %v9563_v51 = vld [vmem:[#allocation2 + $0x9f0] ss:$28 sps:$4 sm:$0xff]   ;;  %v9569_v41 = vld [vmem:[#allocation2 + $0x7f8] ss:$28 sps:$4 sm:$0xff]  }
 0x1cf   :  { %v2851_v1 = vpop.f32.mrf.mxu0  ;;  %v9665_v54 = vld [vmem:[%s10564_s0 + $0xc] ss:$28 sps:$4 sm:$0xff]  }
 0x1d0   :  { %v2852_v2 = vadd.f32 %v2851_v1, %v10096_v47  ;;  %3176 = vmatpush2.bf16.msra.mxu0 %v9519_v57  ;;  %v3407_v16 = vmax.f32 %v2891_v63, 0.0  ;;  %v9534_v47 = vld [vmem:[#allocation2 + $0x978] ss:$28 sps:$4 sm:$0xff]   ;;  %v9564_v55 = vld [vmem:[#allocation2 + $0x4b0] ss:$28 sps:$4 sm:$0xff]  }
 0x1d1   :  { %8782 = vmatpush3.bf16.msra.mxu1 %v9523_v58  ;;  %3177 = vmatprep.subr.bf16.mxu0 %v9526_v12  ;;  %v9565_v56 = vld [vmem:[#allocation2 + $0x830] ss:$28 sps:$4 sm:$0xff]   ;;  %v9567_v57 = vld [vmem:[#allocation2 + $0x9b8] ss:$28 sps:$4 sm:$0xff]   ;;  %v646_v58 = vsub.s32 1, %v10082_v9 }
 0x1d2   :  { %8783 = vmatprep.subr.bf16.mxu1 %v9527_v4  ;;  %v2895_v6 = vadd.f32 %v2894_v5, %v2852_v2  ;;  %v9570_v12 = vld [vmem:[#allocation2 + $0x600] ss:$28 sps:$4 sm:$0xff]   ;;  %v9574_v1 = vld [vmem:[#allocation2 + $0x5c8] ss:$28 sps:$4 sm:$0xff]  }
 0x1d3   :  { %v9571_v4 = vld [vmem:[#allocation2 + $0x980] ss:$28 sps:$4 sm:$0xff]   ;;  %v9575_v2 = vld [vmem:[#allocation2 + $0x948] ss:$28 sps:$4 sm:$0xff]  }
 0x1d4   :  { %v3414_v17 = vmax.f32 %v2895_v6, 0.0  ;;  %3178 = vmatpush2.bf16.msra.mxu0 %v9524_v0  ;;  %v9572_v63 = vld [vmem:[#allocation2 + $0x440] ss:$28 sps:$4 sm:$0xff]   ;;  %v9576_v5 = vld [vmem:[#allocation2 + $0x408] ss:$28 sps:$4 sm:$0xff]  }
 0x1d5   :  { %8784 = vmatpush3.bf16.msra.mxu1 %v9528_v35  ;;  %3179 = vmatprep.subr.bf16.mxu0 %v9531_v38  ;;  %v9573_v0 = vld [vmem:[#allocation2 + $0x7c0] ss:$28 sps:$4 sm:$0xff]   ;;  %v9577_v6 = vld [vmem:[#allocation2 + $0x788] ss:$28 sps:$4 sm:$0xff]  }
 0x1d6   :  { %8785 = vmatprep.subr.bf16.mxu1 %v9532_v3  ;;  %v10134_v60 = vpack.c.bf16 %v3414_v17, %v3407_v16  ;;  %v2853_v3 = vpop.f32.mrf.mxu0  ;;  %v9580_v16 = vld [vmem:[#allocation2 + $0x3d0] ss:$28 sps:$4 sm:$0xff]  }
 0x1d7   :  { %v9581_v17 = vld [vmem:[#allocation2 + $0x750] ss:$28 sps:$4 sm:$0xff]  }
 0x1d8   :  { %3180 = vmatpush2.bf16.msra.mxu0 %v9529_v11 }
 0x1d9   :  { %8786 = vmatpush3.bf16.msra.mxu1 %v9533_v13  ;;  %3181 = vmatprep.subr.bf16.mxu0 %v9536_v15  ;;  %v9579_v13 = vld [vmem:[#allocation2 + $0x910] ss:$28 sps:$4 sm:$0xff]  }
 0x1da   :  { %8787 = vmatprep.subr.bf16.mxu1 %v9537_v18  ;;  %v9582_v18 = vld [vmem:[#allocation2 + $0x558] ss:$28 sps:$4 sm:$0xff]  }
 0x1dc   :  { %3182 = vmatpush2.bf16.msra.mxu0 %v9534_v47  ;;  %v9583_v47 = vld [vmem:[#allocation2 + $0x8d8] ss:$28 sps:$4 sm:$0xff]  }
 0x1dd   :  { %8788 = vmatpush3.bf16.msra.mxu1 %v9538_v20  ;;  %3183 = vmatprep.subr.bf16.mxu0 %v9541_v23  ;;  %v2896_v20 = vpop.f32.mrf.mxu1  ;;  %v3484_v23 = vld [vmem:[#allocation6 + $0x1c0] sm:$0xff] }
 0x1de   :  { %8789 = vmatprep.subr.bf16.mxu1 %v9542_v24 }
 0x1e0   :  { %3184 = vmatpush2.bf16.msra.mxu0 %v9539_v25  ;;  %v9584_v25 = vld [vmem:[#allocation2 + $0x398] ss:$28 sps:$4 sm:$0xff]  }
 0x1e1   :  { %8790 = vmatpush3.bf16.msra.mxu1 %v9543_v26  ;;  %3185 = vmatprep.subr.bf16.mxu0 %v9546_v27  ;;  %v9585_v26 = vld [vmem:[#allocation2 + $0x718] ss:$28 sps:$4 sm:$0xff]  }
 0x1e2   :  { %8791 = vmatprep.subr.bf16.mxu1 %v9547_v28 }
 0x1e4   :  { %3186 = vmatpush2.bf16.msra.mxu0 %v9544_v29  ;;  %v3476_v29 = vld [vmem:[#allocation6 + $0x180] sm:$0xff] }
 0x1e5   :  { %8792 = vmatpush3.bf16.msra.mxu1 %v9548_v30  ;;  %3187 = vmatprep.subr.bf16.mxu0 %v9551_v7  ;;  %v9586_v7 = vld [vmem:[#allocation2 + $0xc20] ss:$28 sps:$4 sm:$0xff]  }
 0x1e6   :  { %8793 = vmatprep.subr.bf16.mxu1 %v9552_v50 }
 0x1e8   :  { %3188 = vmatpush2.bf16.msra.mxu0 %v9549_v31  ;;  %v9917_v31 = vmov 0.0  }
 0x1e9   :  { %8794 = vmatpush3.bf16.msra.mxu1 %v9553_v32  ;;  %8801 = vmatprep.subr.bf16.mxu0 %v9554_v33  ;;  %v3468_v33 = vld [vmem:[#allocation6 + $0x140] sm:$0xff] }
 0x1ea   :  { %8823 = vmatprep.subr.bf16.mxu1 %v9555_v37  ;;  %v3472_v37 = vld [vmem:[#allocation6 + $0x160] sm:$0xff] }
 0x1eb   :  { %3190 = vmatmul.mubr.bf16.vlgmr.msra.gmra.mxu0 %v10139_v44 }
 0x1ec   :  { %3276 = vmatmul.mubr.bf16.vlgmr.msra.gmra.mxu1 %v10101_v8  ;;  %8802 = vmatpush3.bf16.msra.mxu0 %v9556_v39  ;;  %v9566_v8 = vld [vmem:[#allocation2 + $0x638] ss:$28 sps:$4 sm:$0xff]  }
 0x1ed   :  { %8824 = vmatpush3.bf16.msra.mxu1 %v9557_v40  ;;  %8803 = vmatprep.subr.bf16.mxu0 %v9558_v42  ;;  %v9587_v40 = vld [vmem:[#allocation2 + $0xbe8] ss:$28 sps:$4 sm:$0xff]   ;;  %v8295_v42 = vcombine.high %v3468_v33, %v3472_v37 }
 0x1ee   :  { %8825 = vmatprep.subr.bf16.mxu1 %v9559_v43  ;;  %3316 = vmatprep.mubr.bf16.mxu0 %v9665_v54  ;;  %v3460_v43 = vld [vmem:[#allocation6 + $0x100] sm:$0xff] }
 0x1ef   :  { %3357 = vmatprep.mubr.bf16.mxu1 %v10114_v19  ;;  %v647_v19 = vrot.slane %v10084_v21, %v646_v58  ;;  %v9578_v21 = vld [vmem:[#allocation2 + $0x590] ss:$28 sps:$4 sm:$0xff]  }
 0x1f0   :  { %8804 = vmatpush3.bf16.msra.mxu0 %v9560_v45  ;;  %v3464_v45 = vld [vmem:[#allocation6 + $0x120] sm:$0xff] }
 0x1f1   :  { %8826 = vmatpush3.bf16.msra.mxu1 %v9561_v46  ;;  %8805 = vmatprep.subr.bf16.mxu0 %v9562_v48  ;;  %v2768_v35 = vadd.f32 %v10119_v53, %v647_v19  ;;  %v2764_v38 = vadd.f32 %v10090_v34, %v647_v19  ;;  %v9588_v46 = vld [vmem:[#allocation2 + $0xbb0] ss:$28 sps:$4 sm:$0xff]   ;;  %v8286_v54 = vcombine.low %v3460_v43, %v3464_v45 }
 0x1f2   :  { %8827 = vmatprep.subr.bf16.mxu1 %v9563_v51  ;;  %v3452_v48 = vld [vmem:[#allocation6 + $0xc0] sm:$0xff] }
 0x1f3   :  { %v2811_v11 = vadd.f32 %v10117_v52, %v2768_v35  ;;  %v2807_v15 = vadd.f32 %v10092_v36, %v2764_v38  ;;  %v3488_v52 = vld [vmem:[#allocation6 + $0x1e0] sm:$0xff]  ;;  %v10168_v35 = vpop.f32.mrf.mxu1 }
 0x1f4   :  { %8806 = vmatpush3.bf16.msra.mxu0 %v9564_v55  ;;  %v8311_v27 = vcombine.high %v3484_v23, %v3488_v52  ;;  %v8310_v30 = vcombine.low %v3484_v23, %v3488_v52  ;;  %v3456_v51 = vld [vmem:[#allocation6 + $0xe0] sm:$0xff]  ;;  %v9589_v55 = vld [vmem:[#allocation2 + $0xb78] ss:$28 sps:$4 sm:$0xff]  }
 0x1f5   :  { %8828 = vmatpush3.bf16.msra.mxu1 %v9565_v56  ;;  %8807 = vmatprep.subr.bf16.mxu0 %v9566_v8  ;;  %v2854_v53 = vadd.f32 %v2853_v3, %v2811_v11  ;;  %v2850_v34 = vadd.f32 %v10130_v62, %v2807_v15  ;;  %v3480_v62 = vld [vmem:[#allocation6 + $0x1a0] sm:$0xff]  ;;  %v8279_v56 = vcombine.high %v3452_v48, %v3456_v51  ;;  %v2935_v11 = vpop.f32.mrf.mxu1 }
 0x1f6   :  { %8829 = vmatprep.subr.bf16.mxu1 %v9567_v57  ;;  %v8303_v32 = vcombine.high %v3476_v29, %v3480_v62  ;;  %v3444_v8 = vld [vmem:[#allocation6 + $0x80] sm:$0xff] }
 0x1f7   :  { %v2897_v24 = vadd.f32 %v2896_v20, %v2854_v53  ;;  %v2893_v36 = vadd.f32 %v10128_v61, %v2850_v34  ;;  %v8302_v61 = vcombine.low %v3476_v29, %v3480_v62  ;;  %v3448_v57 = vld [vmem:[#allocation6 + $0xa0] sm:$0xff]  ;;  %v654_v53 = vsub.s32 3, %v10082_v9  ;;  %v10175_v20 = vpop.f32.mrf.mxu1 }
 0x1f8   :  { %8808 = vmatpush3.bf16.msra.mxu0 %v9568_v59  ;;  %v8278_v59 = vcombine.low %v3452_v48, %v3456_v51  ;;  %v3440_v19 = vld [vmem:[#allocation6 + $0x60] sm:$0xff] }
 0x1f9   :  { %8830 = vmatpush3.bf16.msra.mxu1 %v9569_v41  ;;  %8809 = vmatprep.subr.bf16.mxu0 %v9570_v12  ;;  %v3415_v28 = vmax.f32 %v2897_v24, 0.0  ;;  %v3408_v50 = vmax.f32 %v2893_v36, 0.0  ;;  %v9590_v41 = vld [vmem:[#allocation2 + $0xb40] ss:$28 sps:$4 sm:$0xff]   ;;  %v8271_v12 = vcombine.high %v3444_v8, %v3448_v57  ;;  %v3428_v38 = vld [vmem:[#allocation6] sm:$0xff] }
 0x1fa   :  { %8831 = vmatprep.subr.bf16.mxu1 %v9571_v4  ;;  %v3436_v4 = vld [vmem:[#allocation6 + $0x40] sm:$0xff] }
 0x1fb   :  { %v10158_v39 = vpack.c.bf16 %v3415_v28, %v3408_v50  ;;  %v3432_v3 = vld [vmem:[#allocation6 + $0x20] sm:$0xff] }
 0x1fc   :  { %8810 = vmatpush3.bf16.msra.mxu0 %v9572_v63  ;;  %v8270_v63 = vcombine.low %v3444_v8, %v3448_v57  ;;  %v3548_v15 = vld [vmem:[#allocation6 + $0x3c0] sm:$0xff] }
 0x1fd   :  { %8832 = vmatpush3.bf16.msra.mxu1 %v9573_v0  ;;  %8811 = vmatprep.subr.bf16.mxu0 %v9574_v1  ;;  %v9591_v0 = vld [vmem:[#allocation2 + $0xb08] ss:$28 sps:$4 sm:$0xff]  }
 0x1fe   :  { %8833 = vmatprep.subr.bf16.mxu1 %v9575_v2  ;;  %v8263_v2 = vcombine.high %v3436_v4, %v3440_v19  ;;  %v3616_v34 = vld [vmem:[#allocation6 + $0x5e0] sm:$0xff] }
 0x1ff   :  { %v3604_v28 = vld [vmem:[#allocation6 + $0x580] sm:$0xff] }
 0x200   :  { %8812 = vmatpush3.bf16.msra.mxu0 %v9576_v5  ;;  %v8262_v5 = vcombine.low %v3436_v4, %v3440_v19  ;;  %v3608_v29 = vld [vmem:[#allocation6 + $0x5a0] sm:$0xff] }
 0x201   :  { %8834 = vmatpush3.bf16.msra.mxu1 %v9577_v6  ;;  %8813 = vmatprep.subr.bf16.mxu0 %v9578_v21  ;;  %v9592_v6 = vld [vmem:[#allocation2 + $0xad0] ss:$28 sps:$4 sm:$0xff]  }
 0x202   :  { %8835 = vmatprep.subr.bf16.mxu1 %v9579_v13  ;;  %v8255_v13 = vcombine.high %v3428_v38, %v3432_v3 }
 0x204   :  { %8814 = vmatpush3.bf16.msra.mxu0 %v9580_v16  ;;  %v3552_v16 = vld [vmem:[#allocation6 + $0x3e0] sm:$0xff] }
 0x205   :  { %8836 = vmatpush3.bf16.msra.mxu1 %v9581_v17  ;;  %8815 = vmatprep.subr.bf16.mxu0 %v9582_v18  ;;  %v3612_v17 = vld [vmem:[#allocation6 + $0x5c0] sm:$0xff]  ;;  %v8254_v18 = vcombine.low %v3428_v38, %v3432_v3  ;;  %v8375_v52 = vcombine.high %v3548_v15, %v3552_v16  ;;  %v8374_v62 = vcombine.low %v3548_v15, %v3552_v16 }
 0x206   :  { %8837 = vmatprep.subr.bf16.mxu1 %v9583_v47  ;;  %v9593_v47 = vld [vmem:[#allocation2 + $0xa98] ss:$28 sps:$4 sm:$0xff]   ;;  %v8439_v24 = vcombine.high %v3612_v17, %v3616_v34  ;;  %v3584_v15 = vld [vmem:[#allocation6 + $0x4e0] sm:$0xff] }
 0x208   :  { %8816 = vmatpush3.bf16.msra.mxu0 %v9584_v25  ;;  %v3540_v25 = vld [vmem:[#allocation6 + $0x380] sm:$0xff] }
 0x209   :  { %8838 = vmatpush3.bf16.msra.mxu1 %v9585_v26  ;;  %8957 = vmatprep.subr.bf16.mxu0 %v9917_v31  ;;  %v10180_v26 = vld [vmem:[#allocation4] sm:$0xff] }
 0x20a   :  { %6158 = vmatprep.subr.bf16.mxu1 %v8311_v27  ;;  %v655_v36 = vrot.slane %v10180_v26, %v654_v53  ;;  %v3544_v27 = vld [vmem:[#allocation6 + $0x3a0] sm:$0xff] }
 0x20b   :  { %3317 = vmatmul.mubr.bf16.vlgmr.msra.gmra.mxu0 %v10107_v10  ;;  %v8294_v10 = vcombine.low %v3468_v33, %v3472_v37  ;;  %v10170_v1 = vpop.f32.mrf.mxu0  ;;  %v3532_v33 = vld [vmem:[#allocation6 + $0x340] sm:$0xff] }
 0x20c   :  { %3358 = vmatmul.mubr.bf16.vlgmr.msra.gmra.mxu1 %v10139_v44  ;;  %8958 = vmatpush3.bf16.msra.mxu0 %v9586_v7  ;;  %v8287_v44 = vcombine.high %v3460_v43, %v3464_v45  ;;  %v2939_v7 = vpop.f32.mrf.mxu1  ;;  %v2936_v37 = vadd.f32 %v2935_v11, %v655_v36 }
 0x20d   :  { %6159 = vmatpush1.bf16.msra.mxu1 %v8310_v30  ;;  %6190 = vmatprep.mubr.bf16.mxu1 %v10158_v39  ;;  %v2978_v21 = vpop.f32.mrf.mxu0  ;;  %v8438_v30 = vcombine.low %v3612_v17, %v3616_v34  ;;  %v2940_v8 = vadd.f32 %v2939_v7, %v655_v36 }
 0x20e   :  { %8959 = vmatprep.subr.bf16.mxu0 %v9917_v31  ;;  %6160 = vmatprep.subr.bf16.mxu1 %v8303_v32  ;;  %v8431_v32 = vcombine.high %v3604_v28, %v3608_v29 }
 0x20f   :  { %8973 = vmatprep.mubr.msk.bf16.mxu0 %vm9918_vm0, %v9917_v31  ;;  %v10177_v23 = vpop.f32.mrf.mxu0 }
 0x210   :  { %8960 = vmatpush3.bf16.msra.mxu0 %v9587_v40  ;;  %v3596_v40 = vld [vmem:[#allocation6 + $0x540] sm:$0xff] }
 0x211   :  { %6161 = vmatpush1.bf16.msra.mxu1 %v8302_v61  ;;  %8961 = vmatprep.subr.bf16.mxu0 %v9917_v31  ;;  %v2982_v50 = vpop.f32.mrf.mxu0  ;;  %v3536_v61 = vld [vmem:[#allocation6 + $0x360] sm:$0xff] }
 0x212   :  { %6162 = vmatprep.subr.bf16.mxu1 %v8295_v42  ;;  %v3600_v42 = vld [vmem:[#allocation6 + $0x560] sm:$0xff]  ;;  %v2983_v19 = vadd.f32 %v2982_v50, %v2940_v8 }
 0x214   :  { %8962 = vmatpush3.bf16.msra.mxu0 %v9588_v46  ;;  %v8366_v46 = vcombine.low %v3540_v25, %v3544_v27 }
 0x215   :  { %6163 = vmatpush1.bf16.msra.mxu1 %v8294_v10  ;;  %8963 = vmatprep.subr.bf16.mxu0 %v9917_v31  ;;  %v2979_v10 = vadd.f32 %v2978_v21, %v2936_v37  ;;  %v3520_v21 = vld [vmem:[#allocation6 + $0x2e0] sm:$0xff] }
 0x216   :  { %6164 = vmatprep.subr.bf16.mxu1 %v8287_v44  ;;  %v8430_v44 = vcombine.low %v3604_v28, %v3608_v29  ;;  %v3572_v28 = vld [vmem:[#allocation6 + $0x480] sm:$0xff] }
 0x217   :  { %v3576_v29 = vld [vmem:[#allocation6 + $0x4a0] sm:$0xff] }
 0x218   :  { %8964 = vmatpush3.bf16.msra.mxu0 %v9589_v55  ;;  %v8423_v55 = vcombine.high %v3596_v40, %v3600_v42  ;;  %v3564_v37 = vld [vmem:[#allocation6 + $0x440] sm:$0xff] }
 0x219   :  { %6165 = vmatpush1.bf16.msra.mxu1 %v8286_v54  ;;  %8965 = vmatprep.subr.bf16.mxu0 %v9917_v31  ;;  %v8359_v54 = vcombine.high %v3532_v33, %v3536_v61 }
 0x21a   :  { %6166 = vmatprep.subr.bf16.mxu1 %v8279_v56  ;;  %v3524_v56 = vld [vmem:[#allocation6 + $0x300] sm:$0xff] }
 0x21c   :  { %8966 = vmatpush3.bf16.msra.mxu0 %v9590_v41  ;;  %v3588_v41 = vld [vmem:[#allocation6 + $0x500] sm:$0xff] }
 0x21d   :  { %6167 = vmatpush1.bf16.msra.mxu1 %v8278_v59  ;;  %8967 = vmatprep.subr.bf16.mxu0 %v9917_v31  ;;  %v3528_v59 = vld [vmem:[#allocation6 + $0x320] sm:$0xff] }
 0x21e   :  { %6168 = vmatprep.subr.bf16.mxu1 %v8271_v12  ;;  %v3592_v12 = vld [vmem:[#allocation6 + $0x520] sm:$0xff]  ;;  %v8351_v38 = vcombine.high %v3524_v56, %v3528_v59  ;;  %v8350_v34 = vcombine.low %v3524_v56, %v3528_v59 }
 0x21f   :  { %v8415_v3 = vcombine.high %v3588_v41, %v3592_v12  ;;  %v3676_v59 = vld [vmem:[#allocation6 + $0x7c0] sm:$0xff] }
 0x220   :  { %8968 = vmatpush3.bf16.msra.mxu0 %v9591_v0  ;;  %v8422_v0 = vcombine.low %v3596_v40, %v3600_v42  ;;  %v8398_v42 = vcombine.low %v3572_v28, %v3576_v29 }
 0x221   :  { %6169 = vmatpush1.bf16.msra.mxu1 %v8270_v63  ;;  %8969 = vmatprep.subr.bf16.mxu0 %v9917_v31  ;;  %v8358_v63 = vcombine.low %v3532_v33, %v3536_v61  ;;  %v3504_v33 = vld [vmem:[#allocation6 + $0x260] sm:$0xff] }
 0x222   :  { %6170 = vmatprep.subr.bf16.mxu1 %v8263_v2  ;;  %v3568_v61 = vld [vmem:[#allocation6 + $0x460] sm:$0xff] }
 0x223   :  { %v8390_v56 = vcombine.low %v3564_v37, %v3568_v61 }
 0x224   :  { %8970 = vmatpush3.bf16.msra.mxu0 %v9592_v6 }
 0x225   :  { %6171 = vmatpush1.bf16.msra.mxu1 %v8262_v5  ;;  %8971 = vmatprep.subr.bf16.mxu0 %v9917_v31  ;;  %v8367_v31 = vcombine.high %v3540_v25, %v3544_v27  ;;  %v3516_v5 = vld [vmem:[#allocation6 + $0x2c0] sm:$0xff] }
 0x226   :  { %6172 = vmatprep.subr.bf16.mxu1 %v8255_v13  ;;  %v3580_v13 = vld [vmem:[#allocation6 + $0x4c0] sm:$0xff] }
 0x227   :  { %v3512_v27 = vld [vmem:[#allocation6 + $0x2a0] sm:$0xff]  ;;  %v8406_v7 = vcombine.low %v3580_v13, %v3584_v15 }
 0x228   :  { %8972 = vmatpush3.bf16.msra.mxu0 %v9593_v47  ;;  %v8343_v47 = vcombine.high %v3516_v5, %v3520_v21 }
 0x229   :  { %6173 = vmatpush1.bf16.msra.mxu1 %v8254_v18  ;;  %6201 = vmatprep.subr.bf16.mxu0 %v8439_v24  ;;  %v8414_v18 = vcombine.low %v3588_v41, %v3592_v12  ;;  %v3508_v24 = vld [vmem:[#allocation6 + $0x280] sm:$0xff] }
 0x22a   :  { %6174 = vmatprep.subr.bf16.mxu1 %v8375_v52  ;;  %v8407_v52 = vcombine.high %v3580_v13, %v3584_v15  ;;  %v8335_v50 = vcombine.high %v3508_v24, %v3512_v27  ;;  %v8334_v40 = vcombine.low %v3508_v24, %v3512_v27  ;;  %v3680_v41 = vld [vmem:[#allocation6 + $0x7e0] sm:$0xff] }
 0x22b   :  { %v10187_v45 = vpop.f32.mrf.mxu0  ;;  %8974 = vmatmul.mubr.bf16.vlgmr.msra.gmra.mxu0 %v10124_v49  ;;  %v3740_v12 = vld [vmem:[#allocation6 + $0x9c0] sm:$0xff] }
 0x22c   :  { %v10185_v43 = vpop.f32.mrf.mxu1  ;;  %6202 = vmatpush1.bf16.msra.mxu0 %v8438_v30  ;;  %v8342_v30 = vcombine.low %v3516_v5, %v3520_v21  ;;  %v3672_v5 = vld [vmem:[#allocation6 + $0x7a0] sm:$0xff]  ;;  %v8502_v21 = vcombine.low %v3676_v59, %v3680_v41 }
 0x22d   :  { %6175 = vmatpush2.bf16.msra.mxu1 %v8374_v62  ;;  %v3064_v51 = vpop.f32.mrf.mxu0  ;;  %6203 = vmatprep.subr.bf16.mxu0 %v8431_v32  ;;  %v3500_v32 = vld [vmem:[#allocation6 + $0x240] sm:$0xff] }
 0x22e   :  { %v3021_v48 = vpop.f32.mrf.mxu1  ;;  %6176 = vmatprep.subr.bf16.mxu1 %v8367_v31  ;;  %v8399_v31 = vcombine.high %v3572_v28, %v3576_v29  ;;  %v3656_v28 = vld [vmem:[#allocation6 + $0x720] sm:$0xff] }
 0x22f   :  { %v3022_v57 = vadd.f32 %v3021_v48, %v2979_v10  ;;  %v10192_v49 = vpop.f32.mrf.mxu0  ;;  %v8327_v10 = vcombine.high %v3500_v32, %v3504_v33  ;;  %v3496_v48 = vld [vmem:[#allocation6 + $0x220] sm:$0xff] }
 0x230   :  { %v10190_v4 = vpop.f32.mrf.mxu1  ;;  %6204 = vmatpush1.bf16.msra.mxu0 %v8430_v44  ;;  %v3492_v44 = vld [vmem:[#allocation6 + $0x200] sm:$0xff] }
 0x231   :  { %6177 = vmatpush2.bf16.msra.mxu1 %v8366_v46  ;;  %6205 = vmatprep.subr.bf16.mxu0 %v8423_v55  ;;  %v3065_v6 = vadd.f32 %v3064_v51, %v3022_v57  ;;  %v3068_v16 = vpop.f32.mrf.mxu0  ;;  %v8391_v46 = vcombine.high %v3564_v37, %v3568_v61  ;;  %v3556_v51 = vld [vmem:[#allocation6 + $0x400] sm:$0xff]  ;;  %v8326_v55 = vcombine.low %v3500_v32, %v3504_v33 }
 0x232   :  { %v3025_v2 = vpop.f32.mrf.mxu1  ;;  %6178 = vmatprep.subr.bf16.mxu1 %v8359_v54  ;;  %v3560_v54 = vld [vmem:[#allocation6 + $0x420] sm:$0xff]  ;;  %v8319_v8 = vcombine.high %v3492_v44, %v3496_v48 }
 0x233   :  { %v3026_v11 = vadd.f32 %v3025_v2, %v2983_v19  ;;  %v3410_v25 = vmax.f32 %v3065_v6, 0.0  ;;  %v8383_v57 = vcombine.high %v3556_v51, %v3560_v54  ;;  %v3744_v19 = vld [vmem:[#allocation6 + $0x9e0] sm:$0xff]  ;;  %v8503_v2 = vcombine.high %v3676_v59, %v3680_v41 }
 0x234   :  { %6206 = vmatpush1.bf16.msra.mxu0 %v8422_v0  ;;  %v8382_v0 = vcombine.low %v3556_v51, %v3560_v54  ;;  %v3732_v6 = vld [vmem:[#allocation6 + $0x980] sm:$0xff]  ;;  %v8566_v13 = vcombine.low %v3740_v12, %v3744_v19 }
 0x235   :  { %v3069_v17 = vadd.f32 %v3068_v16, %v3026_v11  ;;  %6179 = vmatpush2.bf16.msra.mxu1 %v8358_v63  ;;  %6207 = vmatprep.subr.bf16.mxu0 %v8415_v3  ;;  %v8318_v63 = vcombine.low %v3492_v44, %v3496_v48  ;;  %v8567_v3 = vcombine.high %v3740_v12, %v3744_v19  ;;  %v3736_v11 = vld [vmem:[#allocation6 + $0x9a0] sm:$0xff] }
 0x236   :  { %6180 = vmatprep.subr.bf16.mxu1 %v8351_v38  ;;  %v3668_v38 = vld [vmem:[#allocation6 + $0x780] sm:$0xff]  ;;  %v8558_v24 = vcombine.low %v3732_v6, %v3736_v11 }
 0x237   :  { %v3417_v36 = vmax.f32 %v3069_v17, 0.0  ;;  %v8495_v15 = vcombine.high %v3668_v38, %v3672_v5  ;;  %v3660_v16 = vld [vmem:[#allocation6 + $0x740] sm:$0xff]  ;;  %v8559_v17 = vcombine.high %v3732_v6, %v3736_v11 }
 0x238   :  { %6208 = vmatpush1.bf16.msra.mxu0 %v8414_v18  ;;  %v3724_v18 = vld [vmem:[#allocation6 + $0x940] sm:$0xff] }
 0x239   :  { %v10194_v62 = vpack.c.bf16 %v3417_v36, %v3410_v25  ;;  %6181 = vmatpush2.bf16.msra.mxu1 %v8350_v34  ;;  %6209 = vmatprep.subr.bf16.mxu0 %v8407_v52  ;;  %v3664_v34 = vld [vmem:[#allocation6 + $0x760] sm:$0xff]  ;;  %v8494_v52 = vcombine.low %v3668_v38, %v3672_v5 }
 0x23a   :  { %6182 = vmatprep.subr.bf16.mxu1 %v8343_v47  ;;  %v3728_v47 = vld [vmem:[#allocation6 + $0x960] sm:$0xff]  ;;  %v8487_v25 = vcombine.high %v3660_v16, %v3664_v34 }
 0x23b   :  { %6233 = vmatprep.mubr.bf16.mxu0 %v10194_v62  ;;  %v3652_v36 = vld [vmem:[#allocation6 + $0x700] sm:$0xff]  ;;  %v8551_v27 = vcombine.high %v3724_v18, %v3728_v47 }
 0x23c   :  { %6210 = vmatpush1.bf16.msra.mxu0 %v8406_v7  ;;  %v3716_v29 = vld [vmem:[#allocation6 + $0x900] sm:$0xff]  ;;  %v8486_v7 = vcombine.low %v3660_v16, %v3664_v34  ;;  %v8479_v32 = vcombine.high %v3652_v36, %v3656_v28 }
 0x23d   :  { %6183 = vmatpush2.bf16.msra.mxu1 %v8342_v30  ;;  %6211 = vmatprep.subr.bf16.mxu0 %v8399_v31  ;;  %v3720_v30 = vld [vmem:[#allocation6 + $0x920] sm:$0xff]  ;;  %v650_v31 = vsub.s32 2, %v10082_v9 }
 0x23e   :  { %6184 = vmatprep.subr.bf16.mxu1 %v8335_v50  ;;  %v8550_v50 = vcombine.low %v3724_v18, %v3728_v47  ;;  %v3644_v33 = vld [vmem:[#allocation6 + $0x6c0] sm:$0xff]  ;;  %v8543_v37 = vcombine.high %v3716_v29, %v3720_v30 }
 0x23f   :  { %v3648_v61 = vld [vmem:[#allocation6 + $0x6e0] sm:$0xff]  ;;  %v651_v44 = vrot.slane %v10180_v26, %v650_v31 }
 0x240   :  { %6212 = vmatpush1.bf16.msra.mxu0 %v8398_v42  ;;  %v3712_v42 = vld [vmem:[#allocation6 + $0x8e0] sm:$0xff]  ;;  %v8471_v48 = vcombine.high %v3644_v33, %v3648_v61 }
 0x241   :  { %6185 = vmatpush2.bf16.msra.mxu1 %v8334_v40  ;;  %6213 = vmatprep.subr.bf16.mxu0 %v8391_v46  ;;  %v3708_v40 = vld [vmem:[#allocation6 + $0x8c0] sm:$0xff]  ;;  %v8542_v46 = vcombine.low %v3716_v29, %v3720_v30  ;;  %v2938_v41 = vadd.f32 %v10175_v20, %v651_v44 }
 0x242   :  { %6186 = vmatprep.subr.bf16.mxu1 %v8327_v10  ;;  %v8478_v10 = vcombine.low %v3652_v36, %v3656_v28  ;;  %v3636_v51 = vld [vmem:[#allocation6 + $0x680] sm:$0xff]  ;;  %v8535_v54 = vcombine.high %v3708_v40, %v3712_v42  ;;  %v8534_v59 = vcombine.low %v3708_v40, %v3712_v42 }
 0x243   :  { %v3628_v19 = vld [vmem:[#allocation6 + $0x640] sm:$0xff]  ;;  %v2981_v5 = vadd.f32 %v10177_v23, %v2938_v41 }
 0x244   :  { %6214 = vmatpush1.bf16.msra.mxu0 %v8390_v56  ;;  %v3700_v56 = vld [vmem:[#allocation6 + $0x880] sm:$0xff] }
 0x245   :  { %6187 = vmatpush2.bf16.msra.mxu1 %v8326_v55  ;;  %6215 = vmatprep.subr.bf16.mxu0 %v8383_v57  ;;  %v3640_v55 = vld [vmem:[#allocation6 + $0x6a0] sm:$0xff]  ;;  %v8470_v57 = vcombine.low %v3644_v33, %v3648_v61  ;;  %v3024_v20 = vadd.f32 %v10190_v4, %v2981_v5 }
 0x246   :  { %6188 = vmatprep.subr.bf16.mxu1 %v8319_v8  ;;  %v3704_v8 = vld [vmem:[#allocation6 + $0x8a0] sm:$0xff]  ;;  %v8463_v12 = vcombine.high %v3636_v51, %v3640_v55  ;;  %v8462_v6 = vcombine.low %v3636_v51, %v3640_v55 }
 0x247   :  { %v3696_v38 = vld [vmem:[#allocation6 + $0x860] sm:$0xff] }
 0x248   :  { %6216 = vmatpush1.bf16.msra.mxu0 %v8382_v0  ;;  %v8527_v0 = vcombine.high %v3700_v56, %v3704_v8  ;;  %v3684_v34 = vld [vmem:[#allocation6 + $0x800] sm:$0xff] }
 0x249   :  { %6189 = vmatpush2.bf16.msra.mxu1 %v8318_v63  ;;  %6217 = vmatprep.subr.bf16.mxu0 %v8503_v2  ;;  %v3632_v63 = vld [vmem:[#allocation6 + $0x660] sm:$0xff] }
 0x24a   :  { %6244 = vmatprep.subr.bf16.mxu1 %v8567_v3  ;;  %v3692_v2 = vld [vmem:[#allocation6 + $0x840] sm:$0xff]  ;;  %v2934_v3 = vadd.f32 %v10168_v35, %v651_v44  ;;  %v8455_v11 = vcombine.high %v3628_v19, %v3632_v63  ;;  %v8454_v23 = vcombine.low %v3628_v19, %v3632_v63 }
 0x24b   :  { %v8519_v16 = vcombine.high %v3692_v2, %v3696_v38  ;;  %v3688_v18 = vld [vmem:[#allocation6 + $0x820] sm:$0xff]  ;;  %v8518_v47 = vcombine.low %v3692_v2, %v3696_v38 }
 0x24c   :  { %6191 = vmatmul.mubr.bf16.vlgmr.msra.gmra.mxu1 %v10134_v60  ;;  %6218 = vmatpush2.bf16.msra.mxu0 %v8502_v21  ;;  %v8526_v21 = vcombine.low %v3700_v56, %v3704_v8  ;;  %v3804_v4 = vld [vmem:[#allocation6 + $0xbc0] sm:$0xff] }
 0x24d   :  { %6245 = vmatpush1.bf16.msra.mxu1 %v8566_v13  ;;  %6219 = vmatprep.subr.bf16.mxu0 %v8495_v15  ;;  %v2977_v13 = vadd.f32 %v10170_v1, %v2934_v3  ;;  %v3620_v15 = vld [vmem:[#allocation6 + $0x600] sm:$0xff]  ;;  %v8511_v1 = vcombine.high %v3684_v34, %v3688_v18 }
 0x24e   :  { %6246 = vmatprep.subr.bf16.mxu1 %v8559_v17  ;;  %v3624_v17 = vld [vmem:[#allocation6 + $0x620] sm:$0xff] }
 0x24f   :  { %v3020_v35 = vadd.f32 %v10185_v43, %v2977_v13  ;;  %v3868_v36 = vld [vmem:[#allocation6 + $0xdc0] sm:$0xff]  ;;  %v8446_v29 = vcombine.low %v3620_v15, %v3624_v17  ;;  %v8510_v43 = vcombine.low %v3684_v34, %v3688_v18  ;;  %v10216_v13 = vld [vmem:[#allocation6 + $0x1e8] sm:$0xff] }
 0x250   :  { %6220 = vmatpush2.bf16.msra.mxu0 %v8494_v52  ;;  %v3067_v52 = vadd.f32 %v10192_v49, %v3024_v20  ;;  %v3860_v33 = vld [vmem:[#allocation6 + $0xd80] sm:$0xff] }
 0x251   :  { %6247 = vmatpush1.bf16.msra.mxu1 %v8558_v24  ;;  %6221 = vmatprep.subr.bf16.mxu0 %v8487_v25  ;;  %v8447_v24 = vcombine.high %v3620_v15, %v3624_v17  ;;  %v3808_v25 = vld [vmem:[#allocation6 + $0xbe0] sm:$0xff]  ;;  %v3063_v28 = vadd.f32 %v10187_v45, %v3020_v35 }
 0x252   :  { %6248 = vmatprep.subr.bf16.mxu1 %v8551_v27  ;;  %v3872_v27 = vld [vmem:[#allocation6 + $0xde0] sm:$0xff]  ;;  %v3416_v30 = vmax.f32 %v3067_v52, 0.0  ;;  %v8630_v40 = vcombine.low %v3804_v4, %v3808_v25 }
 0x253   :  { %v8695_v49 = vcombine.high %v3868_v36, %v3872_v27  ;;  %v3409_v61 = vmax.f32 %v3063_v28, 0.0  ;;  %v8694_v42 = vcombine.low %v3868_v36, %v3872_v27  ;;  %v3852_v51 = vld [vmem:[#allocation6 + $0xd40] sm:$0xff] }
 0x254   :  { %6222 = vmatpush2.bf16.msra.mxu0 %v8486_v7  ;;  %v8631_v7 = vcombine.high %v3804_v4, %v3808_v25  ;;  %v3784_v41 = vld [vmem:[#allocation6 + $0xb20] sm:$0xff] }
 0x255   :  { %6249 = vmatpush1.bf16.msra.mxu1 %v8550_v50  ;;  %6223 = vmatprep.subr.bf16.mxu0 %v8479_v32  ;;  %v3796_v50 = vld [vmem:[#allocation6 + $0xb80] sm:$0xff] }
 0x256   :  { %6250 = vmatprep.subr.bf16.mxu1 %v8543_v37  ;;  %v3800_v32 = vld [vmem:[#allocation6 + $0xba0] sm:$0xff] }
 0x257   :  { %v3864_v37 = vld [vmem:[#allocation6 + $0xda0] sm:$0xff]  ;;  %v8623_v45 = vcombine.high %v3796_v50, %v3800_v32  ;;  %v8622_v55 = vcombine.low %v3796_v50, %v3800_v32 }
 0x258   :  { %6224 = vmatpush2.bf16.msra.mxu0 %v8478_v10  ;;  %v10210_v10 = vpack.c.bf16 %v3416_v30, %v3409_v61  ;;  %v8687_v44 = vcombine.high %v3860_v33, %v3864_v37  ;;  %v8686_v56 = vcombine.low %v3860_v33, %v3864_v37  ;;  %v3848_v19 = vld [vmem:[#allocation6 + $0xd20] sm:$0xff] }
 0x259   :  { %6251 = vmatpush1.bf16.msra.mxu1 %v8542_v46  ;;  %6225 = vmatprep.subr.bf16.mxu0 %v8471_v48  ;;  %v3788_v46 = vld [vmem:[#allocation6 + $0xb40] sm:$0xff] }
 0x25a   :  { %6252 = vmatprep.subr.bf16.mxu1 %v8535_v54  ;;  %v3792_v48 = vld [vmem:[#allocation6 + $0xb60] sm:$0xff] }
 0x25b   :  { %v3856_v54 = vld [vmem:[#allocation6 + $0xd60] sm:$0xff]  ;;  %v8615_v8 = vcombine.high %v3788_v46, %v3792_v48  ;;  %v8614_v63 = vcombine.low %v3788_v46, %v3792_v48  ;;  %v10222_v46 = vld [vmem:[#allocation6 + $0x5e8] sm:$0xff] }
 0x25c   :  { %6226 = vmatpush2.bf16.msra.mxu0 %v8470_v57  ;;  %v3780_v57 = vld [vmem:[#allocation6 + $0xb00] sm:$0xff] }
 0x25d   :  { %6253 = vmatpush1.bf16.msra.mxu1 %v8534_v59  ;;  %6227 = vmatprep.subr.bf16.mxu0 %v8463_v12  ;;  %v8679_v59 = vcombine.high %v3852_v51, %v3856_v54  ;;  %v3844_v12 = vld [vmem:[#allocation6 + $0xd00] sm:$0xff]  ;;  %v8607_v2 = vcombine.high %v3780_v57, %v3784_v41  ;;  %v8606_v20 = vcombine.low %v3780_v57, %v3784_v41  ;;  %v662_v57 = vsub.s32 5, %v10082_v9 }
 0x25e   :  { %6254 = vmatprep.subr.bf16.mxu1 %v8527_v0  ;;  %v8678_v0 = vcombine.low %v3852_v51, %v3856_v54  ;;  %v3772_v38 = vld [vmem:[#allocation6 + $0xac0] sm:$0xff]  ;;  %v8671_v3 = vcombine.high %v3844_v12, %v3848_v19  ;;  %v8670_v15 = vcombine.low %v3844_v12, %v3848_v19 }
 0x25f   :  { %v3776_v5 = vld [vmem:[#allocation6 + $0xae0] sm:$0xff]  ;;  %v663_v19 = vrot.slane %v10180_v26, %v662_v57 }
 0x260   :  { %6228 = vmatpush2.bf16.msra.mxu0 %v8462_v6  ;;  %v3836_v6 = vld [vmem:[#allocation6 + $0xcc0] sm:$0xff]  ;;  %v8599_v17 = vcombine.high %v3772_v38, %v3776_v5  ;;  %v8598_v52 = vcombine.low %v3772_v38, %v3776_v5 }
 0x261   :  { %6255 = vmatpush1.bf16.msra.mxu1 %v8526_v21  ;;  %6229 = vmatprep.subr.bf16.mxu0 %v8455_v11  ;;  %v3840_v11 = vld [vmem:[#allocation6 + $0xce0] sm:$0xff]  ;;  %v10214_v21 = vld [vmem:[#allocation6 + $0x1c8] sm:$0xff] }
 0x262   :  { %6256 = vmatprep.subr.bf16.mxu1 %v8519_v16  ;;  %v8312_v16 = vcombine.low %v10214_v21, %v10216_v13  ;;  %v3764_v34 = vld [vmem:[#allocation6 + $0xa80] sm:$0xff]  ;;  %v8663_v18 = vcombine.high %v3836_v6, %v3840_v11  ;;  %v8313_v54 = vcombine.high %v10214_v21, %v10216_v13 }
 0x263   :  { %v3768_v35 = vld [vmem:[#allocation6 + $0xaa0] sm:$0xff] }
 0x264   :  { %6230 = vmatpush2.bf16.msra.mxu0 %v8454_v23  ;;  %v3828_v23 = vld [vmem:[#allocation6 + $0xc80] sm:$0xff] }
 0x265   :  { %6257 = vmatpush1.bf16.msra.mxu1 %v8518_v47  ;;  %6231 = vmatprep.subr.bf16.mxu0 %v8447_v24  ;;  %v3832_v47 = vld [vmem:[#allocation6 + $0xca0] sm:$0xff]  ;;  %v8662_v24 = vcombine.low %v3836_v6, %v3840_v11 }
 0x266   :  { %6258 = vmatprep.subr.bf16.mxu1 %v8511_v1  ;;  %v8591_v1 = vcombine.high %v3764_v34, %v3768_v35  ;;  %v3756_v4 = vld [vmem:[#allocation6 + $0xa40] sm:$0xff]  ;;  %v8655_v25 = vcombine.high %v3828_v23, %v3832_v47 }
 0x267   :  { %v3760_v36 = vld [vmem:[#allocation6 + $0xa60] sm:$0xff] }
 0x268   :  { %6232 = vmatpush2.bf16.msra.mxu0 %v8446_v29  ;;  %v3820_v27 = vld [vmem:[#allocation6 + $0xc40] sm:$0xff]  ;;  %v8590_v29 = vcombine.low %v3764_v34, %v3768_v35  ;;  %v8583_v30 = vcombine.high %v3756_v4, %v3760_v36  ;;  %v8582_v37 = vcombine.low %v3756_v4, %v3760_v36 }
 0x269   :  { %6259 = vmatpush1.bf16.msra.mxu1 %v8510_v43  ;;  %6287 = vmatprep.subr.bf16.mxu0 %v8695_v49  ;;  %v3824_v28 = vld [vmem:[#allocation6 + $0xc60] sm:$0xff]  ;;  %v8654_v43 = vcombine.low %v3828_v23, %v3832_v47 }
 0x26a   :  { %6260 = vmatprep.subr.bf16.mxu1 %v8631_v7  ;;  %v3748_v7 = vld [vmem:[#allocation6 + $0xa00] sm:$0xff]  ;;  %v8647_v50 = vcombine.high %v3820_v27, %v3824_v28  ;;  %v8646_v61 = vcombine.low %v3820_v27, %v3824_v28 }
 0x26b   :  { %6234 = vmatmul.mubr.bf16.vlgmr.msra.gmra.mxu0 %v10210_v10  ;;  %v3752_v49 = vld [vmem:[#allocation6 + $0xa20] sm:$0xff] }
 0x26c   :  { %6288 = vmatpush1.bf16.msra.mxu0 %v8694_v42  ;;  %6319 = vmatprep.mubr.bf16.mxu0 %v9916_v14  ;;  %v3812_v32 = vld [vmem:[#allocation6 + $0xc00] sm:$0xff] }
 0x26d   :  { %6261 = vmatpush2.bf16.msra.mxu1 %v8630_v40  ;;  %6289 = vmatprep.subr.bf16.mxu0 %v8687_v44  ;;  %v3816_v33 = vld [vmem:[#allocation6 + $0xc20] sm:$0xff]  ;;  %v8575_v40 = vcombine.high %v3748_v7, %v3752_v49  ;;  %v8574_v44 = vcombine.low %v3748_v7, %v3752_v49 }
 0x26e   :  { %6262 = vmatprep.subr.bf16.mxu1 %v8623_v45  ;;  %v8639_v42 = vcombine.high %v3812_v32, %v3816_v33  ;;  %v10220_v45 = vld [vmem:[#allocation6 + $0x5c8] sm:$0xff]  ;;  %v8638_v48 = vcombine.low %v3812_v32, %v3816_v33 }
 0x26f   :  { %v8441_v51 = vcombine.high %v10220_v45, %v10222_v46  ;;  %v3605_v33 = vld [vmem:[#allocation6 + $0x588] sm:$0xff] }
 0x270   :  { %6290 = vmatpush1.bf16.msra.mxu0 %v8686_v56  ;;  %v3105_v56 = vpop.f32.mrf.mxu0 }
 0x271   :  { %6263 = vmatpush2.bf16.msra.mxu1 %v8622_v55  ;;  %6291 = vmatprep.subr.bf16.mxu0 %v8679_v59  ;;  %v3148_v55 = vpop.f32.mrf.mxu1  ;;  %v658_v59 = vsub.s32 4, %v10082_v9 }
 0x272   :  { %6264 = vmatprep.subr.bf16.mxu1 %v8615_v8  ;;  %v3107_v41 = vpop.f32.mrf.mxu0 }
 0x273   :  { %v3150_v8 = vpop.f32.mrf.mxu1 }
 0x274   :  { %6292 = vmatpush1.bf16.msra.mxu0 %v8678_v0  ;;  %v3109_v0 = vpop.f32.mrf.mxu0 }
 0x275   :  { %6265 = vmatpush2.bf16.msra.mxu1 %v8614_v63  ;;  %6293 = vmatprep.subr.bf16.mxu0 %v8671_v3  ;;  %v3152_v12 = vpop.f32.mrf.mxu1  ;;  %v659_v63 = vrot.slane %v10180_v26, %v658_v59  ;;  %v3108_v3 = vadd.f32 %v3107_v41, %v663_v19  ;;  %v3593_v41 = vld [vmem:[#allocation6 + $0x528] sm:$0xff] }
 0x276   :  { %6266 = vmatprep.subr.bf16.mxu1 %v8607_v2  ;;  %v3111_v6 = vpop.f32.mrf.mxu0 }
 0x277   :  { %v3154_v2 = vpop.f32.mrf.mxu1  ;;  %v3106_v5 = vadd.f32 %v3105_v56, %v659_v63  ;;  %v3110_v11 = vadd.f32 %v3109_v0, %v659_v63  ;;  %v3112_v34 = vadd.f32 %v3111_v6, %v663_v19  ;;  %v3585_v19 = vld [vmem:[#allocation6 + $0x4e8] sm:$0xff] }
 0x278   :  { %6294 = vmatpush1.bf16.msra.mxu0 %v8670_v15  ;;  %v3565_v6 = vld [vmem:[#allocation6 + $0x448] sm:$0xff] }
 0x279   :  { %6267 = vmatpush2.bf16.msra.mxu1 %v8606_v20  ;;  %6295 = vmatprep.subr.bf16.mxu0 %v8663_v18  ;;  %v3149_v18 = vadd.f32 %v3148_v55, %v3106_v5  ;;  %v3153_v23 = vadd.f32 %v3152_v12, %v3110_v11  ;;  %v3155_v4 = vadd.f32 %v3154_v2, %v3112_v34  ;;  %v3573_v2 = vld [vmem:[#allocation6 + $0x488] sm:$0xff] }
 0x27a   :  { %6268 = vmatprep.subr.bf16.mxu1 %v8599_v17  ;;  %v3151_v17 = vadd.f32 %v3150_v8, %v3108_v3  ;;  %v3589_v8 = vld [vmem:[#allocation6 + $0x508] sm:$0xff] }
 0x27b   :  { %v8416_v63 = vcombine.low %v3589_v8, %v3593_v41  ;;  %v3569_v11 = vld [vmem:[#allocation6 + $0x468] sm:$0xff] }
 0x27c   :  { %6296 = vmatpush1.bf16.msra.mxu0 %v8662_v24  ;;  %v3557_v34 = vld [vmem:[#allocation6 + $0x408] sm:$0xff] }
 0x27d   :  { %6269 = vmatpush2.bf16.msra.mxu1 %v8598_v52  ;;  %6297 = vmatprep.subr.bf16.mxu0 %v8655_v25 }
 0x27e   :  { %6270 = vmatprep.subr.bf16.mxu1 %v8591_v1 }
 0x280   :  { %6298 = vmatpush1.bf16.msra.mxu0 %v8654_v43 }
 0x281   :  { %6271 = vmatpush2.bf16.msra.mxu1 %v8590_v29  ;;  %6299 = vmatprep.subr.bf16.mxu0 %v8647_v50 }
 0x282   :  { %6272 = vmatprep.subr.bf16.mxu1 %v8583_v30 }
 0x284   :  { %6300 = vmatpush1.bf16.msra.mxu0 %v8646_v61 }
 0x285   :  { %6273 = vmatpush2.bf16.msra.mxu1 %v8582_v37  ;;  %6301 = vmatprep.subr.bf16.mxu0 %v8639_v42  ;;  %v3609_v37 = vld [vmem:[#allocation6 + $0x5a8] sm:$0xff]  ;;  %v8440_v42 = vcombine.low %v10220_v45, %v10222_v46  ;;  %v8417_v45 = vcombine.high %v3589_v8, %v3593_v41 }
 0x286   :  { %6274 = vmatprep.subr.bf16.mxu1 %v8575_v40  ;;  %v8432_v55 = vcombine.low %v3605_v33, %v3609_v37  ;;  %v3581_v46 = vld [vmem:[#allocation6 + $0x4c8] sm:$0xff] }
 0x287   :  { %v8409_v0 = vcombine.high %v3581_v46, %v3585_v19  ;;  %v8408_v3 = vcombine.low %v3581_v46, %v3585_v19 }
 0x288   :  { %6302 = vmatpush1.bf16.msra.mxu0 %v8638_v48  ;;  %v8433_v48 = vcombine.high %v3605_v33, %v3609_v37 }
 0x289   :  { %6275 = vmatpush2.bf16.msra.mxu1 %v8574_v44  ;;  %6330 = vmatprep.subr.bf16.mxu0 %v8313_v54  ;;  %v3601_v54 = vld [vmem:[#allocation6 + $0x568] sm:$0xff] }
 0x28a   :  { %6373 = vmatprep.subr.bf16.mxu1 %v8441_v51  ;;  %v3597_v51 = vld [vmem:[#allocation6 + $0x548] sm:$0xff] }
 0x28b   :  { %v8425_v56 = vcombine.high %v3597_v51, %v3601_v54  ;;  %v8424_v12 = vcombine.low %v3597_v51, %v3601_v54 }
 0x28c   :  { %v3234_v38 = vpop.f32.mrf.mxu1 }
 0x28e   :  { %v3236_v20 = vpop.f32.mrf.mxu1 }
 0x290   :  { %v3238_v52 = vpop.f32.mrf.mxu1 }
 0x292   :  { %v3240_v43 = vpop.f32.mrf.mxu1 }
 0x2ab   :  { %v3191_v15 = vpop.f32.mrf.mxu0 }
 0x2ac   :  { %v3192_v24 = vadd.f32 %v3191_v15, %v3149_v18  ;;  %v8795_v15 = vpop.f32.mrf.mxu1  ;;  %v3561_v18 = vld [vmem:[#allocation6 + $0x428] sm:$0xff] }
 0x2ad   :  { %v3193_v35 = vpop.f32.mrf.mxu0 }
 0x2ae   :  { %v3194_v47 = vadd.f32 %v3193_v35, %v3151_v17  ;;  %v3235_v30 = vadd.f32 %v3234_v38, %v3192_v24  ;;  %v3577_v38 = vld [vmem:[#allocation6 + $0x4a8] sm:$0xff]  ;;  %v8393_v17 = vcombine.high %v3565_v6, %v3569_v11  ;;  %v8392_v35 = vcombine.low %v3565_v6, %v3569_v11 }
 0x2af   :  { %v3195_v1 = vpop.f32.mrf.mxu0  ;;  %v8401_v5 = vcombine.high %v3573_v2, %v3577_v38  ;;  %v3681_v24 = vld [vmem:[#allocation6 + $0x7e8] sm:$0xff] }
 0x2b0   :  { %v3196_v25 = vadd.f32 %v3195_v1, %v3153_v23  ;;  %v3237_v27 = vadd.f32 %v3236_v20, %v3194_v47  ;;  %v3411_v61 = vmax.f32 %v3235_v30, 0.0  ;;  %v8400_v20 = vcombine.low %v3573_v2, %v3577_v38  ;;  %v8796_v23 = vpop.f32.mrf.mxu1  ;;  %v3637_v6 = vld [vmem:[#allocation6 + $0x688] sm:$0xff] }
 0x2b1   :  { %v3197_v36 = vpop.f32.mrf.mxu0  ;;  %v8385_v47 = vcombine.high %v3557_v34, %v3561_v18  ;;  %v8384_v1 = vcombine.low %v3557_v34, %v3561_v18  ;;  %v8797_v41 = vadd.f32 %v8796_v23, %v8795_v15  ;;  %v3641_v11 = vld [vmem:[#allocation6 + $0x6a8] sm:$0xff] }
 0x2b2   :  { %v3239_v28 = vadd.f32 %v3238_v52, %v3196_v25  ;;  %v3198_v29 = vadd.f32 %v3197_v36, %v3155_v4  ;;  %v3412_v49 = vmax.f32 %v3237_v27, 0.0  ;;  %v3677_v52 = vld [vmem:[#allocation6 + $0x7c8] sm:$0xff]  ;;  %v8798_v4 = vpop.f32.mrf.mxu1  ;;  %v8465_v15 = vcombine.high %v3637_v6, %v3641_v11 }
 0x2b3   :  { %v8505_v25 = vcombine.high %v3677_v52, %v3681_v24  ;;  %v3669_v36 = vld [vmem:[#allocation6 + $0x788] sm:$0xff] }
 0x2b4   :  { %v3241_v7 = vadd.f32 %v3240_v43, %v3198_v29  ;;  %v3418_v50 = vmax.f32 %v3239_v28, 0.0  ;;  %v3673_v27 = vld [vmem:[#allocation6 + $0x7a8] sm:$0xff]  ;;  %v8504_v29 = vcombine.low %v3677_v52, %v3681_v24  ;;  %v8799_v43 = vpop.f32.mrf.mxu1 }
 0x2b5   :  { %v8497_v30 = vcombine.high %v3669_v36, %v3673_v27  ;;  %v8496_v33 = vcombine.low %v3669_v36, %v3673_v27  ;;  %v3633_v52 = vld [vmem:[#allocation6 + $0x668] sm:$0xff] }
 0x2b6   :  { %v3419_v32 = vmax.f32 %v3241_v7, 0.0  ;;  %v10240_v44 = vpack.c.bf16 %v3418_v50, %v3411_v61  ;;  %v3661_v7 = vld [vmem:[#allocation6 + $0x748] sm:$0xff]  ;;  %v666_v61 = vsub.s32 6, %v10082_v9 }
 0x2b7   :  { %v3665_v50 = vld [vmem:[#allocation6 + $0x768] sm:$0xff] }
 0x2b8   :  { %v10236_v40 = vpack.c.bf16 %v3419_v32, %v3412_v49  ;;  %v8489_v37 = vcombine.high %v3661_v7, %v3665_v50  ;;  %v667_v8 = vrot.slane %v10180_v26, %v666_v61 }
 0x2ba   :  { %6276 = vmatprep.mubr.bf16.mxu1 %v10236_v40 }
 0x2bb   :  { %6277 = vmatmul.mubr.bf16.vlgmr.msra.gmra.mxu1 %v10240_v44 }
 0x2bc   :  { %6374 = vmatpush1.bf16.msra.mxu1 %v8440_v42  ;;  %6405 = vmatprep.mubr.bf16.mxu1 %v10194_v62  ;;  %v3653_v42 = vld [vmem:[#allocation6 + $0x708] sm:$0xff] }
 0x2bd   :  { %6375 = vmatprep.subr.bf16.mxu1 %v8433_v48  ;;  %v3657_v48 = vld [vmem:[#allocation6 + $0x728] sm:$0xff] }
 0x2be   :  { %v8480_v2 = vcombine.low %v3653_v42, %v3657_v48 }
 0x2c0   :  { %6376 = vmatpush1.bf16.msra.mxu1 %v8432_v55  ;;  %v8488_v55 = vcombine.low %v3661_v7, %v3665_v50 }
 0x2c1   :  { %6377 = vmatprep.subr.bf16.mxu1 %v8425_v56  ;;  %v8481_v56 = vcombine.high %v3653_v42, %v3657_v48 }
 0x2c4   :  { %6378 = vmatpush1.bf16.msra.mxu1 %v8424_v12  ;;  %v3645_v12 = vld [vmem:[#allocation6 + $0x6c8] sm:$0xff] }
 0x2c5   :  { %6379 = vmatprep.subr.bf16.mxu1 %v8417_v45  ;;  %v3649_v45 = vld [vmem:[#allocation6 + $0x6e8] sm:$0xff] }
 0x2c6   :  { %v8473_v38 = vcombine.high %v3645_v12, %v3649_v45  ;;  %v8472_v26 = vcombine.low %v3645_v12, %v3649_v45  ;;  %v3469_v12 = vld [vmem:[#allocation6 + $0x148] sm:$0xff] }
 0x2c7   :  { %v3473_v45 = vld [vmem:[#allocation6 + $0x168] sm:$0xff] }
 0x2c8   :  { %6380 = vmatpush1.bf16.msra.mxu1 %v8416_v63  ;;  %v8800_v63 = vadd.f32 %v8799_v43, %v8798_v4  ;;  %v8464_v4 = vcombine.low %v3637_v6, %v3641_v11  ;;  %v3625_v43 = vld [vmem:[#allocation6 + $0x628] sm:$0xff] }
 0x2c9   :  { %6381 = vmatprep.subr.bf16.mxu1 %v8409_v0  ;;  %v3853_v6 = vld [vmem:[#allocation6 + $0xd48] sm:$0xff] }
 0x2ca   :  { %v3857_v11 = vld [vmem:[#allocation6 + $0xd68] sm:$0xff] }
 0x2cb   :  { %v8817_v28 = vpop.f32.mrf.mxu0 }
 0x2cc   :  { %6382 = vmatpush1.bf16.msra.mxu1 %v8408_v3  ;;  %v8839_v32 = vpop.f32.mrf.mxu1  ;;  %v3278_v3 = vadd.f32 %v8797_v41, %v667_v8 }
 0x2cd   :  { %6383 = vmatprep.subr.bf16.mxu1 %v8401_v5  ;;  %v8818_v49 = vpop.f32.mrf.mxu0 }
 0x2ce   :  { %v8840_v54 = vpop.f32.mrf.mxu1  ;;  %v8819_v0 = vadd.f32 %v8818_v49, %v8817_v28 }
 0x2cf   :  { %v8820_v51 = vpop.f32.mrf.mxu0  ;;  %v8841_v18 = vadd.f32 %v8840_v54, %v8839_v32  ;;  %v3873_v54 = vld [vmem:[#allocation6 + $0xde8] sm:$0xff] }
 0x2d0   :  { %6384 = vmatpush1.bf16.msra.mxu1 %v8400_v20  ;;  %v8842_v19 = vpop.f32.mrf.mxu1  ;;  %v3319_v34 = vadd.f32 %v8819_v0, %v3278_v3  ;;  %v3461_v3 = vld [vmem:[#allocation6 + $0x108] sm:$0xff] }
 0x2d1   :  { %6385 = vmatprep.subr.bf16.mxu1 %v8393_v17  ;;  %v8821_v46 = vpop.f32.mrf.mxu0  ;;  %v3281_v17 = vadd.f32 %v8800_v63, %v667_v8 }
 0x2d2   :  { %v8822_v5 = vadd.f32 %v8821_v46, %v8820_v51  ;;  %v8843_v20 = vpop.f32.mrf.mxu1  ;;  %v3869_v51 = vld [vmem:[#allocation6 + $0xdc8] sm:$0xff] }
 0x2d3   :  { %v8844_v23 = vadd.f32 %v8843_v20, %v8842_v19  ;;  %v8697_v41 = vcombine.high %v3869_v51, %v3873_v54  ;;  %v3861_v46 = vld [vmem:[#allocation6 + $0xd88] sm:$0xff]  ;;  %v8696_v0 = vcombine.low %v3869_v51, %v3873_v54  ;;  %v8296_v20 = vcombine.low %v3469_v12, %v3473_v45 }
 0x2d4   :  { %6386 = vmatpush1.bf16.msra.mxu1 %v8392_v35  ;;  %v3322_v35 = vadd.f32 %v8822_v5, %v3281_v17  ;;  %v3865_v19 = vld [vmem:[#allocation6 + $0xda8] sm:$0xff] }
 0x2d5   :  { %6387 = vmatprep.subr.bf16.mxu1 %v8385_v47  ;;  %v3629_v47 = vld [vmem:[#allocation6 + $0x648] sm:$0xff]  ;;  %v8688_v21 = vcombine.low %v3861_v46, %v3865_v19 }
 0x2d6   :  { %v8457_v36 = vcombine.high %v3629_v47, %v3633_v52  ;;  %v3363_v28 = vadd.f32 %v8844_v23, %v3322_v35  ;;  %v8456_v50 = vcombine.low %v3629_v47, %v3633_v52  ;;  %v3465_v5 = vld [vmem:[#allocation6 + $0x128] sm:$0xff]  ;;  %v8680_v35 = vcombine.low %v3853_v6, %v3857_v11 }
 0x2d7   :  { %v8289_v13 = vcombine.high %v3461_v3, %v3465_v5  ;;  %v3453_v17 = vld [vmem:[#allocation6 + $0xc8] sm:$0xff] }
 0x2d8   :  { %6388 = vmatpush1.bf16.msra.mxu1 %v8384_v1  ;;  %v3360_v1 = vadd.f32 %v8841_v18, %v3319_v34  ;;  %v3457_v34 = vld [vmem:[#allocation6 + $0xe8] sm:$0xff] }
 0x2d9   :  { %6389 = vmatprep.subr.bf16.mxu1 %v8505_v25  ;;  %v3845_v18 = vld [vmem:[#allocation6 + $0xd08] sm:$0xff]  ;;  %v8281_v23 = vcombine.high %v3453_v17, %v3457_v34 }
 0x2da   :  { %v3445_v52 = vld [vmem:[#allocation6 + $0x88] sm:$0xff] }
 0x2db   :  { %v3825_v51 = vld [vmem:[#allocation6 + $0xc68] sm:$0xff] }
 0x2dc   :  { %6390 = vmatpush2.bf16.msra.mxu1 %v8504_v29  ;;  %v3621_v29 = vld [vmem:[#allocation6 + $0x608] sm:$0xff] }
 0x2dd   :  { %6391 = vmatprep.subr.bf16.mxu1 %v8497_v30  ;;  %v8449_v32 = vcombine.high %v3621_v29, %v3625_v43 }
 0x2e0   :  { %6392 = vmatpush2.bf16.msra.mxu1 %v8496_v33  ;;  %v3477_v33 = vld [vmem:[#allocation6 + $0x188] sm:$0xff] }
 0x2e1   :  { %6393 = vmatprep.subr.bf16.mxu1 %v8489_v37  ;;  %v3481_v37 = vld [vmem:[#allocation6 + $0x1a8] sm:$0xff] }
 0x2e2   :  { %v8305_v8 = vcombine.high %v3477_v33, %v3481_v37  ;;  %v8304_v63 = vcombine.low %v3477_v33, %v3481_v37  ;;  %v3429_v37 = vld [vmem:[#allocation6 + $0x8] sm:$0xff] }
 0x2e4   :  { %6394 = vmatpush2.bf16.msra.mxu1 %v8488_v55 }
 0x2e5   :  { %6395 = vmatprep.subr.bf16.mxu1 %v8481_v56  ;;  %v8448_v56 = vcombine.low %v3621_v29, %v3625_v43  ;;  %v3437_v29 = vld [vmem:[#allocation6 + $0x48] sm:$0xff] }
 0x2e6   :  { %v3441_v43 = vld [vmem:[#allocation6 + $0x68] sm:$0xff] }
 0x2e7   :  { %v8264_v54 = vcombine.low %v3437_v29, %v3441_v43 }
 0x2e8   :  { %6396 = vmatpush2.bf16.msra.mxu1 %v8480_v2  ;;  %v8297_v2 = vcombine.high %v3469_v12, %v3473_v45  ;;  %v3549_v12 = vld [vmem:[#allocation6 + $0x3c8] sm:$0xff] }
 0x2e9   :  { %6397 = vmatprep.subr.bf16.mxu1 %v8473_v38  ;;  %v8689_v38 = vcombine.high %v3861_v46, %v3865_v19  ;;  %v3553_v45 = vld [vmem:[#allocation6 + $0x3e8] sm:$0xff] }
 0x2ea   :  { %v3813_v46 = vld [vmem:[#allocation6 + $0xc08] sm:$0xff] }
 0x2eb   :  { %v3400_v24 = vpop.f32.mrf.mxu0  ;;  %v3817_v19 = vld [vmem:[#allocation6 + $0xc28] sm:$0xff] }
 0x2ec   :  { %6398 = vmatpush2.bf16.msra.mxu1 %v8472_v26  ;;  %v3401_v27 = vadd.f32 %v3400_v24, %v3360_v1  ;;  %v3849_v26 = vld [vmem:[#allocation6 + $0xd28] sm:$0xff] }
 0x2ed   :  { %v8975_v25 = vpop.f32.mrf.mxu0  ;;  %6399 = vmatprep.subr.bf16.mxu1 %v8465_v15  ;;  %v8288_v15 = vcombine.low %v3461_v3, %v3465_v5  ;;  %v8673_v47 = vcombine.high %v3845_v18, %v3849_v26  ;;  %v3449_v24 = vld [vmem:[#allocation6 + $0xa8] sm:$0xff] }
 0x2ee   :  { %v3413_v42 = vmax.f32 %v3401_v27, 0.0  ;;  %v3837_v1 = vld [vmem:[#allocation6 + $0xcc8] sm:$0xff]  ;;  %v8280_v25 = vcombine.low %v3453_v17, %v3457_v34  ;;  %v8273_v27 = vcombine.high %v3445_v52, %v3449_v24 }
 0x2ef   :  { %v3403_v30 = vpop.f32.mrf.mxu0  ;;  %v3541_v3 = vld [vmem:[#allocation6 + $0x388] sm:$0xff] }
 0x2f0   :  { %v3404_v7 = vadd.f32 %v3403_v30, %v3363_v28  ;;  %6400 = vmatpush2.bf16.msra.mxu1 %v8464_v4  ;;  %v3841_v4 = vld [vmem:[#allocation6 + $0xce8] sm:$0xff] }
 0x2f1   :  { %v8976_v49 = vpop.f32.mrf.mxu0  ;;  %6401 = vmatprep.subr.bf16.mxu1 %v8457_v36  ;;  %v8672_v36 = vcombine.low %v3845_v18, %v3849_v26  ;;  %v8665_v28 = vcombine.high %v3837_v1, %v3841_v4  ;;  %v3829_v30 = vld [vmem:[#allocation6 + $0xc88] sm:$0xff]  ;;  %v3478_v18 = vld [vmem:[#allocation6 + $0x190] sm:$0xff] }
 0x2f2   :  { %v3420_v48 = vmax.f32 %v3404_v7, 0.0  ;;  %v3833_v7 = vld [vmem:[#allocation6 + $0xca8] sm:$0xff]  ;;  %v8664_v49 = vcombine.low %v3837_v1, %v3841_v4  ;;  %v3482_v26 = vld [vmem:[#allocation6 + $0x1b0] sm:$0xff] }
 0x2f3   :  { %v8657_v33 = vcombine.high %v3829_v30, %v3833_v7  ;;  %v3545_v5 = vld [vmem:[#allocation6 + $0x3a8] sm:$0xff]  ;;  %v3470_v1 = vld [vmem:[#allocation6 + $0x150] sm:$0xff] }
 0x2f4   :  { %v10249_v55 = vpack.c.bf16 %v3420_v48, %v3413_v42  ;;  %6402 = vmatpush2.bf16.msra.mxu1 %v8456_v50  ;;  %v8272_v50 = vcombine.low %v3445_v52, %v3449_v24  ;;  %v3433_v42 = vld [vmem:[#allocation6 + $0x28] sm:$0xff]  ;;  %v3474_v4 = vld [vmem:[#allocation6 + $0x170] sm:$0xff] }
 0x2f5   :  { %6403 = vmatprep.subr.bf16.mxu1 %v8449_v32  ;;  %v8265_v32 = vcombine.high %v3437_v29, %v3441_v43  ;;  %v3821_v48 = vld [vmem:[#allocation6 + $0xc48] sm:$0xff] }
 0x2f6   :  { %6320 = vmatmul.mubr.bf16.vlgmr.msra.gmra.mxu0 %v10249_v55  ;;  %v3533_v17 = vld [vmem:[#allocation6 + $0x348] sm:$0xff] }
 0x2f7   :  { %6331 = vmatpush1.bf16.msra.mxu0 %v8312_v16  ;;  %6362 = vmatprep.mubr.bf16.mxu0 %v10158_v39  ;;  %v8681_v16 = vcombine.high %v3853_v6, %v3857_v11  ;;  %v3486_v6 = vld [vmem:[#allocation6 + $0x1d0] sm:$0xff]  ;;  %v3537_v34 = vld [vmem:[#allocation6 + $0x368] sm:$0xff] }
 0x2f8   :  { %6404 = vmatpush2.bf16.msra.mxu1 %v8448_v56  ;;  %6332 = vmatprep.subr.bf16.mxu0 %v8305_v8  ;;  %v8656_v56 = vcombine.low %v3829_v30, %v3833_v7  ;;  %v8257_v8 = vcombine.high %v3429_v37, %v3433_v42  ;;  %v3490_v11 = vld [vmem:[#allocation6 + $0x1f0] sm:$0xff]  ;;  %v3525_v52 = vld [vmem:[#allocation6 + $0x308] sm:$0xff] }
 0x2f9   :  { %6459 = vmatprep.subr.bf16.mxu1 %v8697_v41  ;;  %v8649_v41 = vcombine.high %v3821_v48, %v3825_v51  ;;  %v3529_v24 = vld [vmem:[#allocation6 + $0x328] sm:$0xff]  ;;  %v3462_v30 = vld [vmem:[#allocation6 + $0x110] sm:$0xff] }
 0x2fa   :  { %v3517_v29 = vld [vmem:[#allocation6 + $0x2c8] sm:$0xff]  ;;  %v3466_v7 = vld [vmem:[#allocation6 + $0x130] sm:$0xff] }
 0x2fb   :  { %6333 = vmatpush1.bf16.msra.mxu0 %v8304_v63  ;;  %6406 = vmatmul.mubr.bf16.vlgmr.msra.gmra.mxu1 %v10210_v10  ;;  %v8256_v63 = vcombine.low %v3429_v37, %v3433_v42  ;;  %v3521_v43 = vld [vmem:[#allocation6 + $0x2e8] sm:$0xff] }
 0x2fc   :  { %6460 = vmatpush1.bf16.msra.mxu1 %v8696_v0  ;;  %6334 = vmatprep.subr.bf16.mxu0 %v8297_v2  ;;  %v8648_v0 = vcombine.low %v3821_v48, %v3825_v51  ;;  %v8377_v2 = vcombine.high %v3549_v12, %v3553_v45  ;;  %v3509_v37 = vld [vmem:[#allocation6 + $0x288] sm:$0xff]  ;;  %v3454_v48 = vld [vmem:[#allocation6 + $0xd0] sm:$0xff] }
 0x2fd   :  { %6461 = vmatprep.subr.bf16.mxu1 %v8689_v38  ;;  %6491 = vmatprep.mubr.bf16.mxu1 %v9916_v14  ;;  %v8641_v38 = vcombine.high %v3813_v46, %v3817_v19  ;;  %v3513_v42 = vld [vmem:[#allocation6 + $0x2a8] sm:$0xff]  ;;  %v3458_v51 = vld [vmem:[#allocation6 + $0xf0] sm:$0xff] }
 0x2ff   :  { %6335 = vmatpush1.bf16.msra.mxu0 %v8296_v20  ;;  %v8376_v20 = vcombine.low %v3549_v12, %v3553_v45  ;;  %v3501_v12 = vld [vmem:[#allocation6 + $0x248] sm:$0xff] }
 0x300   :  { %6462 = vmatpush1.bf16.msra.mxu1 %v8688_v21  ;;  %6336 = vmatprep.subr.bf16.mxu0 %v8289_v13  ;;  %v8640_v21 = vcombine.low %v3813_v46, %v3817_v19  ;;  %v8369_v13 = vcombine.high %v3541_v3, %v3545_v5  ;;  %v3505_v45 = vld [vmem:[#allocation6 + $0x268] sm:$0xff]  ;;  %v3446_v46 = vld [vmem:[#allocation6 + $0x90] sm:$0xff] }
 0x301   :  { %6463 = vmatprep.subr.bf16.mxu1 %v8681_v16  ;;  %v8315_v16 = vcombine.high %v3486_v6, %v3490_v11  ;;  %v3450_v19 = vld [vmem:[#allocation6 + $0xb0] sm:$0xff] }
 0x303   :  { %6337 = vmatpush1.bf16.msra.mxu0 %v8288_v15  ;;  %v8368_v15 = vcombine.low %v3541_v3, %v3545_v5  ;;  %v3493_v3 = vld [vmem:[#allocation6 + $0x208] sm:$0xff] }
 0x304   :  { %6464 = vmatpush1.bf16.msra.mxu1 %v8680_v35  ;;  %6338 = vmatprep.subr.bf16.mxu0 %v8281_v23  ;;  %v8314_v35 = vcombine.low %v3486_v6, %v3490_v11  ;;  %v8361_v23 = vcombine.high %v3533_v17, %v3537_v34  ;;  %v3497_v5 = vld [vmem:[#allocation6 + $0x228] sm:$0xff]  ;;  %v3438_v6 = vld [vmem:[#allocation6 + $0x50] sm:$0xff] }
 0x305   :  { %6465 = vmatprep.subr.bf16.mxu1 %v8673_v47  ;;  %v8307_v47 = vcombine.high %v3478_v18, %v3482_v26  ;;  %v3442_v11 = vld [vmem:[#allocation6 + $0x70] sm:$0xff] }
 0x307   :  { %6339 = vmatpush1.bf16.msra.mxu0 %v8280_v25  ;;  %v8360_v25 = vcombine.low %v3533_v17, %v3537_v34  ;;  %v3741_v17 = vld [vmem:[#allocation6 + $0x9c8] sm:$0xff] }
 0x308   :  { %6466 = vmatpush1.bf16.msra.mxu1 %v8672_v36  ;;  %6340 = vmatprep.subr.bf16.mxu0 %v8273_v27  ;;  %v8306_v36 = vcombine.low %v3478_v18, %v3482_v26  ;;  %v8353_v27 = vcombine.high %v3525_v52, %v3529_v24  ;;  %v3745_v34 = vld [vmem:[#allocation6 + $0x9e8] sm:$0xff]  ;;  %v3430_v18 = vld [vmem:[#allocation6 + $0x10] sm:$0xff] }
 0x309   :  { %6467 = vmatprep.subr.bf16.mxu1 %v8665_v28  ;;  %v8299_v28 = vcombine.high %v3470_v1, %v3474_v4  ;;  %v3434_v26 = vld [vmem:[#allocation6 + $0x30] sm:$0xff] }
 0x30b   :  { %6341 = vmatpush1.bf16.msra.mxu0 %v8272_v50  ;;  %v8352_v50 = vcombine.low %v3525_v52, %v3529_v24  ;;  %v3733_v52 = vld [vmem:[#allocation6 + $0x988] sm:$0xff] }
 0x30c   :  { %6468 = vmatpush1.bf16.msra.mxu1 %v8664_v49  ;;  %6342 = vmatprep.subr.bf16.mxu0 %v8265_v32  ;;  %v8298_v49 = vcombine.low %v3470_v1, %v3474_v4  ;;  %v8345_v32 = vcombine.high %v3517_v29, %v3521_v43  ;;  %v3737_v24 = vld [vmem:[#allocation6 + $0x9a8] sm:$0xff]  ;;  %v3550_v1 = vld [vmem:[#allocation6 + $0x3d0] sm:$0xff] }
 0x30d   :  { %6469 = vmatprep.subr.bf16.mxu1 %v8657_v33  ;;  %v8291_v33 = vcombine.high %v3462_v30, %v3466_v7  ;;  %v3554_v4 = vld [vmem:[#allocation6 + $0x3f0] sm:$0xff] }
 0x30f   :  { %6343 = vmatpush1.bf16.msra.mxu0 %v8264_v54  ;;  %v8344_v54 = vcombine.low %v3517_v29, %v3521_v43  ;;  %v3725_v29 = vld [vmem:[#allocation6 + $0x948] sm:$0xff] }
 0x310   :  { %6470 = vmatpush1.bf16.msra.mxu1 %v8656_v56  ;;  %6344 = vmatprep.subr.bf16.mxu0 %v8257_v8  ;;  %v8290_v56 = vcombine.low %v3462_v30, %v3466_v7  ;;  %v8337_v8 = vcombine.high %v3509_v37, %v3513_v42  ;;  %v3729_v43 = vld [vmem:[#allocation6 + $0x968] sm:$0xff]  ;;  %v3542_v30 = vld [vmem:[#allocation6 + $0x390] sm:$0xff] }
 0x311   :  { %6471 = vmatprep.subr.bf16.mxu1 %v8649_v41  ;;  %v8283_v41 = vcombine.high %v3454_v48, %v3458_v51  ;;  %v3546_v7 = vld [vmem:[#allocation6 + $0x3b0] sm:$0xff] }
 0x313   :  { %6345 = vmatpush1.bf16.msra.mxu0 %v8256_v63  ;;  %v8336_v63 = vcombine.low %v3509_v37, %v3513_v42  ;;  %v3717_v37 = vld [vmem:[#allocation6 + $0x908] sm:$0xff] }
 0x314   :  { %6472 = vmatpush1.bf16.msra.mxu1 %v8648_v0  ;;  %6346 = vmatprep.subr.bf16.mxu0 %v8377_v2  ;;  %v8282_v0 = vcombine.low %v3454_v48, %v3458_v51  ;;  %v8329_v2 = vcombine.high %v3501_v12, %v3505_v45  ;;  %v3721_v42 = vld [vmem:[#allocation6 + $0x928] sm:$0xff]  ;;  %v3534_v48 = vld [vmem:[#allocation6 + $0x350] sm:$0xff] }
 0x315   :  { %6473 = vmatprep.subr.bf16.mxu1 %v8641_v38  ;;  %v8275_v38 = vcombine.high %v3446_v46, %v3450_v19  ;;  %v3538_v51 = vld [vmem:[#allocation6 + $0x370] sm:$0xff] }
 0x317   :  { %6347 = vmatpush2.bf16.msra.mxu0 %v8376_v20  ;;  %v8328_v20 = vcombine.low %v3501_v12, %v3505_v45  ;;  %v3709_v12 = vld [vmem:[#allocation6 + $0x8c8] sm:$0xff] }
 0x318   :  { %6474 = vmatpush1.bf16.msra.mxu1 %v8640_v21  ;;  %6348 = vmatprep.subr.bf16.mxu0 %v8369_v13  ;;  %v8274_v21 = vcombine.low %v3446_v46, %v3450_v19  ;;  %v8321_v13 = vcombine.high %v3493_v3, %v3497_v5  ;;  %v3713_v45 = vld [vmem:[#allocation6 + $0x8e8] sm:$0xff]  ;;  %v3526_v46 = vld [vmem:[#allocation6 + $0x310] sm:$0xff] }
 0x319   :  { %6502 = vmatprep.subr.bf16.mxu1 %v8315_v16  ;;  %v8267_v16 = vcombine.high %v3438_v6, %v3442_v11  ;;  %v3530_v19 = vld [vmem:[#allocation6 + $0x330] sm:$0xff] }
 0x31b   :  { %6349 = vmatpush2.bf16.msra.mxu0 %v8368_v15  ;;  %6492 = vmatmul.mubr.bf16.vlgmr.msra.gmra.mxu1 %v10249_v55  ;;  %v8320_v15 = vcombine.low %v3493_v3, %v3497_v5  ;;  %v3701_v3 = vld [vmem:[#allocation6 + $0x888] sm:$0xff] }
 0x31c   :  { %6503 = vmatpush1.bf16.msra.mxu1 %v8314_v35  ;;  %6534 = vmatprep.mubr.bf16.mxu1 %v10158_v39  ;;  %v8266_v35 = vcombine.low %v3438_v6, %v3442_v11  ;;  %v3705_v5 = vld [vmem:[#allocation6 + $0x8a8] sm:$0xff]  ;;  %v3518_v6 = vld [vmem:[#allocation6 + $0x2d0] sm:$0xff] }
 0x31d   :  { %6350 = vmatprep.subr.bf16.mxu0 %v8361_v23  ;;  %6504 = vmatprep.subr.bf16.mxu1 %v8307_v47  ;;  %v8569_v23 = vcombine.high %v3741_v17, %v3745_v34  ;;  %v8259_v47 = vcombine.high %v3430_v18, %v3434_v26  ;;  %v3522_v11 = vld [vmem:[#allocation6 + $0x2f0] sm:$0xff] }
 0x31f   :  { %6351 = vmatpush2.bf16.msra.mxu0 %v8360_v25  ;;  %v8568_v25 = vcombine.low %v3741_v17, %v3745_v34  ;;  %v3693_v17 = vld [vmem:[#allocation6 + $0x848] sm:$0xff] }
 0x320   :  { %6505 = vmatpush1.bf16.msra.mxu1 %v8306_v36  ;;  %6352 = vmatprep.subr.bf16.mxu0 %v8353_v27  ;;  %v8258_v36 = vcombine.low %v3430_v18, %v3434_v26  ;;  %v8561_v27 = vcombine.high %v3733_v52, %v3737_v24  ;;  %v3697_v34 = vld [vmem:[#allocation6 + $0x868] sm:$0xff]  ;;  %v3510_v18 = vld [vmem:[#allocation6 + $0x290] sm:$0xff] }
 0x321   :  { %6506 = vmatprep.subr.bf16.mxu1 %v8299_v28  ;;  %v8379_v28 = vcombine.high %v3550_v1, %v3554_v4  ;;  %v3514_v26 = vld [vmem:[#allocation6 + $0x2b0] sm:$0xff] }
 0x323   :  { %6353 = vmatpush2.bf16.msra.mxu0 %v8352_v50  ;;  %v8560_v50 = vcombine.low %v3733_v52, %v3737_v24  ;;  %v3685_v52 = vld [vmem:[#allocation6 + $0x808] sm:$0xff] }
 0x324   :  { %6507 = vmatpush1.bf16.msra.mxu1 %v8298_v49  ;;  %6354 = vmatprep.subr.bf16.mxu0 %v8345_v32  ;;  %v8378_v49 = vcombine.low %v3550_v1, %v3554_v4  ;;  %v8553_v32 = vcombine.high %v3725_v29, %v3729_v43  ;;  %v3689_v24 = vld [vmem:[#allocation6 + $0x828] sm:$0xff]  ;;  %v3502_v1 = vld [vmem:[#allocation6 + $0x250] sm:$0xff] }
 0x325   :  { %6508 = vmatprep.subr.bf16.mxu1 %v8291_v33  ;;  %v8371_v33 = vcombine.high %v3542_v30, %v3546_v7  ;;  %v3506_v4 = vld [vmem:[#allocation6 + $0x270] sm:$0xff] }
 0x327   :  { %6355 = vmatpush2.bf16.msra.mxu0 %v8344_v54  ;;  %v8552_v54 = vcombine.low %v3725_v29, %v3729_v43  ;;  %v3805_v29 = vld [vmem:[#allocation6 + $0xbc8] sm:$0xff] }
 0x328   :  { %6509 = vmatpush1.bf16.msra.mxu1 %v8290_v56  ;;  %6356 = vmatprep.subr.bf16.mxu0 %v8337_v8  ;;  %v8370_v56 = vcombine.low %v3542_v30, %v3546_v7  ;;  %v8545_v8 = vcombine.high %v3717_v37, %v3721_v42  ;;  %v3809_v43 = vld [vmem:[#allocation6 + $0xbe8] sm:$0xff]  ;;  %v3494_v30 = vld [vmem:[#allocation6 + $0x210] sm:$0xff] }
 0x329   :  { %6510 = vmatprep.subr.bf16.mxu1 %v8283_v41  ;;  %v8363_v41 = vcombine.high %v3534_v48, %v3538_v51  ;;  %v3498_v7 = vld [vmem:[#allocation6 + $0x230] sm:$0xff] }
 0x32b   :  { %6357 = vmatpush2.bf16.msra.mxu0 %v8336_v63  ;;  %v8544_v63 = vcombine.low %v3717_v37, %v3721_v42  ;;  %v3797_v37 = vld [vmem:[#allocation6 + $0xb88] sm:$0xff] }
 0x32c   :  { %6511 = vmatpush1.bf16.msra.mxu1 %v8282_v0  ;;  %6358 = vmatprep.subr.bf16.mxu0 %v8329_v2  ;;  %v8362_v0 = vcombine.low %v3534_v48, %v3538_v51  ;;  %v8537_v2 = vcombine.high %v3709_v12, %v3713_v45  ;;  %v3801_v42 = vld [vmem:[#allocation6 + $0xba8] sm:$0xff]  ;;  %v3742_v48 = vld [vmem:[#allocation6 + $0x9d0] sm:$0xff] }
 0x32d   :  { %6512 = vmatprep.subr.bf16.mxu1 %v8275_v38  ;;  %v8355_v38 = vcombine.high %v3526_v46, %v3530_v19  ;;  %v3746_v51 = vld [vmem:[#allocation6 + $0x9f0] sm:$0xff] }
 0x32f   :  { %6359 = vmatpush2.bf16.msra.mxu0 %v8328_v20  ;;  %v8536_v20 = vcombine.low %v3709_v12, %v3713_v45  ;;  %v3789_v12 = vld [vmem:[#allocation6 + $0xb48] sm:$0xff] }
 0x330   :  { %6513 = vmatpush1.bf16.msra.mxu1 %v8274_v21  ;;  %6360 = vmatprep.subr.bf16.mxu0 %v8321_v13  ;;  %v8354_v21 = vcombine.low %v3526_v46, %v3530_v19  ;;  %v8529_v13 = vcombine.high %v3701_v3, %v3705_v5  ;;  %v3793_v45 = vld [vmem:[#allocation6 + $0xb68] sm:$0xff]  ;;  %v3734_v46 = vld [vmem:[#allocation6 + $0x990] sm:$0xff] }
 0x331   :  { %6514 = vmatprep.subr.bf16.mxu1 %v8267_v16  ;;  %v8347_v16 = vcombine.high %v3518_v6, %v3522_v11  ;;  %v3738_v19 = vld [vmem:[#allocation6 + $0x9b0] sm:$0xff] }
 0x333   :  { %6361 = vmatpush2.bf16.msra.mxu0 %v8320_v15  ;;  %v8528_v15 = vcombine.low %v3701_v3, %v3705_v5  ;;  %v3781_v3 = vld [vmem:[#allocation6 + $0xb08] sm:$0xff] }
 0x334   :  { %6515 = vmatpush1.bf16.msra.mxu1 %v8266_v35  ;;  %6416 = vmatprep.subr.bf16.mxu0 %v8569_v23  ;;  %v8346_v35 = vcombine.low %v3518_v6, %v3522_v11  ;;  %v8521_v23 = vcombine.high %v3693_v17, %v3697_v34  ;;  %v3785_v5 = vld [vmem:[#allocation6 + $0xb28] sm:$0xff]  ;;  %v3726_v6 = vld [vmem:[#allocation6 + $0x950] sm:$0xff] }
 0x335   :  { %6516 = vmatprep.subr.bf16.mxu1 %v8259_v47  ;;  %v8339_v47 = vcombine.high %v3510_v18, %v3514_v26  ;;  %v3730_v11 = vld [vmem:[#allocation6 + $0x970] sm:$0xff] }
 0x336   :  { %6363 = vmatmul.mubr.bf16.vlgmr.msra.gmra.mxu0 %v10134_v60 }
 0x337   :  { %6417 = vmatpush1.bf16.msra.mxu0 %v8568_v25  ;;  %6448 = vmatprep.mubr.bf16.mxu0 %v10236_v40  ;;  %v8520_v25 = vcombine.low %v3693_v17, %v3697_v34  ;;  %v3773_v17 = vld [vmem:[#allocation6 + $0xac8] sm:$0xff] }
 0x338   :  { %6517 = vmatpush1.bf16.msra.mxu1 %v8258_v36  ;;  %6418 = vmatprep.subr.bf16.mxu0 %v8561_v27  ;;  %v8338_v36 = vcombine.low %v3510_v18, %v3514_v26  ;;  %v8513_v27 = vcombine.high %v3685_v52, %v3689_v24  ;;  %v3777_v34 = vld [vmem:[#allocation6 + $0xae8] sm:$0xff]  ;;  %v3718_v18 = vld [vmem:[#allocation6 + $0x910] sm:$0xff] }
 0x339   :  { %6518 = vmatprep.subr.bf16.mxu1 %v8379_v28  ;;  %v8331_v28 = vcombine.high %v3502_v1, %v3506_v4  ;;  %v3722_v26 = vld [vmem:[#allocation6 + $0x930] sm:$0xff] }
 0x33b   :  { %6419 = vmatpush1.bf16.msra.mxu0 %v8560_v50  ;;  %v8512_v50 = vcombine.low %v3685_v52, %v3689_v24  ;;  %v3765_v52 = vld [vmem:[#allocation6 + $0xa88] sm:$0xff] }
 0x33c   :  { %6519 = vmatpush2.bf16.msra.mxu1 %v8378_v49  ;;  %6420 = vmatprep.subr.bf16.mxu0 %v8553_v32  ;;  %v8330_v49 = vcombine.low %v3502_v1, %v3506_v4  ;;  %v8633_v32 = vcombine.high %v3805_v29, %v3809_v43  ;;  %v3769_v24 = vld [vmem:[#allocation6 + $0xaa8] sm:$0xff]  ;;  %v3710_v1 = vld [vmem:[#allocation6 + $0x8d0] sm:$0xff] }
 0x33d   :  { %6520 = vmatprep.subr.bf16.mxu1 %v8371_v33  ;;  %v8323_v33 = vcombine.high %v3494_v30, %v3498_v7  ;;  %v3714_v4 = vld [vmem:[#allocation6 + $0x8f0] sm:$0xff] }
 0x33f   :  { %6421 = vmatpush1.bf16.msra.mxu0 %v8552_v54  ;;  %v8632_v54 = vcombine.low %v3805_v29, %v3809_v43  ;;  %v3757_v29 = vld [vmem:[#allocation6 + $0xa48] sm:$0xff] }
 0x340   :  { %6521 = vmatpush2.bf16.msra.mxu1 %v8370_v56  ;;  %6422 = vmatprep.subr.bf16.mxu0 %v8545_v8  ;;  %v8322_v56 = vcombine.low %v3494_v30, %v3498_v7  ;;  %v8625_v8 = vcombine.high %v3797_v37, %v3801_v42  ;;  %v3761_v43 = vld [vmem:[#allocation6 + $0xa68] sm:$0xff]  ;;  %v3702_v30 = vld [vmem:[#allocation6 + $0x890] sm:$0xff] }
 0x341   :  { %6522 = vmatprep.subr.bf16.mxu1 %v8363_v41  ;;  %v8571_v41 = vcombine.high %v3742_v48, %v3746_v51  ;;  %v3706_v7 = vld [vmem:[#allocation6 + $0x8b0] sm:$0xff] }
 0x343   :  { %6423 = vmatpush1.bf16.msra.mxu0 %v8544_v63  ;;  %v8624_v63 = vcombine.low %v3797_v37, %v3801_v42  ;;  %v3749_v37 = vld [vmem:[#allocation6 + $0xa08] sm:$0xff] }
 0x344   :  { %6523 = vmatpush2.bf16.msra.mxu1 %v8362_v0  ;;  %6424 = vmatprep.subr.bf16.mxu0 %v8537_v2  ;;  %v8570_v0 = vcombine.low %v3742_v48, %v3746_v51  ;;  %v8617_v2 = vcombine.high %v3789_v12, %v3793_v45  ;;  %v3753_v42 = vld [vmem:[#allocation6 + $0xa28] sm:$0xff]  ;;  %v3694_v48 = vld [vmem:[#allocation6 + $0x850] sm:$0xff] }
 0x345   :  { %6524 = vmatprep.subr.bf16.mxu1 %v8355_v38  ;;  %v8563_v38 = vcombine.high %v3734_v46, %v3738_v19  ;;  %v3698_v51 = vld [vmem:[#allocation6 + $0x870] sm:$0xff] }
 0x347   :  { %6425 = vmatpush1.bf16.msra.mxu0 %v8536_v20  ;;  %v8616_v20 = vcombine.low %v3789_v12, %v3793_v45  ;;  %v3614_v12 = vld [vmem:[#allocation6 + $0x5d0] sm:$0xff] }
 0x348   :  { %6525 = vmatpush2.bf16.msra.mxu1 %v8354_v21  ;;  %6426 = vmatprep.subr.bf16.mxu0 %v8529_v13  ;;  %v8562_v21 = vcombine.low %v3734_v46, %v3738_v19  ;;  %v8609_v13 = vcombine.high %v3781_v3, %v3785_v5  ;;  %v3618_v45 = vld [vmem:[#allocation6 + $0x5f0] sm:$0xff] }
 0x349   :  { %6526 = vmatprep.subr.bf16.mxu1 %v8347_v16  ;;  %v8555_v16 = vcombine.high %v3726_v6, %v3730_v11  ;;  %v3686_v46 = vld [vmem:[#allocation6 + $0x810] sm:$0xff] }
 0x34a   :  { %v3690_v19 = vld [vmem:[#allocation6 + $0x830] sm:$0xff] }
 0x34b   :  { %6427 = vmatpush1.bf16.msra.mxu0 %v8528_v15  ;;  %v8608_v15 = vcombine.low %v3781_v3, %v3785_v5  ;;  %v3606_v3 = vld [vmem:[#allocation6 + $0x590] sm:$0xff] }
 0x34c   :  { %6527 = vmatpush2.bf16.msra.mxu1 %v8346_v35  ;;  %6428 = vmatprep.subr.bf16.mxu0 %v8521_v23  ;;  %v8554_v35 = vcombine.low %v3726_v6, %v3730_v11  ;;  %v8601_v23 = vcombine.high %v3773_v17, %v3777_v34  ;;  %v3610_v5 = vld [vmem:[#allocation6 + $0x5b0] sm:$0xff] }
 0x34d   :  { %6528 = vmatprep.subr.bf16.mxu1 %v8339_v47  ;;  %v8547_v47 = vcombine.high %v3718_v18, %v3722_v26  ;;  %v3806_v6 = vld [vmem:[#allocation6 + $0xbd0] sm:$0xff] }
 0x34e   :  { %v3810_v11 = vld [vmem:[#allocation6 + $0xbf0] sm:$0xff] }
 0x34f   :  { %6429 = vmatpush1.bf16.msra.mxu0 %v8520_v25  ;;  %v8600_v25 = vcombine.low %v3773_v17, %v3777_v34  ;;  %v3598_v17 = vld [vmem:[#allocation6 + $0x550] sm:$0xff] }
 0x350   :  { %6529 = vmatpush2.bf16.msra.mxu1 %v8338_v36  ;;  %6430 = vmatprep.subr.bf16.mxu0 %v8513_v27  ;;  %v8546_v36 = vcombine.low %v3718_v18, %v3722_v26  ;;  %v8593_v27 = vcombine.high %v3765_v52, %v3769_v24  ;;  %v3602_v34 = vld [vmem:[#allocation6 + $0x570] sm:$0xff] }
 0x351   :  { %6530 = vmatprep.subr.bf16.mxu1 %v8331_v28  ;;  %v8539_v28 = vcombine.high %v3710_v1, %v3714_v4  ;;  %v3798_v18 = vld [vmem:[#allocation6 + $0xb90] sm:$0xff] }
 0x352   :  { %v3802_v26 = vld [vmem:[#allocation6 + $0xbb0] sm:$0xff] }
 0x353   :  { %6431 = vmatpush1.bf16.msra.mxu0 %v8512_v50  ;;  %v8592_v50 = vcombine.low %v3765_v52, %v3769_v24  ;;  %v3590_v52 = vld [vmem:[#allocation6 + $0x510] sm:$0xff] }
 0x354   :  { %6531 = vmatpush2.bf16.msra.mxu1 %v8330_v49  ;;  %6432 = vmatprep.subr.bf16.mxu0 %v8633_v32  ;;  %v8538_v49 = vcombine.low %v3710_v1, %v3714_v4  ;;  %v8585_v32 = vcombine.high %v3757_v29, %v3761_v43  ;;  %v3594_v24 = vld [vmem:[#allocation6 + $0x530] sm:$0xff] }
 0x355   :  { %6532 = vmatprep.subr.bf16.mxu1 %v8323_v33  ;;  %v8531_v33 = vcombine.high %v3702_v30, %v3706_v7  ;;  %v3790_v1 = vld [vmem:[#allocation6 + $0xb50] sm:$0xff] }
 0x356   :  { %v3794_v4 = vld [vmem:[#allocation6 + $0xb70] sm:$0xff] }
 0x357   :  { %6433 = vmatpush2.bf16.msra.mxu0 %v8632_v54  ;;  %v8584_v54 = vcombine.low %v3757_v29, %v3761_v43  ;;  %v3582_v29 = vld [vmem:[#allocation6 + $0x4d0] sm:$0xff] }
 0x358   :  { %6533 = vmatpush2.bf16.msra.mxu1 %v8322_v56  ;;  %6434 = vmatprep.subr.bf16.mxu0 %v8625_v8  ;;  %v8530_v56 = vcombine.low %v3702_v30, %v3706_v7  ;;  %v8577_v8 = vcombine.high %v3749_v37, %v3753_v42  ;;  %v3586_v43 = vld [vmem:[#allocation6 + $0x4f0] sm:$0xff] }
 0x359   :  { %6588 = vmatprep.subr.bf16.mxu1 %v8571_v41  ;;  %v8523_v41 = vcombine.high %v3694_v48, %v3698_v51  ;;  %v3782_v30 = vld [vmem:[#allocation6 + $0xb10] sm:$0xff] }
 0x35a   :  { %v3786_v7 = vld [vmem:[#allocation6 + $0xb30] sm:$0xff] }
 0x35b   :  { %6435 = vmatpush2.bf16.msra.mxu0 %v8624_v63  ;;  %6535 = vmatmul.mubr.bf16.vlgmr.msra.gmra.mxu1 %v10134_v60  ;;  %v8576_v63 = vcombine.low %v3749_v37, %v3753_v42  ;;  %v3574_v37 = vld [vmem:[#allocation6 + $0x490] sm:$0xff] }
 0x35c   :  { %6589 = vmatpush1.bf16.msra.mxu1 %v8570_v0  ;;  %6620 = vmatprep.mubr.bf16.mxu1 %v10236_v40  ;;  %v8522_v0 = vcombine.low %v3694_v48, %v3698_v51  ;;  %v3578_v42 = vld [vmem:[#allocation6 + $0x4b0] sm:$0xff] }
 0x35d   :  { %6436 = vmatprep.subr.bf16.mxu0 %v8617_v2  ;;  %6590 = vmatprep.subr.bf16.mxu1 %v8563_v38  ;;  %v8443_v2 = vcombine.high %v3614_v12, %v3618_v45  ;;  %v8515_v38 = vcombine.high %v3686_v46, %v3690_v19  ;;  %v3774_v48 = vld [vmem:[#allocation6 + $0xad0] sm:$0xff] }
 0x35e   :  { %v3778_v51 = vld [vmem:[#allocation6 + $0xaf0] sm:$0xff] }
 0x35f   :  { %6437 = vmatpush2.bf16.msra.mxu0 %v8616_v20  ;;  %v8442_v20 = vcombine.low %v3614_v12, %v3618_v45  ;;  %v3566_v12 = vld [vmem:[#allocation6 + $0x450] sm:$0xff] }
 0x360   :  { %6591 = vmatpush1.bf16.msra.mxu1 %v8562_v21  ;;  %6438 = vmatprep.subr.bf16.mxu0 %v8609_v13  ;;  %v8514_v21 = vcombine.low %v3686_v46, %v3690_v19  ;;  %v8435_v13 = vcombine.high %v3606_v3, %v3610_v5  ;;  %v3570_v45 = vld [vmem:[#allocation6 + $0x470] sm:$0xff] }
 0x361   :  { %6592 = vmatprep.subr.bf16.mxu1 %v8555_v16  ;;  %v8635_v16 = vcombine.high %v3806_v6, %v3810_v11  ;;  %v3766_v46 = vld [vmem:[#allocation6 + $0xa90] sm:$0xff] }
 0x362   :  { %v3770_v19 = vld [vmem:[#allocation6 + $0xab0] sm:$0xff] }
 0x363   :  { %6439 = vmatpush2.bf16.msra.mxu0 %v8608_v15  ;;  %v8434_v15 = vcombine.low %v3606_v3, %v3610_v5  ;;  %v3558_v3 = vld [vmem:[#allocation6 + $0x410] sm:$0xff] }
 0x364   :  { %6593 = vmatpush1.bf16.msra.mxu1 %v8554_v35  ;;  %6440 = vmatprep.subr.bf16.mxu0 %v8601_v23  ;;  %v8634_v35 = vcombine.low %v3806_v6, %v3810_v11  ;;  %v8427_v23 = vcombine.high %v3598_v17, %v3602_v34  ;;  %v3562_v5 = vld [vmem:[#allocation6 + $0x430] sm:$0xff] }
 0x365   :  { %6594 = vmatprep.subr.bf16.mxu1 %v8547_v47  ;;  %v8627_v47 = vcombine.high %v3798_v18, %v3802_v26  ;;  %v3758_v6 = vld [vmem:[#allocation6 + $0xa50] sm:$0xff] }
 0x366   :  { %v3762_v11 = vld [vmem:[#allocation6 + $0xa70] sm:$0xff] }
 0x367   :  { %6441 = vmatpush2.bf16.msra.mxu0 %v8600_v25  ;;  %v8426_v25 = vcombine.low %v3598_v17, %v3602_v34  ;;  %v3678_v17 = vld [vmem:[#allocation6 + $0x7d0] sm:$0xff] }
 0x368   :  { %6595 = vmatpush1.bf16.msra.mxu1 %v8546_v36  ;;  %6442 = vmatprep.subr.bf16.mxu0 %v8593_v27  ;;  %v8626_v36 = vcombine.low %v3798_v18, %v3802_v26  ;;  %v8419_v27 = vcombine.high %v3590_v52, %v3594_v24  ;;  %v3682_v34 = vld [vmem:[#allocation6 + $0x7f0] sm:$0xff] }
 0x369   :  { %6596 = vmatprep.subr.bf16.mxu1 %v8539_v28  ;;  %v8619_v28 = vcombine.high %v3790_v1, %v3794_v4  ;;  %v3750_v18 = vld [vmem:[#allocation6 + $0xa10] sm:$0xff] }
 0x36a   :  { %v3754_v26 = vld [vmem:[#allocation6 + $0xa30] sm:$0xff] }
 0x36b   :  { %6443 = vmatpush2.bf16.msra.mxu0 %v8592_v50  ;;  %v8418_v50 = vcombine.low %v3590_v52, %v3594_v24  ;;  %v3670_v52 = vld [vmem:[#allocation6 + $0x790] sm:$0xff] }
 0x36c   :  { %6597 = vmatpush1.bf16.msra.mxu1 %v8538_v49  ;;  %6444 = vmatprep.subr.bf16.mxu0 %v8585_v32  ;;  %v8618_v49 = vcombine.low %v3790_v1, %v3794_v4  ;;  %v8411_v32 = vcombine.high %v3582_v29, %v3586_v43  ;;  %v3674_v24 = vld [vmem:[#allocation6 + $0x7b0] sm:$0xff]  ;;  %v3615_v1 = vld [vmem:[#allocation6 + $0x5d8] sm:$0xff] }
 0x36d   :  { %6598 = vmatprep.subr.bf16.mxu1 %v8531_v33  ;;  %v8611_v33 = vcombine.high %v3782_v30, %v3786_v7  ;;  %v3619_v4 = vld [vmem:[#allocation6 + $0x5f8] sm:$0xff] }
 0x36f   :  { %6445 = vmatpush2.bf16.msra.mxu0 %v8584_v54  ;;  %v8410_v54 = vcombine.low %v3582_v29, %v3586_v43  ;;  %v3662_v29 = vld [vmem:[#allocation6 + $0x750] sm:$0xff] }
 0x370   :  { %6599 = vmatpush1.bf16.msra.mxu1 %v8530_v56  ;;  %6446 = vmatprep.subr.bf16.mxu0 %v8577_v8  ;;  %v8610_v56 = vcombine.low %v3782_v30, %v3786_v7  ;;  %v8403_v8 = vcombine.high %v3574_v37, %v3578_v42  ;;  %v3666_v43 = vld [vmem:[#allocation6 + $0x770] sm:$0xff]  ;;  %v3607_v30 = vld [vmem:[#allocation6 + $0x598] sm:$0xff] }
 0x371   :  { %6600 = vmatprep.subr.bf16.mxu1 %v8523_v41  ;;  %v8603_v41 = vcombine.high %v3774_v48, %v3778_v51  ;;  %v3611_v7 = vld [vmem:[#allocation6 + $0x5b8] sm:$0xff] }
 0x373   :  { %6447 = vmatpush2.bf16.msra.mxu0 %v8576_v63  ;;  %v8402_v63 = vcombine.low %v3574_v37, %v3578_v42  ;;  %v3654_v37 = vld [vmem:[#allocation6 + $0x710] sm:$0xff] }
 0x374   :  { %6601 = vmatpush1.bf16.msra.mxu1 %v8522_v0  ;;  %6545 = vmatprep.subr.bf16.mxu0 %v8443_v2  ;;  %v8602_v0 = vcombine.low %v3774_v48, %v3778_v51  ;;  %v8395_v2 = vcombine.high %v3566_v12, %v3570_v45  ;;  %v3658_v42 = vld [vmem:[#allocation6 + $0x730] sm:$0xff]  ;;  %v3599_v48 = vld [vmem:[#allocation6 + $0x558] sm:$0xff] }
 0x375   :  { %6602 = vmatprep.subr.bf16.mxu1 %v8515_v38  ;;  %v8595_v38 = vcombine.high %v3766_v46, %v3770_v19  ;;  %v3603_v51 = vld [vmem:[#allocation6 + $0x578] sm:$0xff] }
 0x376   :  { %6449 = vmatmul.mubr.bf16.vlgmr.msra.gmra.mxu0 %v10240_v44 }
 0x377   :  { %6546 = vmatpush1.bf16.msra.mxu0 %v8442_v20  ;;  %6577 = vmatprep.mubr.bf16.mxu0 %v10194_v62  ;;  %v8394_v20 = vcombine.low %v3566_v12, %v3570_v45  ;;  %v3646_v12 = vld [vmem:[#allocation6 + $0x6d0] sm:$0xff] }
 0x378   :  { %6603 = vmatpush1.bf16.msra.mxu1 %v8514_v21  ;;  %6547 = vmatprep.subr.bf16.mxu0 %v8435_v13  ;;  %v8594_v21 = vcombine.low %v3766_v46, %v3770_v19  ;;  %v8387_v13 = vcombine.high %v3558_v3, %v3562_v5  ;;  %v3650_v45 = vld [vmem:[#allocation6 + $0x6f0] sm:$0xff]  ;;  %v3591_v46 = vld [vmem:[#allocation6 + $0x518] sm:$0xff] }
 0x379   :  { %6604 = vmatprep.subr.bf16.mxu1 %v8635_v16  ;;  %v8587_v16 = vcombine.high %v3758_v6, %v3762_v11  ;;  %v3595_v19 = vld [vmem:[#allocation6 + $0x538] sm:$0xff] }
 0x37b   :  { %6548 = vmatpush1.bf16.msra.mxu0 %v8434_v15  ;;  %v8386_v15 = vcombine.low %v3558_v3, %v3562_v5  ;;  %v3638_v3 = vld [vmem:[#allocation6 + $0x690] sm:$0xff] }
 0x37c   :  { %6605 = vmatpush2.bf16.msra.mxu1 %v8634_v35  ;;  %6549 = vmatprep.subr.bf16.mxu0 %v8427_v23  ;;  %v8586_v35 = vcombine.low %v3758_v6, %v3762_v11  ;;  %v8507_v23 = vcombine.high %v3678_v17, %v3682_v34  ;;  %v3642_v5 = vld [vmem:[#allocation6 + $0x6b0] sm:$0xff]  ;;  %v3587_v6 = vld [vmem:[#allocation6 + $0x4f8] sm:$0xff]  ;;  %v8474_v11 = vcombine.low %v3646_v12, %v3650_v45 }
 0x37d   :  { %6606 = vmatprep.subr.bf16.mxu1 %v8627_v47  ;;  %v8579_v47 = vcombine.high %v3750_v18, %v3754_v26 }
 0x37f   :  { %6550 = vmatpush1.bf16.msra.mxu0 %v8426_v25  ;;  %v8506_v25 = vcombine.low %v3678_v17, %v3682_v34  ;;  %v3634_v17 = vld [vmem:[#allocation6 + $0x670] sm:$0xff]  ;;  %v3575_v34 = vld [vmem:[#allocation6 + $0x498] sm:$0xff] }
 0x380   :  { %6607 = vmatpush2.bf16.msra.mxu1 %v8626_v36  ;;  %6551 = vmatprep.subr.bf16.mxu0 %v8419_v27  ;;  %v8578_v36 = vcombine.low %v3750_v18, %v3754_v26  ;;  %v8499_v27 = vcombine.high %v3670_v52, %v3674_v24  ;;  %v3579_v18 = vld [vmem:[#allocation6 + $0x4b8] sm:$0xff]  ;;  %v8466_v26 = vcombine.low %v3638_v3, %v3642_v5 }
 0x381   :  { %6608 = vmatprep.subr.bf16.mxu1 %v8619_v28  ;;  %v8445_v28 = vcombine.high %v3615_v1, %v3619_v4 }
 0x383   :  { %6552 = vmatpush1.bf16.msra.mxu0 %v8418_v50  ;;  %v8498_v50 = vcombine.low %v3670_v52, %v3674_v24  ;;  %v3626_v52 = vld [vmem:[#allocation6 + $0x630] sm:$0xff]  ;;  %v3567_v24 = vld [vmem:[#allocation6 + $0x458] sm:$0xff] }
 0x384   :  { %6609 = vmatpush2.bf16.msra.mxu1 %v8618_v49  ;;  %6553 = vmatprep.subr.bf16.mxu0 %v8411_v32  ;;  %v8444_v49 = vcombine.low %v3615_v1, %v3619_v4  ;;  %v8491_v32 = vcombine.high %v3662_v29, %v3666_v43  ;;  %v3571_v1 = vld [vmem:[#allocation6 + $0x478] sm:$0xff] }
 0x385   :  { %6610 = vmatprep.subr.bf16.mxu1 %v8611_v33  ;;  %v8437_v33 = vcombine.high %v3607_v30, %v3611_v7 }
 0x387   :  { %6554 = vmatpush1.bf16.msra.mxu0 %v8410_v54  ;;  %v8490_v54 = vcombine.low %v3662_v29, %v3666_v43  ;;  %v3874_v29 = vld [vmem:[#allocation6 + $0xdf0] sm:$0xff]  ;;  %v3559_v43 = vld [vmem:[#allocation6 + $0x418] sm:$0xff] }
 0x388   :  { %6611 = vmatpush2.bf16.msra.mxu1 %v8610_v56  ;;  %6555 = vmatprep.subr.bf16.mxu0 %v8403_v8  ;;  %v8436_v56 = vcombine.low %v3607_v30, %v3611_v7  ;;  %v8483_v8 = vcombine.high %v3654_v37, %v3658_v42  ;;  %v3563_v30 = vld [vmem:[#allocation6 + $0x438] sm:$0xff] }
 0x389   :  { %6612 = vmatprep.subr.bf16.mxu1 %v8603_v41  ;;  %v8429_v41 = vcombine.high %v3599_v48, %v3603_v51 }
 0x38b   :  { %6556 = vmatpush1.bf16.msra.mxu0 %v8402_v63  ;;  %v8482_v63 = vcombine.low %v3654_v37, %v3658_v42  ;;  %v3866_v37 = vld [vmem:[#allocation6 + $0xdb0] sm:$0xff]  ;;  %v3679_v42 = vld [vmem:[#allocation6 + $0x7d8] sm:$0xff] }
 0x38c   :  { %6613 = vmatpush2.bf16.msra.mxu1 %v8602_v0  ;;  %6557 = vmatprep.subr.bf16.mxu0 %v8395_v2  ;;  %v8428_v0 = vcombine.low %v3599_v48, %v3603_v51  ;;  %v8475_v2 = vcombine.high %v3646_v12, %v3650_v45  ;;  %v3683_v48 = vld [vmem:[#allocation6 + $0x7f8] sm:$0xff]  ;;  %v3858_v12 = vld [vmem:[#allocation6 + $0xd70] sm:$0xff] }
 0x38d   :  { %6614 = vmatprep.subr.bf16.mxu1 %v8595_v38  ;;  %v8421_v38 = vcombine.high %v3591_v46, %v3595_v19  ;;  %v3671_v45 = vld [vmem:[#allocation6 + $0x798] sm:$0xff] }
 0x38f   :  { %6558 = vmatpush1.bf16.msra.mxu0 %v8394_v20  ;;  %v8420_v20 = vcombine.low %v3591_v46, %v3595_v19  ;;  %v3675_v46 = vld [vmem:[#allocation6 + $0x7b8] sm:$0xff] }
 0x390   :  { %6615 = vmatpush2.bf16.msra.mxu1 %v8594_v21  ;;  %6559 = vmatprep.subr.bf16.mxu0 %v8387_v13  ;;  %v8467_v21 = vcombine.high %v3638_v3, %v3642_v5  ;;  %v3850_v3 = vld [vmem:[#allocation6 + $0xd30] sm:$0xff]  ;;  %v3663_v5 = vld [vmem:[#allocation6 + $0x758] sm:$0xff] }
 0x391   :  { %6616 = vmatprep.subr.bf16.mxu1 %v8587_v16  ;;  %v3630_v16 = vld [vmem:[#allocation6 + $0x650] sm:$0xff] }
 0x392   :  { %v8458_v4 = vcombine.low %v3630_v16, %v3634_v17 }
 0x393   :  { %6560 = vmatpush1.bf16.msra.mxu0 %v8386_v15 }
 0x394   :  { %6617 = vmatpush2.bf16.msra.mxu1 %v8586_v35  ;;  %6561 = vmatprep.subr.bf16.mxu0 %v8507_v23  ;;  %v8459_v35 = vcombine.high %v3630_v16, %v3634_v17  ;;  %v8405_v23 = vcombine.high %v3575_v34, %v3579_v18  ;;  %v3842_v16 = vld [vmem:[#allocation6 + $0xcf0] sm:$0xff]  ;;  %v3655_v17 = vld [vmem:[#allocation6 + $0x718] sm:$0xff] }
 0x395   :  { %6618 = vmatprep.subr.bf16.mxu1 %v8579_v47  ;;  %v3622_v47 = vld [vmem:[#allocation6 + $0x610] sm:$0xff] }
 0x396   :  { %v8450_v7 = vcombine.low %v3622_v47, %v3626_v52 }
 0x397   :  { %6562 = vmatpush2.bf16.msra.mxu0 %v8506_v25  ;;  %v8404_v25 = vcombine.low %v3575_v34, %v3579_v18  ;;  %v3659_v34 = vld [vmem:[#allocation6 + $0x738] sm:$0xff] }
 0x398   :  { %6619 = vmatpush2.bf16.msra.mxu1 %v8578_v36  ;;  %6563 = vmatprep.subr.bf16.mxu0 %v8499_v27  ;;  %v8451_v36 = vcombine.high %v3622_v47, %v3626_v52  ;;  %v8397_v27 = vcombine.high %v3567_v24, %v3571_v1  ;;  %v3834_v47 = vld [vmem:[#allocation6 + $0xcb0] sm:$0xff]  ;;  %v3647_v52 = vld [vmem:[#allocation6 + $0x6d8] sm:$0xff] }
 0x399   :  { %6717 = vmatprep.subr.bf16.mxu1 %v8445_v28  ;;  %v3870_v28 = vld [vmem:[#allocation6 + $0xdd0] sm:$0xff] }
 0x39a   :  { %v8698_v51 = vcombine.low %v3870_v28, %v3874_v29 }
 0x39b   :  { %6564 = vmatpush2.bf16.msra.mxu0 %v8498_v50  ;;  %6621 = vmatmul.mubr.bf16.vlgmr.msra.gmra.mxu1 %v10240_v44  ;;  %v8396_v50 = vcombine.low %v3567_v24, %v3571_v1  ;;  %v3651_v24 = vld [vmem:[#allocation6 + $0x6f8] sm:$0xff] }
 0x39c   :  { %6718 = vmatpush1.bf16.msra.mxu1 %v8444_v49  ;;  %6749 = vmatprep.mubr.bf16.mxu1 %v10194_v62  ;;  %v3583_v62 = vld [vmem:[#allocation6 + $0x4d8] sm:$0xff]  ;;  %v8699_v49 = vcombine.high %v3870_v28, %v3874_v29  ;;  %v3826_v28 = vld [vmem:[#allocation6 + $0xc70] sm:$0xff] }
 0x39d   :  { %6565 = vmatprep.subr.bf16.mxu0 %v8491_v32  ;;  %6719 = vmatprep.subr.bf16.mxu1 %v8437_v33  ;;  %v8413_v13 = vcombine.high %v3583_v62, %v3587_v6  ;;  %v8412_v15 = vcombine.low %v3583_v62, %v3587_v6  ;;  %v8389_v32 = vcombine.high %v3559_v43, %v3563_v30  ;;  %v3862_v33 = vld [vmem:[#allocation6 + $0xd90] sm:$0xff]  ;;  %v3667_v62 = vld [vmem:[#allocation6 + $0x778] sm:$0xff] }
 0x39e   :  { %v8690_v19 = vcombine.low %v3862_v33, %v3866_v37  ;;  %v3639_v29 = vld [vmem:[#allocation6 + $0x698] sm:$0xff] }
 0x39f   :  { %6566 = vmatpush2.bf16.msra.mxu0 %v8490_v54  ;;  %v8388_v54 = vcombine.low %v3559_v43, %v3563_v30  ;;  %v3643_v43 = vld [vmem:[#allocation6 + $0x6b8] sm:$0xff] }
 0x3a0   :  { %6720 = vmatpush1.bf16.msra.mxu1 %v8436_v56  ;;  %6567 = vmatprep.subr.bf16.mxu0 %v8483_v8  ;;  %v8691_v56 = vcombine.high %v3862_v33, %v3866_v37  ;;  %v8509_v8 = vcombine.high %v3679_v42, %v3683_v48  ;;  %v3818_v33 = vld [vmem:[#allocation6 + $0xc30] sm:$0xff]  ;;  %v3631_v37 = vld [vmem:[#allocation6 + $0x658] sm:$0xff] }
 0x3a1   :  { %6721 = vmatprep.subr.bf16.mxu1 %v8429_v41  ;;  %v3854_v41 = vld [vmem:[#allocation6 + $0xd50] sm:$0xff] }
 0x3a2   :  { %v8682_v6 = vcombine.low %v3854_v41, %v3858_v12 }
 0x3a3   :  { %6568 = vmatpush2.bf16.msra.mxu0 %v8482_v63  ;;  %v8508_v63 = vcombine.low %v3679_v42, %v3683_v48  ;;  %v3635_v42 = vld [vmem:[#allocation6 + $0x678] sm:$0xff] }
 0x3a4   :  { %6722 = vmatpush1.bf16.msra.mxu1 %v8428_v0  ;;  %6569 = vmatprep.subr.bf16.mxu0 %v8475_v2  ;;  %v8683_v0 = vcombine.high %v3854_v41, %v3858_v12  ;;  %v8501_v2 = vcombine.high %v3671_v45, %v3675_v46  ;;  %v3491_v41 = vld [vmem:[#allocation6 + $0x1f8] sm:$0xff] }
 0x3a5   :  { %6723 = vmatprep.subr.bf16.mxu1 %v8421_v38  ;;  %v3846_v38 = vld [vmem:[#allocation6 + $0xd10] sm:$0xff]  ;;  %v3623_v12 = vld [vmem:[#allocation6 + $0x618] sm:$0xff] }
 0x3a6   :  { %v8674_v18 = vcombine.low %v3846_v38, %v3850_v3 }
 0x3a7   :  { %6570 = vmatpush2.bf16.msra.mxu0 %v8474_v11  ;;  %v8500_v11 = vcombine.low %v3671_v45, %v3675_v46  ;;  %v3627_v45 = vld [vmem:[#allocation6 + $0x638] sm:$0xff] }
 0x3a8   :  { %6724 = vmatpush1.bf16.msra.mxu1 %v8420_v20  ;;  %6571 = vmatprep.subr.bf16.mxu0 %v8467_v21  ;;  %v8675_v20 = vcombine.high %v3846_v38, %v3850_v3  ;;  %v8493_v21 = vcombine.high %v3663_v5, %v3667_v62  ;;  %v3483_v38 = vld [vmem:[#allocation6 + $0x1b8] sm:$0xff] }
 0x3a9   :  { %6725 = vmatprep.subr.bf16.mxu1 %v8413_v13  ;;  %v3838_v13 = vld [vmem:[#allocation6 + $0xcd0] sm:$0xff]  ;;  %v3871_v3 = vld [vmem:[#allocation6 + $0xdd8] sm:$0xff] }
 0x3aa   :  { %v8666_v1 = vcombine.low %v3838_v13, %v3842_v16 }
 0x3ab   :  { %6572 = vmatpush2.bf16.msra.mxu0 %v8466_v26  ;;  %v8492_v26 = vcombine.low %v3663_v5, %v3667_v62  ;;  %v3875_v5 = vld [vmem:[#allocation6 + $0xdf8] sm:$0xff]  ;;  %v10270_v62 = vpop.f32.mrf.mxu1 }
 0x3ac   :  { %6726 = vmatpush1.bf16.msra.mxu1 %v8412_v15  ;;  %6573 = vmatprep.subr.bf16.mxu0 %v8459_v35  ;;  %v8667_v15 = vcombine.high %v3838_v13, %v3842_v16  ;;  %v8485_v35 = vcombine.high %v3655_v17, %v3659_v34  ;;  %v8701_v13 = vcombine.high %v3871_v3, %v3875_v5  ;;  %v3471_v16 = vld [vmem:[#allocation6 + $0x158] sm:$0xff] }
 0x3ad   :  { %6727 = vmatprep.subr.bf16.mxu1 %v8405_v23  ;;  %v3830_v23 = vld [vmem:[#allocation6 + $0xc90] sm:$0xff] }
 0x3ae   :  { %v8658_v30 = vcombine.low %v3830_v23, %v3834_v47 }
 0x3af   :  { %6574 = vmatpush2.bf16.msra.mxu0 %v8458_v4  ;;  %v8484_v4 = vcombine.low %v3655_v17, %v3659_v34  ;;  %v3475_v17 = vld [vmem:[#allocation6 + $0x178] sm:$0xff] }
 0x3b0   :  { %6728 = vmatpush1.bf16.msra.mxu1 %v8404_v25  ;;  %6575 = vmatprep.subr.bf16.mxu0 %v8451_v36  ;;  %v8659_v25 = vcombine.high %v3830_v23, %v3834_v47  ;;  %v8477_v36 = vcombine.high %v3647_v52, %v3651_v24  ;;  %v3863_v34 = vld [vmem:[#allocation6 + $0xd98] sm:$0xff]  ;;  %v8301_v23 = vcombine.high %v3471_v16, %v3475_v17 }
 0x3b1   :  { %6729 = vmatprep.subr.bf16.mxu1 %v8397_v27  ;;  %v3822_v27 = vld [vmem:[#allocation6 + $0xc50] sm:$0xff] }
 0x3b2   :  { %v8650_v48 = vcombine.low %v3822_v27, %v3826_v28 }
 0x3b3   :  { %6576 = vmatpush2.bf16.msra.mxu0 %v8450_v7  ;;  %v8476_v7 = vcombine.low %v3647_v52, %v3651_v24  ;;  %v3463_v24 = vld [vmem:[#allocation6 + $0x118] sm:$0xff] }
 0x3b4   :  { %6730 = vmatpush1.bf16.msra.mxu1 %v8396_v50  ;;  %6631 = vmatprep.subr.bf16.mxu0 %v8699_v49  ;;  %v8651_v50 = vcombine.high %v3822_v27, %v3826_v28  ;;  %v8469_v49 = vcombine.high %v3639_v29, %v3643_v43  ;;  %v8300_v27 = vcombine.low %v3471_v16, %v3475_v17 }
 0x3b5   :  { %6731 = vmatprep.subr.bf16.mxu1 %v8389_v32  ;;  %v3814_v32 = vld [vmem:[#allocation6 + $0xc10] sm:$0xff] }
 0x3b6   :  { %6578 = vmatmul.mubr.bf16.vlgmr.msra.gmra.mxu0 %v10210_v10  ;;  %v8642_v46 = vcombine.low %v3814_v32, %v3818_v33 }
 0x3b7   :  { %6632 = vmatpush1.bf16.msra.mxu0 %v8698_v51  ;;  %6663 = vmatprep.mubr.bf16.mxu0 %v9916_v14  ;;  %v8468_v51 = vcombine.low %v3639_v29, %v3643_v43 }
 0x3b8   :  { %6732 = vmatpush1.bf16.msra.mxu1 %v8388_v54  ;;  %6633 = vmatprep.subr.bf16.mxu0 %v8691_v56  ;;  %v8643_v54 = vcombine.high %v3814_v32, %v3818_v33  ;;  %v8461_v56 = vcombine.high %v3631_v37, %v3635_v42 }
 0x3b9   :  { %6733 = vmatprep.subr.bf16.mxu1 %v8509_v8  ;;  %v3487_v8 = vld [vmem:[#allocation6 + $0x1d8] sm:$0xff] }
 0x3bb   :  { %6634 = vmatpush1.bf16.msra.mxu0 %v8690_v19  ;;  %v8460_v19 = vcombine.low %v3631_v37, %v3635_v42 }
 0x3bc   :  { %6734 = vmatpush2.bf16.msra.mxu1 %v8508_v63  ;;  %6635 = vmatprep.subr.bf16.mxu0 %v8683_v0  ;;  %v8317_v63 = vcombine.high %v3487_v8, %v3491_v41  ;;  %v8453_v0 = vcombine.high %v3623_v12, %v3627_v45 }
 0x3bd   :  { %6735 = vmatprep.subr.bf16.mxu1 %v8501_v2  ;;  %v3479_v2 = vld [vmem:[#allocation6 + $0x198] sm:$0xff] }
 0x3bf   :  { %6636 = vmatpush1.bf16.msra.mxu0 %v8682_v6  ;;  %v8316_v6 = vcombine.low %v3487_v8, %v3491_v41  ;;  %v3839_v8 = vld [vmem:[#allocation6 + $0xcd8] sm:$0xff] }
 0x3c0   :  { %6736 = vmatpush2.bf16.msra.mxu1 %v8500_v11  ;;  %6637 = vmatprep.subr.bf16.mxu0 %v8675_v20  ;;  %v8452_v11 = vcombine.low %v3623_v12, %v3627_v45  ;;  %v8309_v20 = vcombine.high %v3479_v2, %v3483_v38  ;;  %v3843_v41 = vld [vmem:[#allocation6 + $0xcf8] sm:$0xff] }
 0x3c1   :  { %6737 = vmatprep.subr.bf16.mxu1 %v8493_v21  ;;  %v10272_v21 = vpop.f32.mrf.mxu0 }
 0x3c3   :  { %6638 = vmatpush1.bf16.msra.mxu0 %v8674_v18  ;;  %v3867_v18 = vld [vmem:[#allocation6 + $0xdb8] sm:$0xff]  ;;  %v10278_v47 = vpop.f32.mrf.mxu0 }
 0x3c4   :  { %6738 = vmatpush2.bf16.msra.mxu1 %v8492_v26  ;;  %6639 = vmatprep.subr.bf16.mxu0 %v8667_v15  ;;  %v10275_v26 = vpop.f32.mrf.mxu1  ;;  %v8308_v15 = vcombine.low %v3479_v2, %v3483_v38  ;;  %v8693_v52 = vcombine.high %v3863_v34, %v3867_v18  ;;  %v3443_v2 = vld [vmem:[#allocation6 + $0x78] sm:$0xff] }
 0x3c5   :  { %6739 = vmatprep.subr.bf16.mxu1 %v8485_v35  ;;  %v8700_v35 = vcombine.low %v3871_v3, %v3875_v5  ;;  %v10283_v29 = vpop.f32.mrf.mxu0  ;;  %v3831_v38 = vld [vmem:[#allocation6 + $0xc98] sm:$0xff] }
 0x3c6   :  { %v3835_v3 = vld [vmem:[#allocation6 + $0xcb8] sm:$0xff] }
 0x3c7   :  { %6640 = vmatpush1.bf16.msra.mxu0 %v8666_v1  ;;  %v3467_v1 = vld [vmem:[#allocation6 + $0x138] sm:$0xff]  ;;  %v6241_v42 = vpop.f32.mrf.mxu0 }
 0x3c8   :  { %6740 = vmatpush2.bf16.msra.mxu1 %v8484_v4  ;;  %6641 = vmatprep.subr.bf16.mxu0 %v8659_v25  ;;  %v3855_v4 = vld [vmem:[#allocation6 + $0xd58] sm:$0xff]  ;;  %v8293_v28 = vcombine.high %v3463_v24, %v3467_v1  ;;  %v8292_v33 = vcombine.low %v3463_v24, %v3467_v1 }
 0x3c9   :  { %6741 = vmatprep.subr.bf16.mxu1 %v8477_v36  ;;  %v3859_v25 = vld [vmem:[#allocation6 + $0xd78] sm:$0xff]  ;;  %v10280_v36 = vpop.f32.mrf.mxu1  ;;  %v10288_v12 = vpop.f32.mrf.mxu0 }
 0x3ca   :  { %v8685_v43 = vcombine.high %v3855_v4, %v3859_v25 }
 0x3cb   :  { %6642 = vmatpush1.bf16.msra.mxu0 %v8658_v30  ;;  %v3455_v30 = vld [vmem:[#allocation6 + $0xd8] sm:$0xff]  ;;  %v6198_v32 = vpop.f32.mrf.mxu1  ;;  %v6323_v5 = vpop.f32.mrf.mxu0 }
 0x3cc   :  { %6742 = vmatpush2.bf16.msra.mxu1 %v8476_v7  ;;  %6643 = vmatprep.subr.bf16.mxu0 %v8651_v50  ;;  %v3459_v7 = vld [vmem:[#allocation6 + $0xf8] sm:$0xff] }
 0x3cd   :  { %6743 = vmatprep.subr.bf16.mxu1 %v8469_v49  ;;  %v3847_v50 = vld [vmem:[#allocation6 + $0xd18] sm:$0xff]  ;;  %v8285_v37 = vcombine.high %v3455_v30, %v3459_v7 }
 0x3ce   :  { %v3851_v49 = vld [vmem:[#allocation6 + $0xd38] sm:$0xff] }
 0x3cf   :  { %6644 = vmatpush1.bf16.msra.mxu0 %v8650_v48  ;;  %v10286_v48 = vpop.f32.mrf.mxu1  ;;  %v8676_v45 = vcombine.low %v3847_v50, %v3851_v49 }
 0x3d0   :  { %6744 = vmatpush2.bf16.msra.mxu1 %v8468_v51  ;;  %6645 = vmatprep.subr.bf16.mxu0 %v8643_v54  ;;  %v8677_v51 = vcombine.high %v3847_v50, %v3851_v49  ;;  %v3447_v54 = vld [vmem:[#allocation6 + $0x98] sm:$0xff] }
 0x3d1   :  { %6745 = vmatprep.subr.bf16.mxu1 %v8461_v56  ;;  %v3451_v56 = vld [vmem:[#allocation6 + $0xb8] sm:$0xff] }
 0x3d2   :  { %v3819_v50 = vld [vmem:[#allocation6 + $0xc38] sm:$0xff] }
 0x3d3   :  { %6646 = vmatpush1.bf16.msra.mxu0 %v8642_v46  ;;  %v8277_v46 = vcombine.high %v3447_v54, %v3451_v56 }
 0x3d4   :  { %6746 = vmatpush2.bf16.msra.mxu1 %v8460_v19  ;;  %6674 = vmatprep.subr.bf16.mxu0 %v8317_v63  ;;  %v6280_v19 = vpop.f32.mrf.mxu1  ;;  %v8669_v63 = vcombine.high %v3839_v8, %v3843_v41 }
 0x3d5   :  { %6747 = vmatprep.subr.bf16.mxu1 %v8453_v0  ;;  %v3439_v0 = vld [vmem:[#allocation6 + $0x58] sm:$0xff] }
 0x3d6   :  { %6664 = vmatmul.mubr.bf16.vlgmr.msra.gmra.mxu0 %v10249_v55  ;;  %v10295_v17 = vpop.f32.mrf.mxu1  ;;  %v8268_v24 = vcombine.low %v3439_v0, %v3443_v2 }
 0x3d7   :  { %6675 = vmatpush1.bf16.msra.mxu0 %v8316_v6  ;;  %6706 = vmatprep.mubr.bf16.mxu0 %v10158_v39  ;;  %v8692_v39 = vcombine.low %v3863_v34, %v3867_v18  ;;  %v8276_v6 = vcombine.low %v3447_v54, %v3451_v56  ;;  %v8661_v34 = vcombine.high %v3831_v38, %v3835_v3  ;;  %v3431_v18 = vld [vmem:[#allocation6 + $0x18] sm:$0xff] }
 0x3d8   :  { %6748 = vmatpush2.bf16.msra.mxu1 %v8452_v11  ;;  %6676 = vmatprep.subr.bf16.mxu0 %v8309_v20  ;;  %v10290_v11 = vld [vmem:[#allocation7] sm:$0xff]  ;;  %v8668_v20 = vcombine.low %v3839_v8, %v3843_v41  ;;  %v3543_v54 = vld [vmem:[#allocation6 + $0x398] sm:$0xff] }
 0x3d9   :  { %6803 = vmatprep.subr.bf16.mxu1 %v8701_v13  ;;  %v8269_v13 = vcombine.high %v3439_v0, %v3443_v2  ;;  %v3885_v16 = vrot.slane %v10290_v11, %v646_v58  ;;  %v6284_v58 = vpop.f32.mrf.mxu1  ;;  %v3547_v56 = vld [vmem:[#allocation6 + $0x3b8] sm:$0xff] }
 0x3da   :  { %v3535_v0 = vld [vmem:[#allocation6 + $0x358] sm:$0xff] }
 0x3db   :  { %6677 = vmatpush1.bf16.msra.mxu0 %v8308_v15  ;;  %6750 = vmatmul.mubr.bf16.vlgmr.msra.gmra.mxu1 %v10210_v10  ;;  %v8684_v10 = vcombine.low %v3855_v4, %v3859_v25  ;;  %v3435_v15 = vld [vmem:[#allocation6 + $0x38] sm:$0xff]  ;;  %v6199_v1 = vadd.f32 %v6198_v32, %v3885_v16  ;;  %v8660_v4 = vcombine.low %v3831_v38, %v3835_v3 }
 0x3dc   :  { %6804 = vmatpush1.bf16.msra.mxu1 %v8700_v35  ;;  %6678 = vmatprep.subr.bf16.mxu0 %v8301_v23  ;;  %v3823_v35 = vld [vmem:[#allocation6 + $0xc58] sm:$0xff]  ;;  %v8261_v25 = vcombine.high %v3431_v18, %v3435_v15  ;;  %v8372_v38 = vcombine.low %v3543_v54, %v3547_v56 }
 0x3dd   :  { %6805 = vmatprep.subr.bf16.mxu1 %v8693_v52  ;;  %6835 = vmatprep.mubr.bf16.mxu1 %v9916_v14  ;;  %v8284_v14 = vcombine.low %v3455_v30, %v3459_v7  ;;  %v3827_v23 = vld [vmem:[#allocation6 + $0xc78] sm:$0xff]  ;;  %v10297_v52 = vpop.f32.mrf.mxu0  ;;  %v6242_v30 = vadd.f32 %v6241_v42, %v6199_v1 }
 0x3de   :  { %v3815_v7 = vld [vmem:[#allocation6 + $0xc18] sm:$0xff] }
 0x3df   :  { %6679 = vmatpush1.bf16.msra.mxu0 %v8300_v27  ;;  %v6195_v27 = vadd.f32 %v10275_v26, %v3885_v16  ;;  %v6285_v32 = vadd.f32 %v6284_v58, %v6242_v30  ;;  %v8645_v26 = vcombine.high %v3815_v7, %v3819_v50  ;;  %v3539_v2 = vld [vmem:[#allocation6 + $0x378] sm:$0xff]  ;;  %v9602_v30 = vld [vmem:[%s10569_s5 + $0x58] sm:$0xff]  }
 0x3e0   :  { %6806 = vmatpush1.bf16.msra.mxu1 %v8692_v39  ;;  %6680 = vmatprep.subr.bf16.mxu0 %v8293_v28  ;;  %v8653_v39 = vcombine.high %v3823_v35, %v3827_v23  ;;  %v3551_v28 = vld [vmem:[#allocation6 + $0x3d8] sm:$0xff] }
 0x3e1   :  { %6807 = vmatprep.subr.bf16.mxu1 %v8685_v43  ;;  %v3555_v43 = vld [vmem:[#allocation6 + $0x3f8] sm:$0xff]  ;;  %v6238_v49 = vadd.f32 %v10278_v47, %v6195_v27  ;;  %v8644_v47 = vcombine.low %v3815_v7, %v3819_v50 }
 0x3e2   :  { %v8380_v42 = vcombine.low %v3551_v28, %v3555_v43  ;;  %v3511_v27 = vld [vmem:[#allocation6 + $0x298] sm:$0xff] }
 0x3e3   :  { %6681 = vmatpush1.bf16.msra.mxu0 %v8292_v33  ;;  %v6327_v33 = vpop.f32.mrf.mxu0  ;;  %v6281_v8 = vadd.f32 %v6280_v19, %v6238_v49  ;;  %v9595_v19 = vld [vmem:[%s10569_s5 + $0x38] sm:$0xff]   ;;  %v3515_v58 = vld [vmem:[#allocation6 + $0x2b8] sm:$0xff] }
 0x3e4   :  { %6808 = vmatpush1.bf16.msra.mxu1 %v8684_v10  ;;  %6682 = vmatprep.subr.bf16.mxu0 %v8285_v37  ;;  %v8260_v10 = vcombine.low %v3431_v18, %v3435_v15  ;;  %v8652_v37 = vcombine.low %v3823_v35, %v3827_v23  ;;  %v6328_v41 = vadd.f32 %v6327_v33, %v6285_v32  ;;  %v9597_v18 = vld [vmem:[%s10569_s5 + $0x30] sm:$0xff]   ;;  %v9598_v35 = vld [vmem:[%s10569_s5 + $0x68] sm:$0xff]   ;;  %v3519_v23 = vld [vmem:[#allocation6 + $0x2d8] sm:$0xff] }
 0x3e5   :  { %6809 = vmatprep.subr.bf16.mxu1 %v8677_v51  ;;  %v8381_v51 = vcombine.high %v3551_v28, %v3555_v43  ;;  %v9601_v28 = vld [vmem:[%s10569_s5 + $0x20] sm:$0xff]   ;;  %v8341_v43 = vcombine.high %v3511_v27, %v3515_v58  ;;  %v8340_v49 = vcombine.low %v3511_v27, %v3515_v58  ;;  %v9603_v33 = vld [vmem:[%s10569_s5 + $0x18] sm:$0xff]   ;;  %v3881_v32 = vrot.slane %v10290_v11, %v642_v22 }
 0x3e6   :  { %v3503_v7 = vld [vmem:[#allocation6 + $0x258] sm:$0xff] }
 0x3e7   :  { %6683 = vmatpush1.bf16.msra.mxu0 %v8284_v14  ;;  %v6324_v14 = vadd.f32 %v6323_v5, %v6281_v8  ;;  %v8365_v5 = vcombine.high %v3535_v0, %v3539_v2  ;;  %v3507_v50 = vld [vmem:[#allocation6 + $0x278] sm:$0xff]  ;;  %v9605_v8 = vld [vmem:[%s10569_s5 + $0x10] sm:$0xff]   ;;  %v6193_v22 = vadd.f32 %v10270_v62, %v3881_v32  ;;  %v9607_v62 = vld [vmem:[%s10569_s5 + $0x8] sm:$0xff]  }
 0x3e8   :  { %6810 = vmatpush1.bf16.msra.mxu1 %v8676_v45  ;;  %6684 = vmatprep.subr.bf16.mxu0 %v8277_v46  ;;  %v8373_v45 = vcombine.high %v3543_v54, %v3547_v56  ;;  %v9594_v46 = vld [vmem:[%s10569_s5 + $0x78] sm:$0xff]   ;;  %v6197_v54 = vadd.f32 %v10280_v36, %v3881_v32  ;;  %v8332_v56 = vcombine.low %v3503_v7, %v3507_v50  ;;  %v3747_v36 = vld [vmem:[#allocation6 + $0x9f8] sm:$0xff] }
 0x3e9   :  { %6811 = vmatprep.subr.bf16.mxu1 %v8669_v63  ;;  %v6855_v63 = vmax.f32 %v6328_v41, 0.0  ;;  %v6847_v3 = vmax.f32 %v6324_v14, 0.0  ;;  %v9606_v14 = vld [vmem:[%s10569_s5 + $0x48] sm:$0xff]   ;;  %v9634_v32 = vld [vmem:[%s10569_s5 + $0x158] sm:$0xff]  }
 0x3eb   :  { %6685 = vmatpush1.bf16.msra.mxu0 %v8276_v6  ;;  %v9596_v6 = vld [vmem:[%s10569_s5 + $0x70] sm:$0xff]   ;;  %v6863_v16 = vpack.c.bf16 %v6855_v63, %v6847_v3 }
 0x3ec   :  { %6812 = vmatpush1.bf16.msra.mxu1 %v8668_v20  ;;  %6686 = vmatprep.subr.bf16.mxu0 %v8269_v13  ;;  %v3527_v20 = vld [vmem:[#allocation6 + $0x318] sm:$0xff] }
 0x3ed   :  { %6813 = vmatprep.subr.bf16.mxu1 %v8661_v34  ;;  %v3531_v13 = vld [vmem:[#allocation6 + $0x338] sm:$0xff]  ;;  %v8364_v34 = vcombine.low %v3535_v0, %v3539_v2 }
 0x3ee   :  { %v8357_v15 = vcombine.high %v3527_v20, %v3531_v13  ;;  %v8356_v1 = vcombine.low %v3527_v20, %v3531_v13  ;;  %v3731_v20 = vld [vmem:[#allocation6 + $0x978] sm:$0xff]  ;;  %v9626_v13 = vld [vmem:[%s10569_s5 + $0x178] sm:$0xff]  }
 0x3ef   :  { %6687 = vmatpush1.bf16.msra.mxu0 %v8268_v24  ;;  %v3523_v24 = vld [vmem:[#allocation6 + $0x2f8] sm:$0xff] }
 0x3f0   :  { %6814 = vmatpush1.bf16.msra.mxu1 %v8660_v4  ;;  %6688 = vmatprep.subr.bf16.mxu0 %v8261_v25  ;;  %v8349_v4 = vcombine.high %v3519_v23, %v3523_v24  ;;  %v9600_v25 = vld [vmem:[%s10569_s5 + $0x60] sm:$0xff]  }
 0x3f1   :  { %6815 = vmatprep.subr.bf16.mxu1 %v8653_v39  ;;  %v8348_v39 = vcombine.low %v3519_v23, %v3523_v24  ;;  %v3723_v23 = vld [vmem:[#allocation6 + $0x938] sm:$0xff] }
 0x3f3   :  { %6689 = vmatpush1.bf16.msra.mxu0 %v8260_v10  ;;  %v8333_v10 = vcombine.high %v3503_v7, %v3507_v50 }
 0x3f4   :  { %6816 = vmatpush1.bf16.msra.mxu1 %v8652_v37  ;;  %6690 = vmatprep.subr.bf16.mxu0 %v8381_v51  ;;  %v9604_v37 = vld [vmem:[%s10569_s5 + $0x50] sm:$0xff]   ;;  %v3495_v51 = vld [vmem:[#allocation6 + $0x218] sm:$0xff] }
 0x3f5   :  { %6817 = vmatprep.subr.bf16.mxu1 %v8645_v26  ;;  %v3499_v26 = vld [vmem:[#allocation6 + $0x238] sm:$0xff] }
 0x3f6   :  { %v8325_v41 = vcombine.high %v3495_v51, %v3499_v26  ;;  %v8324_v63 = vcombine.low %v3495_v51, %v3499_v26  ;;  %v9635_v26 = vld [vmem:[%s10569_s5 + $0x118] sm:$0xff]  }
 0x3f7   :  { %6691 = vmatpush2.bf16.msra.mxu0 %v8380_v42  ;;  %v6240_v42 = vadd.f32 %v10283_v29, %v6197_v54  ;;  %v3687_v54 = vld [vmem:[#allocation6 + $0x818] sm:$0xff] }
 0x3f8   :  { %6818 = vmatpush1.bf16.msra.mxu1 %v8644_v47  ;;  %6692 = vmatprep.subr.bf16.mxu0 %v8373_v45  ;;  %v3743_v47 = vld [vmem:[#allocation6 + $0x9d8] sm:$0xff]  ;;  %v6236_v45 = vadd.f32 %v10272_v21, %v6193_v22  ;;  %v10396_v22 = vpop.f32.mrf.mxu0 }
 0x3f9   :  { %8854 = vmatprep.subr.bf16.mxu1 %v9594_v46  ;;  %v6283_v46 = vadd.f32 %v10295_v17, %v6240_v42  ;;  %v8573_v29 = vcombine.high %v3743_v47, %v3747_v36  ;;  %v9608_v21 = vld [vmem:[%s10569_s5 + $0x40] sm:$0xff]  }
 0x3fa   :  { %v6279_v0 = vadd.f32 %v10286_v48, %v6236_v45  ;;  %v3739_v17 = vld [vmem:[#allocation6 + $0x9b8] sm:$0xff]  ;;  %v9638_v45 = vld [vmem:[%s10569_s5 + $0x148] sm:$0xff]  }
 0x3fb   :  { %6693 = vmatpush2.bf16.msra.mxu0 %v8372_v38  ;;  %6836 = vmatmul.mubr.bf16.vlgmr.msra.gmra.mxu1 %v10249_v55  ;;  %v9599_v55 = vld [vmem:[%s10569_s5 + $0x28] sm:$0xff]   ;;  %v6326_v2 = vadd.f32 %v10297_v52, %v6283_v46  ;;  %v3735_v38 = vld [vmem:[#allocation6 + $0x998] sm:$0xff] }
 0x3fc   :  { %8855 = vmatpush3.bf16.msra.mxu1 %v9595_v19  ;;  %7421 = vmatprep.mubr.bf16.mxu1 %v6863_v16  ;;  %v6322_v3 = vadd.f32 %v10288_v12, %v6279_v0  ;;  %v8572_v19 = vcombine.low %v3743_v47, %v3747_v36  ;;  %v8565_v48 = vcombine.high %v3735_v38, %v3739_v17  ;;  %v3727_v52 = vld [vmem:[#allocation6 + $0x958] sm:$0xff] }
 0x3fd   :  { %6694 = vmatprep.subr.bf16.mxu0 %v8365_v5  ;;  %8856 = vmatprep.subr.bf16.mxu1 %v9596_v6  ;;  %v9609_v5 = vld [vmem:[%s10569_s5] sm:$0xff]   ;;  %v6854_v6 = vmax.f32 %v6326_v2, 0.0  ;;  %v8564_v16 = vcombine.low %v3735_v38, %v3739_v17  ;;  %v8556_v24 = vcombine.low %v3727_v52, %v3731_v20  ;;  %v10410_v38 = vpop.f32.mrf.mxu1 }
 0x3fe   :  { %v6846_v12 = vmax.f32 %v6322_v3, 0.0  ;;  %v3807_v47 = vld [vmem:[#allocation6 + $0xbd8] sm:$0xff] }
 0x3ff   :  { %6695 = vmatpush2.bf16.msra.mxu0 %v8364_v34  ;;  %v8557_v34 = vcombine.high %v3727_v52, %v3731_v20  ;;  %v3811_v36 = vld [vmem:[#allocation6 + $0xbf8] sm:$0xff]  ;;  %v6409_v52 = vpop.f32.mrf.mxu1 }
 0x400   :  { %8857 = vmatpush3.bf16.msra.mxu1 %v9597_v18  ;;  %6696 = vmatprep.subr.bf16.mxu0 %v8357_v15  ;;  %v9627_v18 = vld [vmem:[%s10569_s5 + $0x138] sm:$0xff]   ;;  %v6862_v15 = vpack.c.bf16 %v6854_v6, %v6846_v12  ;;  %v3799_v0 = vld [vmem:[#allocation6 + $0xb98] sm:$0xff]  ;;  %v8636_v17 = vcombine.low %v3807_v47, %v3811_v36 }
 0x401   :  { %8858 = vmatprep.subr.bf16.mxu1 %v9598_v35  ;;  %v3719_v35 = vld [vmem:[#allocation6 + $0x918] sm:$0xff] }
 0x402   :  { %v8548_v27 = vcombine.low %v3719_v35, %v3723_v23  ;;  %v3803_v2 = vld [vmem:[#allocation6 + $0xbb8] sm:$0xff] }
 0x403   :  { %6697 = vmatpush2.bf16.msra.mxu0 %v8356_v1  ;;  %v9629_v1 = vld [vmem:[%s10569_s5 + $0x130] sm:$0xff]   ;;  %v3795_v6 = vld [vmem:[#allocation6 + $0xb78] sm:$0xff]  ;;  %v8628_v20 = vcombine.low %v3799_v0, %v3803_v2 }
 0x404   :  { %8859 = vmatpush3.bf16.msra.mxu1 %v9599_v55  ;;  %6698 = vmatprep.subr.bf16.mxu0 %v8349_v4  ;;  %v3711_v55 = vld [vmem:[#allocation6 + $0x8d8] sm:$0xff] }
 0x405   :  { %8860 = vmatprep.subr.bf16.mxu1 %v9600_v25  ;;  %v3715_v4 = vld [vmem:[#allocation6 + $0x8f8] sm:$0xff]  ;;  %v9630_v25 = vld [vmem:[%s10569_s5 + $0x168] sm:$0xff]  }
 0x406   :  { %v8541_v58 = vcombine.high %v3711_v55, %v3715_v4  ;;  %v8540_v7 = vcombine.low %v3711_v55, %v3715_v4 }
 0x407   :  { %6699 = vmatpush2.bf16.msra.mxu0 %v8348_v39  ;;  %v9631_v39 = vld [vmem:[%s10569_s5 + $0x128] sm:$0xff]  }
 0x408   :  { %8861 = vmatpush3.bf16.msra.mxu1 %v9601_v28  ;;  %6700 = vmatprep.subr.bf16.mxu0 %v8341_v43  ;;  %v3703_v28 = vld [vmem:[#allocation6 + $0x898] sm:$0xff] }
 0x409   :  { %8862 = vmatprep.subr.bf16.mxu1 %v9602_v30  ;;  %v3707_v43 = vld [vmem:[#allocation6 + $0x8b8] sm:$0xff] }
 0x40a   :  { %v9632_v30 = vld [vmem:[%s10569_s5 + $0x160] sm:$0xff]   ;;  %v8533_v50 = vcombine.high %v3703_v28, %v3707_v43 }
 0x40b   :  { %6701 = vmatpush2.bf16.msra.mxu0 %v8340_v49  ;;  %v9633_v49 = vld [vmem:[%s10569_s5 + $0x120] sm:$0xff]  }
 0x40c   :  { %8863 = vmatpush3.bf16.msra.mxu1 %v9603_v33  ;;  %6702 = vmatprep.subr.bf16.mxu0 %v8333_v10  ;;  %v3695_v33 = vld [vmem:[#allocation6 + $0x858] sm:$0xff] }
 0x40d   :  { %8864 = vmatprep.subr.bf16.mxu1 %v9604_v37  ;;  %v3699_v10 = vld [vmem:[#allocation6 + $0x878] sm:$0xff]  ;;  %v8532_v37 = vcombine.low %v3703_v28, %v3707_v43 }
 0x40e   :  { %v8525_v51 = vcombine.high %v3695_v33, %v3699_v10 }
 0x40f   :  { %6703 = vmatpush2.bf16.msra.mxu0 %v8332_v56  ;;  %v3691_v56 = vld [vmem:[#allocation6 + $0x838] sm:$0xff] }
 0x410   :  { %8865 = vmatpush3.bf16.msra.mxu1 %v9605_v8  ;;  %6704 = vmatprep.subr.bf16.mxu0 %v8325_v41  ;;  %v9636_v8 = vld [vmem:[%s10569_s5 + $0x150] sm:$0xff]   ;;  %v8524_v41 = vcombine.low %v3695_v33, %v3699_v10  ;;  %v8517_v42 = vcombine.high %v3687_v54, %v3691_v56  ;;  %v8516_v46 = vcombine.low %v3687_v54, %v3691_v56  ;;  %v3759_v33 = vld [vmem:[#allocation6 + $0xa58] sm:$0xff] }
 0x411   :  { %8866 = vmatprep.subr.bf16.mxu1 %v9606_v14  ;;  %v9637_v14 = vld [vmem:[%s10569_s5 + $0x110] sm:$0xff]   ;;  %v3763_v10 = vld [vmem:[#allocation6 + $0xa78] sm:$0xff] }
 0x413   :  { %6705 = vmatpush2.bf16.msra.mxu0 %v8324_v63  ;;  %v6366_v63 = vpop.f32.mrf.mxu0 }
 0x414   :  { %8867 = vmatpush3.bf16.msra.mxu1 %v9607_v62  ;;  %6760 = vmatprep.subr.bf16.mxu0 %v8573_v29  ;;  %v8637_v62 = vcombine.high %v3807_v47, %v3811_v36  ;;  %v9639_v29 = vld [vmem:[%s10569_s5 + $0x108] sm:$0xff]  }
 0x415   :  { %8868 = vmatprep.subr.bf16.mxu1 %v9608_v21  ;;  %v9640_v21 = vld [vmem:[%s10569_s5 + $0x140] sm:$0xff]   ;;  %v10412_v3 = vpop.f32.mrf.mxu0 }
 0x416   :  { %6707 = vmatmul.mubr.bf16.vlgmr.msra.gmra.mxu0 %v10134_v60  ;;  %v9628_v60 = vld [vmem:[%s10569_s5 + $0x170] sm:$0xff]  }
 0x417   :  { %6761 = vmatpush1.bf16.msra.mxu0 %v8572_v19  ;;  %6792 = vmatprep.mubr.bf16.mxu0 %v10236_v40  ;;  %v8549_v40 = vcombine.high %v3719_v35, %v3723_v23  ;;  %v8629_v19 = vcombine.high %v3799_v0, %v3803_v2  ;;  %v9611_v2 = vld [vmem:[%s10569_s5 + $0xb8] sm:$0xff]  }
 0x418   :  { %8869 = vmatpush3.bf16.msra.mxu1 %v9609_v5  ;;  %6762 = vmatprep.subr.bf16.mxu0 %v8565_v48  ;;  %v9641_v5 = vld [vmem:[%s10569_s5 + $0x100] sm:$0xff]  }
 0x419   :  { %8898 = vmatprep.subr.bf16.mxu1 %v9626_v13  ;;  %v3791_v48 = vld [vmem:[#allocation6 + $0xb58] sm:$0xff]  ;;  %v6370_v13 = vpop.f32.mrf.mxu0 }
 0x41a   :  { %v8621_v12 = vcombine.high %v3791_v48, %v3795_v6  ;;  %v8620_v35 = vcombine.low %v3791_v48, %v3795_v6  ;;  %v9615_v48 = vld [vmem:[%s10569_s5 + $0xa8] sm:$0xff]   ;;  %v9617_v6 = vld [vmem:[%s10569_s5 + $0xa0] sm:$0xff]  }
 0x41b   :  { %6763 = vmatpush1.bf16.msra.mxu0 %v8564_v16  ;;  %7422 = vmatmul.mubr.bf16.vlgmr.msra.gmra.mxu1 %v6862_v15  ;;  %v3783_v16 = vld [vmem:[#allocation6 + $0xb18] sm:$0xff] }
 0x41c   :  { %6764 = vmatprep.subr.bf16.mxu0 %v8557_v34  ;;  %8899 = vmatpush3.bf16.msra.mxu1 %v9627_v18  ;;  %v3787_v34 = vld [vmem:[#allocation6 + $0xb38] sm:$0xff]  ;;  %v10417_v18 = vpop.f32.mrf.mxu1 }
 0x41d   :  { %8900 = vmatprep.subr.bf16.mxu1 %v9628_v60  ;;  %v8613_v23 = vcombine.high %v3783_v16, %v3787_v34  ;;  %v3775_v60 = vld [vmem:[#allocation6 + $0xad8] sm:$0xff]  ;;  %v8612_v55 = vcombine.low %v3783_v16, %v3787_v34  ;;  %v9620_v34 = vld [vmem:[%s10569_s5 + $0xd0] sm:$0xff]  }
 0x41f   :  { %6765 = vmatpush1.bf16.msra.mxu0 %v8556_v24  ;;  %v3779_v24 = vld [vmem:[#allocation6 + $0xaf8] sm:$0xff] }
 0x420   :  { %6766 = vmatprep.subr.bf16.mxu0 %v8549_v40  ;;  %8901 = vmatpush3.bf16.msra.mxu1 %v9629_v1  ;;  %v6413_v40 = vpop.f32.mrf.mxu1 }
 0x421   :  { %8902 = vmatprep.subr.bf16.mxu1 %v9630_v25  ;;  %v8605_v25 = vcombine.high %v3775_v60, %v3779_v24 }
 0x422   :  { %v10421_v4 = vpop.f32.mrf.mxu1 }
 0x423   :  { %6767 = vmatpush1.bf16.msra.mxu0 %v8548_v27  ;;  %v3893_v27 = vrot.slane %v10290_v11, %v654_v53  ;;  %v8589_v53 = vcombine.high %v3759_v33, %v3763_v10 }
 0x424   :  { %6768 = vmatprep.subr.bf16.mxu0 %v8541_v58  ;;  %8903 = vmatpush3.bf16.msra.mxu1 %v9631_v39  ;;  %v3767_v58 = vld [vmem:[#allocation6 + $0xa98] sm:$0xff] }
 0x425   :  { %8904 = vmatprep.subr.bf16.mxu1 %v9632_v30  ;;  %v3771_v39 = vld [vmem:[#allocation6 + $0xab8] sm:$0xff]  ;;  %v6371_v43 = vadd.f32 %v6370_v13, %v3893_v27  ;;  %v8604_v30 = vcombine.low %v3775_v60, %v3779_v24 }
 0x427   :  { %6769 = vmatpush1.bf16.msra.mxu0 %v8540_v7  ;;  %v6495_v7 = vpop.f32.mrf.mxu1 }
 0x428   :  { %6770 = vmatprep.subr.bf16.mxu0 %v8533_v50  ;;  %8905 = vmatpush3.bf16.msra.mxu1 %v9633_v49  ;;  %v8597_v50 = vcombine.high %v3767_v58, %v3771_v39  ;;  %v6367_v49 = vadd.f32 %v6366_v63, %v3893_v27  ;;  %v9643_v27 = vld [vmem:[%s10569_s5 + $0x1b8] sm:$0xff]  }
 0x429   :  { %8906 = vmatprep.subr.bf16.mxu1 %v9634_v32 }
 0x42a   :  { %v6410_v54 = vadd.f32 %v6409_v52, %v6367_v49  ;;  %v3889_v52 = vrot.slane %v10290_v11, %v650_v31 }
 0x42b   :  { %6771 = vmatpush1.bf16.msra.mxu0 %v8532_v37  ;;  %v6414_v37 = vadd.f32 %v6413_v40, %v6371_v43  ;;  %v9647_v43 = vld [vmem:[%s10569_s5 + $0x1a8] sm:$0xff]  }
 0x42c   :  { %6772 = vmatprep.subr.bf16.mxu0 %v8525_v51  ;;  %8907 = vmatpush3.bf16.msra.mxu1 %v9635_v26  ;;  %v8596_v51 = vcombine.low %v3767_v58, %v3771_v39  ;;  %v6497_v26 = vpop.f32.mrf.mxu1  ;;  %v6369_v13 = vadd.f32 %v10412_v3, %v3889_v52  ;;  %v6365_v16 = vadd.f32 %v10396_v22, %v3889_v52  ;;  %v9622_v22 = vld [vmem:[%s10569_s5 + $0xc8] sm:$0xff]   ;;  %v9645_v39 = vld [vmem:[%s10569_s5 + $0x1b0] sm:$0xff]  }
 0x42d   :  { %8908 = vmatprep.subr.bf16.mxu1 %v9636_v8  ;;  %v3751_v8 = vld [vmem:[#allocation6 + $0xa18] sm:$0xff] }
 0x42e   :  { %v6499_v47 = vpop.f32.mrf.mxu1  ;;  %v6412_v31 = vadd.f32 %v10417_v18, %v6369_v13  ;;  %v6408_v3 = vadd.f32 %v10410_v38, %v6365_v16  ;;  %v9623_v18 = vld [vmem:[%s10569_s5 + $0x88] sm:$0xff]   ;;  %v9624_v38 = vld [vmem:[%s10569_s5 + $0xc0] sm:$0xff]  }
 0x42f   :  { %6773 = vmatpush1.bf16.msra.mxu0 %v8524_v41  ;;  %v3755_v41 = vld [vmem:[#allocation6 + $0xa38] sm:$0xff]  ;;  %v9654_v16 = vld [vmem:[%s10569_s5 + $0x1c8] sm:$0xff]  }
 0x430   :  { %6774 = vmatprep.subr.bf16.mxu0 %v8517_v42  ;;  %8909 = vmatpush3.bf16.msra.mxu1 %v9637_v14  ;;  %v8588_v14 = vcombine.low %v3759_v33, %v3763_v10  ;;  %v8581_v36 = vcombine.high %v3751_v8, %v3755_v41  ;;  %v8580_v63 = vcombine.low %v3751_v8, %v3755_v41 }
 0x431   :  { %8910 = vmatprep.subr.bf16.mxu1 %v9638_v45 }
 0x433   :  { %6775 = vmatpush1.bf16.msra.mxu0 %v8516_v46 }
 0x434   :  { %6776 = vmatprep.subr.bf16.mxu0 %v8637_v62  ;;  %8911 = vmatpush3.bf16.msra.mxu1 %v9639_v29  ;;  %v9610_v62 = vld [vmem:[%s10569_s5 + $0xf8] sm:$0xff]  }
 0x435   :  { %8912 = vmatprep.subr.bf16.mxu1 %v9640_v21  ;;  %v9612_v21 = vld [vmem:[%s10569_s5 + $0xf0] sm:$0xff]  }
 0x436   :  { %v10419_v15 = vpop.f32.mrf.mxu0 }
 0x437   :  { %6777 = vmatpush2.bf16.msra.mxu0 %v8636_v17  ;;  %v6451_v60 = vadd.f32 %v10419_v15, %v6408_v3  ;;  %v9642_v15 = vld [vmem:[%s10569_s5 + $0x1f8] sm:$0xff]  }
 0x438   :  { %6778 = vmatprep.subr.bf16.mxu0 %v8629_v19  ;;  %8913 = vmatpush3.bf16.msra.mxu1 %v9641_v5  ;;  %v6452_v1 = vpop.f32.mrf.mxu0  ;;  %v9613_v19 = vld [vmem:[%s10569_s5 + $0xb0] sm:$0xff]   ;;  %v9614_v5 = vld [vmem:[%s10569_s5 + $0xe8] sm:$0xff]  }
 0x439   :  { %v6453_v42 = vadd.f32 %v6452_v1, %v6410_v54  ;;  %v6494_v40 = vadd.f32 %v10421_v4, %v6451_v60  ;;  %v9625_v1 = vld [vmem:[%s10569_s5 + $0x80] sm:$0xff]   ;;  %v9644_v4 = vld [vmem:[%s10569_s5 + $0x1f0] sm:$0xff]  }
 0x43a   :  { %v10426_v28 = vpop.f32.mrf.mxu0  ;;  %v9656_v60 = vld [vmem:[%s10569_s5 + $0x1c0] sm:$0xff]  }
 0x43b   :  { %6779 = vmatpush2.bf16.msra.mxu0 %v8628_v20  ;;  %v6496_v46 = vadd.f32 %v6495_v7, %v6453_v42  ;;  %v9618_v20 = vld [vmem:[%s10569_s5 + $0xd8] sm:$0xff]   ;;  %v9649_v7 = vld [vmem:[%s10569_s5 + $0x1a0] sm:$0xff]  }
 0x43c   :  { %6780 = vmatprep.subr.bf16.mxu0 %v8621_v12  ;;  %v6456_v32 = vpop.f32.mrf.mxu0  ;;  %v9619_v12 = vld [vmem:[%s10569_s5 + $0x98] sm:$0xff]  }
 0x43d   :  { %v6457_v56 = vadd.f32 %v6456_v32, %v6414_v37  ;;  %v6849_v0 = vmax.f32 %v6496_v46, 0.0 }
 0x43f   :  { %6781 = vmatpush2.bf16.msra.mxu0 %v8620_v35  ;;  %v6500_v45 = vadd.f32 %v6499_v47, %v6457_v56  ;;  %v9621_v35 = vld [vmem:[%s10569_s5 + $0x90] sm:$0xff]   ;;  %v9650_v47 = vld [vmem:[%s10569_s5 + $0x1d8] sm:$0xff]  }
 0x440   :  { %6782 = vmatprep.subr.bf16.mxu0 %v8613_v23  ;;  %v6455_v23 = vadd.f32 %v10426_v28, %v6412_v31  ;;  %v9646_v28 = vld [vmem:[%s10569_s5 + $0x1e8] sm:$0xff]  }
 0x441   :  { %v6857_v29 = vmax.f32 %v6500_v45, 0.0  ;;  %v9655_v31 = vld [vmem:[%s10569_s5 + $0x188] sm:$0xff]  }
 0x442   :  { %v6498_v24 = vadd.f32 %v6497_v26, %v6455_v23  ;;  %v3901_v26 = vrot.slane %v10290_v11, %v662_v57  ;;  %v9651_v57 = vld [vmem:[%s10569_s5 + $0x198] sm:$0xff]  }
 0x443   :  { %6783 = vmatpush2.bf16.msra.mxu0 %v8612_v55  ;;  %v6865_v17 = vpack.c.bf16 %v6857_v29, %v6849_v0 }
 0x444   :  { %6784 = vmatprep.subr.bf16.mxu0 %v8605_v25  ;;  %v6856_v55 = vmax.f32 %v6498_v24, 0.0  ;;  %v6848_v25 = vmax.f32 %v6494_v40, 0.0  ;;  %v9657_v24 = vld [vmem:[%s10569_s5 + $0x180] sm:$0xff]  }
 0x446   :  { %v6864_v58 = vpack.c.bf16 %v6856_v55, %v6848_v25 }
 0x447   :  { %6785 = vmatpush2.bf16.msra.mxu0 %v8604_v30  ;;  %v9648_v30 = vld [vmem:[%s10569_s5 + $0x1e0] sm:$0xff]  }
 0x448   :  { %6786 = vmatprep.subr.bf16.mxu0 %v8597_v50  ;;  %v6536_v50 = vpop.f32.mrf.mxu1 }
 0x44a   :  { %v6538_v49 = vpop.f32.mrf.mxu1 }
 0x44b   :  { %6787 = vmatpush2.bf16.msra.mxu0 %v8596_v51  ;;  %v6539_v8 = vadd.f32 %v6538_v49, %v3901_v26 }
 0x44c   :  { %6788 = vmatprep.subr.bf16.mxu0 %v8589_v53  ;;  %v6540_v33 = vpop.f32.mrf.mxu1  ;;  %v3897_v53 = vrot.slane %v10290_v11, %v658_v59 }
 0x44e   :  { %v6542_v32 = vpop.f32.mrf.mxu1  ;;  %v6541_v41 = vadd.f32 %v6540_v33, %v3897_v53  ;;  %v6537_v42 = vadd.f32 %v6536_v50, %v3897_v53 }
 0x44f   :  { %6789 = vmatpush2.bf16.msra.mxu0 %v8588_v14 }
 0x450   :  { %6790 = vmatprep.subr.bf16.mxu0 %v8581_v36  ;;  %v6543_v36 = vadd.f32 %v6542_v32, %v3901_v26 }
 0x453   :  { %6791 = vmatpush2.bf16.msra.mxu0 %v8580_v63 }
 0x454   :  { %8876 = vmatprep.subr.bf16.mxu0 %v9610_v62 }
 0x456   :  { %6793 = vmatmul.mubr.bf16.vlgmr.msra.gmra.mxu0 %v10240_v44  ;;  %v9616_v44 = vld [vmem:[%s10569_s5 + $0xe0] sm:$0xff]  }
 0x457   :  { %8877 = vmatpush3.bf16.msra.mxu0 %v9611_v2  ;;  %7462 = vmatprep.mubr.bf16.mxu0 %v6865_v17  ;;  %v9652_v2 = vld [vmem:[%s10569_s5 + $0x1d0] sm:$0xff]  }
 0x458   :  { %8878 = vmatprep.subr.bf16.mxu0 %v9612_v21 }
 0x45b   :  { %8879 = vmatpush3.bf16.msra.mxu0 %v9613_v19  ;;  %v6622_v51 = vpop.f32.mrf.mxu1  ;;  %v9653_v19 = vld [vmem:[%s10569_s5 + $0x190] sm:$0xff]  }
 0x45c   :  { %8880 = vmatprep.subr.bf16.mxu0 %v9614_v5 }
 0x45d   :  { %v6624_v56 = vpop.f32.mrf.mxu1 }
 0x45f   :  { %8881 = vmatpush3.bf16.msra.mxu0 %v9615_v48  ;;  %v6626_v63 = vpop.f32.mrf.mxu1 }
 0x460   :  { %8882 = vmatprep.subr.bf16.mxu0 %v9616_v44 }
 0x461   :  { %v6628_v5 = vpop.f32.mrf.mxu1 }
 0x463   :  { %8883 = vmatpush3.bf16.msra.mxu0 %v9617_v6 }
 0x464   :  { %8884 = vmatprep.subr.bf16.mxu0 %v9618_v20 }
 0x467   :  { %8885 = vmatpush3.bf16.msra.mxu0 %v9619_v12 }
 0x468   :  { %8886 = vmatprep.subr.bf16.mxu0 %v9620_v34 }
 0x46b   :  { %8887 = vmatpush3.bf16.msra.mxu0 %v9621_v35 }
 0x46c   :  { %8888 = vmatprep.subr.bf16.mxu0 %v9622_v22 }
 0x46f   :  { %8889 = vmatpush3.bf16.msra.mxu0 %v9623_v18 }
 0x470   :  { %8890 = vmatprep.subr.bf16.mxu0 %v9624_v38 }
 0x473   :  { %8891 = vmatpush3.bf16.msra.mxu0 %v9625_v1 }
 0x474   :  { %8920 = vmatprep.subr.bf16.mxu0 %v9642_v15  ;;  %v3908_v15 = vsub.s32 7, %v10082_v9 }
 0x476   :  { %7463 = vmatmul.mubr.bf16.vlgmr.msra.gmra.mxu0 %v6864_v58  ;;  %v6579_v10 = vpop.f32.mrf.mxu0  ;;  %v3909_v58 = vrot.slane %v10290_v11, %v3908_v15 }
 0x477   :  { %8921 = vmatpush3.bf16.msra.mxu0 %v9643_v27  ;;  %v6580_v62 = vadd.f32 %v6579_v10, %v6537_v42 }
 0x478   :  { %8922 = vmatprep.subr.bf16.mxu0 %v9644_v4  ;;  %v6581_v37 = vpop.f32.mrf.mxu0 }
 0x479   :  { %v6582_v45 = vadd.f32 %v6581_v37, %v6539_v8  ;;  %v6623_v48 = vadd.f32 %v6622_v51, %v6580_v62 }
 0x47a   :  { %v6583_v54 = vpop.f32.mrf.mxu0 }
 0x47b   :  { %8923 = vmatpush3.bf16.msra.mxu0 %v9645_v39  ;;  %v6584_v46 = vadd.f32 %v6583_v54, %v6541_v41  ;;  %v6625_v21 = vadd.f32 %v6624_v56, %v6582_v45  ;;  %v3905_v39 = vrot.slane %v10290_v11, %v666_v61 }
 0x47c   :  { %8924 = vmatprep.subr.bf16.mxu0 %v9646_v28  ;;  %v6585_v14 = vpop.f32.mrf.mxu0 }
 0x47d   :  { %v6586_v29 = vadd.f32 %v6585_v14, %v6543_v36  ;;  %v6627_v17 = vadd.f32 %v6626_v63, %v6584_v46 }
 0x47f   :  { %8925 = vmatpush3.bf16.msra.mxu0 %v9647_v43  ;;  %v6629_v20 = vadd.f32 %v6628_v5, %v6586_v29 }
 0x480   :  { %8926 = vmatprep.subr.bf16.mxu0 %v9648_v30 }
 0x483   :  { %8927 = vmatpush3.bf16.msra.mxu0 %v9649_v7 }
 0x484   :  { %8928 = vmatprep.subr.bf16.mxu0 %v9650_v47 }
 0x487   :  { %8929 = vmatpush3.bf16.msra.mxu0 %v9651_v57 }
 0x488   :  { %8930 = vmatprep.subr.bf16.mxu0 %v9652_v2  ;;  %v7557_v2 = vld [vmem:[#allocation10 + $0x10] sm:$0xf] }
 0x489   :  { %8977 = vmatprep.subr.msk.mxu1 %vm7572_vm1, %v7557_v2 }
 0x48b   :  { %8931 = vmatpush3.bf16.msra.mxu0 %v9653_v19 }
 0x48c   :  { %8932 = vmatprep.subr.bf16.mxu0 %v9654_v16 }
 0x48f   :  { %8933 = vmatpush3.bf16.msra.mxu0 %v9655_v31 }
 0x490   :  { %8934 = vmatprep.subr.bf16.mxu0 %v9656_v60 }
 0x493   :  { %8935 = vmatpush3.bf16.msra.mxu0 %v9657_v24 }
 0x496   :  { %v6665_v59 = vpop.f32.mrf.mxu0 }
 0x497   :  { %v6666_v13 = vadd.f32 %v6665_v59, %v6623_v48 }
 0x498   :  { %v6667_v0 = vpop.f32.mrf.mxu0 }
 0x499   :  { %v6668_v6 = vadd.f32 %v6667_v0, %v6625_v21  ;;  %v6850_v22 = vmax.f32 %v6666_v13, 0.0  ;;  %v7556_v21 = vld [vmem:[#allocation10 + $0x8] sm:$0xff] }
 0x49a   :  { %v6669_v44 = vpop.f32.mrf.mxu0 }
 0x49b   :  { %v6670_v52 = vadd.f32 %v6669_v44, %v6627_v17  ;;  %v6851_v3 = vmax.f32 %v6668_v6, 0.0  ;;  %v6751_v40 = vpop.f32.mrf.mxu1  ;;  %v7555_v17 = vld [vmem:[#allocation10] sm:$0xff] }
 0x49c   :  { %v6671_v12 = vpop.f32.mrf.mxu0 }
 0x49d   :  { %v6672_v34 = vadd.f32 %v6671_v12, %v6629_v20  ;;  %v6858_v35 = vmax.f32 %v6670_v52, 0.0  ;;  %v6753_v1 = vpop.f32.mrf.mxu1 }
 0x49f   :  { %v6859_v23 = vmax.f32 %v6672_v34, 0.0  ;;  %v6866_v38 = vpack.c.bf16 %v6858_v35, %v6850_v22  ;;  %v6755_v25 = vpop.f32.mrf.mxu1  ;;  %v8702_v34 = vld [vmem:[#allocation9] ss:$0 sm:$0xff] }
 0x4a1   :  { %v6867_v18 = vpack.c.bf16 %v6859_v23, %v6851_v3  ;;  %v6757_v4 = vpop.f32.mrf.mxu1 }
 0x4a3   :  { %7503 = vmatprep.mubr.bf16.mxu1 %v6867_v18 }
 0x4a4   :  { %7504 = vmatmul.mubr.bf16.vlgmr.msra.gmra.mxu1 %v6866_v38 }
 0x4a5   :  { %8978 = vmatpush3.msk.msra.mxu1 %vm7572_vm1, %v7557_v2 }
 0x4a6   :  { %8979 = vmatprep.subr.mxu1 %v7556_v21 }
 0x4a7   :  { %8980 = vmatpush3.msra.mxu1 %v7556_v21 }
 0x4a8   :  { %8981 = vmatprep.subr.mxu1 %v7555_v17 }
 0x4a9   :  { %8982 = vmatpush3.msra.mxu1 %v7555_v17 }
 0x4bb   :  { %v6837_v43 = vpop.f32.mrf.mxu1 }
 0x4bd   :  { %v6839_v33 = vpop.f32.mrf.mxu1 }
 0x4bf   :  { %v6841_v56 = vpop.f32.mrf.mxu1 }
 0x4c1   :  { %v6843_v36 = vpop.f32.mrf.mxu1 }
 0x4d6   :  { %v6708_v55 = vpop.f32.mrf.mxu0 }
 0x4d7   :  { %v6709_v7 = vadd.f32 %v6708_v55, %v3905_v39 }
 0x4d8   :  { %v6710_v27 = vpop.f32.mrf.mxu0 }
 0x4d9   :  { %v6711_v30 = vadd.f32 %v6710_v27, %v3909_v58  ;;  %v6752_v51 = vadd.f32 %v6751_v40, %v6709_v7 }
 0x4da   :  { %v6712_v28 = vpop.f32.mrf.mxu0 }
 0x4db   :  { %v6713_v49 = vadd.f32 %v6712_v28, %v3905_v39  ;;  %v6754_v37 = vadd.f32 %v6753_v1, %v6711_v30  ;;  %v8870_v19 = vpop.f32.mrf.mxu1 }
 0x4dc   :  { %v6714_v50 = vpop.f32.mrf.mxu0 }
 0x4dd   :  { %v6715_v32 = vadd.f32 %v6714_v50, %v3909_v58  ;;  %v6756_v54 = vadd.f32 %v6755_v25, %v6713_v49  ;;  %v8871_v5 = vpop.f32.mrf.mxu1 }
 0x4de   :  { %v8872_v16 = vadd.f32 %v8871_v5, %v8870_v19 }
 0x4df   :  { %v6758_v42 = vadd.f32 %v6757_v4, %v6715_v32  ;;  %v8873_v48 = vpop.f32.mrf.mxu1  ;;  %v7653_v32 = vld [vmem:[#allocation13] sm:$0xff] }
 0x4e0   :  { %v7424_v23 = vadd.f32 %v8872_v16, %v8702_v34 }
 0x4e1   :  { %v8874_v44 = vpop.f32.mrf.mxu1 }
 0x4e2   :  { %v8875_v22 = vadd.f32 %v8874_v44, %v8873_v48 }
 0x4e4   :  { %v7427_v55 = vadd.f32 %v8875_v22, %v8702_v34 }
 0x516   :  { %v6794_v10 = vpop.f32.mrf.mxu0 }
 0x517   :  { %v6795_v8 = vadd.f32 %v6794_v10, %v6752_v51  ;;  %v7654_v10 = vld [vmem:[#allocation13 + $0x8] sm:$0xff] }
 0x518   :  { %v6796_v26 = vpop.f32.mrf.mxu0 }
 0x519   :  { %v6797_v53 = vadd.f32 %v6796_v26, %v6754_v37  ;;  %v6838_v45 = vadd.f32 %v6837_v43, %v6795_v8  ;;  %v8767_v37 = vld [vmem:[#allocation12] ss:$0 sm:$0xff] }
 0x51a   :  { %v6798_v41 = vpop.f32.mrf.mxu0 }
 0x51b   :  { %v6799_v9 = vadd.f32 %v6798_v41, %v6756_v54  ;;  %v6840_v11 = vadd.f32 %v6839_v33, %v6797_v53  ;;  %v6852_v59 = vmax.f32 %v6838_v45, 0.0  ;;  %v7655_v33 = vld [vmem:[#allocation13 + $0x10] sm:$0xf]  ;;  %v7751_v41 = vld [vmem:[#allocation16 + $0x10] sm:$0xf] }
 0x51c   :  { %v6800_v61 = vpop.f32.mrf.mxu0  ;;  %8986 = vmatprep.subr.msk.mxu1 %vm7572_vm1, %v7655_v33 }
 0x51d   :  { %v6842_v14 = vadd.f32 %v6841_v56, %v6799_v9  ;;  %v6801_v47 = vadd.f32 %v6800_v61, %v6758_v42  ;;  %v6853_v63 = vmax.f32 %v6840_v11, 0.0  ;;  %v7750_v9 = vld [vmem:[#allocation16 + $0x8] sm:$0xff]  ;;  %v7749_v42 = vld [vmem:[#allocation16] sm:$0xff]  ;;  %v8771_v61 = vld [vmem:[#allocation15] ss:$0 sm:$0xff] }
 0x51f   :  { %v6844_v46 = vadd.f32 %v6843_v36, %v6801_v47  ;;  %v6860_v57 = vmax.f32 %v6842_v14, 0.0 }
 0x521   :  { %v6861_v62 = vmax.f32 %v6844_v46, 0.0  ;;  %v6868_v0 = vpack.c.bf16 %v6860_v57, %v6852_v59  ;;  %v8775_v57 = vld [vmem:[#allocation18] ss:$0 sm:$0xff] }
 0x523   :  { %v6869_v29 = vpack.c.bf16 %v6861_v62, %v6853_v63 }
 0x525   :  { %7544 = vmatprep.mubr.bf16.mxu0 %v6869_v29 }
 0x526   :  { %7545 = vmatmul.mubr.bf16.vlgmr.msra.gmra.mxu0 %v6868_v0 }
 0x536   :  { %v8892_v6 = vpop.f32.mrf.mxu0 }
 0x538   :  { %v8893_v20 = vpop.f32.mrf.mxu0 }
 0x539   :  { %v8894_v35 = vadd.f32 %v8893_v20, %v8892_v6 }
 0x53a   :  { %v8895_v12 = vpop.f32.mrf.mxu0 }
 0x53b   :  { %v7465_v38 = vadd.f32 %v8894_v35, %v7424_v23 }
 0x53c   :  { %v8896_v3 = vpop.f32.mrf.mxu0 }
 0x53d   :  { %v8897_v40 = vadd.f32 %v8896_v3, %v8895_v12 }
 0x53f   :  { %v7468_v4 = vadd.f32 %v8897_v40, %v7427_v55 }
 0x564   :  { %v8914_v52 = vpop.f32.mrf.mxu1 }
 0x566   :  { %v8915_v13 = vpop.f32.mrf.mxu1 }
 0x567   :  { %v8916_v60 = vadd.f32 %v8915_v13, %v8914_v52 }
 0x568   :  { %v8917_v31 = vpop.f32.mrf.mxu1 }
 0x569   :  { %v7506_v15 = vadd.f32 %v8916_v60, %v7465_v38 }
 0x56a   :  { %v8918_v18 = vpop.f32.mrf.mxu1 }
 0x56b   :  { %v8919_v25 = vadd.f32 %v8918_v18, %v8917_v31 }
 0x56d   :  { %v7509_v43 = vadd.f32 %v8919_v25, %v7468_v4 }
 0x5e6   :  { %v8936_v24 = vpop.f32.mrf.mxu0 }
 0x5e8   :  { %v8937_v1 = vpop.f32.mrf.mxu0 }
 0x5e9   :  { %v8938_v27 = vadd.f32 %v8937_v1, %v8936_v24 }
 0x5ea   :  { %v8939_v58 = vpop.f32.mrf.mxu0 }
 0x5eb   :  { %v7547_v39 = vadd.f32 %v8938_v27, %v7506_v15 }
 0x5ec   :  { %v8940_v28 = vpop.f32.mrf.mxu0 }
 0x5ed   :  { %v7553_v30 = vmax.f32 %v7547_v39, 0.0  ;;  %v8941_v7 = vadd.f32 %v8940_v28, %v8939_v58 }
 0x5ef   :  { %v7550_v50 = vadd.f32 %v8941_v7, %v7509_v43  ;;  %8983 = vmatprep.mubr.msk.f32.mxu1 %vm7565_vm2, %v7553_v30 }
 0x5f1   :  { %v7554_v49 = vmax.f32 %v7550_v50, 0.0 }
 0x5f3   :  { %8984 = vmatmul.mubr.msk.f32.vlgmr.msra.gmra.mxu1 %vm7565_vm2, %v7554_v49 }
 0x5f4   :  { %8987 = vmatpush3.msk.msra.mxu1 %vm7572_vm1, %v7655_v33 }
 0x5f5   :  { %8988 = vmatprep.subr.mxu1 %v7654_v10 }
 0x5f6   :  { %8989 = vmatpush3.msra.mxu1 %v7654_v10 }
 0x5f7   :  { %8990 = vmatprep.subr.mxu1 %v7653_v32 }
 0x5f8   :  { %8991 = vmatpush3.msra.mxu1 %v7653_v32 }
 0x5f9   :  { %8995 = vmatprep.subr.msk.mxu1 %vm7572_vm1, %v7751_v41 }
 0x6b3   :  { %v8985_v51 = vpop.f32.mrf.mxu1 }
 0x6b4   :  { %v7648_v26 = vadd.f32 %v8985_v51, %v8767_v37 }
 0x6b5   :  { %v7642_v53 = vpop.f32.mrf.mxu1 }
 0x6b6   :  { %v7643_v54 = vadd.f32 %v8767_v37, %v7642_v53  ;;  %v7652_v8 = vmax.f32 %v7648_v26, 0.0 }
 0x6b8   :  { %v7651_v56 = vmax.f32 %v7643_v54, 0.0 }
 0x6ba   :  { %8992 = vmatprep.mubr.msk.f32.mxu1 %vm7565_vm2, %v7651_v56 }
 0x6bb   :  { %8993 = vmatmul.mubr.msk.f32.vlgmr.msra.gmra.mxu1 %vm7565_vm2, %v7652_v8 }
 0x6bc   :  { %8996 = vmatpush3.msk.msra.mxu1 %vm7572_vm1, %v7751_v41 }
 0x6bd   :  { %8997 = vmatprep.subr.mxu1 %v7750_v9 }
 0x6be   :  { %8998 = vmatpush3.msra.mxu1 %v7750_v9 }
 0x6bf   :  { %8999 = vmatprep.subr.mxu1 %v7749_v42 }
 0x6c0   :  { %9000 = vmatpush3.msra.mxu1 %v7749_v42 }
 0x77b   :  { %v8994_v11 = vpop.f32.mrf.mxu1 }
 0x77c   :  { %v7744_v14 = vadd.f32 %v8994_v11, %v8771_v61 }
 0x77d   :  { %v7738_v47 = vpop.f32.mrf.mxu1 }
 0x77e   :  { %v7739_v36 = vadd.f32 %v8771_v61, %v7738_v47  ;;  %v7748_v46 = vmax.f32 %v7744_v14, 0.0 }
 0x780   :  { %v7747_v45 = vmax.f32 %v7739_v36, 0.0 }
 0x782   :  { %9001 = vmatprep.mubr.msk.f32.mxu1 %vm7565_vm2, %v7747_v45 }
 0x783   :  { %9002 = vmatmul.mubr.msk.f32.vlgmr.msra.gmra.mxu1 %vm7565_vm2, %v7748_v46 }
 0x843   :  { %v9003_v63 = vpop.f32.mrf.mxu1 }
 0x844   :  { %v7840_v62 = vadd.f32 %v9003_v63, %v8775_v57 }
 0x845   :  { %v7834_v59 = vpop.f32.mrf.mxu1 }
 0x846   :  { %7844 = vst [vmem:[%s10577_s13 + $0x8] sm:$0xff] %v7840_v62  ;;  %v7835_v29 = vadd.f32 %v8775_v57, %v7834_v59 }
 0x848   :  { %7843 = vst [vmem:[%s10577_s13] sm:$0xff] %v7835_v29 }
 0x849   :  { %7849 = vsyncpa [#allocation3], 1 }
 0x84a   :  { %7850 = vsyncpa [#allocation5], 1 }
 0x84b   :  { %7851 = vsyncpa [#allocation8], 1 }
 0x84c   :  { %7852 = vsyncpa [#allocation11], 1 }
 0x84d   :  { %7853 = vsyncpa [#allocation14], 1 }
 0x84e   :  { %7854 = vsyncpa [#allocation17], 1 }

// kernel: _forward_impl.1
= control target key start
LH: loop header
LB: loop body
LE: loop exit
PB: predicated region body
PF: predicated region fallthrough
CT: control target
= control target key end

     0   :  { %18 = vsyncpa [#allocation3], 0  ;;  %s10564_s0 = inlined_call_operand.vmem [shape: bf16[16,896], index: 0, kind: input, shape index: {}]   ;;  %s10565_s1 = inlined_call_operand.hbm [shape: bf16[896,896], index: 1, kind: input, shape index: {}]   ;;  %s10566_s2 = inlined_call_operand.hbm [shape: f32[1,896], index: 2, kind: input, shape index: {}]   ;;  %s10567_s3 = inlined_call_operand.hbm [shape: bf16[896,1024], index: 3, kind: input, shape index: {}]   ;;  %s10568_s4 = inlined_call_operand.hbm [shape: f32[1,1024], index: 4, kind: input, shape index: {}]   ;;  %s10569_s5 = inlined_call_operand.vmem [shape: bf16[1024,20], index: 5, kind: input, shape index: {}]   ;;  %s10570_s6 = inlined_call_operand.hbm [shape: f32[1,20], index: 6, kind: input, shape index: {}]   ;;  %s10571_s7 = inlined_call_operand.hbm [shape: f32[20,20], index: 7, kind: input, shape index: {}]   ;;  %s10572_s8 = inlined_call_operand.hbm [shape: f32[1,20], index: 8, kind: input, shape index: {}]   ;;  %s10573_s9 = inlined_call_operand.hbm [shape: f32[20,20], index: 9, kind: input, shape index: {}]   ;;  %s10574_s10 = inlined_call_operand.hbm [shape: f32[1,20], index: 10, kind: input, shape index: {}]   ;;  %s10575_s11 = inlined_call_operand.hbm [shape: f32[20,128], index: 11, kind: input, shape index: {}]   ;;  %s10576_s12 = inlined_call_operand.hbm [shape: f32[1,128], index: 12, kind: input, shape index: {}]   ;;  %s10577_s13 = inlined_call_operand.vmem [shape: f32[16,128], index: 13, kind: output, shape index: {}]  }
   0x1   :  { %19 = vsyncpa [#allocation5], 0 }
   0x2   :  { %20 = vsyncpa [#allocation8], 0 }
   0x3   :  { %21 = vsyncpa [#allocation11], 0 }
   0x4   :  { %22 = vsyncpa [#allocation14], 0 }
   0x5   :  { %23 = vsyncpa [#allocation17], 0  ;;  %s9899_s25 = smov [#allocation4]   ;;  %s9900_s27 = smov [#allocation7]  }
   0x6   :  { %s44_s26 = sshll.u32 %s9899_s25, 4  ;;  %s66_s28 = sshll.u32 %s9900_s27, 4  ;;  %s45_s26 = int_to_ptr.vmem [resolvable:$true] %s44_s26  ;;  %s67_s28 = int_to_ptr.vmem [resolvable:$true] %s66_s28 }
   0x7   :  { %s9675_s29 = scalar_lea.vmem %s45_s26, 112  ;;  %s9679_s30 = scalar_lea.vmem %s45_s26, 128 }
   0x8   :  { %p9676_p0 = scmp.ne.s32.totalorder %s45_s26, %s9675_s29  ;;  %p9680_p1 = scmp.lt.s32.totalorder %s45_s26, %s45_s26 }
   0x9   :  { %p9681_p2 = scmp.lt.s32.totalorder %s9679_s30, %s9675_s29 }
   0xb   :  { %p9682_p3 = por %p9681_p2, %p9680_p1 }
   0xd   :  { %p9683_p4 = pnand %p9682_p3, %p9676_p0 }
   0xf   :  { %9686 = shalt.err (!%p9683_p4)
}
  0x10   :  { %47 = dma.hbm_to_vmem [thread:$0]  %s10566_s2, 112, %s45_s26, [#allocation5]  }
  0x11   :  { %s9695_s16 = scalar_lea.vmem %s67_s28, 128  ;;  %p9700_p6 = scmp.lt.s32.totalorder %s67_s28, %s67_s28 }
  0x12   :  { %p9696_p5 = scmp.ne.s32.totalorder %s67_s28, %s9695_s16  ;;  %p9701_p7 = scmp.lt.s32.totalorder %s9695_s16, %s9695_s16 }
  0x14   :  { %p9702_p8 = por %p9701_p7, %p9700_p6 }
  0x16   :  { %p9703_p9 = pnand %p9702_p8, %p9696_p5 }
  0x18   :  { %9706 = shalt.err (!%p9703_p9)
}
  0x19   :  { %69 = dma.hbm_to_vmem [thread:$0]  %s10568_s4, 128, %s67_s28, [#allocation8]  }
  0x1a   :  { %s9901_s19 = smov [#allocation10]  }
  0x1b   :  { %s87_s20 = sshll.u32 %s9901_s19, 4  ;;  %s88_s20 = int_to_ptr.vmem [resolvable:$true] %s87_s20 }
  0x1c   :  { %s9715_s21 = scalar_lea.vmem %s88_s20, 384  ;;  %p9720_p11 = scmp.lt.s32.totalorder %s88_s20, %s88_s20 }
  0x1d   :  { %p9716_p10 = scmp.ne.s32.totalorder %s88_s20, %s9715_s21  ;;  %p9721_p12 = scmp.lt.s32.totalorder %s9715_s21, %s9715_s21 }
  0x1f   :  { %p9722_p13 = por %p9721_p12, %p9720_p11 }
  0x21   :  { %p9723_p0 = pnand %p9722_p13, %p9716_p10 }
  0x23   :  { %9726 = shalt.err (!%p9723_p0)
}
  0x24   :  { %s9902_s2 = smov 128   ;;  %s9903_s22 = smov 8  }
  0x25   :  { %93 = dma.hbm_to_vmem [thread:$0]  %s10571_s7, 384, %s88_s20, [#allocation11], %s9902_s2, %s9902_s2, %s9903_s22  }
  0x26   :  { %s9904_s25 = smov [#allocation13]   ;;  %s9905_s4 = smov [#allocation16]  }
  0x27   :  { %s109_s26 = sshll.u32 %s9904_s25, 4  ;;  %s131_s27 = sshll.u32 %s9905_s4, 4  ;;  %s110_s26 = int_to_ptr.vmem [resolvable:$true] %s109_s26  ;;  %s132_s27 = int_to_ptr.vmem [resolvable:$true] %s131_s27 }
  0x28   :  { %s9735_s28 = scalar_lea.vmem %s110_s26, 384  ;;  %p9740_p2 = scmp.lt.s32.totalorder %s110_s26, %s110_s26 }
  0x29   :  { %p9736_p1 = scmp.ne.s32.totalorder %s110_s26, %s9735_s28  ;;  %p9741_p3 = scmp.lt.s32.totalorder %s9735_s28, %s9735_s28 }
  0x2b   :  { %p9742_p4 = por %p9741_p3, %p9740_p2 }
  0x2d   :  { %p9743_p5 = pnand %p9742_p4, %p9736_p1 }
  0x2f   :  { %9746 = shalt.err (!%p9743_p5)
}
  0x30   :  { %115 = dma.hbm_to_vmem [thread:$0]  %s10573_s9, 384, %s110_s26, [#allocation14], %s9902_s2, %s9902_s2, %s9903_s22  }
  0x31   :  { %s9755_s14 = scalar_lea.vmem %s132_s27, 384  ;;  %p9760_p7 = scmp.lt.s32.totalorder %s132_s27, %s132_s27 }
  0x32   :  { %p9756_p6 = scmp.ne.s32.totalorder %s132_s27, %s9755_s14  ;;  %p9761_p8 = scmp.lt.s32.totalorder %s9755_s14, %s9755_s14 }
  0x34   :  { %p9762_p9 = por %p9761_p8, %p9760_p7 }
  0x36   :  { %p9763_p10 = pnand %p9762_p9, %p9756_p6 }
  0x38   :  { %9766 = shalt.err (!%p9763_p10)
}
  0x39   :  { %137 = dma.hbm_to_vmem [thread:$0]  %s10575_s11, 384, %s132_s27, [#allocation17], %s9902_s2, %s9902_s2, %s9903_s22  }
  0x3a   :  { %s9906_s16 = smov [#allocation2]  }
  0x3b   :  { %s31_s17 = sshll.u32 %s9906_s16, 4  ;;  %s32_s17 = int_to_ptr.vmem [resolvable:$true] %s31_s17 }
  0x3c   :  { %s9775_s18 = scalar_lea.vmem %s32_s17, 50176  ;;  %p9780_p12 = scmp.lt.s32.totalorder %s32_s17, %s32_s17 }
  0x3d   :  { %p9776_p11 = scmp.ne.s32.totalorder %s32_s17, %s9775_s18  ;;  %p9781_p13 = scmp.lt.s32.totalorder %s9775_s18, %s9775_s18 }
  0x3f   :  { %p9782_p0 = por %p9781_p13, %p9780_p12 }
  0x41   :  { %p9783_p1 = pnand %p9782_p0, %p9776_p11 }
  0x43   :  { %9786 = shalt.err (!%p9783_p1)
}
  0x44   :  { %s9907_s9 = smov 448   ;;  %s9908_s19 = smov 28  }
  0x45   :  { %37 = dma.hbm_to_vmem [thread:$0]  %s10565_s1, 50176, %s32_s17, [#allocation3], %s9907_s9, %s9907_s9, %s9908_s19  }
  0x46   :  { %s9909_s23 = smov [#allocation6]  }
  0x47   :  { %s53_s24 = sshll.u32 %s9909_s23, 4  ;;  %s54_s24 = int_to_ptr.vmem [resolvable:$true] %s53_s24 }
  0x48   :  { %s9795_s11 = scalar_lea.vmem %s54_s24, 57344  ;;  %p9800_p3 = scmp.lt.s32.totalorder %s54_s24, %s54_s24 }
  0x49   :  { %p9796_p2 = scmp.ne.s32.totalorder %s54_s24, %s9795_s11  ;;  %p9801_p4 = scmp.lt.s32.totalorder %s9795_s11, %s9795_s11 }
  0x4b   :  { %p9802_p5 = por %p9801_p4, %p9800_p3 }
  0x4d   :  { %p9803_p6 = pnand %p9802_p5, %p9796_p2 }
  0x4f   :  { %9806 = shalt.err (!%p9803_p6)
}
  0x50   :  { %s9910_s2 = smov 512   ;;  %s9911_s22 = smov 32  }
  0x51   :  { %59 = dma.hbm_to_vmem [thread:$0]  %s10567_s3, 57344, %s54_s24, [#allocation5], %s9910_s2, %s9910_s2, %s9911_s22  }
  0x52   :  { %s9912_s4 = smov [#allocation9]   ;;  %s9913_s1 = smov [#allocation12]  }
  0x53   :  { %s78_s27 = sshll.u32 %s9912_s4, 4  ;;  %s100_s28 = sshll.u32 %s9913_s1, 4  ;;  %s79_s27 = int_to_ptr.vmem [resolvable:$true] %s78_s27  ;;  %s101_s28 = int_to_ptr.vmem [resolvable:$true] %s100_s28 }
  0x54   :  { %s9815_s29 = scalar_lea.vmem %s79_s27, 16  ;;  %s9819_s30 = scalar_lea.vmem %s79_s27, 32 }
  0x55   :  { %p9816_p7 = scmp.ne.s32.totalorder %s79_s27, %s9815_s29  ;;  %p9820_p8 = scmp.lt.s32.totalorder %s79_s27, %s79_s27 }
  0x56   :  { %p9821_p9 = scmp.lt.s32.totalorder %s9819_s30, %s9815_s29 }
  0x58   :  { %p9822_p10 = por %p9821_p9, %p9820_p8 }
  0x5a   :  { %p9823_p11 = pnand %p9822_p10, %p9816_p7 }
  0x5c   :  { %9826 = shalt.err (!%p9823_p11)
}
  0x5d   :  { %81 = dma.hbm_to_vmem [thread:$0]  %s10570_s6, 16, %s79_s27, [#allocation8]  }
  0x5e   :  { %s9835_s15 = scalar_lea.vmem %s101_s28, 16  ;;  %s9839_s3 = scalar_lea.vmem %s101_s28, 32 }
  0x5f   :  { %p9836_p12 = scmp.ne.s32.totalorder %s101_s28, %s9835_s15  ;;  %p9840_p13 = scmp.lt.s32.totalorder %s101_s28, %s101_s28 }
  0x60   :  { %p9841_p0 = scmp.lt.s32.totalorder %s9839_s3, %s9835_s15 }
  0x62   :  { %p9842_p1 = por %p9841_p0, %p9840_p13 }
  0x64   :  { %p9843_p2 = pnand %p9842_p1, %p9836_p12 }
  0x66   :  { %9846 = shalt.err (!%p9843_p2)
}
  0x67   :  { %103 = dma.hbm_to_vmem [thread:$0]  %s10572_s8, 16, %s101_s28, [#allocation11]  }
  0x68   :  { %s9914_s18 = smov [#allocation15]   ;;  %s9915_s19 = smov [#allocation18]  }
  0x69   :  { %s122_s9 = sshll.u32 %s9914_s18, 4  ;;  %s144_s20 = sshll.u32 %s9915_s19, 4  ;;  %s123_s9 = int_to_ptr.vmem [resolvable:$true] %s122_s9  ;;  %s145_s20 = int_to_ptr.vmem [resolvable:$true] %s144_s20 }
  0x6a   :  { %s9855_s21 = scalar_lea.vmem %s123_s9, 16  ;;  %s9859_s6 = scalar_lea.vmem %s123_s9, 32 }
  0x6b   :  { %p9856_p3 = scmp.ne.s32.totalorder %s123_s9, %s9855_s21  ;;  %p9860_p4 = scmp.lt.s32.totalorder %s123_s9, %s123_s9 }
  0x6c   :  { %p9861_p5 = scmp.lt.s32.totalorder %s9859_s6, %s9855_s21 }
  0x6e   :  { %p9862_p6 = por %p9861_p5, %p9860_p4 }
  0x70   :  { %p9863_p7 = pnand %p9862_p6, %p9856_p3 }
  0x72   :  { %9866 = shalt.err (!%p9863_p7)
}
  0x73   :  { %125 = dma.hbm_to_vmem [thread:$0]  %s10574_s10, 16, %s123_s9, [#allocation14]  }
  0x74   :  { %s9875_s11 = scalar_lea.vmem %s145_s20, 16  ;;  %s9879_s8 = scalar_lea.vmem %s145_s20, 32 }
  0x75   :  { %p9876_p8 = scmp.ne.s32.totalorder %s145_s20, %s9875_s11  ;;  %p9880_p9 = scmp.lt.s32.totalorder %s145_s20, %s145_s20 }
  0x76   :  { %p9881_p10 = scmp.lt.s32.totalorder %s9879_s8, %s9875_s11 }
  0x78   :  { %p9882_p11 = por %p9881_p10, %p9880_p9 }
  0x7a   :  { %p9883_p12 = pnand %p9882_p11, %p9876_p8 }
  0x7c   :  { %9886 = shalt.err (!%p9883_p12)
}
  0x7d   :  { %147 = dma.hbm_to_vmem [thread:$0]  %s10576_s12, 16, %s145_s20, [#allocation17]  }
  0x7e   :  { %9887 = dma.done.wait [#allocation3], 50176  }
  0x7f   :  { %9888 = vsyncadd [#allocation3], 4294917120 }
  0x80   :  { %9889 = dma.done.wait [#allocation5], 57456  }
  0x81   :  { %9890 = vsyncadd [#allocation5], 4294909840 }
  0x82   :  { %9891 = dma.done.wait [#allocation8], 144  }
  0x83   :  { %9892 = vsyncadd [#allocation8], 4294967152 }
  0x84   :  { %9893 = dma.done.wait [#allocation11], 400  }
  0x85   :  { %9894 = vsyncadd [#allocation11], 4294966896 }
  0x86   :  { %9895 = dma.done.wait [#allocation14], 400  }
  0x87   :  { %9896 = vsyncadd [#allocation14], 4294966896 }
  0x88   :  { %9897 = dma.done.wait [#allocation17], 400  }
  0x89   :  { %9898 = vsyncadd [#allocation17], 4294966896  ;;  %v9024_v0 = vld [vmem:[#allocation2 + $0x18c] ss:$28 sps:$4 sm:$0xff]   ;;  %v9030_v4 = vld [vmem:[#allocation2 + $0x154] ss:$28 sps:$4 sm:$0xff]  }
  0x8a   :  { %v9026_v1 = vld [vmem:[#allocation2 + $0x50c] ss:$28 sps:$4 sm:$0xff]   ;;  %2727 = vmatprep.subr.bf16.mxu0 %v9024_v0  ;;  %v9032_v5 = vld [vmem:[#allocation2 + $0x4d4] ss:$28 sps:$4 sm:$0xff]   ;;  %v9036_v8 = vld [vmem:[#allocation2 + $0x11c] ss:$28 sps:$4 sm:$0xff]  }
  0x8b   :  { %v9028_v2 = vld [vmem:[#allocation2 + $0x188] ss:$28 sps:$4 sm:$0xff]   ;;  %2770 = vmatprep.subr.bf16.mxu1 %v9026_v1  ;;  %v9034_v6 = vld [vmem:[#allocation2 + $0x150] ss:$28 sps:$4 sm:$0xff]   ;;  %v9038_v9 = vld [vmem:[#allocation2 + $0x49c] ss:$28 sps:$4 sm:$0xff]  }
  0x8c   :  { %v9029_v3 = vld [vmem:[#allocation2 + $0x508] ss:$28 sps:$4 sm:$0xff]   ;;  %2728 = vmatpush1.bf16.msra.mxu0 %v9028_v2  ;;  %v9035_v7 = vld [vmem:[#allocation2 + $0x4d0] ss:$28 sps:$4 sm:$0xff]   ;;  %v9040_v10 = vld [vmem:[#allocation2 + $0x118] ss:$28 sps:$4 sm:$0xff]  }
  0x8d   :  { %2771 = vmatpush1.bf16.msra.mxu1 %v9029_v3  ;;  %2729 = vmatprep.subr.bf16.mxu0 %v9030_v4  ;;  %v9041_v11 = vld [vmem:[#allocation2 + $0x498] ss:$28 sps:$4 sm:$0xff]   ;;  %v9042_v12 = vld [vmem:[#allocation2 + $0xe4] ss:$28 sps:$4 sm:$0xff]   ;;  %v9048_v16 = vld [vmem:[#allocation2 + $0xac] ss:$28 sps:$4 sm:$0xff]  }
  0x8e   :  { %2772 = vmatprep.subr.bf16.mxu1 %v9032_v5  ;;  %v9044_v13 = vld [vmem:[#allocation2 + $0x464] ss:$28 sps:$4 sm:$0xff]   ;;  %v9050_v17 = vld [vmem:[#allocation2 + $0x42c] ss:$28 sps:$4 sm:$0xff]   ;;  %v9054_v20 = vld [vmem:[#allocation2 + $0x74] ss:$28 sps:$4 sm:$0xff]  }
  0x8f   :  { %v9046_v14 = vld [vmem:[#allocation2 + $0xe0] ss:$28 sps:$4 sm:$0xff]   ;;  %v9052_v18 = vld [vmem:[#allocation2 + $0xa8] ss:$28 sps:$4 sm:$0xff]   ;;  %v9056_v21 = vld [vmem:[#allocation2 + $0x3f4] ss:$28 sps:$4 sm:$0xff]  }
  0x90   :  { %2730 = vmatpush1.bf16.msra.mxu0 %v9034_v6  ;;  %v9047_v15 = vld [vmem:[#allocation2 + $0x460] ss:$28 sps:$4 sm:$0xff]   ;;  %v9053_v19 = vld [vmem:[#allocation2 + $0x428] ss:$28 sps:$4 sm:$0xff]   ;;  %v9058_v22 = vld [vmem:[#allocation2 + $0x70] ss:$28 sps:$4 sm:$0xff]  }
  0x91   :  { %2773 = vmatpush1.bf16.msra.mxu1 %v9035_v7  ;;  %2731 = vmatprep.subr.bf16.mxu0 %v9036_v8  ;;  %v9059_v23 = vld [vmem:[#allocation2 + $0x3f0] ss:$28 sps:$4 sm:$0xff]   ;;  %v9060_v24 = vld [vmem:[#allocation2 + $0x3c] ss:$28 sps:$4 sm:$0xff]   ;;  %v9066_v28 = vld [vmem:[#allocation2 + $0x4] ss:$28 sps:$4 sm:$0xff]  }
  0x92   :  { %2774 = vmatprep.subr.bf16.mxu1 %v9038_v9  ;;  %v9062_v25 = vld [vmem:[#allocation2 + $0x3bc] ss:$28 sps:$4 sm:$0xff]   ;;  %v9068_v29 = vld [vmem:[#allocation2 + $0x384] ss:$28 sps:$4 sm:$0xff]   ;;  %v9072_v32 = vld [vmem:[#allocation2 + $0x34c] ss:$28 sps:$4 sm:$0xff]  }
  0x93   :  { %v9064_v26 = vld [vmem:[#allocation2 + $0x38] ss:$28 sps:$4 sm:$0xff]   ;;  %v9070_v30 = vld [vmem:[#allocation2] ss:$28 sps:$4 sm:$0xff]   ;;  %v9074_v33 = vld [vmem:[#allocation2 + $0x6cc] ss:$28 sps:$4 sm:$0xff]  }
  0x94   :  { %2732 = vmatpush1.bf16.msra.mxu0 %v9040_v10  ;;  %v9065_v27 = vld [vmem:[#allocation2 + $0x3b8] ss:$28 sps:$4 sm:$0xff]   ;;  %v9071_v31 = vld [vmem:[#allocation2 + $0x380] ss:$28 sps:$4 sm:$0xff]   ;;  %v9076_v34 = vld [vmem:[#allocation2 + $0x348] ss:$28 sps:$4 sm:$0xff]  }
  0x95   :  { %2775 = vmatpush1.bf16.msra.mxu1 %v9041_v11  ;;  %2733 = vmatprep.subr.bf16.mxu0 %v9042_v12  ;;  %v9077_v35 = vld [vmem:[#allocation2 + $0x6c8] ss:$28 sps:$4 sm:$0xff]   ;;  %v9078_v36 = vld [vmem:[#allocation2 + $0x314] ss:$28 sps:$4 sm:$0xff]   ;;  %v9084_v40 = vld [vmem:[#allocation2 + $0x2dc] ss:$28 sps:$4 sm:$0xff]  }
  0x96   :  { %2776 = vmatprep.subr.bf16.mxu1 %v9044_v13  ;;  %v9080_v37 = vld [vmem:[#allocation2 + $0x694] ss:$28 sps:$4 sm:$0xff]   ;;  %v9086_v41 = vld [vmem:[#allocation2 + $0x65c] ss:$28 sps:$4 sm:$0xff]   ;;  %v9090_v44 = vld [vmem:[#allocation2 + $0x2a4] ss:$28 sps:$4 sm:$0xff]  }
  0x97   :  { %v9082_v38 = vld [vmem:[#allocation2 + $0x310] ss:$28 sps:$4 sm:$0xff]   ;;  %v9088_v42 = vld [vmem:[#allocation2 + $0x2d8] ss:$28 sps:$4 sm:$0xff]   ;;  %v9092_v45 = vld [vmem:[#allocation2 + $0x624] ss:$28 sps:$4 sm:$0xff]  }
  0x98   :  { %2734 = vmatpush1.bf16.msra.mxu0 %v9046_v14  ;;  %v9083_v39 = vld [vmem:[#allocation2 + $0x690] ss:$28 sps:$4 sm:$0xff]   ;;  %v9089_v43 = vld [vmem:[#allocation2 + $0x658] ss:$28 sps:$4 sm:$0xff]   ;;  %v9094_v46 = vld [vmem:[#allocation2 + $0x2a0] ss:$28 sps:$4 sm:$0xff]  }
  0x99   :  { %2777 = vmatpush1.bf16.msra.mxu1 %v9047_v15  ;;  %2735 = vmatprep.subr.bf16.mxu0 %v9048_v16  ;;  %v9095_v47 = vld [vmem:[#allocation2 + $0x620] ss:$28 sps:$4 sm:$0xff]   ;;  %v9096_v48 = vld [vmem:[#allocation2 + $0x26c] ss:$28 sps:$4 sm:$0xff]   ;;  %v9102_v54 = vld [vmem:[#allocation2 + $0x234] ss:$28 sps:$4 sm:$0xff]  }
  0x9a   :  { %2778 = vmatprep.subr.bf16.mxu1 %v9050_v17  ;;  %v10025_v49 = vld [vmem:[%s10564_s0 + $0x4] ss:$28 sps:$4 sm:$0xff]   ;;  %v10030_v50 = vld [vmem:[%s10564_s0 + $0xc] ss:$28 sps:$4 sm:$0xff]   ;;  %v9104_v55 = vld [vmem:[#allocation2 + $0x5b4] ss:$28 sps:$4 sm:$0xff]  }
  0x9b   :  { %v9098_v51 = vld [vmem:[#allocation2 + $0x5ec] ss:$28 sps:$4 sm:$0xff]   ;;  %2759 = vmatprep.mubr.bf16.mxu0 %v10025_v49  ;;  %2802 = vmatprep.mubr.bf16.mxu1 %v10030_v50  ;;  %v9108_v58 = vld [vmem:[#allocation2 + $0x1fc] ss:$28 sps:$4 sm:$0xff]   ;;  %v9114_v62 = vld [vmem:[#allocation2 + $0x1c4] ss:$28 sps:$4 sm:$0xff]  }
  0x9c   :  { %2736 = vmatpush1.bf16.msra.mxu0 %v9052_v18  ;;  %v9100_v52 = vld [vmem:[#allocation2 + $0x268] ss:$28 sps:$4 sm:$0xff]   ;;  %v9106_v56 = vld [vmem:[#allocation2 + $0x230] ss:$28 sps:$4 sm:$0xff]   ;;  %v9110_v59 = vld [vmem:[#allocation2 + $0x57c] ss:$28 sps:$4 sm:$0xff]  }
  0x9d   :  { %2779 = vmatpush1.bf16.msra.mxu1 %v9053_v19  ;;  %2737 = vmatprep.subr.bf16.mxu0 %v9054_v20  ;;  %v9101_v53 = vld [vmem:[#allocation2 + $0x5e8] ss:$28 sps:$4 sm:$0xff]   ;;  %v9107_v57 = vld [vmem:[#allocation2 + $0x5b0] ss:$28 sps:$4 sm:$0xff]   ;;  %v9112_v60 = vld [vmem:[#allocation2 + $0x1f8] ss:$28 sps:$4 sm:$0xff]  }
  0x9e   :  { %2780 = vmatprep.subr.bf16.mxu1 %v9056_v21  ;;  %v9113_v61 = vld [vmem:[#allocation2 + $0x578] ss:$28 sps:$4 sm:$0xff]   ;;  %v9116_v63 = vld [vmem:[#allocation2 + $0x544] ss:$28 sps:$4 sm:$0xff]   ;;  %v9127_v2 = vld [vmem:[#allocation2 + $0x88c] ss:$28 sps:$4 sm:$0xff]  }
  0x9f   :  { %v9118_v0 = vld [vmem:[#allocation2 + $0x1c0] ss:$28 sps:$4 sm:$0xff]   ;;  %v9130_v3 = vld [vmem:[#allocation2 + $0xc0c] ss:$28 sps:$4 sm:$0xff]   ;;  %v9134_v8 = vld [vmem:[#allocation2 + $0x854] ss:$28 sps:$4 sm:$0xff]  }
  0xa0   :  { %2738 = vmatpush1.bf16.msra.mxu0 %v9058_v22  ;;  %v9119_v1 = vld [vmem:[#allocation2 + $0x540] ss:$28 sps:$4 sm:$0xff]   ;;  %v9125_v5 = vld [vmem:[#allocation2 + $0x888] ss:$28 sps:$4 sm:$0xff]   ;;  %v9137_v9 = vld [vmem:[#allocation2 + $0xbd4] ss:$28 sps:$4 sm:$0xff]  }
  0xa1   :  { %2781 = vmatpush1.bf16.msra.mxu1 %v9059_v23  ;;  %2739 = vmatprep.subr.bf16.mxu0 %v9060_v24  ;;  %v10037_v4 = vld [vmem:[%s10564_s0] ss:$28 sps:$4 sm:$0xff]   ;;  %v9128_v6 = vld [vmem:[#allocation2 + $0xc08] ss:$28 sps:$4 sm:$0xff]   ;;  %v9132_v10 = vld [vmem:[#allocation2 + $0x850] ss:$28 sps:$4 sm:$0xff]  }
  0xa2   :  { %2782 = vmatprep.subr.bf16.mxu1 %v9062_v25  ;;  %v10042_v7 = vld [vmem:[%s10564_s0 + $0x8] ss:$28 sps:$4 sm:$0xff]   ;;  %v9135_v11 = vld [vmem:[#allocation2 + $0xbd0] ss:$28 sps:$4 sm:$0xff]   ;;  %v9140_v12 = vld [vmem:[#allocation2 + $0x81c] ss:$28 sps:$4 sm:$0xff]  }
  0xa3   :  { %v9143_v13 = vld [vmem:[#allocation2 + $0xb9c] ss:$28 sps:$4 sm:$0xff]   ;;  %v9916_v14 = vmov 0   ;;  %v9146_v17 = vld [vmem:[#allocation2 + $0x7e4] ss:$28 sps:$4 sm:$0xff]   ;;  %vm9918_vm0 = vmmov 0  }
  0xa4   :  { %2740 = vmatpush1.bf16.msra.mxu0 %v9064_v26  ;;  %v9138_v15 = vld [vmem:[#allocation2 + $0x818] ss:$28 sps:$4 sm:$0xff]   ;;  %v9149_v18 = vld [vmem:[#allocation2 + $0xb64] ss:$28 sps:$4 sm:$0xff]   ;;  %v9152_v21 = vld [vmem:[#allocation2 + $0x7ac] ss:$28 sps:$4 sm:$0xff]  }
  0xa5   :  { %2783 = vmatpush1.bf16.msra.mxu1 %v9065_v27  ;;  %2741 = vmatprep.subr.bf16.mxu0 %v9066_v28  ;;  %v9141_v16 = vld [vmem:[#allocation2 + $0xb98] ss:$28 sps:$4 sm:$0xff]   ;;  %v9144_v19 = vld [vmem:[#allocation2 + $0x7e0] ss:$28 sps:$4 sm:$0xff]   ;;  %v9155_v22 = vld [vmem:[#allocation2 + $0xb2c] ss:$28 sps:$4 sm:$0xff]  }
  0xa6   :  { %2784 = vmatprep.subr.bf16.mxu1 %v9068_v29  ;;  %v9147_v20 = vld [vmem:[#allocation2 + $0xb60] ss:$28 sps:$4 sm:$0xff]   ;;  %v9150_v23 = vld [vmem:[#allocation2 + $0x7a8] ss:$28 sps:$4 sm:$0xff]   ;;  %v9158_v25 = vld [vmem:[#allocation2 + $0x774] ss:$28 sps:$4 sm:$0xff]  }
  0xa7   :  { %v9153_v24 = vld [vmem:[#allocation2 + $0xb28] ss:$28 sps:$4 sm:$0xff]   ;;  %v9161_v26 = vld [vmem:[#allocation2 + $0xaf4] ss:$28 sps:$4 sm:$0xff]   ;;  %v9164_v29 = vld [vmem:[#allocation2 + $0x73c] ss:$28 sps:$4 sm:$0xff]  }
  0xa8   :  { %2742 = vmatpush1.bf16.msra.mxu0 %v9070_v30  ;;  %v9156_v27 = vld [vmem:[#allocation2 + $0x770] ss:$28 sps:$4 sm:$0xff]   ;;  %v9167_v30 = vld [vmem:[#allocation2 + $0xabc] ss:$28 sps:$4 sm:$0xff]   ;;  %vm7572_vm1 = vcmask 1043456   ;;  %vm7565_vm2 = vcmask 162816  }
  0xa9   :  { %2785 = vmatpush1.bf16.msra.mxu1 %v9071_v31  ;;  %2743 = vmatprep.subr.bf16.mxu0 %v9072_v32  ;;  %v9159_v28 = vld [vmem:[#allocation2 + $0xaf0] ss:$28 sps:$4 sm:$0xff]   ;;  %v9162_v31 = vld [vmem:[#allocation2 + $0x738] ss:$28 sps:$4 sm:$0xff]  }
  0xaa   :  { %2786 = vmatprep.subr.bf16.mxu1 %v9074_v33  ;;  %v9165_v32 = vld [vmem:[#allocation2 + $0xab8] ss:$28 sps:$4 sm:$0xff]   ;;  %v9170_v33 = vld [vmem:[#allocation2 + $0x704] ss:$28 sps:$4 sm:$0xff]  }
  0xac   :  { %2744 = vmatpush2.bf16.msra.mxu0 %v9076_v34  ;;  %v9173_v34 = vld [vmem:[#allocation2 + $0xa84] ss:$28 sps:$4 sm:$0xff]  }
  0xad   :  { %2787 = vmatpush2.bf16.msra.mxu1 %v9077_v35  ;;  %2745 = vmatprep.subr.bf16.mxu0 %v9078_v36  ;;  %v10050_v35 = vld [vmem:[%s10564_s0 + $0x14] ss:$28 sps:$4 sm:$0xff]   ;;  %v9168_v36 = vld [vmem:[#allocation2 + $0x700] ss:$28 sps:$4 sm:$0xff]  }
  0xae   :  { %2788 = vmatprep.subr.bf16.mxu1 %v9080_v37  ;;  %v9171_v37 = vld [vmem:[#allocation2 + $0xa80] ss:$28 sps:$4 sm:$0xff]  }
  0xb0   :  { %2746 = vmatpush2.bf16.msra.mxu0 %v9082_v38  ;;  %v9176_v38 = vld [vmem:[#allocation2 + $0xa4c] ss:$28 sps:$4 sm:$0xff]  }
  0xb1   :  { %2789 = vmatpush2.bf16.msra.mxu1 %v9083_v39  ;;  %2747 = vmatprep.subr.bf16.mxu0 %v9084_v40  ;;  %v9179_v39 = vld [vmem:[#allocation2 + $0x194] ss:$28 sps:$4 sm:$0xff]   ;;  %v9174_v40 = vld [vmem:[#allocation2 + $0xa48] ss:$28 sps:$4 sm:$0xff]  }
  0xb2   :  { %2790 = vmatprep.subr.bf16.mxu1 %v9086_v41  ;;  %v10056_v41 = vld [vmem:[%s10564_s0 + $0x18] ss:$28 sps:$4 sm:$0xff]  }
  0xb4   :  { %2748 = vmatpush2.bf16.msra.mxu0 %v9088_v42  ;;  %v9177_v42 = vld [vmem:[#allocation2 + $0x190] ss:$28 sps:$4 sm:$0xff]  }
  0xb5   :  { %2791 = vmatpush2.bf16.msra.mxu1 %v9089_v43  ;;  %2749 = vmatprep.subr.bf16.mxu0 %v9090_v44  ;;  %v9183_v43 = vld [vmem:[#allocation2 + $0xa14] ss:$28 sps:$4 sm:$0xff]   ;;  %v9186_v44 = vld [vmem:[#allocation2 + $0x15c] ss:$28 sps:$4 sm:$0xff]  }
  0xb6   :  { %2792 = vmatprep.subr.bf16.mxu1 %v9092_v45  ;;  %v9181_v45 = vld [vmem:[#allocation2 + $0xa10] ss:$28 sps:$4 sm:$0xff]  }
  0xb8   :  { %2750 = vmatpush2.bf16.msra.mxu0 %v9094_v46  ;;  %v9184_v46 = vld [vmem:[#allocation2 + $0x158] ss:$28 sps:$4 sm:$0xff]  }
  0xb9   :  { %2793 = vmatpush2.bf16.msra.mxu1 %v9095_v47  ;;  %2751 = vmatprep.subr.bf16.mxu0 %v9096_v48  ;;  %v9189_v47 = vld [vmem:[#allocation2 + $0x9dc] ss:$28 sps:$4 sm:$0xff]   ;;  %v9192_v48 = vld [vmem:[#allocation2 + $0x124] ss:$28 sps:$4 sm:$0xff]  }
  0xba   :  { %2794 = vmatprep.subr.bf16.mxu1 %v9098_v51  ;;  %v9187_v51 = vld [vmem:[#allocation2 + $0x9d8] ss:$28 sps:$4 sm:$0xff]  }
  0xbc   :  { %2752 = vmatpush2.bf16.msra.mxu0 %v9100_v52  ;;  %v9190_v52 = vld [vmem:[#allocation2 + $0x120] ss:$28 sps:$4 sm:$0xff]  }
  0xbd   :  { %2795 = vmatpush2.bf16.msra.mxu1 %v9101_v53  ;;  %2753 = vmatprep.subr.bf16.mxu0 %v9102_v54  ;;  %v9195_v53 = vld [vmem:[#allocation2 + $0x9a4] ss:$28 sps:$4 sm:$0xff]   ;;  %v9198_v54 = vld [vmem:[#allocation2 + $0xec] ss:$28 sps:$4 sm:$0xff]  }
  0xbe   :  { %2796 = vmatprep.subr.bf16.mxu1 %v9104_v55  ;;  %v9193_v55 = vld [vmem:[#allocation2 + $0x9a0] ss:$28 sps:$4 sm:$0xff]  }
  0xc0   :  { %2754 = vmatpush2.bf16.msra.mxu0 %v9106_v56  ;;  %v9196_v56 = vld [vmem:[#allocation2 + $0xe8] ss:$28 sps:$4 sm:$0xff]  }
  0xc1   :  { %2797 = vmatpush2.bf16.msra.mxu1 %v9107_v57  ;;  %2755 = vmatprep.subr.bf16.mxu0 %v9108_v58  ;;  %v9201_v57 = vld [vmem:[#allocation2 + $0x96c] ss:$28 sps:$4 sm:$0xff]   ;;  %v9204_v58 = vld [vmem:[#allocation2 + $0xb4] ss:$28 sps:$4 sm:$0xff]  }
  0xc2   :  { %2798 = vmatprep.subr.bf16.mxu1 %v9110_v59  ;;  %v9199_v59 = vld [vmem:[#allocation2 + $0x968] ss:$28 sps:$4 sm:$0xff]  }
  0xc4   :  { %2756 = vmatpush2.bf16.msra.mxu0 %v9112_v60  ;;  %v9207_v60 = vld [vmem:[#allocation2 + $0x934] ss:$28 sps:$4 sm:$0xff]  }
  0xc5   :  { %2799 = vmatpush2.bf16.msra.mxu1 %v9113_v61  ;;  %2757 = vmatprep.subr.bf16.mxu0 %v9114_v62  ;;  %v9210_v61 = vld [vmem:[#allocation2 + $0x7c] ss:$28 sps:$4 sm:$0xff]   ;;  %v9205_v62 = vld [vmem:[#allocation2 + $0x930] ss:$28 sps:$4 sm:$0xff]  }
  0xc6   :  { %2800 = vmatprep.subr.bf16.mxu1 %v9116_v63  ;;  %v9208_v63 = vld [vmem:[#allocation2 + $0x78] ss:$28 sps:$4 sm:$0xff]  }
  0xc8   :  { %2758 = vmatpush2.bf16.msra.mxu0 %v9118_v0  ;;  %v9213_v0 = vld [vmem:[#allocation2 + $0x8fc] ss:$28 sps:$4 sm:$0xff]  }
  0xc9   :  { %2801 = vmatpush2.bf16.msra.mxu1 %v9119_v1  ;;  %2813 = vmatprep.subr.bf16.mxu0 %v9127_v2  ;;  %v9216_v1 = vld [vmem:[#allocation2 + $0x44] ss:$28 sps:$4 sm:$0xff]   ;;  %v9211_v2 = vld [vmem:[#allocation2 + $0x8f8] ss:$28 sps:$4 sm:$0xff]  }
  0xca   :  { %2856 = vmatprep.subr.bf16.mxu1 %v9130_v3  ;;  %v9214_v3 = vld [vmem:[#allocation2 + $0x40] ss:$28 sps:$4 sm:$0xff]  }
  0xcb   :  { %2760 = vmatmul.mubr.bf16.vlgmr.msra.gmra.mxu0 %v10037_v4 }
  0xcc   :  { %2803 = vmatmul.mubr.bf16.vlgmr.msra.gmra.mxu1 %v10042_v7  ;;  %2814 = vmatpush1.bf16.msra.mxu0 %v9125_v5  ;;  %v9219_v5 = vld [vmem:[#allocation2 + $0x8c4] ss:$28 sps:$4 sm:$0xff]  }
  0xcd   :  { %2857 = vmatpush1.bf16.msra.mxu1 %v9128_v6  ;;  %2815 = vmatprep.subr.bf16.mxu0 %v9134_v8  ;;  %v9222_v6 = vld [vmem:[#allocation2 + $0xc] ss:$28 sps:$4 sm:$0xff]   ;;  %v9217_v8 = vld [vmem:[#allocation2 + $0x8c0] ss:$28 sps:$4 sm:$0xff]  }
  0xce   :  { %2858 = vmatprep.subr.bf16.mxu1 %v9137_v9  ;;  %2888 = vmatprep.mubr.bf16.mxu1 %v9916_v14  ;;  %v9220_v9 = vld [vmem:[#allocation2 + $0x8] ss:$28 sps:$4 sm:$0xff]  }
  0xcf   :  { %2845 = vmatprep.mubr.bf16.mxu0 %v10050_v35 }
  0xd0   :  { %2816 = vmatpush1.bf16.msra.mxu0 %v9132_v10  ;;  %v9228_v10 = vld [vmem:[#allocation2 + $0x354] ss:$28 sps:$4 sm:$0xff]  }
  0xd1   :  { %2859 = vmatpush1.bf16.msra.mxu1 %v9135_v11  ;;  %2817 = vmatprep.subr.bf16.mxu0 %v9140_v12  ;;  %v9231_v11 = vld [vmem:[#allocation2 + $0x514] ss:$28 sps:$4 sm:$0xff]  }
  0xd2   :  { %2860 = vmatprep.subr.bf16.mxu1 %v9143_v13  ;;  %v10063_v12 = vld [vmem:[%s10564_s0 + $0x10] ss:$28 sps:$4 sm:$0xff]  }
  0xd3   :  { %v9226_v13 = vld [vmem:[#allocation2 + $0x350] ss:$28 sps:$4 sm:$0xff]  }
  0xd4   :  { %2818 = vmatpush1.bf16.msra.mxu0 %v9138_v15  ;;  %v9229_v15 = vld [vmem:[#allocation2 + $0x510] ss:$28 sps:$4 sm:$0xff]  }
  0xd5   :  { %2861 = vmatpush1.bf16.msra.mxu1 %v9141_v16  ;;  %2819 = vmatprep.subr.bf16.mxu0 %v9146_v17  ;;  %v9234_v16 = vld [vmem:[#allocation2 + $0x31c] ss:$28 sps:$4 sm:$0xff]  }
  0xd6   :  { %2862 = vmatprep.subr.bf16.mxu1 %v9149_v18  ;;  %v9237_v17 = vld [vmem:[#allocation2 + $0x4dc] ss:$28 sps:$4 sm:$0xff]  }
  0xd7   :  { %v9232_v18 = vld [vmem:[#allocation2 + $0x318] ss:$28 sps:$4 sm:$0xff]  }
  0xd8   :  { %2820 = vmatpush1.bf16.msra.mxu0 %v9144_v19  ;;  %v9235_v19 = vld [vmem:[#allocation2 + $0x4d8] ss:$28 sps:$4 sm:$0xff]  }
  0xd9   :  { %2863 = vmatpush1.bf16.msra.mxu1 %v9147_v20  ;;  %2821 = vmatprep.subr.bf16.mxu0 %v9152_v21  ;;  %v9240_v20 = vld [vmem:[#allocation2 + $0x2e4] ss:$28 sps:$4 sm:$0xff]  }
  0xda   :  { %2864 = vmatprep.subr.bf16.mxu1 %v9155_v22  ;;  %v9243_v21 = vld [vmem:[#allocation2 + $0x4a4] ss:$28 sps:$4 sm:$0xff]  }
  0xdb   :  { %v9238_v22 = vld [vmem:[#allocation2 + $0x2e0] ss:$28 sps:$4 sm:$0xff]  }
  0xdc   :  { %2822 = vmatpush1.bf16.msra.mxu0 %v9150_v23  ;;  %v9241_v23 = vld [vmem:[#allocation2 + $0x4a0] ss:$28 sps:$4 sm:$0xff]  }
  0xdd   :  { %2865 = vmatpush1.bf16.msra.mxu1 %v9153_v24  ;;  %2823 = vmatprep.subr.bf16.mxu0 %v9158_v25  ;;  %v9246_v24 = vld [vmem:[#allocation2 + $0x2ac] ss:$28 sps:$4 sm:$0xff]  }
  0xde   :  { %2866 = vmatprep.subr.bf16.mxu1 %v9161_v26  ;;  %v9249_v25 = vld [vmem:[#allocation2 + $0x46c] ss:$28 sps:$4 sm:$0xff]  }
  0xdf   :  { %v9244_v26 = vld [vmem:[#allocation2 + $0x2a8] ss:$28 sps:$4 sm:$0xff]  }
  0xe0   :  { %2824 = vmatpush1.bf16.msra.mxu0 %v9156_v27  ;;  %v9247_v27 = vld [vmem:[#allocation2 + $0x468] ss:$28 sps:$4 sm:$0xff]  }
  0xe1   :  { %2867 = vmatpush1.bf16.msra.mxu1 %v9159_v28  ;;  %2825 = vmatprep.subr.bf16.mxu0 %v9164_v29  ;;  %v9252_v28 = vld [vmem:[#allocation2 + $0x274] ss:$28 sps:$4 sm:$0xff]  }
  0xe2   :  { %2868 = vmatprep.subr.bf16.mxu1 %v9167_v30  ;;  %v9255_v29 = vld [vmem:[#allocation2 + $0x434] ss:$28 sps:$4 sm:$0xff]  }
  0xe3   :  { %v9250_v30 = vld [vmem:[#allocation2 + $0x270] ss:$28 sps:$4 sm:$0xff]  }
  0xe4   :  { %2826 = vmatpush1.bf16.msra.mxu0 %v9162_v31  ;;  %v9258_v31 = vld [vmem:[#allocation2 + $0x23c] ss:$28 sps:$4 sm:$0xff]  }
  0xe5   :  { %2869 = vmatpush1.bf16.msra.mxu1 %v9165_v32  ;;  %2827 = vmatprep.subr.bf16.mxu0 %v9170_v33  ;;  %v9261_v32 = vld [vmem:[#allocation2 + $0x3fc] ss:$28 sps:$4 sm:$0xff]  }
  0xe6   :  { %2870 = vmatprep.subr.bf16.mxu1 %v9173_v34  ;;  %v9256_v33 = vld [vmem:[#allocation2 + $0x238] ss:$28 sps:$4 sm:$0xff]  }
  0xe7   :  { %v9259_v34 = vld [vmem:[#allocation2 + $0x3f8] ss:$28 sps:$4 sm:$0xff]  }
  0xe8   :  { %2828 = vmatpush1.bf16.msra.mxu0 %v9168_v36  ;;  %v9264_v36 = vld [vmem:[#allocation2 + $0x204] ss:$28 sps:$4 sm:$0xff]  }
  0xe9   :  { %2871 = vmatpush1.bf16.msra.mxu1 %v9171_v37  ;;  %2829 = vmatprep.subr.bf16.mxu0 %v9176_v38  ;;  %v9267_v37 = vld [vmem:[#allocation2 + $0x3c4] ss:$28 sps:$4 sm:$0xff]  }
  0xea   :  { %2899 = vmatprep.subr.bf16.mxu1 %v9179_v39  ;;  %v9262_v38 = vld [vmem:[#allocation2 + $0x200] ss:$28 sps:$4 sm:$0xff]  }
  0xeb   :  { %v9265_v39 = vld [vmem:[#allocation2 + $0x3c0] ss:$28 sps:$4 sm:$0xff]  }
  0xec   :  { %2889 = vmatmul.mubr.bf16.vlgmr.msra.gmra.mxu1 %v10056_v41  ;;  %2830 = vmatpush2.bf16.msra.mxu0 %v9174_v40  ;;  %v9270_v40 = vld [vmem:[#allocation2 + $0x1cc] ss:$28 sps:$4 sm:$0xff]  }
  0xed   :  { %2900 = vmatpush1.bf16.msra.mxu1 %v9177_v42  ;;  %2831 = vmatprep.subr.bf16.mxu0 %v9183_v43  ;;  %v9273_v42 = vld [vmem:[#allocation2 + $0x38c] ss:$28 sps:$4 sm:$0xff]  }
  0xee   :  { %2901 = vmatprep.subr.bf16.mxu1 %v9186_v44  ;;  %2931 = vmatprep.mubr.bf16.mxu1 %v10025_v49  ;;  %v9202_v49 = vld [vmem:[#allocation2 + $0xb0] ss:$28 sps:$4 sm:$0xff]   ;;  %v9268_v43 = vld [vmem:[#allocation2 + $0x1c8] ss:$28 sps:$4 sm:$0xff]  }
  0xef   :  { %v9271_v44 = vld [vmem:[#allocation2 + $0x388] ss:$28 sps:$4 sm:$0xff]  }
  0xf0   :  { %2832 = vmatpush2.bf16.msra.mxu0 %v9181_v45  ;;  %v9276_v45 = vld [vmem:[#allocation2 + $0x6d4] ss:$28 sps:$4 sm:$0xff]  }
  0xf1   :  { %2902 = vmatpush1.bf16.msra.mxu1 %v9184_v46  ;;  %2833 = vmatprep.subr.bf16.mxu0 %v9189_v47  ;;  %v9279_v46 = vld [vmem:[#allocation2 + $0x894] ss:$28 sps:$4 sm:$0xff]  }
  0xf2   :  { %2903 = vmatprep.subr.bf16.mxu1 %v9192_v48  ;;  %v9274_v47 = vld [vmem:[#allocation2 + $0x6d0] ss:$28 sps:$4 sm:$0xff]  }
  0xf3   :  { %v9277_v48 = vld [vmem:[#allocation2 + $0x890] ss:$28 sps:$4 sm:$0xff]  }
  0xf4   :  { %2834 = vmatpush2.bf16.msra.mxu0 %v9187_v51  ;;  %v9282_v51 = vld [vmem:[#allocation2 + $0x69c] ss:$28 sps:$4 sm:$0xff]  }
  0xf5   :  { %2904 = vmatpush1.bf16.msra.mxu1 %v9190_v52  ;;  %2835 = vmatprep.subr.bf16.mxu0 %v9195_v53  ;;  %v9285_v52 = vld [vmem:[#allocation2 + $0x85c] ss:$28 sps:$4 sm:$0xff]  }
  0xf6   :  { %2905 = vmatprep.subr.bf16.mxu1 %v9198_v54  ;;  %v9280_v53 = vld [vmem:[#allocation2 + $0x698] ss:$28 sps:$4 sm:$0xff]  }
  0xf7   :  { %v9283_v54 = vld [vmem:[#allocation2 + $0x858] ss:$28 sps:$4 sm:$0xff]  }
  0xf8   :  { %2836 = vmatpush2.bf16.msra.mxu0 %v9193_v55  ;;  %v9288_v55 = vld [vmem:[#allocation2 + $0x664] ss:$28 sps:$4 sm:$0xff]  }
  0xf9   :  { %2906 = vmatpush1.bf16.msra.mxu1 %v9196_v56  ;;  %2837 = vmatprep.subr.bf16.mxu0 %v9201_v57  ;;  %v9291_v56 = vld [vmem:[#allocation2 + $0x824] ss:$28 sps:$4 sm:$0xff]  }
  0xfa   :  { %2907 = vmatprep.subr.bf16.mxu1 %v9204_v58  ;;  %v9286_v57 = vld [vmem:[#allocation2 + $0x660] ss:$28 sps:$4 sm:$0xff]  }
  0xfb   :  { %v9289_v58 = vld [vmem:[#allocation2 + $0x820] ss:$28 sps:$4 sm:$0xff]  }
  0xfc   :  { %2838 = vmatpush2.bf16.msra.mxu0 %v9199_v59  ;;  %v9294_v59 = vld [vmem:[#allocation2 + $0x62c] ss:$28 sps:$4 sm:$0xff]  }
  0xfd   :  { %2908 = vmatpush1.bf16.msra.mxu1 %v9202_v49  ;;  %2839 = vmatprep.subr.bf16.mxu0 %v9207_v60  ;;  %v9297_v49 = vld [vmem:[#allocation2 + $0x7ec] ss:$28 sps:$4 sm:$0xff]  }
  0xfe   :  { %2909 = vmatprep.subr.bf16.mxu1 %v9210_v61  ;;  %v9292_v60 = vld [vmem:[#allocation2 + $0x628] ss:$28 sps:$4 sm:$0xff]   ;;  %v9300_v61 = vld [vmem:[#allocation2 + $0x5f4] ss:$28 sps:$4 sm:$0xff]  }
 0x100   :  { %2840 = vmatpush2.bf16.msra.mxu0 %v9205_v62  ;;  %v9303_v62 = vld [vmem:[#allocation2 + $0x7b4] ss:$28 sps:$4 sm:$0xff]  }
 0x101   :  { %2910 = vmatpush1.bf16.msra.mxu1 %v9208_v63  ;;  %2841 = vmatprep.subr.bf16.mxu0 %v9213_v0  ;;  %v9298_v63 = vld [vmem:[#allocation2 + $0x5f0] ss:$28 sps:$4 sm:$0xff]  }
 0x102   :  { %2911 = vmatprep.subr.bf16.mxu1 %v9216_v1  ;;  %v9301_v0 = vld [vmem:[#allocation2 + $0x7b0] ss:$28 sps:$4 sm:$0xff]   ;;  %v9309_v1 = vld [vmem:[#allocation2 + $0x77c] ss:$28 sps:$4 sm:$0xff]  }
 0x104   :  { %2842 = vmatpush2.bf16.msra.mxu0 %v9211_v2  ;;  %v9304_v2 = vld [vmem:[#allocation2 + $0x5b8] ss:$28 sps:$4 sm:$0xff]  }
 0x105   :  { %2912 = vmatpush1.bf16.msra.mxu1 %v9214_v3  ;;  %2843 = vmatprep.subr.bf16.mxu0 %v9219_v5  ;;  %v9307_v3 = vld [vmem:[#allocation2 + $0x778] ss:$28 sps:$4 sm:$0xff]   ;;  %v9312_v5 = vld [vmem:[#allocation2 + $0x584] ss:$28 sps:$4 sm:$0xff]  }
 0x106   :  { %2913 = vmatprep.subr.bf16.mxu1 %v9222_v6  ;;  %v9315_v6 = vld [vmem:[#allocation2 + $0x744] ss:$28 sps:$4 sm:$0xff]  }
 0x108   :  { %2844 = vmatpush2.bf16.msra.mxu0 %v9217_v8  ;;  %v9310_v8 = vld [vmem:[#allocation2 + $0x580] ss:$28 sps:$4 sm:$0xff]  }
 0x109   :  { %2914 = vmatpush1.bf16.msra.mxu1 %v9220_v9  ;;  %2942 = vmatprep.subr.bf16.mxu0 %v9231_v11  ;;  %v9313_v9 = vld [vmem:[#allocation2 + $0x740] ss:$28 sps:$4 sm:$0xff]   ;;  %v9321_v11 = vld [vmem:[#allocation2 + $0x70c] ss:$28 sps:$4 sm:$0xff]  }
 0x10a   :  { %2915 = vmatprep.subr.bf16.mxu1 %v9228_v10  ;;  %v9318_v10 = vld [vmem:[#allocation2 + $0x54c] ss:$28 sps:$4 sm:$0xff]  }
 0x10b   :  { %2846 = vmatmul.mubr.bf16.vlgmr.msra.gmra.mxu0 %v10063_v12 }
 0x10c   :  { %2943 = vmatpush1.bf16.msra.mxu0 %v9229_v15  ;;  %2974 = vmatprep.mubr.bf16.mxu0 %v10030_v50  ;;  %v9253_v50 = vld [vmem:[#allocation2 + $0x430] ss:$28 sps:$4 sm:$0xff]   ;;  %v9319_v15 = vld [vmem:[#allocation2 + $0x708] ss:$28 sps:$4 sm:$0xff]  }
 0x10d   :  { %2916 = vmatpush2.bf16.msra.mxu1 %v9226_v13  ;;  %2944 = vmatprep.subr.bf16.mxu0 %v9237_v17  ;;  %v9316_v13 = vld [vmem:[#allocation2 + $0x548] ss:$28 sps:$4 sm:$0xff]   ;;  %v9327_v17 = vld [vmem:[#allocation2 + $0xc14] ss:$28 sps:$4 sm:$0xff]  }
 0x10e   :  { %2917 = vmatprep.subr.bf16.mxu1 %v9234_v16  ;;  %v9324_v16 = vld [vmem:[#allocation2 + $0xa54] ss:$28 sps:$4 sm:$0xff]  }
 0x110   :  { %2945 = vmatpush1.bf16.msra.mxu0 %v9235_v19  ;;  %v9325_v19 = vld [vmem:[#allocation2 + $0xc10] ss:$28 sps:$4 sm:$0xff]  }
 0x111   :  { %2918 = vmatpush2.bf16.msra.mxu1 %v9232_v18  ;;  %2946 = vmatprep.subr.bf16.mxu0 %v9243_v21  ;;  %v9322_v18 = vld [vmem:[#allocation2 + $0xa50] ss:$28 sps:$4 sm:$0xff]   ;;  %v9333_v21 = vld [vmem:[#allocation2 + $0xbdc] ss:$28 sps:$4 sm:$0xff]  }
 0x112   :  { %2919 = vmatprep.subr.bf16.mxu1 %v9240_v20  ;;  %v9330_v20 = vld [vmem:[#allocation2 + $0xa1c] ss:$28 sps:$4 sm:$0xff]  }
 0x114   :  { %2947 = vmatpush1.bf16.msra.mxu0 %v9241_v23  ;;  %v9331_v23 = vld [vmem:[#allocation2 + $0xbd8] ss:$28 sps:$4 sm:$0xff]  }
 0x115   :  { %2920 = vmatpush2.bf16.msra.mxu1 %v9238_v22  ;;  %2948 = vmatprep.subr.bf16.mxu0 %v9249_v25  ;;  %v9328_v22 = vld [vmem:[#allocation2 + $0xa18] ss:$28 sps:$4 sm:$0xff]   ;;  %v9339_v25 = vld [vmem:[#allocation2 + $0xba4] ss:$28 sps:$4 sm:$0xff]  }
 0x116   :  { %2921 = vmatprep.subr.bf16.mxu1 %v9246_v24  ;;  %v9336_v24 = vld [vmem:[#allocation2 + $0x9e4] ss:$28 sps:$4 sm:$0xff]  }
 0x118   :  { %2949 = vmatpush1.bf16.msra.mxu0 %v9247_v27  ;;  %v9337_v27 = vld [vmem:[#allocation2 + $0xba0] ss:$28 sps:$4 sm:$0xff]  }
 0x119   :  { %2922 = vmatpush2.bf16.msra.mxu1 %v9244_v26  ;;  %2950 = vmatprep.subr.bf16.mxu0 %v9255_v29  ;;  %v9334_v26 = vld [vmem:[#allocation2 + $0x9e0] ss:$28 sps:$4 sm:$0xff]   ;;  %v9345_v29 = vld [vmem:[#allocation2 + $0xb6c] ss:$28 sps:$4 sm:$0xff]  }
 0x11a   :  { %2923 = vmatprep.subr.bf16.mxu1 %v9252_v28  ;;  %v9342_v28 = vld [vmem:[#allocation2 + $0x9ac] ss:$28 sps:$4 sm:$0xff]  }
 0x11c   :  { %2951 = vmatpush1.bf16.msra.mxu0 %v9253_v50  ;;  %v9348_v50 = vld [vmem:[#allocation2 + $0x974] ss:$28 sps:$4 sm:$0xff]  }
 0x11d   :  { %2924 = vmatpush2.bf16.msra.mxu1 %v9250_v30  ;;  %2952 = vmatprep.subr.bf16.mxu0 %v9261_v32  ;;  %v9340_v30 = vld [vmem:[#allocation2 + $0x9a8] ss:$28 sps:$4 sm:$0xff]   ;;  %v9346_v32 = vld [vmem:[#allocation2 + $0x970] ss:$28 sps:$4 sm:$0xff]  }
 0x11e   :  { %2925 = vmatprep.subr.bf16.mxu1 %v9258_v31  ;;  %v9351_v31 = vld [vmem:[#allocation2 + $0xb34] ss:$28 sps:$4 sm:$0xff]  }
 0x120   :  { %2953 = vmatpush1.bf16.msra.mxu0 %v9259_v34  ;;  %v9354_v34 = vld [vmem:[#allocation2 + $0x93c] ss:$28 sps:$4 sm:$0xff]  }
 0x121   :  { %2926 = vmatpush2.bf16.msra.mxu1 %v9256_v33  ;;  %2954 = vmatprep.subr.bf16.mxu0 %v9267_v37  ;;  %v9349_v33 = vld [vmem:[#allocation2 + $0xb30] ss:$28 sps:$4 sm:$0xff]   ;;  %v9352_v37 = vld [vmem:[#allocation2 + $0x938] ss:$28 sps:$4 sm:$0xff]  }
 0x122   :  { %2927 = vmatprep.subr.bf16.mxu1 %v9264_v36  ;;  %v9357_v36 = vld [vmem:[#allocation2 + $0xafc] ss:$28 sps:$4 sm:$0xff]  }
 0x124   :  { %2955 = vmatpush1.bf16.msra.mxu0 %v9265_v39  ;;  %v9360_v39 = vld [vmem:[#allocation2 + $0x904] ss:$28 sps:$4 sm:$0xff]  }
 0x125   :  { %2928 = vmatpush2.bf16.msra.mxu1 %v9262_v38  ;;  %2956 = vmatprep.subr.bf16.mxu0 %v9273_v42  ;;  %v9355_v38 = vld [vmem:[#allocation2 + $0xaf8] ss:$28 sps:$4 sm:$0xff]   ;;  %v9358_v42 = vld [vmem:[#allocation2 + $0x900] ss:$28 sps:$4 sm:$0xff]  }
 0x126   :  { %2929 = vmatprep.subr.bf16.mxu1 %v9270_v40  ;;  %v9363_v40 = vld [vmem:[#allocation2 + $0xac4] ss:$28 sps:$4 sm:$0xff]  }
 0x128   :  { %2957 = vmatpush1.bf16.msra.mxu0 %v9271_v44  ;;  %v9366_v44 = vld [vmem:[#allocation2 + $0x8cc] ss:$28 sps:$4 sm:$0xff]  }
 0x129   :  { %2930 = vmatpush2.bf16.msra.mxu1 %v9268_v43  ;;  %2958 = vmatprep.subr.bf16.mxu0 %v9276_v45  ;;  %v9361_v43 = vld [vmem:[#allocation2 + $0xac0] ss:$28 sps:$4 sm:$0xff]   ;;  %v9369_v45 = vld [vmem:[#allocation2 + $0xa8c] ss:$28 sps:$4 sm:$0xff]  }
 0x12a   :  { %2985 = vmatprep.subr.bf16.mxu1 %v9279_v46  ;;  %v9364_v46 = vld [vmem:[#allocation2 + $0x8c8] ss:$28 sps:$4 sm:$0xff]  }
 0x12c   :  { %2932 = vmatmul.mubr.bf16.vlgmr.msra.gmra.mxu1 %v10037_v4  ;;  %2959 = vmatpush2.bf16.msra.mxu0 %v9274_v47  ;;  %v9295_v4 = vld [vmem:[#allocation2 + $0x7e8] ss:$28 sps:$4 sm:$0xff]  }
 0x12d   :  { %2986 = vmatpush1.bf16.msra.mxu1 %v9277_v48  ;;  %2960 = vmatprep.subr.bf16.mxu0 %v9282_v51  ;;  %v9367_v47 = vld [vmem:[#allocation2 + $0xa88] ss:$28 sps:$4 sm:$0xff]   ;;  %v9372_v48 = vld [vmem:[#allocation2 + $0x19c] ss:$28 sps:$4 sm:$0xff]  }
 0x12e   :  { %2987 = vmatprep.subr.bf16.mxu1 %v9285_v52  ;;  %3017 = vmatprep.mubr.bf16.mxu1 %v10050_v35  ;;  %v9306_v35 = vld [vmem:[#allocation2 + $0x5bc] ss:$28 sps:$4 sm:$0xff]  }
 0x12f   :  { %v9375_v51 = vld [vmem:[#allocation2 + $0x51c] ss:$28 sps:$4 sm:$0xff]  }
 0x130   :  { %2961 = vmatpush2.bf16.msra.mxu0 %v9280_v53  ;;  %v9370_v52 = vld [vmem:[#allocation2 + $0x198] ss:$28 sps:$4 sm:$0xff]  }
 0x131   :  { %2988 = vmatpush1.bf16.msra.mxu1 %v9283_v54  ;;  %2962 = vmatprep.subr.bf16.mxu0 %v9288_v55  ;;  %v9373_v53 = vld [vmem:[#allocation2 + $0x518] ss:$28 sps:$4 sm:$0xff]   ;;  %v9378_v54 = vld [vmem:[#allocation2 + $0x164] ss:$28 sps:$4 sm:$0xff]  }
 0x132   :  { %2989 = vmatprep.subr.bf16.mxu1 %v9291_v56  ;;  %v9381_v55 = vld [vmem:[#allocation2 + $0x4e4] ss:$28 sps:$4 sm:$0xff]  }
 0x133   :  { %v9376_v56 = vld [vmem:[#allocation2 + $0x160] ss:$28 sps:$4 sm:$0xff]  }
 0x134   :  { %2963 = vmatpush2.bf16.msra.mxu0 %v9286_v57  ;;  %v9379_v57 = vld [vmem:[#allocation2 + $0x4e0] ss:$28 sps:$4 sm:$0xff]  }
 0x135   :  { %2990 = vmatpush1.bf16.msra.mxu1 %v9289_v58  ;;  %2964 = vmatprep.subr.bf16.mxu0 %v9294_v59  ;;  %v9384_v58 = vld [vmem:[#allocation2 + $0x12c] ss:$28 sps:$4 sm:$0xff]  }
 0x136   :  { %2991 = vmatprep.subr.bf16.mxu1 %v9297_v49  ;;  %v9387_v59 = vld [vmem:[#allocation2 + $0x4ac] ss:$28 sps:$4 sm:$0xff]  }
 0x137   :  { %v9382_v49 = vld [vmem:[#allocation2 + $0x128] ss:$28 sps:$4 sm:$0xff]  }
 0x138   :  { %2965 = vmatpush2.bf16.msra.mxu0 %v9292_v60  ;;  %v10076_v60 = vld [vmem:[%s10564_s0 + $0x4] ss:$28 sps:$4 sm:$0xff]  }
 0x139   :  { %2992 = vmatpush1.bf16.msra.mxu1 %v9295_v4  ;;  %2966 = vmatprep.subr.bf16.mxu0 %v9300_v61  ;;  %v9390_v4 = vld [vmem:[#allocation2 + $0xf4] ss:$28 sps:$4 sm:$0xff]  }
 0x13a   :  { %2993 = vmatprep.subr.bf16.mxu1 %v9303_v62  ;;  %v9393_v61 = vld [vmem:[#allocation2 + $0x474] ss:$28 sps:$4 sm:$0xff]  }
 0x13b   :  { %v9388_v62 = vld [vmem:[#allocation2 + $0xf0] ss:$28 sps:$4 sm:$0xff]  }
 0x13c   :  { %2967 = vmatpush2.bf16.msra.mxu0 %v9298_v63  ;;  %v9391_v63 = vld [vmem:[#allocation2 + $0x470] ss:$28 sps:$4 sm:$0xff]  }
 0x13d   :  { %2994 = vmatpush1.bf16.msra.mxu1 %v9301_v0  ;;  %2968 = vmatprep.subr.bf16.mxu0 %v9306_v35  ;;  %v9396_v0 = vld [vmem:[#allocation2 + $0xbc] ss:$28 sps:$4 sm:$0xff]  }
 0x13e   :  { %2995 = vmatprep.subr.bf16.mxu1 %v9309_v1  ;;  %v9399_v35 = vld [vmem:[#allocation2 + $0x43c] ss:$28 sps:$4 sm:$0xff]   ;;  %v640_v1 = vlaneseq }
 0x140   :  { %2969 = vmatpush2.bf16.msra.mxu0 %v9304_v2  ;;  %v9394_v2 = vld [vmem:[#allocation2 + $0xb8] ss:$28 sps:$4 sm:$0xff]  }
 0x141   :  { %2996 = vmatpush1.bf16.msra.mxu1 %v9307_v3  ;;  %2970 = vmatprep.subr.bf16.mxu0 %v9312_v5  ;;  %v9397_v3 = vld [vmem:[#allocation2 + $0x438] ss:$28 sps:$4 sm:$0xff]   ;;  %v9402_v5 = vld [vmem:[#allocation2 + $0x84] ss:$28 sps:$4 sm:$0xff]  }
 0x142   :  { %2997 = vmatprep.subr.bf16.mxu1 %v9315_v6  ;;  %v9405_v6 = vld [vmem:[#allocation2 + $0x404] ss:$28 sps:$4 sm:$0xff]  }
 0x144   :  { %2971 = vmatpush2.bf16.msra.mxu0 %v9310_v8  ;;  %v9400_v8 = vld [vmem:[#allocation2 + $0x80] ss:$28 sps:$4 sm:$0xff]  }
 0x145   :  { %2998 = vmatpush1.bf16.msra.mxu1 %v9313_v9  ;;  %2972 = vmatprep.subr.bf16.mxu0 %v9318_v10  ;;  %v10082_v9 = vshrl.u32 %v640_v1, 7  ;;  %v9403_v10 = vld [vmem:[#allocation2 + $0x400] ss:$28 sps:$4 sm:$0xff]  }
 0x146   :  { %2999 = vmatprep.subr.bf16.mxu1 %v9321_v11  ;;  %v9408_v11 = vld [vmem:[#allocation2 + $0x4c] ss:$28 sps:$4 sm:$0xff]   ;;  %v9471_v1 = vld [vmem:[#allocation2 + $0xc1c] ss:$28 sps:$4 sm:$0xff]  }
 0x148   :  { %2973 = vmatpush2.bf16.msra.mxu0 %v9316_v13  ;;  %v9411_v13 = vld [vmem:[#allocation2 + $0x3cc] ss:$28 sps:$4 sm:$0xff]  }
 0x149   :  { %3000 = vmatpush1.bf16.msra.mxu1 %v9319_v15  ;;  %3028 = vmatprep.subr.bf16.mxu0 %v9327_v17  ;;  %v9406_v15 = vld [vmem:[#allocation2 + $0x48] ss:$28 sps:$4 sm:$0xff]   ;;  %v9414_v17 = vld [vmem:[#allocation2 + $0x14] ss:$28 sps:$4 sm:$0xff]  }
 0x14a   :  { %3001 = vmatprep.subr.bf16.mxu1 %v9324_v16  ;;  %v9409_v16 = vld [vmem:[#allocation2 + $0x3c8] ss:$28 sps:$4 sm:$0xff]  }
 0x14b   :  { %2975 = vmatmul.mubr.bf16.vlgmr.msra.gmra.mxu0 %v10042_v7  ;;  %v9343_v7 = vld [vmem:[#allocation2 + $0xb68] ss:$28 sps:$4 sm:$0xff]  }
 0x14c   :  { %3029 = vmatpush1.bf16.msra.mxu0 %v9325_v19  ;;  %3060 = vmatprep.mubr.bf16.mxu0 %v9916_v14  ;;  %v9412_v19 = vld [vmem:[#allocation2 + $0x10] ss:$28 sps:$4 sm:$0xff]  }
 0x14d   :  { %3002 = vmatpush2.bf16.msra.mxu1 %v9322_v18  ;;  %3030 = vmatprep.subr.bf16.mxu0 %v9333_v21  ;;  %v9417_v18 = vld [vmem:[#allocation2 + $0x394] ss:$28 sps:$4 sm:$0xff]   ;;  %v10084_v21 = vld [vmem:[#allocation4] sm:$0xff] }
 0x14e   :  { %3003 = vmatprep.subr.bf16.mxu1 %v9330_v20  ;;  %v9415_v20 = vld [vmem:[#allocation2 + $0x390] ss:$28 sps:$4 sm:$0xff]  }
 0x150   :  { %3031 = vmatpush1.bf16.msra.mxu0 %v9331_v23  ;;  %v9420_v23 = vld [vmem:[#allocation2 + $0x35c] ss:$28 sps:$4 sm:$0xff]  }
 0x151   :  { %3004 = vmatpush2.bf16.msra.mxu1 %v9328_v22  ;;  %3032 = vmatprep.subr.bf16.mxu0 %v9339_v25  ;;  %v642_v22 = vsub.s32 0, %v10082_v9  ;;  %v9418_v25 = vld [vmem:[#allocation2 + $0x358] ss:$28 sps:$4 sm:$0xff]  }
 0x152   :  { %3005 = vmatprep.subr.bf16.mxu1 %v9336_v24  ;;  %v9423_v24 = vld [vmem:[#allocation2 + $0x6dc] ss:$28 sps:$4 sm:$0xff]  }
 0x154   :  { %3033 = vmatpush1.bf16.msra.mxu0 %v9337_v27  ;;  %v643_v27 = vrot.slane %v10084_v21, %v642_v22 }
 0x155   :  { %3006 = vmatpush2.bf16.msra.mxu1 %v9334_v26  ;;  %3034 = vmatprep.subr.bf16.mxu0 %v9345_v29  ;;  %v9421_v26 = vld [vmem:[#allocation2 + $0x6d8] ss:$28 sps:$4 sm:$0xff]   ;;  %v9429_v29 = vld [vmem:[#allocation2 + $0x6a4] ss:$28 sps:$4 sm:$0xff]  }
 0x156   :  { %3007 = vmatprep.subr.bf16.mxu1 %v9342_v28  ;;  %v9426_v28 = vld [vmem:[#allocation2 + $0x324] ss:$28 sps:$4 sm:$0xff]  }
 0x158   :  { %3035 = vmatpush1.bf16.msra.mxu0 %v9343_v7 }
 0x159   :  { %3008 = vmatpush2.bf16.msra.mxu1 %v9340_v30  ;;  %3036 = vmatprep.subr.bf16.mxu0 %v9351_v31  ;;  %v9424_v30 = vld [vmem:[#allocation2 + $0x320] ss:$28 sps:$4 sm:$0xff]  }
 0x15a   :  { %3009 = vmatprep.subr.bf16.mxu1 %v9348_v50  ;;  %v9427_v31 = vld [vmem:[#allocation2 + $0x6a0] ss:$28 sps:$4 sm:$0xff]  }
 0x15c   :  { %3037 = vmatpush1.bf16.msra.mxu0 %v9349_v33  ;;  %v9432_v33 = vld [vmem:[#allocation2 + $0x2ec] ss:$28 sps:$4 sm:$0xff]  }
 0x15d   :  { %3010 = vmatpush2.bf16.msra.mxu1 %v9346_v32  ;;  %3038 = vmatprep.subr.bf16.mxu0 %v9357_v36 }
 0x15e   :  { %3011 = vmatprep.subr.bf16.mxu1 %v9354_v34 }
 0x160   :  { %3039 = vmatpush1.bf16.msra.mxu0 %v9355_v38 }
 0x161   :  { %3012 = vmatpush2.bf16.msra.mxu1 %v9352_v37  ;;  %3040 = vmatprep.subr.bf16.mxu0 %v9363_v40  ;;  %v9435_v37 = vld [vmem:[#allocation2 + $0x66c] ss:$28 sps:$4 sm:$0xff]  }
 0x162   :  { %3013 = vmatprep.subr.bf16.mxu1 %v9360_v39  ;;  %v9430_v39 = vld [vmem:[#allocation2 + $0x2e8] ss:$28 sps:$4 sm:$0xff]  }
 0x164   :  { %3041 = vmatpush1.bf16.msra.mxu0 %v9361_v43  ;;  %v9433_v43 = vld [vmem:[#allocation2 + $0x668] ss:$28 sps:$4 sm:$0xff]  }
 0x165   :  { %3014 = vmatpush2.bf16.msra.mxu1 %v9358_v42  ;;  %3042 = vmatprep.subr.bf16.mxu0 %v9369_v45  ;;  %v9438_v45 = vld [vmem:[#allocation2 + $0x2b4] ss:$28 sps:$4 sm:$0xff]  }
 0x166   :  { %3015 = vmatprep.subr.bf16.mxu1 %v9366_v44 }
 0x168   :  { %3043 = vmatpush1.bf16.msra.mxu0 %v9367_v47 }
 0x169   :  { %3016 = vmatpush2.bf16.msra.mxu1 %v9364_v46  ;;  %3071 = vmatprep.subr.bf16.mxu0 %v9372_v48  ;;  %v9441_v46 = vld [vmem:[#allocation2 + $0x634] ss:$28 sps:$4 sm:$0xff]  }
 0x16a   :  { %3114 = vmatprep.subr.bf16.mxu1 %v9375_v51  ;;  %v9436_v48 = vld [vmem:[#allocation2 + $0x2b0] ss:$28 sps:$4 sm:$0xff]  }
 0x16b   :  { %3061 = vmatmul.mubr.bf16.vlgmr.msra.gmra.mxu0 %v10056_v41  ;;  %v9659_v41 = vld [vmem:[%s10564_s0 + $0xc] ss:$28 sps:$4 sm:$0xff]  }
 0x16c   :  { %3018 = vmatmul.mubr.bf16.vlgmr.msra.gmra.mxu1 %v10063_v12  ;;  %3072 = vmatpush1.bf16.msra.mxu0 %v9370_v52  ;;  %v9385_v12 = vld [vmem:[#allocation2 + $0x4a8] ss:$28 sps:$4 sm:$0xff]   ;;  %v9439_v51 = vld [vmem:[#allocation2 + $0x630] ss:$28 sps:$4 sm:$0xff]   ;;  %v9444_v52 = vld [vmem:[#allocation2 + $0x27c] ss:$28 sps:$4 sm:$0xff]  }
 0x16d   :  { %3115 = vmatpush1.bf16.msra.mxu1 %v9373_v53  ;;  %3073 = vmatprep.subr.bf16.mxu0 %v9378_v54  ;;  %v9447_v53 = vld [vmem:[#allocation2 + $0x5fc] ss:$28 sps:$4 sm:$0xff]  }
 0x16e   :  { %3116 = vmatprep.subr.bf16.mxu1 %v9381_v55  ;;  %3103 = vmatprep.mubr.bf16.mxu0 %v10076_v60  ;;  %v9442_v54 = vld [vmem:[#allocation2 + $0x278] ss:$28 sps:$4 sm:$0xff]  }
 0x16f   :  { %3146 = vmatprep.mubr.bf16.mxu1 %v9659_v41  ;;  %v9445_v55 = vld [vmem:[#allocation2 + $0x5f8] ss:$28 sps:$4 sm:$0xff]   ;;  %v9459_v41 = vld [vmem:[#allocation2 + $0x58c] ss:$28 sps:$4 sm:$0xff]  }
 0x170   :  { %3074 = vmatpush1.bf16.msra.mxu0 %v9376_v56  ;;  %v9450_v56 = vld [vmem:[#allocation2 + $0x244] ss:$28 sps:$4 sm:$0xff]  }
 0x171   :  { %3117 = vmatpush1.bf16.msra.mxu1 %v9379_v57  ;;  %3075 = vmatprep.subr.bf16.mxu0 %v9384_v58  ;;  %v9453_v57 = vld [vmem:[#allocation2 + $0x5c4] ss:$28 sps:$4 sm:$0xff]  }
 0x172   :  { %3118 = vmatprep.subr.bf16.mxu1 %v9387_v59  ;;  %v9448_v58 = vld [vmem:[#allocation2 + $0x240] ss:$28 sps:$4 sm:$0xff]  }
 0x173   :  { %v9451_v59 = vld [vmem:[#allocation2 + $0x5c0] ss:$28 sps:$4 sm:$0xff]  }
 0x174   :  { %3076 = vmatpush1.bf16.msra.mxu0 %v9382_v49  ;;  %v9456_v49 = vld [vmem:[#allocation2 + $0x20c] ss:$28 sps:$4 sm:$0xff]  }
 0x175   :  { %3119 = vmatpush1.bf16.msra.mxu1 %v9385_v12  ;;  %3077 = vmatprep.subr.bf16.mxu0 %v9390_v4  ;;  %v9454_v12 = vld [vmem:[#allocation2 + $0x208] ss:$28 sps:$4 sm:$0xff]  }
 0x176   :  { %3120 = vmatprep.subr.bf16.mxu1 %v9393_v61  ;;  %v9457_v4 = vld [vmem:[#allocation2 + $0x588] ss:$28 sps:$4 sm:$0xff]   ;;  %v9462_v61 = vld [vmem:[#allocation2 + $0x1d4] ss:$28 sps:$4 sm:$0xff]  }
 0x178   :  { %3078 = vmatpush1.bf16.msra.mxu0 %v9388_v62  ;;  %v9465_v62 = vld [vmem:[#allocation2 + $0x554] ss:$28 sps:$4 sm:$0xff]  }
 0x179   :  { %3121 = vmatpush1.bf16.msra.mxu1 %v9391_v63  ;;  %3079 = vmatprep.subr.bf16.mxu0 %v9396_v0  ;;  %v9460_v63 = vld [vmem:[#allocation2 + $0x1d0] ss:$28 sps:$4 sm:$0xff]  }
 0x17a   :  { %3122 = vmatprep.subr.bf16.mxu1 %v9399_v35  ;;  %v9463_v0 = vld [vmem:[#allocation2 + $0x550] ss:$28 sps:$4 sm:$0xff]   ;;  %v9468_v35 = vld [vmem:[#allocation2 + $0x89c] ss:$28 sps:$4 sm:$0xff]  }
 0x17c   :  { %3080 = vmatpush1.bf16.msra.mxu0 %v9394_v2  ;;  %v9466_v2 = vld [vmem:[#allocation2 + $0x898] ss:$28 sps:$4 sm:$0xff]  }
 0x17d   :  { %3123 = vmatpush1.bf16.msra.mxu1 %v9397_v3  ;;  %3081 = vmatprep.subr.bf16.mxu0 %v9402_v5  ;;  %v9469_v3 = vld [vmem:[#allocation2 + $0xc18] ss:$28 sps:$4 sm:$0xff]   ;;  %v9474_v5 = vld [vmem:[#allocation2 + $0x864] ss:$28 sps:$4 sm:$0xff]  }
 0x17e   :  { %3124 = vmatprep.subr.bf16.mxu1 %v9405_v6  ;;  %v9477_v6 = vld [vmem:[#allocation2 + $0xbe4] ss:$28 sps:$4 sm:$0xff]  }
 0x180   :  { %3082 = vmatpush1.bf16.msra.mxu0 %v9400_v8  ;;  %v10101_v8 = vld [vmem:[%s10564_s0] ss:$28 sps:$4 sm:$0xff]  }
 0x181   :  { %3125 = vmatpush1.bf16.msra.mxu1 %v9403_v10  ;;  %3083 = vmatprep.subr.bf16.mxu0 %v9408_v11  ;;  %v10107_v10 = vld [vmem:[%s10564_s0 + $0x8] ss:$28 sps:$4 sm:$0xff]   ;;  %v9472_v11 = vld [vmem:[#allocation2 + $0x860] ss:$28 sps:$4 sm:$0xff]  }
 0x182   :  { %3126 = vmatprep.subr.bf16.mxu1 %v9411_v13  ;;  %v9475_v13 = vld [vmem:[#allocation2 + $0xbe0] ss:$28 sps:$4 sm:$0xff]  }
 0x184   :  { %3084 = vmatpush1.bf16.msra.mxu0 %v9406_v15  ;;  %v9480_v15 = vld [vmem:[#allocation2 + $0x82c] ss:$28 sps:$4 sm:$0xff]  }
 0x185   :  { %3127 = vmatpush1.bf16.msra.mxu1 %v9409_v16  ;;  %3085 = vmatprep.subr.bf16.mxu0 %v9414_v17  ;;  %v9483_v16 = vld [vmem:[#allocation2 + $0xbac] ss:$28 sps:$4 sm:$0xff]  }
 0x186   :  { %3128 = vmatprep.subr.bf16.mxu1 %v9417_v18  ;;  %v9478_v17 = vld [vmem:[#allocation2 + $0x828] ss:$28 sps:$4 sm:$0xff]  }
 0x187   :  { %v9481_v18 = vld [vmem:[#allocation2 + $0xba8] ss:$28 sps:$4 sm:$0xff]  }
 0x188   :  { %3086 = vmatpush1.bf16.msra.mxu0 %v9412_v19  ;;  %v10114_v19 = vld [vmem:[%s10564_s0 + $0x14] ss:$28 sps:$4 sm:$0xff]  }
 0x189   :  { %3129 = vmatpush1.bf16.msra.mxu1 %v9415_v20  ;;  %3087 = vmatprep.subr.bf16.mxu0 %v9420_v23  ;;  %v9486_v20 = vld [vmem:[#allocation2 + $0x7f4] ss:$28 sps:$4 sm:$0xff]  }
 0x18a   :  { %3130 = vmatprep.subr.bf16.mxu1 %v9423_v24  ;;  %v9489_v23 = vld [vmem:[#allocation2 + $0xb74] ss:$28 sps:$4 sm:$0xff]  }
 0x18b   :  { %v2761_v7 = vpop.f32.mrf.mxu0  ;;  %v9484_v24 = vld [vmem:[#allocation2 + $0x7f0] ss:$28 sps:$4 sm:$0xff]  }
 0x18c   :  { %v2804_v50 = vpop.f32.mrf.mxu1  ;;  %v2762_v32 = vadd.f32 %v2761_v7, %v643_v27  ;;  %3088 = vmatpush2.bf16.msra.mxu0 %v9418_v25  ;;  %v9487_v25 = vld [vmem:[#allocation2 + $0xb70] ss:$28 sps:$4 sm:$0xff]   ;;  %v9501_v7 = vld [vmem:[#allocation2 + $0xb04] ss:$28 sps:$4 sm:$0xff]  }
 0x18d   :  { %3131 = vmatpush2.bf16.msra.mxu1 %v9421_v26  ;;  %v10090_v34 = vpop.f32.mrf.mxu0  ;;  %3089 = vmatprep.subr.bf16.mxu0 %v9426_v28  ;;  %v9492_v26 = vld [vmem:[#allocation2 + $0x7bc] ss:$28 sps:$4 sm:$0xff]  }
 0x18e   :  { %v10092_v36 = vpop.f32.mrf.mxu1  ;;  %3132 = vmatprep.subr.bf16.mxu1 %v9429_v29  ;;  %v10094_v38 = vadd.f32 %v2804_v50, %v2762_v32  ;;  %v9490_v28 = vld [vmem:[#allocation2 + $0x7b8] ss:$28 sps:$4 sm:$0xff]   ;;  %v9496_v50 = vld [vmem:[#allocation2 + $0x780] ss:$28 sps:$4 sm:$0xff]   ;;  %v9504_v32 = vld [vmem:[#allocation2 + $0x74c] ss:$28 sps:$4 sm:$0xff]  }
 0x18f   :  { %v2765_v40 = vpop.f32.mrf.mxu0  ;;  %v9493_v29 = vld [vmem:[#allocation2 + $0xb38] ss:$28 sps:$4 sm:$0xff]  }
 0x190   :  { %v2808_v42 = vpop.f32.mrf.mxu1  ;;  %v2766_v44 = vadd.f32 %v2765_v40, %v643_v27  ;;  %3090 = vmatpush2.bf16.msra.mxu0 %v9424_v30  ;;  %v9495_v27 = vld [vmem:[#allocation2 + $0xb3c] ss:$28 sps:$4 sm:$0xff]   ;;  %v9498_v30 = vld [vmem:[#allocation2 + $0x784] ss:$28 sps:$4 sm:$0xff]   ;;  %v9510_v40 = vld [vmem:[#allocation2 + $0x714] ss:$28 sps:$4 sm:$0xff]  }
 0x191   :  { %3133 = vmatpush2.bf16.msra.mxu1 %v9427_v31  ;;  %3091 = vmatprep.subr.bf16.mxu0 %v9432_v33  ;;  %v9499_v31 = vld [vmem:[#allocation2 + $0xb00] ss:$28 sps:$4 sm:$0xff]   ;;  %v9507_v33 = vld [vmem:[#allocation2 + $0xacc] ss:$28 sps:$4 sm:$0xff]  }
 0x192   :  { %3134 = vmatprep.subr.bf16.mxu1 %v9435_v37  ;;  %v10096_v47 = vadd.f32 %v2808_v42, %v2766_v44  ;;  %v9502_v37 = vld [vmem:[#allocation2 + $0x748] ss:$28 sps:$4 sm:$0xff]   ;;  %v9513_v42 = vld [vmem:[#allocation2 + $0xa94] ss:$28 sps:$4 sm:$0xff]  }
 0x193   :  { %v9511_v44 = vld [vmem:[#allocation2 + $0xa90] ss:$28 sps:$4 sm:$0xff]  }
 0x194   :  { %3092 = vmatpush2.bf16.msra.mxu0 %v9430_v39  ;;  %v9505_v39 = vld [vmem:[#allocation2 + $0xac8] ss:$28 sps:$4 sm:$0xff]  }
 0x195   :  { %3135 = vmatpush2.bf16.msra.mxu1 %v9433_v43  ;;  %3093 = vmatprep.subr.bf16.mxu0 %v9438_v45  ;;  %v9508_v43 = vld [vmem:[#allocation2 + $0x710] ss:$28 sps:$4 sm:$0xff]   ;;  %v9516_v45 = vld [vmem:[#allocation2 + $0xa5c] ss:$28 sps:$4 sm:$0xff]  }
 0x196   :  { %3136 = vmatprep.subr.bf16.mxu1 %v9441_v46  ;;  %v9517_v46 = vld [vmem:[#allocation2 + $0x360] ss:$28 sps:$4 sm:$0xff]  }
 0x198   :  { %3094 = vmatpush2.bf16.msra.mxu0 %v9436_v48  ;;  %v9514_v48 = vld [vmem:[#allocation2 + $0xa58] ss:$28 sps:$4 sm:$0xff]  }
 0x199   :  { %3137 = vmatpush2.bf16.msra.mxu1 %v9439_v51  ;;  %3095 = vmatprep.subr.bf16.mxu0 %v9444_v52  ;;  %v9518_v51 = vld [vmem:[#allocation2 + $0x1a0] ss:$28 sps:$4 sm:$0xff]   ;;  %v10117_v52 = vpop.f32.mrf.mxu1 }
 0x19a   :  { %3138 = vmatprep.subr.bf16.mxu1 %v9447_v53  ;;  %v10119_v53 = vpop.f32.mrf.mxu0 }
 0x19c   :  { %3096 = vmatpush2.bf16.msra.mxu0 %v9442_v54 }
 0x19d   :  { %3139 = vmatpush2.bf16.msra.mxu1 %v9445_v55  ;;  %3097 = vmatprep.subr.bf16.mxu0 %v9450_v56  ;;  %v9521_v55 = vld [vmem:[#allocation2 + $0xa24] ss:$28 sps:$4 sm:$0xff]  }
 0x19e   :  { %3140 = vmatprep.subr.bf16.mxu1 %v9453_v57  ;;  %v9522_v56 = vld [vmem:[#allocation2 + $0x328] ss:$28 sps:$4 sm:$0xff]   ;;  %v9519_v57 = vld [vmem:[#allocation2 + $0xa20] ss:$28 sps:$4 sm:$0xff]  }
 0x1a0   :  { %3098 = vmatpush2.bf16.msra.mxu0 %v9448_v58  ;;  %v9523_v58 = vld [vmem:[#allocation2 + $0x168] ss:$28 sps:$4 sm:$0xff]  }
 0x1a1   :  { %3141 = vmatpush2.bf16.msra.mxu1 %v9451_v59  ;;  %3099 = vmatprep.subr.bf16.mxu0 %v9456_v49  ;;  %v10124_v49 = vld [vmem:[%s10564_s0 + $0x18] ss:$28 sps:$4 sm:$0xff]  }
 0x1a2   :  { %3142 = vmatprep.subr.bf16.mxu1 %v9459_v41 }
 0x1a4   :  { %3100 = vmatpush2.bf16.msra.mxu0 %v9454_v12  ;;  %v9526_v12 = vld [vmem:[#allocation2 + $0x9ec] ss:$28 sps:$4 sm:$0xff]  }
 0x1a5   :  { %3143 = vmatpush2.bf16.msra.mxu1 %v9457_v4  ;;  %3101 = vmatprep.subr.bf16.mxu0 %v9462_v61  ;;  %v9527_v4 = vld [vmem:[#allocation2 + $0x2f0] ss:$28 sps:$4 sm:$0xff]  }
 0x1a6   :  { %3144 = vmatprep.subr.bf16.mxu1 %v9465_v62 }
 0x1a8   :  { %3102 = vmatpush2.bf16.msra.mxu0 %v9460_v63 }
 0x1a9   :  { %3145 = vmatpush2.bf16.msra.mxu1 %v9463_v0  ;;  %3157 = vmatprep.subr.bf16.mxu0 %v9468_v35  ;;  %v9524_v0 = vld [vmem:[#allocation2 + $0x9e8] ss:$28 sps:$4 sm:$0xff]   ;;  %v9528_v35 = vld [vmem:[#allocation2 + $0x130] ss:$28 sps:$4 sm:$0xff]  }
 0x1aa   :  { %3200 = vmatprep.subr.bf16.mxu1 %v9471_v1 }
 0x1ab   :  { %3104 = vmatmul.mubr.bf16.vlgmr.msra.gmra.mxu0 %v10101_v8 }
 0x1ac   :  { %3147 = vmatmul.mubr.bf16.vlgmr.msra.gmra.mxu1 %v10107_v10  ;;  %3158 = vmatpush1.bf16.msra.mxu0 %v9466_v2  ;;  %v2890_v54 = vpop.f32.mrf.mxu1 }
 0x1ad   :  { %3201 = vmatpush1.bf16.msra.mxu1 %v9469_v3  ;;  %3159 = vmatprep.subr.bf16.mxu0 %v9474_v5  ;;  %v9532_v3 = vld [vmem:[#allocation2 + $0x2b8] ss:$28 sps:$4 sm:$0xff]  }
 0x1ae   :  { %3202 = vmatprep.subr.bf16.mxu1 %v9477_v6  ;;  %3232 = vmatprep.mubr.bf16.mxu1 %v9916_v14  ;;  %v10128_v61 = vpop.f32.mrf.mxu1 }
 0x1af   :  { %3189 = vmatprep.mubr.bf16.mxu0 %v10114_v19 }
 0x1b0   :  { %3160 = vmatpush1.bf16.msra.mxu0 %v9472_v11  ;;  %v2894_v5 = vpop.f32.mrf.mxu1  ;;  %v9529_v11 = vld [vmem:[#allocation2 + $0x9b0] ss:$28 sps:$4 sm:$0xff]  }
 0x1b1   :  { %3203 = vmatpush1.bf16.msra.mxu1 %v9475_v13  ;;  %3161 = vmatprep.subr.bf16.mxu0 %v9480_v15  ;;  %v9533_v13 = vld [vmem:[#allocation2 + $0xf8] ss:$28 sps:$4 sm:$0xff]  }
 0x1b2   :  { %3204 = vmatprep.subr.bf16.mxu1 %v9483_v16  ;;  %v9536_v15 = vld [vmem:[#allocation2 + $0x97c] ss:$28 sps:$4 sm:$0xff]  }
 0x1b4   :  { %3162 = vmatpush1.bf16.msra.mxu0 %v9478_v17 }
 0x1b5   :  { %3205 = vmatpush1.bf16.msra.mxu1 %v9481_v18  ;;  %3163 = vmatprep.subr.bf16.mxu0 %v9486_v20  ;;  %v9537_v18 = vld [vmem:[#allocation2 + $0x280] ss:$28 sps:$4 sm:$0xff]  }
 0x1b6   :  { %3206 = vmatprep.subr.bf16.mxu1 %v9489_v23  ;;  %v9538_v20 = vld [vmem:[#allocation2 + $0xc0] ss:$28 sps:$4 sm:$0xff]  }
 0x1b7   :  { %v9541_v23 = vld [vmem:[#allocation2 + $0x944] ss:$28 sps:$4 sm:$0xff]  }
 0x1b8   :  { %3164 = vmatpush1.bf16.msra.mxu0 %v9484_v24  ;;  %v9542_v24 = vld [vmem:[#allocation2 + $0x248] ss:$28 sps:$4 sm:$0xff]  }
 0x1b9   :  { %3207 = vmatpush1.bf16.msra.mxu1 %v9487_v25  ;;  %3165 = vmatprep.subr.bf16.mxu0 %v9492_v26  ;;  %v9539_v25 = vld [vmem:[#allocation2 + $0x940] ss:$28 sps:$4 sm:$0xff]   ;;  %v9543_v26 = vld [vmem:[#allocation2 + $0x88] ss:$28 sps:$4 sm:$0xff]  }
 0x1ba   :  { %3208 = vmatprep.subr.bf16.mxu1 %v9495_v27  ;;  %v9546_v27 = vld [vmem:[#allocation2 + $0x90c] ss:$28 sps:$4 sm:$0xff]  }
 0x1bc   :  { %3166 = vmatpush1.bf16.msra.mxu0 %v9490_v28  ;;  %v9547_v28 = vld [vmem:[#allocation2 + $0x210] ss:$28 sps:$4 sm:$0xff]  }
 0x1bd   :  { %3209 = vmatpush1.bf16.msra.mxu1 %v9493_v29  ;;  %3167 = vmatprep.subr.bf16.mxu0 %v9498_v30  ;;  %v9544_v29 = vld [vmem:[#allocation2 + $0x908] ss:$28 sps:$4 sm:$0xff]   ;;  %v9548_v30 = vld [vmem:[#allocation2 + $0x50] ss:$28 sps:$4 sm:$0xff]  }
 0x1be   :  { %3210 = vmatprep.subr.bf16.mxu1 %v9501_v7  ;;  %v9551_v7 = vld [vmem:[#allocation2 + $0x8d4] ss:$28 sps:$4 sm:$0xff]  }
 0x1c0   :  { %3168 = vmatpush1.bf16.msra.mxu0 %v9496_v50  ;;  %v9552_v50 = vld [vmem:[#allocation2 + $0x1d8] ss:$28 sps:$4 sm:$0xff]  }
 0x1c1   :  { %3211 = vmatpush1.bf16.msra.mxu1 %v9499_v31  ;;  %3169 = vmatprep.subr.bf16.mxu0 %v9504_v32  ;;  %v9549_v31 = vld [vmem:[#allocation2 + $0x8d0] ss:$28 sps:$4 sm:$0xff]   ;;  %v9553_v32 = vld [vmem:[#allocation2 + $0x18] ss:$28 sps:$4 sm:$0xff]  }
 0x1c2   :  { %3212 = vmatprep.subr.bf16.mxu1 %v9507_v33  ;;  %v9554_v33 = vld [vmem:[#allocation2 + $0x6e0] ss:$28 sps:$4 sm:$0xff]  }
 0x1c4   :  { %3170 = vmatpush1.bf16.msra.mxu0 %v9502_v37  ;;  %v9555_v37 = vld [vmem:[#allocation2 + $0xa60] ss:$28 sps:$4 sm:$0xff]  }
 0x1c5   :  { %3213 = vmatpush1.bf16.msra.mxu1 %v9505_v39  ;;  %3171 = vmatprep.subr.bf16.mxu0 %v9510_v40  ;;  %v9556_v39 = vld [vmem:[#allocation2 + $0x520] ss:$28 sps:$4 sm:$0xff]  }
 0x1c6   :  { %3214 = vmatprep.subr.bf16.mxu1 %v9513_v42  ;;  %v9557_v40 = vld [vmem:[#allocation2 + $0x8a0] ss:$28 sps:$4 sm:$0xff]   ;;  %v9558_v42 = vld [vmem:[#allocation2 + $0x6a8] ss:$28 sps:$4 sm:$0xff]  }
 0x1c8   :  { %3172 = vmatpush1.bf16.msra.mxu0 %v9508_v43  ;;  %v9559_v43 = vld [vmem:[#allocation2 + $0xa28] ss:$28 sps:$4 sm:$0xff]  }
 0x1c9   :  { %3215 = vmatpush1.bf16.msra.mxu1 %v9511_v44  ;;  %3173 = vmatprep.subr.bf16.mxu0 %v9516_v45  ;;  %v10139_v44 = vld [vmem:[%s10564_s0 + $0x10] ss:$28 sps:$4 sm:$0xff]   ;;  %v9560_v45 = vld [vmem:[#allocation2 + $0x4e8] ss:$28 sps:$4 sm:$0xff]  }
 0x1ca   :  { %8779 = vmatprep.subr.bf16.mxu1 %v9517_v46  ;;  %v9561_v46 = vld [vmem:[#allocation2 + $0x868] ss:$28 sps:$4 sm:$0xff]  }
 0x1cb   :  { %v2847_v59 = vpop.f32.mrf.mxu0 }
 0x1cc   :  { %3233 = vmatmul.mubr.bf16.vlgmr.msra.gmra.mxu1 %v10124_v49  ;;  %v2848_v41 = vadd.f32 %v2847_v59, %v10094_v38  ;;  %3174 = vmatpush2.bf16.msra.mxu0 %v9514_v48  ;;  %v9531_v38 = vld [vmem:[#allocation2 + $0x9b4] ss:$28 sps:$4 sm:$0xff]  }
 0x1cd   :  { %8780 = vmatpush3.bf16.msra.mxu1 %v9518_v51  ;;  %v10130_v62 = vpop.f32.mrf.mxu0  ;;  %3175 = vmatprep.subr.bf16.mxu0 %v9521_v55  ;;  %v9562_v48 = vld [vmem:[#allocation2 + $0x670] ss:$28 sps:$4 sm:$0xff]   ;;  %v9568_v59 = vld [vmem:[#allocation2 + $0x478] ss:$28 sps:$4 sm:$0xff]  }
 0x1ce   :  { %8781 = vmatprep.subr.bf16.mxu1 %v9522_v56  ;;  %v2891_v63 = vadd.f32 %v2890_v54, %v2848_v41  ;;  %3275 = vmatprep.mubr.bf16.mxu1 %v10076_v60  ;;  %v9563_v51 = vld [vmem:[#allocation2 + $0x9f0] ss:$28 sps:$4 sm:$0xff]   ;;  %v9569_v41 = vld [vmem:[#allocation2 + $0x7f8] ss:$28 sps:$4 sm:$0xff]  }
 0x1cf   :  { %v2851_v1 = vpop.f32.mrf.mxu0  ;;  %v9665_v54 = vld [vmem:[%s10564_s0 + $0xc] ss:$28 sps:$4 sm:$0xff]  }
 0x1d0   :  { %v2852_v2 = vadd.f32 %v2851_v1, %v10096_v47  ;;  %3176 = vmatpush2.bf16.msra.mxu0 %v9519_v57  ;;  %v3407_v16 = vmax.f32 %v2891_v63, 0.0  ;;  %v9534_v47 = vld [vmem:[#allocation2 + $0x978] ss:$28 sps:$4 sm:$0xff]   ;;  %v9564_v55 = vld [vmem:[#allocation2 + $0x4b0] ss:$28 sps:$4 sm:$0xff]  }
 0x1d1   :  { %8782 = vmatpush3.bf16.msra.mxu1 %v9523_v58  ;;  %3177 = vmatprep.subr.bf16.mxu0 %v9526_v12  ;;  %v9565_v56 = vld [vmem:[#allocation2 + $0x830] ss:$28 sps:$4 sm:$0xff]   ;;  %v9567_v57 = vld [vmem:[#allocation2 + $0x9b8] ss:$28 sps:$4 sm:$0xff]   ;;  %v646_v58 = vsub.s32 1, %v10082_v9 }
 0x1d2   :  { %8783 = vmatprep.subr.bf16.mxu1 %v9527_v4  ;;  %v2895_v6 = vadd.f32 %v2894_v5, %v2852_v2  ;;  %v9570_v12 = vld [vmem:[#allocation2 + $0x600] ss:$28 sps:$4 sm:$0xff]   ;;  %v9574_v1 = vld [vmem:[#allocation2 + $0x5c8] ss:$28 sps:$4 sm:$0xff]  }
 0x1d3   :  { %v9571_v4 = vld [vmem:[#allocation2 + $0x980] ss:$28 sps:$4 sm:$0xff]   ;;  %v9575_v2 = vld [vmem:[#allocation2 + $0x948] ss:$28 sps:$4 sm:$0xff]  }
 0x1d4   :  { %v3414_v17 = vmax.f32 %v2895_v6, 0.0  ;;  %3178 = vmatpush2.bf16.msra.mxu0 %v9524_v0  ;;  %v9572_v63 = vld [vmem:[#allocation2 + $0x440] ss:$28 sps:$4 sm:$0xff]   ;;  %v9576_v5 = vld [vmem:[#allocation2 + $0x408] ss:$28 sps:$4 sm:$0xff]  }
 0x1d5   :  { %8784 = vmatpush3.bf16.msra.mxu1 %v9528_v35  ;;  %3179 = vmatprep.subr.bf16.mxu0 %v9531_v38  ;;  %v9573_v0 = vld [vmem:[#allocation2 + $0x7c0] ss:$28 sps:$4 sm:$0xff]   ;;  %v9577_v6 = vld [vmem:[#allocation2 + $0x788] ss:$28 sps:$4 sm:$0xff]  }
 0x1d6   :  { %8785 = vmatprep.subr.bf16.mxu1 %v9532_v3  ;;  %v10134_v60 = vpack.c.bf16 %v3414_v17, %v3407_v16  ;;  %v2853_v3 = vpop.f32.mrf.mxu0  ;;  %v9580_v16 = vld [vmem:[#allocation2 + $0x3d0] ss:$28 sps:$4 sm:$0xff]  }
 0x1d7   :  { %v9581_v17 = vld [vmem:[#allocation2 + $0x750] ss:$28 sps:$4 sm:$0xff]  }
 0x1d8   :  { %3180 = vmatpush2.bf16.msra.mxu0 %v9529_v11 }
 0x1d9   :  { %8786 = vmatpush3.bf16.msra.mxu1 %v9533_v13  ;;  %3181 = vmatprep.subr.bf16.mxu0 %v9536_v15  ;;  %v9579_v13 = vld [vmem:[#allocation2 + $0x910] ss:$28 sps:$4 sm:$0xff]  }
 0x1da   :  { %8787 = vmatprep.subr.bf16.mxu1 %v9537_v18  ;;  %v9582_v18 = vld [vmem:[#allocation2 + $0x558] ss:$28 sps:$4 sm:$0xff]  }
 0x1dc   :  { %3182 = vmatpush2.bf16.msra.mxu0 %v9534_v47  ;;  %v9583_v47 = vld [vmem:[#allocation2 + $0x8d8] ss:$28 sps:$4 sm:$0xff]  }
 0x1dd   :  { %8788 = vmatpush3.bf16.msra.mxu1 %v9538_v20  ;;  %3183 = vmatprep.subr.bf16.mxu0 %v9541_v23  ;;  %v2896_v20 = vpop.f32.mrf.mxu1  ;;  %v3484_v23 = vld [vmem:[#allocation6 + $0x1c0] sm:$0xff] }
 0x1de   :  { %8789 = vmatprep.subr.bf16.mxu1 %v9542_v24 }
 0x1e0   :  { %3184 = vmatpush2.bf16.msra.mxu0 %v9539_v25  ;;  %v9584_v25 = vld [vmem:[#allocation2 + $0x398] ss:$28 sps:$4 sm:$0xff]  }
 0x1e1   :  { %8790 = vmatpush3.bf16.msra.mxu1 %v9543_v26  ;;  %3185 = vmatprep.subr.bf16.mxu0 %v9546_v27  ;;  %v9585_v26 = vld [vmem:[#allocation2 + $0x718] ss:$28 sps:$4 sm:$0xff]  }
 0x1e2   :  { %8791 = vmatprep.subr.bf16.mxu1 %v9547_v28 }
 0x1e4   :  { %3186 = vmatpush2.bf16.msra.mxu0 %v9544_v29  ;;  %v3476_v29 = vld [vmem:[#allocation6 + $0x180] sm:$0xff] }
 0x1e5   :  { %8792 = vmatpush3.bf16.msra.mxu1 %v9548_v30  ;;  %3187 = vmatprep.subr.bf16.mxu0 %v9551_v7  ;;  %v9586_v7 = vld [vmem:[#allocation2 + $0xc20] ss:$28 sps:$4 sm:$0xff]  }
 0x1e6   :  { %8793 = vmatprep.subr.bf16.mxu1 %v9552_v50 }
 0x1e8   :  { %3188 = vmatpush2.bf16.msra.mxu0 %v9549_v31  ;;  %v9917_v31 = vmov 0.0  }
 0x1e9   :  { %8794 = vmatpush3.bf16.msra.mxu1 %v9553_v32  ;;  %8801 = vmatprep.subr.bf16.mxu0 %v9554_v33  ;;  %v3468_v33 = vld [vmem:[#allocation6 + $0x140] sm:$0xff] }
 0x1ea   :  { %8823 = vmatprep.subr.bf16.mxu1 %v9555_v37  ;;  %v3472_v37 = vld [vmem:[#allocation6 + $0x160] sm:$0xff] }
 0x1eb   :  { %3190 = vmatmul.mubr.bf16.vlgmr.msra.gmra.mxu0 %v10139_v44 }
 0x1ec   :  { %3276 = vmatmul.mubr.bf16.vlgmr.msra.gmra.mxu1 %v10101_v8  ;;  %8802 = vmatpush3.bf16.msra.mxu0 %v9556_v39  ;;  %v9566_v8 = vld [vmem:[#allocation2 + $0x638] ss:$28 sps:$4 sm:$0xff]  }
 0x1ed   :  { %8824 = vmatpush3.bf16.msra.mxu1 %v9557_v40  ;;  %8803 = vmatprep.subr.bf16.mxu0 %v9558_v42  ;;  %v9587_v40 = vld [vmem:[#allocation2 + $0xbe8] ss:$28 sps:$4 sm:$0xff]   ;;  %v8295_v42 = vcombine.high %v3468_v33, %v3472_v37 }
 0x1ee   :  { %8825 = vmatprep.subr.bf16.mxu1 %v9559_v43  ;;  %3316 = vmatprep.mubr.bf16.mxu0 %v9665_v54  ;;  %v3460_v43 = vld [vmem:[#allocation6 + $0x100] sm:$0xff] }
 0x1ef   :  { %3357 = vmatprep.mubr.bf16.mxu1 %v10114_v19  ;;  %v647_v19 = vrot.slane %v10084_v21, %v646_v58  ;;  %v9578_v21 = vld [vmem:[#allocation2 + $0x590] ss:$28 sps:$4 sm:$0xff]  }
 0x1f0   :  { %8804 = vmatpush3.bf16.msra.mxu0 %v9560_v45  ;;  %v3464_v45 = vld [vmem:[#allocation6 + $0x120] sm:$0xff] }
 0x1f1   :  { %8826 = vmatpush3.bf16.msra.mxu1 %v9561_v46  ;;  %8805 = vmatprep.subr.bf16.mxu0 %v9562_v48  ;;  %v2768_v35 = vadd.f32 %v10119_v53, %v647_v19  ;;  %v2764_v38 = vadd.f32 %v10090_v34, %v647_v19  ;;  %v9588_v46 = vld [vmem:[#allocation2 + $0xbb0] ss:$28 sps:$4 sm:$0xff]   ;;  %v8286_v54 = vcombine.low %v3460_v43, %v3464_v45 }
 0x1f2   :  { %8827 = vmatprep.subr.bf16.mxu1 %v9563_v51  ;;  %v3452_v48 = vld [vmem:[#allocation6 + $0xc0] sm:$0xff] }
 0x1f3   :  { %v2811_v11 = vadd.f32 %v10117_v52, %v2768_v35  ;;  %v2807_v15 = vadd.f32 %v10092_v36, %v2764_v38  ;;  %v3488_v52 = vld [vmem:[#allocation6 + $0x1e0] sm:$0xff]  ;;  %v10168_v35 = vpop.f32.mrf.mxu1 }
 0x1f4   :  { %8806 = vmatpush3.bf16.msra.mxu0 %v9564_v55  ;;  %v8311_v27 = vcombine.high %v3484_v23, %v3488_v52  ;;  %v8310_v30 = vcombine.low %v3484_v23, %v3488_v52  ;;  %v3456_v51 = vld [vmem:[#allocation6 + $0xe0] sm:$0xff]  ;;  %v9589_v55 = vld [vmem:[#allocation2 + $0xb78] ss:$28 sps:$4 sm:$0xff]  }
 0x1f5   :  { %8828 = vmatpush3.bf16.msra.mxu1 %v9565_v56  ;;  %8807 = vmatprep.subr.bf16.mxu0 %v9566_v8  ;;  %v2854_v53 = vadd.f32 %v2853_v3, %v2811_v11  ;;  %v2850_v34 = vadd.f32 %v10130_v62, %v2807_v15  ;;  %v3480_v62 = vld [vmem:[#allocation6 + $0x1a0] sm:$0xff]  ;;  %v8279_v56 = vcombine.high %v3452_v48, %v3456_v51  ;;  %v2935_v11 = vpop.f32.mrf.mxu1 }
 0x1f6   :  { %8829 = vmatprep.subr.bf16.mxu1 %v9567_v57  ;;  %v8303_v32 = vcombine.high %v3476_v29, %v3480_v62  ;;  %v3444_v8 = vld [vmem:[#allocation6 + $0x80] sm:$0xff] }
 0x1f7   :  { %v2897_v24 = vadd.f32 %v2896_v20, %v2854_v53  ;;  %v2893_v36 = vadd.f32 %v10128_v61, %v2850_v34  ;;  %v8302_v61 = vcombine.low %v3476_v29, %v3480_v62  ;;  %v3448_v57 = vld [vmem:[#allocation6 + $0xa0] sm:$0xff]  ;;  %v654_v53 = vsub.s32 3, %v10082_v9  ;;  %v10175_v20 = vpop.f32.mrf.mxu1 }
 0x1f8   :  { %8808 = vmatpush3.bf16.msra.mxu0 %v9568_v59  ;;  %v8278_v59 = vcombine.low %v3452_v48, %v3456_v51  ;;  %v3440_v19 = vld [vmem:[#allocation6 + $0x60] sm:$0xff] }
 0x1f9   :  { %8830 = vmatpush3.bf16.msra.mxu1 %v9569_v41  ;;  %8809 = vmatprep.subr.bf16.mxu0 %v9570_v12  ;;  %v3415_v28 = vmax.f32 %v2897_v24, 0.0  ;;  %v3408_v50 = vmax.f32 %v2893_v36, 0.0  ;;  %v9590_v41 = vld [vmem:[#allocation2 + $0xb40] ss:$28 sps:$4 sm:$0xff]   ;;  %v8271_v12 = vcombine.high %v3444_v8, %v3448_v57  ;;  %v3428_v38 = vld [vmem:[#allocation6] sm:$0xff] }
 0x1fa   :  { %8831 = vmatprep.subr.bf16.mxu1 %v9571_v4  ;;  %v3436_v4 = vld [vmem:[#allocation6 + $0x40] sm:$0xff] }
 0x1fb   :  { %v10158_v39 = vpack.c.bf16 %v3415_v28, %v3408_v50  ;;  %v3432_v3 = vld [vmem:[#allocation6 + $0x20] sm:$0xff] }
 0x1fc   :  { %8810 = vmatpush3.bf16.msra.mxu0 %v9572_v63  ;;  %v8270_v63 = vcombine.low %v3444_v8, %v3448_v57  ;;  %v3548_v15 = vld [vmem:[#allocation6 + $0x3c0] sm:$0xff] }
 0x1fd   :  { %8832 = vmatpush3.bf16.msra.mxu1 %v9573_v0  ;;  %8811 = vmatprep.subr.bf16.mxu0 %v9574_v1  ;;  %v9591_v0 = vld [vmem:[#allocation2 + $0xb08] ss:$28 sps:$4 sm:$0xff]  }
 0x1fe   :  { %8833 = vmatprep.subr.bf16.mxu1 %v9575_v2  ;;  %v8263_v2 = vcombine.high %v3436_v4, %v3440_v19  ;;  %v3616_v34 = vld [vmem:[#allocation6 + $0x5e0] sm:$0xff] }
 0x1ff   :  { %v3604_v28 = vld [vmem:[#allocation6 + $0x580] sm:$0xff] }
 0x200   :  { %8812 = vmatpush3.bf16.msra.mxu0 %v9576_v5  ;;  %v8262_v5 = vcombine.low %v3436_v4, %v3440_v19  ;;  %v3608_v29 = vld [vmem:[#allocation6 + $0x5a0] sm:$0xff] }
 0x201   :  { %8834 = vmatpush3.bf16.msra.mxu1 %v9577_v6  ;;  %8813 = vmatprep.subr.bf16.mxu0 %v9578_v21  ;;  %v9592_v6 = vld [vmem:[#allocation2 + $0xad0] ss:$28 sps:$4 sm:$0xff]  }
 0x202   :  { %8835 = vmatprep.subr.bf16.mxu1 %v9579_v13  ;;  %v8255_v13 = vcombine.high %v3428_v38, %v3432_v3 }
 0x204   :  { %8814 = vmatpush3.bf16.msra.mxu0 %v9580_v16  ;;  %v3552_v16 = vld [vmem:[#allocation6 + $0x3e0] sm:$0xff] }
 0x205   :  { %8836 = vmatpush3.bf16.msra.mxu1 %v9581_v17  ;;  %8815 = vmatprep.subr.bf16.mxu0 %v9582_v18  ;;  %v3612_v17 = vld [vmem:[#allocation6 + $0x5c0] sm:$0xff]  ;;  %v8254_v18 = vcombine.low %v3428_v38, %v3432_v3  ;;  %v8375_v52 = vcombine.high %v3548_v15, %v3552_v16  ;;  %v8374_v62 = vcombine.low %v3548_v15, %v3552_v16 }
 0x206   :  { %8837 = vmatprep.subr.bf16.mxu1 %v9583_v47  ;;  %v9593_v47 = vld [vmem:[#allocation2 + $0xa98] ss:$28 sps:$4 sm:$0xff]   ;;  %v8439_v24 = vcombine.high %v3612_v17, %v3616_v34  ;;  %v3584_v15 = vld [vmem:[#allocation6 + $0x4e0] sm:$0xff] }
 0x208   :  { %8816 = vmatpush3.bf16.msra.mxu0 %v9584_v25  ;;  %v3540_v25 = vld [vmem:[#allocation6 + $0x380] sm:$0xff] }
 0x209   :  { %8838 = vmatpush3.bf16.msra.mxu1 %v9585_v26  ;;  %8957 = vmatprep.subr.bf16.mxu0 %v9917_v31  ;;  %v10180_v26 = vld [vmem:[#allocation4] sm:$0xff] }
 0x20a   :  { %6158 = vmatprep.subr.bf16.mxu1 %v8311_v27  ;;  %v655_v36 = vrot.slane %v10180_v26, %v654_v53  ;;  %v3544_v27 = vld [vmem:[#allocation6 + $0x3a0] sm:$0xff] }
 0x20b   :  { %3317 = vmatmul.mubr.bf16.vlgmr.msra.gmra.mxu0 %v10107_v10  ;;  %v8294_v10 = vcombine.low %v3468_v33, %v3472_v37  ;;  %v10170_v1 = vpop.f32.mrf.mxu0  ;;  %v3532_v33 = vld [vmem:[#allocation6 + $0x340] sm:$0xff] }
 0x20c   :  { %3358 = vmatmul.mubr.bf16.vlgmr.msra.gmra.mxu1 %v10139_v44  ;;  %8958 = vmatpush3.bf16.msra.mxu0 %v9586_v7  ;;  %v8287_v44 = vcombine.high %v3460_v43, %v3464_v45  ;;  %v2939_v7 = vpop.f32.mrf.mxu1  ;;  %v2936_v37 = vadd.f32 %v2935_v11, %v655_v36 }
 0x20d   :  { %6159 = vmatpush1.bf16.msra.mxu1 %v8310_v30  ;;  %6190 = vmatprep.mubr.bf16.mxu1 %v10158_v39  ;;  %v2978_v21 = vpop.f32.mrf.mxu0  ;;  %v8438_v30 = vcombine.low %v3612_v17, %v3616_v34  ;;  %v2940_v8 = vadd.f32 %v2939_v7, %v655_v36 }
 0x20e   :  { %8959 = vmatprep.subr.bf16.mxu0 %v9917_v31  ;;  %6160 = vmatprep.subr.bf16.mxu1 %v8303_v32  ;;  %v8431_v32 = vcombine.high %v3604_v28, %v3608_v29 }
 0x20f   :  { %8973 = vmatprep.mubr.msk.bf16.mxu0 %vm9918_vm0, %v9917_v31  ;;  %v10177_v23 = vpop.f32.mrf.mxu0 }
 0x210   :  { %8960 = vmatpush3.bf16.msra.mxu0 %v9587_v40  ;;  %v3596_v40 = vld [vmem:[#allocation6 + $0x540] sm:$0xff] }
 0x211   :  { %6161 = vmatpush1.bf16.msra.mxu1 %v8302_v61  ;;  %8961 = vmatprep.subr.bf16.mxu0 %v9917_v31  ;;  %v2982_v50 = vpop.f32.mrf.mxu0  ;;  %v3536_v61 = vld [vmem:[#allocation6 + $0x360] sm:$0xff] }
 0x212   :  { %6162 = vmatprep.subr.bf16.mxu1 %v8295_v42  ;;  %v3600_v42 = vld [vmem:[#allocation6 + $0x560] sm:$0xff]  ;;  %v2983_v19 = vadd.f32 %v2982_v50, %v2940_v8 }
 0x214   :  { %8962 = vmatpush3.bf16.msra.mxu0 %v9588_v46  ;;  %v8366_v46 = vcombine.low %v3540_v25, %v3544_v27 }
 0x215   :  { %6163 = vmatpush1.bf16.msra.mxu1 %v8294_v10  ;;  %8963 = vmatprep.subr.bf16.mxu0 %v9917_v31  ;;  %v2979_v10 = vadd.f32 %v2978_v21, %v2936_v37  ;;  %v3520_v21 = vld [vmem:[#allocation6 + $0x2e0] sm:$0xff] }
 0x216   :  { %6164 = vmatprep.subr.bf16.mxu1 %v8287_v44  ;;  %v8430_v44 = vcombine.low %v3604_v28, %v3608_v29  ;;  %v3572_v28 = vld [vmem:[#allocation6 + $0x480] sm:$0xff] }
 0x217   :  { %v3576_v29 = vld [vmem:[#allocation6 + $0x4a0] sm:$0xff] }
 0x218   :  { %8964 = vmatpush3.bf16.msra.mxu0 %v9589_v55  ;;  %v8423_v55 = vcombine.high %v3596_v40, %v3600_v42  ;;  %v3564_v37 = vld [vmem:[#allocation6 + $0x440] sm:$0xff] }
 0x219   :  { %6165 = vmatpush1.bf16.msra.mxu1 %v8286_v54  ;;  %8965 = vmatprep.subr.bf16.mxu0 %v9917_v31  ;;  %v8359_v54 = vcombine.high %v3532_v33, %v3536_v61 }
 0x21a   :  { %6166 = vmatprep.subr.bf16.mxu1 %v8279_v56  ;;  %v3524_v56 = vld [vmem:[#allocation6 + $0x300] sm:$0xff] }
 0x21c   :  { %8966 = vmatpush3.bf16.msra.mxu0 %v9590_v41  ;;  %v3588_v41 = vld [vmem:[#allocation6 + $0x500] sm:$0xff] }
 0x21d   :  { %6167 = vmatpush1.bf16.msra.mxu1 %v8278_v59  ;;  %8967 = vmatprep.subr.bf16.mxu0 %v9917_v31  ;;  %v3528_v59 = vld [vmem:[#allocation6 + $0x320] sm:$0xff] }
 0x21e   :  { %6168 = vmatprep.subr.bf16.mxu1 %v8271_v12  ;;  %v3592_v12 = vld [vmem:[#allocation6 + $0x520] sm:$0xff]  ;;  %v8351_v38 = vcombine.high %v3524_v56, %v3528_v59  ;;  %v8350_v34 = vcombine.low %v3524_v56, %v3528_v59 }
 0x21f   :  { %v8415_v3 = vcombine.high %v3588_v41, %v3592_v12  ;;  %v3676_v59 = vld [vmem:[#allocation6 + $0x7c0] sm:$0xff] }
 0x220   :  { %8968 = vmatpush3.bf16.msra.mxu0 %v9591_v0  ;;  %v8422_v0 = vcombine.low %v3596_v40, %v3600_v42  ;;  %v8398_v42 = vcombine.low %v3572_v28, %v3576_v29 }
 0x221   :  { %6169 = vmatpush1.bf16.msra.mxu1 %v8270_v63  ;;  %8969 = vmatprep.subr.bf16.mxu0 %v9917_v31  ;;  %v8358_v63 = vcombine.low %v3532_v33, %v3536_v61  ;;  %v3504_v33 = vld [vmem:[#allocation6 + $0x260] sm:$0xff] }
 0x222   :  { %6170 = vmatprep.subr.bf16.mxu1 %v8263_v2  ;;  %v3568_v61 = vld [vmem:[#allocation6 + $0x460] sm:$0xff] }
 0x223   :  { %v8390_v56 = vcombine.low %v3564_v37, %v3568_v61 }
 0x224   :  { %8970 = vmatpush3.bf16.msra.mxu0 %v9592_v6 }
 0x225   :  { %6171 = vmatpush1.bf16.msra.mxu1 %v8262_v5  ;;  %8971 = vmatprep.subr.bf16.mxu0 %v9917_v31  ;;  %v8367_v31 = vcombine.high %v3540_v25, %v3544_v27  ;;  %v3516_v5 = vld [vmem:[#allocation6 + $0x2c0] sm:$0xff] }
 0x226   :  { %6172 = vmatprep.subr.bf16.mxu1 %v8255_v13  ;;  %v3580_v13 = vld [vmem:[#allocation6 + $0x4c0] sm:$0xff] }
 0x227   :  { %v3512_v27 = vld [vmem:[#allocation6 + $0x2a0] sm:$0xff]  ;;  %v8406_v7 = vcombine.low %v3580_v13, %v3584_v15 }
 0x228   :  { %8972 = vmatpush3.bf16.msra.mxu0 %v9593_v47  ;;  %v8343_v47 = vcombine.high %v3516_v5, %v3520_v21 }
 0x229   :  { %6173 = vmatpush1.bf16.msra.mxu1 %v8254_v18  ;;  %6201 = vmatprep.subr.bf16.mxu0 %v8439_v24  ;;  %v8414_v18 = vcombine.low %v3588_v41, %v3592_v12  ;;  %v3508_v24 = vld [vmem:[#allocation6 + $0x280] sm:$0xff] }
 0x22a   :  { %6174 = vmatprep.subr.bf16.mxu1 %v8375_v52  ;;  %v8407_v52 = vcombine.high %v3580_v13, %v3584_v15  ;;  %v8335_v50 = vcombine.high %v3508_v24, %v3512_v27  ;;  %v8334_v40 = vcombine.low %v3508_v24, %v3512_v27  ;;  %v3680_v41 = vld [vmem:[#allocation6 + $0x7e0] sm:$0xff] }
 0x22b   :  { %v10187_v45 = vpop.f32.mrf.mxu0  ;;  %8974 = vmatmul.mubr.bf16.vlgmr.msra.gmra.mxu0 %v10124_v49  ;;  %v3740_v12 = vld [vmem:[#allocation6 + $0x9c0] sm:$0xff] }
 0x22c   :  { %v10185_v43 = vpop.f32.mrf.mxu1  ;;  %6202 = vmatpush1.bf16.msra.mxu0 %v8438_v30  ;;  %v8342_v30 = vcombine.low %v3516_v5, %v3520_v21  ;;  %v3672_v5 = vld [vmem:[#allocation6 + $0x7a0] sm:$0xff]  ;;  %v8502_v21 = vcombine.low %v3676_v59, %v3680_v41 }
 0x22d   :  { %6175 = vmatpush2.bf16.msra.mxu1 %v8374_v62  ;;  %v3064_v51 = vpop.f32.mrf.mxu0  ;;  %6203 = vmatprep.subr.bf16.mxu0 %v8431_v32  ;;  %v3500_v32 = vld [vmem:[#allocation6 + $0x240] sm:$0xff] }
 0x22e   :  { %v3021_v48 = vpop.f32.mrf.mxu1  ;;  %6176 = vmatprep.subr.bf16.mxu1 %v8367_v31  ;;  %v8399_v31 = vcombine.high %v3572_v28, %v3576_v29  ;;  %v3656_v28 = vld [vmem:[#allocation6 + $0x720] sm:$0xff] }
 0x22f   :  { %v3022_v57 = vadd.f32 %v3021_v48, %v2979_v10  ;;  %v10192_v49 = vpop.f32.mrf.mxu0  ;;  %v8327_v10 = vcombine.high %v3500_v32, %v3504_v33  ;;  %v3496_v48 = vld [vmem:[#allocation6 + $0x220] sm:$0xff] }
 0x230   :  { %v10190_v4 = vpop.f32.mrf.mxu1  ;;  %6204 = vmatpush1.bf16.msra.mxu0 %v8430_v44  ;;  %v3492_v44 = vld [vmem:[#allocation6 + $0x200] sm:$0xff] }
 0x231   :  { %6177 = vmatpush2.bf16.msra.mxu1 %v8366_v46  ;;  %6205 = vmatprep.subr.bf16.mxu0 %v8423_v55  ;;  %v3065_v6 = vadd.f32 %v3064_v51, %v3022_v57  ;;  %v3068_v16 = vpop.f32.mrf.mxu0  ;;  %v8391_v46 = vcombine.high %v3564_v37, %v3568_v61  ;;  %v3556_v51 = vld [vmem:[#allocation6 + $0x400] sm:$0xff]  ;;  %v8326_v55 = vcombine.low %v3500_v32, %v3504_v33 }
 0x232   :  { %v3025_v2 = vpop.f32.mrf.mxu1  ;;  %6178 = vmatprep.subr.bf16.mxu1 %v8359_v54  ;;  %v3560_v54 = vld [vmem:[#allocation6 + $0x420] sm:$0xff]  ;;  %v8319_v8 = vcombine.high %v3492_v44, %v3496_v48 }
 0x233   :  { %v3026_v11 = vadd.f32 %v3025_v2, %v2983_v19  ;;  %v3410_v25 = vmax.f32 %v3065_v6, 0.0  ;;  %v8383_v57 = vcombine.high %v3556_v51, %v3560_v54  ;;  %v3744_v19 = vld [vmem:[#allocation6 + $0x9e0] sm:$0xff]  ;;  %v8503_v2 = vcombine.high %v3676_v59, %v3680_v41 }
 0x234   :  { %6206 = vmatpush1.bf16.msra.mxu0 %v8422_v0  ;;  %v8382_v0 = vcombine.low %v3556_v51, %v3560_v54  ;;  %v3732_v6 = vld [vmem:[#allocation6 + $0x980] sm:$0xff]  ;;  %v8566_v13 = vcombine.low %v3740_v12, %v3744_v19 }
 0x235   :  { %v3069_v17 = vadd.f32 %v3068_v16, %v3026_v11  ;;  %6179 = vmatpush2.bf16.msra.mxu1 %v8358_v63  ;;  %6207 = vmatprep.subr.bf16.mxu0 %v8415_v3  ;;  %v8318_v63 = vcombine.low %v3492_v44, %v3496_v48  ;;  %v8567_v3 = vcombine.high %v3740_v12, %v3744_v19  ;;  %v3736_v11 = vld [vmem:[#allocation6 + $0x9a0] sm:$0xff] }
 0x236   :  { %6180 = vmatprep.subr.bf16.mxu1 %v8351_v38  ;;  %v3668_v38 = vld [vmem:[#allocation6 + $0x780] sm:$0xff]  ;;  %v8558_v24 = vcombine.low %v3732_v6, %v3736_v11 }
 0x237   :  { %v3417_v36 = vmax.f32 %v3069_v17, 0.0  ;;  %v8495_v15 = vcombine.high %v3668_v38, %v3672_v5  ;;  %v3660_v16 = vld [vmem:[#allocation6 + $0x740] sm:$0xff]  ;;  %v8559_v17 = vcombine.high %v3732_v6, %v3736_v11 }
 0x238   :  { %6208 = vmatpush1.bf16.msra.mxu0 %v8414_v18  ;;  %v3724_v18 = vld [vmem:[#allocation6 + $0x940] sm:$0xff] }
 0x239   :  { %v10194_v62 = vpack.c.bf16 %v3417_v36, %v3410_v25  ;;  %6181 = vmatpush2.bf16.msra.mxu1 %v8350_v34  ;;  %6209 = vmatprep.subr.bf16.mxu0 %v8407_v52  ;;  %v3664_v34 = vld [vmem:[#allocation6 + $0x760] sm:$0xff]  ;;  %v8494_v52 = vcombine.low %v3668_v38, %v3672_v5 }
 0x23a   :  { %6182 = vmatprep.subr.bf16.mxu1 %v8343_v47  ;;  %v3728_v47 = vld [vmem:[#allocation6 + $0x960] sm:$0xff]  ;;  %v8487_v25 = vcombine.high %v3660_v16, %v3664_v34 }
 0x23b   :  { %6233 = vmatprep.mubr.bf16.mxu0 %v10194_v62  ;;  %v3652_v36 = vld [vmem:[#allocation6 + $0x700] sm:$0xff]  ;;  %v8551_v27 = vcombine.high %v3724_v18, %v3728_v47 }
 0x23c   :  { %6210 = vmatpush1.bf16.msra.mxu0 %v8406_v7  ;;  %v3716_v29 = vld [vmem:[#allocation6 + $0x900] sm:$0xff]  ;;  %v8486_v7 = vcombine.low %v3660_v16, %v3664_v34  ;;  %v8479_v32 = vcombine.high %v3652_v36, %v3656_v28 }
 0x23d   :  { %6183 = vmatpush2.bf16.msra.mxu1 %v8342_v30  ;;  %6211 = vmatprep.subr.bf16.mxu0 %v8399_v31  ;;  %v3720_v30 = vld [vmem:[#allocation6 + $0x920] sm:$0xff]  ;;  %v650_v31 = vsub.s32 2, %v10082_v9 }
 0x23e   :  { %6184 = vmatprep.subr.bf16.mxu1 %v8335_v50  ;;  %v8550_v50 = vcombine.low %v3724_v18, %v3728_v47  ;;  %v3644_v33 = vld [vmem:[#allocation6 + $0x6c0] sm:$0xff]  ;;  %v8543_v37 = vcombine.high %v3716_v29, %v3720_v30 }
 0x23f   :  { %v3648_v61 = vld [vmem:[#allocation6 + $0x6e0] sm:$0xff]  ;;  %v651_v44 = vrot.slane %v10180_v26, %v650_v31 }
 0x240   :  { %6212 = vmatpush1.bf16.msra.mxu0 %v8398_v42  ;;  %v3712_v42 = vld [vmem:[#allocation6 + $0x8e0] sm:$0xff]  ;;  %v8471_v48 = vcombine.high %v3644_v33, %v3648_v61 }
 0x241   :  { %6185 = vmatpush2.bf16.msra.mxu1 %v8334_v40  ;;  %6213 = vmatprep.subr.bf16.mxu0 %v8391_v46  ;;  %v3708_v40 = vld [vmem:[#allocation6 + $0x8c0] sm:$0xff]  ;;  %v8542_v46 = vcombine.low %v3716_v29, %v3720_v30  ;;  %v2938_v41 = vadd.f32 %v10175_v20, %v651_v44 }
 0x242   :  { %6186 = vmatprep.subr.bf16.mxu1 %v8327_v10  ;;  %v8478_v10 = vcombine.low %v3652_v36, %v3656_v28  ;;  %v3636_v51 = vld [vmem:[#allocation6 + $0x680] sm:$0xff]  ;;  %v8535_v54 = vcombine.high %v3708_v40, %v3712_v42  ;;  %v8534_v59 = vcombine.low %v3708_v40, %v3712_v42 }
 0x243   :  { %v3628_v19 = vld [vmem:[#allocation6 + $0x640] sm:$0xff]  ;;  %v2981_v5 = vadd.f32 %v10177_v23, %v2938_v41 }
 0x244   :  { %6214 = vmatpush1.bf16.msra.mxu0 %v8390_v56  ;;  %v3700_v56 = vld [vmem:[#allocation6 + $0x880] sm:$0xff] }
 0x245   :  { %6187 = vmatpush2.bf16.msra.mxu1 %v8326_v55  ;;  %6215 = vmatprep.subr.bf16.mxu0 %v8383_v57  ;;  %v3640_v55 = vld [vmem:[#allocation6 + $0x6a0] sm:$0xff]  ;;  %v8470_v57 = vcombine.low %v3644_v33, %v3648_v61  ;;  %v3024_v20 = vadd.f32 %v10190_v4, %v2981_v5 }
 0x246   :  { %6188 = vmatprep.subr.bf16.mxu1 %v8319_v8  ;;  %v3704_v8 = vld [vmem:[#allocation6 + $0x8a0] sm:$0xff]  ;;  %v8463_v12 = vcombine.high %v3636_v51, %v3640_v55  ;;  %v8462_v6 = vcombine.low %v3636_v51, %v3640_v55 }
 0x247   :  { %v3696_v38 = vld [vmem:[#allocation6 + $0x860] sm:$0xff] }
 0x248   :  { %6216 = vmatpush1.bf16.msra.mxu0 %v8382_v0  ;;  %v8527_v0 = vcombine.high %v3700_v56, %v3704_v8  ;;  %v3684_v34 = vld [vmem:[#allocation6 + $0x800] sm:$0xff] }
 0x249   :  { %6189 = vmatpush2.bf16.msra.mxu1 %v8318_v63  ;;  %6217 = vmatprep.subr.bf16.mxu0 %v8503_v2  ;;  %v3632_v63 = vld [vmem:[#allocation6 + $0x660] sm:$0xff] }
 0x24a   :  { %6244 = vmatprep.subr.bf16.mxu1 %v8567_v3  ;;  %v3692_v2 = vld [vmem:[#allocation6 + $0x840] sm:$0xff]  ;;  %v2934_v3 = vadd.f32 %v10168_v35, %v651_v44  ;;  %v8455_v11 = vcombine.high %v3628_v19, %v3632_v63  ;;  %v8454_v23 = vcombine.low %v3628_v19, %v3632_v63 }
 0x24b   :  { %v8519_v16 = vcombine.high %v3692_v2, %v3696_v38  ;;  %v3688_v18 = vld [vmem:[#allocation6 + $0x820] sm:$0xff]  ;;  %v8518_v47 = vcombine.low %v3692_v2, %v3696_v38 }
 0x24c   :  { %6191 = vmatmul.mubr.bf16.vlgmr.msra.gmra.mxu1 %v10134_v60  ;;  %6218 = vmatpush2.bf16.msra.mxu0 %v8502_v21  ;;  %v8526_v21 = vcombine.low %v3700_v56, %v3704_v8  ;;  %v3804_v4 = vld [vmem:[#allocation6 + $0xbc0] sm:$0xff] }
 0x24d   :  { %6245 = vmatpush1.bf16.msra.mxu1 %v8566_v13  ;;  %6219 = vmatprep.subr.bf16.mxu0 %v8495_v15  ;;  %v2977_v13 = vadd.f32 %v10170_v1, %v2934_v3  ;;  %v3620_v15 = vld [vmem:[#allocation6 + $0x600] sm:$0xff]  ;;  %v8511_v1 = vcombine.high %v3684_v34, %v3688_v18 }
 0x24e   :  { %6246 = vmatprep.subr.bf16.mxu1 %v8559_v17  ;;  %v3624_v17 = vld [vmem:[#allocation6 + $0x620] sm:$0xff] }
 0x24f   :  { %v3020_v35 = vadd.f32 %v10185_v43, %v2977_v13  ;;  %v3868_v36 = vld [vmem:[#allocation6 + $0xdc0] sm:$0xff]  ;;  %v8446_v29 = vcombine.low %v3620_v15, %v3624_v17  ;;  %v8510_v43 = vcombine.low %v3684_v34, %v3688_v18  ;;  %v10216_v13 = vld [vmem:[#allocation6 + $0x1e8] sm:$0xff] }
 0x250   :  { %6220 = vmatpush2.bf16.msra.mxu0 %v8494_v52  ;;  %v3067_v52 = vadd.f32 %v10192_v49, %v3024_v20  ;;  %v3860_v33 = vld [vmem:[#allocation6 + $0xd80] sm:$0xff] }
 0x251   :  { %6247 = vmatpush1.bf16.msra.mxu1 %v8558_v24  ;;  %6221 = vmatprep.subr.bf16.mxu0 %v8487_v25  ;;  %v8447_v24 = vcombine.high %v3620_v15, %v3624_v17  ;;  %v3808_v25 = vld [vmem:[#allocation6 + $0xbe0] sm:$0xff]  ;;  %v3063_v28 = vadd.f32 %v10187_v45, %v3020_v35 }
 0x252   :  { %6248 = vmatprep.subr.bf16.mxu1 %v8551_v27  ;;  %v3872_v27 = vld [vmem:[#allocation6 + $0xde0] sm:$0xff]  ;;  %v3416_v30 = vmax.f32 %v3067_v52, 0.0  ;;  %v8630_v40 = vcombine.low %v3804_v4, %v3808_v25 }
 0x253   :  { %v8695_v49 = vcombine.high %v3868_v36, %v3872_v27  ;;  %v3409_v61 = vmax.f32 %v3063_v28, 0.0  ;;  %v8694_v42 = vcombine.low %v3868_v36, %v3872_v27  ;;  %v3852_v51 = vld [vmem:[#allocation6 + $0xd40] sm:$0xff] }
 0x254   :  { %6222 = vmatpush2.bf16.msra.mxu0 %v8486_v7  ;;  %v8631_v7 = vcombine.high %v3804_v4, %v3808_v25  ;;  %v3784_v41 = vld [vmem:[#allocation6 + $0xb20] sm:$0xff] }
 0x255   :  { %6249 = vmatpush1.bf16.msra.mxu1 %v8550_v50  ;;  %6223 = vmatprep.subr.bf16.mxu0 %v8479_v32  ;;  %v3796_v50 = vld [vmem:[#allocation6 + $0xb80] sm:$0xff] }
 0x256   :  { %6250 = vmatprep.subr.bf16.mxu1 %v8543_v37  ;;  %v3800_v32 = vld [vmem:[#allocation6 + $0xba0] sm:$0xff] }
 0x257   :  { %v3864_v37 = vld [vmem:[#allocation6 + $0xda0] sm:$0xff]  ;;  %v8623_v45 = vcombine.high %v3796_v50, %v3800_v32  ;;  %v8622_v55 = vcombine.low %v3796_v50, %v3800_v32 }
 0x258   :  { %6224 = vmatpush2.bf16.msra.mxu0 %v8478_v10  ;;  %v10210_v10 = vpack.c.bf16 %v3416_v30, %v3409_v61  ;;  %v8687_v44 = vcombine.high %v3860_v33, %v3864_v37  ;;  %v8686_v56 = vcombine.low %v3860_v33, %v3864_v37  ;;  %v3848_v19 = vld [vmem:[#allocation6 + $0xd20] sm:$0xff] }
 0x259   :  { %6251 = vmatpush1.bf16.msra.mxu1 %v8542_v46  ;;  %6225 = vmatprep.subr.bf16.mxu0 %v8471_v48  ;;  %v3788_v46 = vld [vmem:[#allocation6 + $0xb40] sm:$0xff] }
 0x25a   :  { %6252 = vmatprep.subr.bf16.mxu1 %v8535_v54  ;;  %v3792_v48 = vld [vmem:[#allocation6 + $0xb60] sm:$0xff] }
 0x25b   :  { %v3856_v54 = vld [vmem:[#allocation6 + $0xd60] sm:$0xff]  ;;  %v8615_v8 = vcombine.high %v3788_v46, %v3792_v48  ;;  %v8614_v63 = vcombine.low %v3788_v46, %v3792_v48  ;;  %v10222_v46 = vld [vmem:[#allocation6 + $0x5e8] sm:$0xff] }
 0x25c   :  { %6226 = vmatpush2.bf16.msra.mxu0 %v8470_v57  ;;  %v3780_v57 = vld [vmem:[#allocation6 + $0xb00] sm:$0xff] }
 0x25d   :  { %6253 = vmatpush1.bf16.msra.mxu1 %v8534_v59  ;;  %6227 = vmatprep.subr.bf16.mxu0 %v8463_v12  ;;  %v8679_v59 = vcombine.high %v3852_v51, %v3856_v54  ;;  %v3844_v12 = vld [vmem:[#allocation6 + $0xd00] sm:$0xff]  ;;  %v8607_v2 = vcombine.high %v3780_v57, %v3784_v41  ;;  %v8606_v20 = vcombine.low %v3780_v57, %v3784_v41  ;;  %v662_v57 = vsub.s32 5, %v10082_v9 }
 0x25e   :  { %6254 = vmatprep.subr.bf16.mxu1 %v8527_v0  ;;  %v8678_v0 = vcombine.low %v3852_v51, %v3856_v54  ;;  %v3772_v38 = vld [vmem:[#allocation6 + $0xac0] sm:$0xff]  ;;  %v8671_v3 = vcombine.high %v3844_v12, %v3848_v19  ;;  %v8670_v15 = vcombine.low %v3844_v12, %v3848_v19 }
 0x25f   :  { %v3776_v5 = vld [vmem:[#allocation6 + $0xae0] sm:$0xff]  ;;  %v663_v19 = vrot.slane %v10180_v26, %v662_v57 }
 0x260   :  { %6228 = vmatpush2.bf16.msra.mxu0 %v8462_v6  ;;  %v3836_v6 = vld [vmem:[#allocation6 + $0xcc0] sm:$0xff]  ;;  %v8599_v17 = vcombine.high %v3772_v38, %v3776_v5  ;;  %v8598_v52 = vcombine.low %v3772_v38, %v3776_v5 }
 0x261   :  { %6255 = vmatpush1.bf16.msra.mxu1 %v8526_v21  ;;  %6229 = vmatprep.subr.bf16.mxu0 %v8455_v11  ;;  %v3840_v11 = vld [vmem:[#allocation6 + $0xce0] sm:$0xff]  ;;  %v10214_v21 = vld [vmem:[#allocation6 + $0x1c8] sm:$0xff] }
 0x262   :  { %6256 = vmatprep.subr.bf16.mxu1 %v8519_v16  ;;  %v8312_v16 = vcombine.low %v10214_v21, %v10216_v13  ;;  %v3764_v34 = vld [vmem:[#allocation6 + $0xa80] sm:$0xff]  ;;  %v8663_v18 = vcombine.high %v3836_v6, %v3840_v11  ;;  %v8313_v54 = vcombine.high %v10214_v21, %v10216_v13 }
 0x263   :  { %v3768_v35 = vld [vmem:[#allocation6 + $0xaa0] sm:$0xff] }
 0x264   :  { %6230 = vmatpush2.bf16.msra.mxu0 %v8454_v23  ;;  %v3828_v23 = vld [vmem:[#allocation6 + $0xc80] sm:$0xff] }
 0x265   :  { %6257 = vmatpush1.bf16.msra.mxu1 %v8518_v47  ;;  %6231 = vmatprep.subr.bf16.mxu0 %v8447_v24  ;;  %v3832_v47 = vld [vmem:[#allocation6 + $0xca0] sm:$0xff]  ;;  %v8662_v24 = vcombine.low %v3836_v6, %v3840_v11 }
 0x266   :  { %6258 = vmatprep.subr.bf16.mxu1 %v8511_v1  ;;  %v8591_v1 = vcombine.high %v3764_v34, %v3768_v35  ;;  %v3756_v4 = vld [vmem:[#allocation6 + $0xa40] sm:$0xff]  ;;  %v8655_v25 = vcombine.high %v3828_v23, %v3832_v47 }
 0x267   :  { %v3760_v36 = vld [vmem:[#allocation6 + $0xa60] sm:$0xff] }
 0x268   :  { %6232 = vmatpush2.bf16.msra.mxu0 %v8446_v29  ;;  %v3820_v27 = vld [vmem:[#allocation6 + $0xc40] sm:$0xff]  ;;  %v8590_v29 = vcombine.low %v3764_v34, %v3768_v35  ;;  %v8583_v30 = vcombine.high %v3756_v4, %v3760_v36  ;;  %v8582_v37 = vcombine.low %v3756_v4, %v3760_v36 }
 0x269   :  { %6259 = vmatpush1.bf16.msra.mxu1 %v8510_v43  ;;  %6287 = vmatprep.subr.bf16.mxu0 %v8695_v49  ;;  %v3824_v28 = vld [vmem:[#allocation6 + $0xc60] sm:$0xff]  ;;  %v8654_v43 = vcombine.low %v3828_v23, %v3832_v47 }
 0x26a   :  { %6260 = vmatprep.subr.bf16.mxu1 %v8631_v7  ;;  %v3748_v7 = vld [vmem:[#allocation6 + $0xa00] sm:$0xff]  ;;  %v8647_v50 = vcombine.high %v3820_v27, %v3824_v28  ;;  %v8646_v61 = vcombine.low %v3820_v27, %v3824_v28 }
 0x26b   :  { %6234 = vmatmul.mubr.bf16.vlgmr.msra.gmra.mxu0 %v10210_v10  ;;  %v3752_v49 = vld [vmem:[#allocation6 + $0xa20] sm:$0xff] }
 0x26c   :  { %6288 = vmatpush1.bf16.msra.mxu0 %v8694_v42  ;;  %6319 = vmatprep.mubr.bf16.mxu0 %v9916_v14  ;;  %v3812_v32 = vld [vmem:[#allocation6 + $0xc00] sm:$0xff] }
 0x26d   :  { %6261 = vmatpush2.bf16.msra.mxu1 %v8630_v40  ;;  %6289 = vmatprep.subr.bf16.mxu0 %v8687_v44  ;;  %v3816_v33 = vld [vmem:[#allocation6 + $0xc20] sm:$0xff]  ;;  %v8575_v40 = vcombine.high %v3748_v7, %v3752_v49  ;;  %v8574_v44 = vcombine.low %v3748_v7, %v3752_v49 }
 0x26e   :  { %6262 = vmatprep.subr.bf16.mxu1 %v8623_v45  ;;  %v8639_v42 = vcombine.high %v3812_v32, %v3816_v33  ;;  %v10220_v45 = vld [vmem:[#allocation6 + $0x5c8] sm:$0xff]  ;;  %v8638_v48 = vcombine.low %v3812_v32, %v3816_v33 }
 0x26f   :  { %v8441_v51 = vcombine.high %v10220_v45, %v10222_v46  ;;  %v3605_v33 = vld [vmem:[#allocation6 + $0x588] sm:$0xff] }
 0x270   :  { %6290 = vmatpush1.bf16.msra.mxu0 %v8686_v56  ;;  %v3105_v56 = vpop.f32.mrf.mxu0 }
 0x271   :  { %6263 = vmatpush2.bf16.msra.mxu1 %v8622_v55  ;;  %6291 = vmatprep.subr.bf16.mxu0 %v8679_v59  ;;  %v3148_v55 = vpop.f32.mrf.mxu1  ;;  %v658_v59 = vsub.s32 4, %v10082_v9 }
 0x272   :  { %6264 = vmatprep.subr.bf16.mxu1 %v8615_v8  ;;  %v3107_v41 = vpop.f32.mrf.mxu0 }
 0x273   :  { %v3150_v8 = vpop.f32.mrf.mxu1 }
 0x274   :  { %6292 = vmatpush1.bf16.msra.mxu0 %v8678_v0  ;;  %v3109_v0 = vpop.f32.mrf.mxu0 }
 0x275   :  { %6265 = vmatpush2.bf16.msra.mxu1 %v8614_v63  ;;  %6293 = vmatprep.subr.bf16.mxu0 %v8671_v3  ;;  %v3152_v12 = vpop.f32.mrf.mxu1  ;;  %v659_v63 = vrot.slane %v10180_v26, %v658_v59  ;;  %v3108_v3 = vadd.f32 %v3107_v41, %v663_v19  ;;  %v3593_v41 = vld [vmem:[#allocation6 + $0x528] sm:$0xff] }
 0x276   :  { %6266 = vmatprep.subr.bf16.mxu1 %v8607_v2  ;;  %v3111_v6 = vpop.f32.mrf.mxu0 }
 0x277   :  { %v3154_v2 = vpop.f32.mrf.mxu1  ;;  %v3106_v5 = vadd.f32 %v3105_v56, %v659_v63  ;;  %v3110_v11 = vadd.f32 %v3109_v0, %v659_v63  ;;  %v3112_v34 = vadd.f32 %v3111_v6, %v663_v19  ;;  %v3585_v19 = vld [vmem:[#allocation6 + $0x4e8] sm:$0xff] }
 0x278   :  { %6294 = vmatpush1.bf16.msra.mxu0 %v8670_v15  ;;  %v3565_v6 = vld [vmem:[#allocation6 + $0x448] sm:$0xff] }
 0x279   :  { %6267 = vmatpush2.bf16.msra.mxu1 %v8606_v20  ;;  %6295 = vmatprep.subr.bf16.mxu0 %v8663_v18  ;;  %v3149_v18 = vadd.f32 %v3148_v55, %v3106_v5  ;;  %v3153_v23 = vadd.f32 %v3152_v12, %v3110_v11  ;;  %v3155_v4 = vadd.f32 %v3154_v2, %v3112_v34  ;;  %v3573_v2 = vld [vmem:[#allocation6 + $0x488] sm:$0xff] }
 0x27a   :  { %6268 = vmatprep.subr.bf16.mxu1 %v8599_v17  ;;  %v3151_v17 = vadd.f32 %v3150_v8, %v3108_v3  ;;  %v3589_v8 = vld [vmem:[#allocation6 + $0x508] sm:$0xff] }
 0x27b   :  { %v8416_v63 = vcombine.low %v3589_v8, %v3593_v41  ;;  %v3569_v11 = vld [vmem:[#allocation6 + $0x468] sm:$0xff] }
 0x27c   :  { %6296 = vmatpush1.bf16.msra.mxu0 %v8662_v24  ;;  %v3557_v34 = vld [vmem:[#allocation6 + $0x408] sm:$0xff] }
 0x27d   :  { %6269 = vmatpush2.bf16.msra.mxu1 %v8598_v52  ;;  %6297 = vmatprep.subr.bf16.mxu0 %v8655_v25 }
 0x27e   :  { %6270 = vmatprep.subr.bf16.mxu1 %v8591_v1 }
 0x280   :  { %6298 = vmatpush1.bf16.msra.mxu0 %v8654_v43 }
 0x281   :  { %6271 = vmatpush2.bf16.msra.mxu1 %v8590_v29  ;;  %6299 = vmatprep.subr.bf16.mxu0 %v8647_v50 }
 0x282   :  { %6272 = vmatprep.subr.bf16.mxu1 %v8583_v30 }
 0x284   :  { %6300 = vmatpush1.bf16.msra.mxu0 %v8646_v61 }
 0x285   :  { %6273 = vmatpush2.bf16.msra.mxu1 %v8582_v37  ;;  %6301 = vmatprep.subr.bf16.mxu0 %v8639_v42  ;;  %v3609_v37 = vld [vmem:[#allocation6 + $0x5a8] sm:$0xff]  ;;  %v8440_v42 = vcombine.low %v10220_v45, %v10222_v46  ;;  %v8417_v45 = vcombine.high %v3589_v8, %v3593_v41 }
 0x286   :  { %6274 = vmatprep.subr.bf16.mxu1 %v8575_v40  ;;  %v8432_v55 = vcombine.low %v3605_v33, %v3609_v37  ;;  %v3581_v46 = vld [vmem:[#allocation6 + $0x4c8] sm:$0xff] }
 0x287   :  { %v8409_v0 = vcombine.high %v3581_v46, %v3585_v19  ;;  %v8408_v3 = vcombine.low %v3581_v46, %v3585_v19 }
 0x288   :  { %6302 = vmatpush1.bf16.msra.mxu0 %v8638_v48  ;;  %v8433_v48 = vcombine.high %v3605_v33, %v3609_v37 }
 0x289   :  { %6275 = vmatpush2.bf16.msra.mxu1 %v8574_v44  ;;  %6330 = vmatprep.subr.bf16.mxu0 %v8313_v54  ;;  %v3601_v54 = vld [vmem:[#allocation6 + $0x568] sm:$0xff] }
 0x28a   :  { %6373 = vmatprep.subr.bf16.mxu1 %v8441_v51  ;;  %v3597_v51 = vld [vmem:[#allocation6 + $0x548] sm:$0xff] }
 0x28b   :  { %v8425_v56 = vcombine.high %v3597_v51, %v3601_v54  ;;  %v8424_v12 = vcombine.low %v3597_v51, %v3601_v54 }
 0x28c   :  { %v3234_v38 = vpop.f32.mrf.mxu1 }
 0x28e   :  { %v3236_v20 = vpop.f32.mrf.mxu1 }
 0x290   :  { %v3238_v52 = vpop.f32.mrf.mxu1 }
 0x292   :  { %v3240_v43 = vpop.f32.mrf.mxu1 }
 0x2ab   :  { %v3191_v15 = vpop.f32.mrf.mxu0 }
 0x2ac   :  { %v3192_v24 = vadd.f32 %v3191_v15, %v3149_v18  ;;  %v8795_v15 = vpop.f32.mrf.mxu1  ;;  %v3561_v18 = vld [vmem:[#allocation6 + $0x428] sm:$0xff] }
 0x2ad   :  { %v3193_v35 = vpop.f32.mrf.mxu0 }
 0x2ae   :  { %v3194_v47 = vadd.f32 %v3193_v35, %v3151_v17  ;;  %v3235_v30 = vadd.f32 %v3234_v38, %v3192_v24  ;;  %v3577_v38 = vld [vmem:[#allocation6 + $0x4a8] sm:$0xff]  ;;  %v8393_v17 = vcombine.high %v3565_v6, %v3569_v11  ;;  %v8392_v35 = vcombine.low %v3565_v6, %v3569_v11 }
 0x2af   :  { %v3195_v1 = vpop.f32.mrf.mxu0  ;;  %v8401_v5 = vcombine.high %v3573_v2, %v3577_v38  ;;  %v3681_v24 = vld [vmem:[#allocation6 + $0x7e8] sm:$0xff] }
 0x2b0   :  { %v3196_v25 = vadd.f32 %v3195_v1, %v3153_v23  ;;  %v3237_v27 = vadd.f32 %v3236_v20, %v3194_v47  ;;  %v3411_v61 = vmax.f32 %v3235_v30, 0.0  ;;  %v8400_v20 = vcombine.low %v3573_v2, %v3577_v38  ;;  %v8796_v23 = vpop.f32.mrf.mxu1  ;;  %v3637_v6 = vld [vmem:[#allocation6 + $0x688] sm:$0xff] }
 0x2b1   :  { %v3197_v36 = vpop.f32.mrf.mxu0  ;;  %v8385_v47 = vcombine.high %v3557_v34, %v3561_v18  ;;  %v8384_v1 = vcombine.low %v3557_v34, %v3561_v18  ;;  %v8797_v41 = vadd.f32 %v8796_v23, %v8795_v15  ;;  %v3641_v11 = vld [vmem:[#allocation6 + $0x6a8] sm:$0xff] }
 0x2b2   :  { %v3239_v28 = vadd.f32 %v3238_v52, %v3196_v25  ;;  %v3198_v29 = vadd.f32 %v3197_v36, %v3155_v4  ;;  %v3412_v49 = vmax.f32 %v3237_v27, 0.0  ;;  %v3677_v52 = vld [vmem:[#allocation6 + $0x7c8] sm:$0xff]  ;;  %v8798_v4 = vpop.f32.mrf.mxu1  ;;  %v8465_v15 = vcombine.high %v3637_v6, %v3641_v11 }
 0x2b3   :  { %v8505_v25 = vcombine.high %v3677_v52, %v3681_v24  ;;  %v3669_v36 = vld [vmem:[#allocation6 + $0x788] sm:$0xff] }
 0x2b4   :  { %v3241_v7 = vadd.f32 %v3240_v43, %v3198_v29  ;;  %v3418_v50 = vmax.f32 %v3239_v28, 0.0  ;;  %v3673_v27 = vld [vmem:[#allocation6 + $0x7a8] sm:$0xff]  ;;  %v8504_v29 = vcombine.low %v3677_v52, %v3681_v24  ;;  %v8799_v43 = vpop.f32.mrf.mxu1 }
 0x2b5   :  { %v8497_v30 = vcombine.high %v3669_v36, %v3673_v27  ;;  %v8496_v33 = vcombine.low %v3669_v36, %v3673_v27  ;;  %v3633_v52 = vld [vmem:[#allocation6 + $0x668] sm:$0xff] }
 0x2b6   :  { %v3419_v32 = vmax.f32 %v3241_v7, 0.0  ;;  %v10240_v44 = vpack.c.bf16 %v3418_v50, %v3411_v61  ;;  %v3661_v7 = vld [vmem:[#allocation6 + $0x748] sm:$0xff]  ;;  %v666_v61 = vsub.s32 6, %v10082_v9 }
 0x2b7   :  { %v3665_v50 = vld [vmem:[#allocation6 + $0x768] sm:$0xff] }
 0x2b8   :  { %v10236_v40 = vpack.c.bf16 %v3419_v32, %v3412_v49  ;;  %v8489_v37 = vcombine.high %v3661_v7, %v3665_v50  ;;  %v667_v8 = vrot.slane %v10180_v26, %v666_v61 }
 0x2ba   :  { %6276 = vmatprep.mubr.bf16.mxu1 %v10236_v40 }
 0x2bb   :  { %6277 = vmatmul.mubr.bf16.vlgmr.msra.gmra.mxu1 %v10240_v44 }
 0x2bc   :  { %6374 = vmatpush1.bf16.msra.mxu1 %v8440_v42  ;;  %6405 = vmatprep.mubr.bf16.mxu1 %v10194_v62  ;;  %v3653_v42 = vld [vmem:[#allocation6 + $0x708] sm:$0xff] }
 0x2bd   :  { %6375 = vmatprep.subr.bf16.mxu1 %v8433_v48  ;;  %v3657_v48 = vld [vmem:[#allocation6 + $0x728] sm:$0xff] }
 0x2be   :  { %v8480_v2 = vcombine.low %v3653_v42, %v3657_v48 }
 0x2c0   :  { %6376 = vmatpush1.bf16.msra.mxu1 %v8432_v55  ;;  %v8488_v55 = vcombine.low %v3661_v7, %v3665_v50 }
 0x2c1   :  { %6377 = vmatprep.subr.bf16.mxu1 %v8425_v56  ;;  %v8481_v56 = vcombine.high %v3653_v42, %v3657_v48 }
 0x2c4   :  { %6378 = vmatpush1.bf16.msra.mxu1 %v8424_v12  ;;  %v3645_v12 = vld [vmem:[#allocation6 + $0x6c8] sm:$0xff] }
 0x2c5   :  { %6379 = vmatprep.subr.bf16.mxu1 %v8417_v45  ;;  %v3649_v45 = vld [vmem:[#allocation6 + $0x6e8] sm:$0xff] }
 0x2c6   :  { %v8473_v38 = vcombine.high %v3645_v12, %v3649_v45  ;;  %v8472_v26 = vcombine.low %v3645_v12, %v3649_v45  ;;  %v3469_v12 = vld [vmem:[#allocation6 + $0x148] sm:$0xff] }
 0x2c7   :  { %v3473_v45 = vld [vmem:[#allocation6 + $0x168] sm:$0xff] }
 0x2c8   :  { %6380 = vmatpush1.bf16.msra.mxu1 %v8416_v63  ;;  %v8800_v63 = vadd.f32 %v8799_v43, %v8798_v4  ;;  %v8464_v4 = vcombine.low %v3637_v6, %v3641_v11  ;;  %v3625_v43 = vld [vmem:[#allocation6 + $0x628] sm:$0xff] }
 0x2c9   :  { %6381 = vmatprep.subr.bf16.mxu1 %v8409_v0  ;;  %v3853_v6 = vld [vmem:[#allocation6 + $0xd48] sm:$0xff] }
 0x2ca   :  { %v3857_v11 = vld [vmem:[#allocation6 + $0xd68] sm:$0xff] }
 0x2cb   :  { %v8817_v28 = vpop.f32.mrf.mxu0 }
 0x2cc   :  { %6382 = vmatpush1.bf16.msra.mxu1 %v8408_v3  ;;  %v8839_v32 = vpop.f32.mrf.mxu1  ;;  %v3278_v3 = vadd.f32 %v8797_v41, %v667_v8 }
 0x2cd   :  { %6383 = vmatprep.subr.bf16.mxu1 %v8401_v5  ;;  %v8818_v49 = vpop.f32.mrf.mxu0 }
 0x2ce   :  { %v8840_v54 = vpop.f32.mrf.mxu1  ;;  %v8819_v0 = vadd.f32 %v8818_v49, %v8817_v28 }
 0x2cf   :  { %v8820_v51 = vpop.f32.mrf.mxu0  ;;  %v8841_v18 = vadd.f32 %v8840_v54, %v8839_v32  ;;  %v3873_v54 = vld [vmem:[#allocation6 + $0xde8] sm:$0xff] }
 0x2d0   :  { %6384 = vmatpush1.bf16.msra.mxu1 %v8400_v20  ;;  %v8842_v19 = vpop.f32.mrf.mxu1  ;;  %v3319_v34 = vadd.f32 %v8819_v0, %v3278_v3  ;;  %v3461_v3 = vld [vmem:[#allocation6 + $0x108] sm:$0xff] }
 0x2d1   :  { %6385 = vmatprep.subr.bf16.mxu1 %v8393_v17  ;;  %v8821_v46 = vpop.f32.mrf.mxu0  ;;  %v3281_v17 = vadd.f32 %v8800_v63, %v667_v8 }
 0x2d2   :  { %v8822_v5 = vadd.f32 %v8821_v46, %v8820_v51  ;;  %v8843_v20 = vpop.f32.mrf.mxu1  ;;  %v3869_v51 = vld [vmem:[#allocation6 + $0xdc8] sm:$0xff] }
 0x2d3   :  { %v8844_v23 = vadd.f32 %v8843_v20, %v8842_v19  ;;  %v8697_v41 = vcombine.high %v3869_v51, %v3873_v54  ;;  %v3861_v46 = vld [vmem:[#allocation6 + $0xd88] sm:$0xff]  ;;  %v8696_v0 = vcombine.low %v3869_v51, %v3873_v54  ;;  %v8296_v20 = vcombine.low %v3469_v12, %v3473_v45 }
 0x2d4   :  { %6386 = vmatpush1.bf16.msra.mxu1 %v8392_v35  ;;  %v3322_v35 = vadd.f32 %v8822_v5, %v3281_v17  ;;  %v3865_v19 = vld [vmem:[#allocation6 + $0xda8] sm:$0xff] }
 0x2d5   :  { %6387 = vmatprep.subr.bf16.mxu1 %v8385_v47  ;;  %v3629_v47 = vld [vmem:[#allocation6 + $0x648] sm:$0xff]  ;;  %v8688_v21 = vcombine.low %v3861_v46, %v3865_v19 }
 0x2d6   :  { %v8457_v36 = vcombine.high %v3629_v47, %v3633_v52  ;;  %v3363_v28 = vadd.f32 %v8844_v23, %v3322_v35  ;;  %v8456_v50 = vcombine.low %v3629_v47, %v3633_v52  ;;  %v3465_v5 = vld [vmem:[#allocation6 + $0x128] sm:$0xff]  ;;  %v8680_v35 = vcombine.low %v3853_v6, %v3857_v11 }
 0x2d7   :  { %v8289_v13 = vcombine.high %v3461_v3, %v3465_v5  ;;  %v3453_v17 = vld [vmem:[#allocation6 + $0xc8] sm:$0xff] }
 0x2d8   :  { %6388 = vmatpush1.bf16.msra.mxu1 %v8384_v1  ;;  %v3360_v1 = vadd.f32 %v8841_v18, %v3319_v34  ;;  %v3457_v34 = vld [vmem:[#allocation6 + $0xe8] sm:$0xff] }
 0x2d9   :  { %6389 = vmatprep.subr.bf16.mxu1 %v8505_v25  ;;  %v3845_v18 = vld [vmem:[#allocation6 + $0xd08] sm:$0xff]  ;;  %v8281_v23 = vcombine.high %v3453_v17, %v3457_v34 }
 0x2da   :  { %v3445_v52 = vld [vmem:[#allocation6 + $0x88] sm:$0xff] }
 0x2db   :  { %v3825_v51 = vld [vmem:[#allocation6 + $0xc68] sm:$0xff] }
 0x2dc   :  { %6390 = vmatpush2.bf16.msra.mxu1 %v8504_v29  ;;  %v3621_v29 = vld [vmem:[#allocation6 + $0x608] sm:$0xff] }
 0x2dd   :  { %6391 = vmatprep.subr.bf16.mxu1 %v8497_v30  ;;  %v8449_v32 = vcombine.high %v3621_v29, %v3625_v43 }
 0x2e0   :  { %6392 = vmatpush2.bf16.msra.mxu1 %v8496_v33  ;;  %v3477_v33 = vld [vmem:[#allocation6 + $0x188] sm:$0xff] }
 0x2e1   :  { %6393 = vmatprep.subr.bf16.mxu1 %v8489_v37  ;;  %v3481_v37 = vld [vmem:[#allocation6 + $0x1a8] sm:$0xff] }
 0x2e2   :  { %v8305_v8 = vcombine.high %v3477_v33, %v3481_v37  ;;  %v8304_v63 = vcombine.low %v3477_v33, %v3481_v37  ;;  %v3429_v37 = vld [vmem:[#allocation6 + $0x8] sm:$0xff] }
 0x2e4   :  { %6394 = vmatpush2.bf16.msra.mxu1 %v8488_v55 }
 0x2e5   :  { %6395 = vmatprep.subr.bf16.mxu1 %v8481_v56  ;;  %v8448_v56 = vcombine.low %v3621_v29, %v3625_v43  ;;  %v3437_v29 = vld [vmem:[#allocation6 + $0x48] sm:$0xff] }
 0x2e6   :  { %v3441_v43 = vld [vmem:[#allocation6 + $0x68] sm:$0xff] }
 0x2e7   :  { %v8264_v54 = vcombine.low %v3437_v29, %v3441_v43 }
 0x2e8   :  { %6396 = vmatpush2.bf16.msra.mxu1 %v8480_v2  ;;  %v8297_v2 = vcombine.high %v3469_v12, %v3473_v45  ;;  %v3549_v12 = vld [vmem:[#allocation6 + $0x3c8] sm:$0xff] }
 0x2e9   :  { %6397 = vmatprep.subr.bf16.mxu1 %v8473_v38  ;;  %v8689_v38 = vcombine.high %v3861_v46, %v3865_v19  ;;  %v3553_v45 = vld [vmem:[#allocation6 + $0x3e8] sm:$0xff] }
 0x2ea   :  { %v3813_v46 = vld [vmem:[#allocation6 + $0xc08] sm:$0xff] }
 0x2eb   :  { %v3400_v24 = vpop.f32.mrf.mxu0  ;;  %v3817_v19 = vld [vmem:[#allocation6 + $0xc28] sm:$0xff] }
 0x2ec   :  { %6398 = vmatpush2.bf16.msra.mxu1 %v8472_v26  ;;  %v3401_v27 = vadd.f32 %v3400_v24, %v3360_v1  ;;  %v3849_v26 = vld [vmem:[#allocation6 + $0xd28] sm:$0xff] }
 0x2ed   :  { %v8975_v25 = vpop.f32.mrf.mxu0  ;;  %6399 = vmatprep.subr.bf16.mxu1 %v8465_v15  ;;  %v8288_v15 = vcombine.low %v3461_v3, %v3465_v5  ;;  %v8673_v47 = vcombine.high %v3845_v18, %v3849_v26  ;;  %v3449_v24 = vld [vmem:[#allocation6 + $0xa8] sm:$0xff] }
 0x2ee   :  { %v3413_v42 = vmax.f32 %v3401_v27, 0.0  ;;  %v3837_v1 = vld [vmem:[#allocation6 + $0xcc8] sm:$0xff]  ;;  %v8280_v25 = vcombine.low %v3453_v17, %v3457_v34  ;;  %v8273_v27 = vcombine.high %v3445_v52, %v3449_v24 }
 0x2ef   :  { %v3403_v30 = vpop.f32.mrf.mxu0  ;;  %v3541_v3 = vld [vmem:[#allocation6 + $0x388] sm:$0xff] }
 0x2f0   :  { %v3404_v7 = vadd.f32 %v3403_v30, %v3363_v28  ;;  %6400 = vmatpush2.bf16.msra.mxu1 %v8464_v4  ;;  %v3841_v4 = vld [vmem:[#allocation6 + $0xce8] sm:$0xff] }
 0x2f1   :  { %v8976_v49 = vpop.f32.mrf.mxu0  ;;  %6401 = vmatprep.subr.bf16.mxu1 %v8457_v36  ;;  %v8672_v36 = vcombine.low %v3845_v18, %v3849_v26  ;;  %v8665_v28 = vcombine.high %v3837_v1, %v3841_v4  ;;  %v3829_v30 = vld [vmem:[#allocation6 + $0xc88] sm:$0xff]  ;;  %v3478_v18 = vld [vmem:[#allocation6 + $0x190] sm:$0xff] }
 0x2f2   :  { %v3420_v48 = vmax.f32 %v3404_v7, 0.0  ;;  %v3833_v7 = vld [vmem:[#allocation6 + $0xca8] sm:$0xff]  ;;  %v8664_v49 = vcombine.low %v3837_v1, %v3841_v4  ;;  %v3482_v26 = vld [vmem:[#allocation6 + $0x1b0] sm:$0xff] }
 0x2f3   :  { %v8657_v33 = vcombine.high %v3829_v30, %v3833_v7  ;;  %v3545_v5 = vld [vmem:[#allocation6 + $0x3a8] sm:$0xff]  ;;  %v3470_v1 = vld [vmem:[#allocation6 + $0x150] sm:$0xff] }
 0x2f4   :  { %v10249_v55 = vpack.c.bf16 %v3420_v48, %v3413_v42  ;;  %6402 = vmatpush2.bf16.msra.mxu1 %v8456_v50  ;;  %v8272_v50 = vcombine.low %v3445_v52, %v3449_v24  ;;  %v3433_v42 = vld [vmem:[#allocation6 + $0x28] sm:$0xff]  ;;  %v3474_v4 = vld [vmem:[#allocation6 + $0x170] sm:$0xff] }
 0x2f5   :  { %6403 = vmatprep.subr.bf16.mxu1 %v8449_v32  ;;  %v8265_v32 = vcombine.high %v3437_v29, %v3441_v43  ;;  %v3821_v48 = vld [vmem:[#allocation6 + $0xc48] sm:$0xff] }
 0x2f6   :  { %6320 = vmatmul.mubr.bf16.vlgmr.msra.gmra.mxu0 %v10249_v55  ;;  %v3533_v17 = vld [vmem:[#allocation6 + $0x348] sm:$0xff] }
 0x2f7   :  { %6331 = vmatpush1.bf16.msra.mxu0 %v8312_v16  ;;  %6362 = vmatprep.mubr.bf16.mxu0 %v10158_v39  ;;  %v8681_v16 = vcombine.high %v3853_v6, %v3857_v11  ;;  %v3486_v6 = vld [vmem:[#allocation6 + $0x1d0] sm:$0xff]  ;;  %v3537_v34 = vld [vmem:[#allocation6 + $0x368] sm:$0xff] }
 0x2f8   :  { %6404 = vmatpush2.bf16.msra.mxu1 %v8448_v56  ;;  %6332 = vmatprep.subr.bf16.mxu0 %v8305_v8  ;;  %v8656_v56 = vcombine.low %v3829_v30, %v3833_v7  ;;  %v8257_v8 = vcombine.high %v3429_v37, %v3433_v42  ;;  %v3490_v11 = vld [vmem:[#allocation6 + $0x1f0] sm:$0xff]  ;;  %v3525_v52 = vld [vmem:[#allocation6 + $0x308] sm:$0xff] }
 0x2f9   :  { %6459 = vmatprep.subr.bf16.mxu1 %v8697_v41  ;;  %v8649_v41 = vcombine.high %v3821_v48, %v3825_v51  ;;  %v3529_v24 = vld [vmem:[#allocation6 + $0x328] sm:$0xff]  ;;  %v3462_v30 = vld [vmem:[#allocation6 + $0x110] sm:$0xff] }
 0x2fa   :  { %v3517_v29 = vld [vmem:[#allocation6 + $0x2c8] sm:$0xff]  ;;  %v3466_v7 = vld [vmem:[#allocation6 + $0x130] sm:$0xff] }
 0x2fb   :  { %6333 = vmatpush1.bf16.msra.mxu0 %v8304_v63  ;;  %6406 = vmatmul.mubr.bf16.vlgmr.msra.gmra.mxu1 %v10210_v10  ;;  %v8256_v63 = vcombine.low %v3429_v37, %v3433_v42  ;;  %v3521_v43 = vld [vmem:[#allocation6 + $0x2e8] sm:$0xff] }
 0x2fc   :  { %6460 = vmatpush1.bf16.msra.mxu1 %v8696_v0  ;;  %6334 = vmatprep.subr.bf16.mxu0 %v8297_v2  ;;  %v8648_v0 = vcombine.low %v3821_v48, %v3825_v51  ;;  %v8377_v2 = vcombine.high %v3549_v12, %v3553_v45  ;;  %v3509_v37 = vld [vmem:[#allocation6 + $0x288] sm:$0xff]  ;;  %v3454_v48 = vld [vmem:[#allocation6 + $0xd0] sm:$0xff] }
 0x2fd   :  { %6461 = vmatprep.subr.bf16.mxu1 %v8689_v38  ;;  %6491 = vmatprep.mubr.bf16.mxu1 %v9916_v14  ;;  %v8641_v38 = vcombine.high %v3813_v46, %v3817_v19  ;;  %v3513_v42 = vld [vmem:[#allocation6 + $0x2a8] sm:$0xff]  ;;  %v3458_v51 = vld [vmem:[#allocation6 + $0xf0] sm:$0xff] }
 0x2ff   :  { %6335 = vmatpush1.bf16.msra.mxu0 %v8296_v20  ;;  %v8376_v20 = vcombine.low %v3549_v12, %v3553_v45  ;;  %v3501_v12 = vld [vmem:[#allocation6 + $0x248] sm:$0xff] }
 0x300   :  { %6462 = vmatpush1.bf16.msra.mxu1 %v8688_v21  ;;  %6336 = vmatprep.subr.bf16.mxu0 %v8289_v13  ;;  %v8640_v21 = vcombine.low %v3813_v46, %v3817_v19  ;;  %v8369_v13 = vcombine.high %v3541_v3, %v3545_v5  ;;  %v3505_v45 = vld [vmem:[#allocation6 + $0x268] sm:$0xff]  ;;  %v3446_v46 = vld [vmem:[#allocation6 + $0x90] sm:$0xff] }
 0x301   :  { %6463 = vmatprep.subr.bf16.mxu1 %v8681_v16  ;;  %v8315_v16 = vcombine.high %v3486_v6, %v3490_v11  ;;  %v3450_v19 = vld [vmem:[#allocation6 + $0xb0] sm:$0xff] }
 0x303   :  { %6337 = vmatpush1.bf16.msra.mxu0 %v8288_v15  ;;  %v8368_v15 = vcombine.low %v3541_v3, %v3545_v5  ;;  %v3493_v3 = vld [vmem:[#allocation6 + $0x208] sm:$0xff] }
 0x304   :  { %6464 = vmatpush1.bf16.msra.mxu1 %v8680_v35  ;;  %6338 = vmatprep.subr.bf16.mxu0 %v8281_v23  ;;  %v8314_v35 = vcombine.low %v3486_v6, %v3490_v11  ;;  %v8361_v23 = vcombine.high %v3533_v17, %v3537_v34  ;;  %v3497_v5 = vld [vmem:[#allocation6 + $0x228] sm:$0xff]  ;;  %v3438_v6 = vld [vmem:[#allocation6 + $0x50] sm:$0xff] }
 0x305   :  { %6465 = vmatprep.subr.bf16.mxu1 %v8673_v47  ;;  %v8307_v47 = vcombine.high %v3478_v18, %v3482_v26  ;;  %v3442_v11 = vld [vmem:[#allocation6 + $0x70] sm:$0xff] }
 0x307   :  { %6339 = vmatpush1.bf16.msra.mxu0 %v8280_v25  ;;  %v8360_v25 = vcombine.low %v3533_v17, %v3537_v34  ;;  %v3741_v17 = vld [vmem:[#allocation6 + $0x9c8] sm:$0xff] }
 0x308   :  { %6466 = vmatpush1.bf16.msra.mxu1 %v8672_v36  ;;  %6340 = vmatprep.subr.bf16.mxu0 %v8273_v27  ;;  %v8306_v36 = vcombine.low %v3478_v18, %v3482_v26  ;;  %v8353_v27 = vcombine.high %v3525_v52, %v3529_v24  ;;  %v3745_v34 = vld [vmem:[#allocation6 + $0x9e8] sm:$0xff]  ;;  %v3430_v18 = vld [vmem:[#allocation6 + $0x10] sm:$0xff] }
 0x309   :  { %6467 = vmatprep.subr.bf16.mxu1 %v8665_v28  ;;  %v8299_v28 = vcombine.high %v3470_v1, %v3474_v4  ;;  %v3434_v26 = vld [vmem:[#allocation6 + $0x30] sm:$0xff] }
 0x30b   :  { %6341 = vmatpush1.bf16.msra.mxu0 %v8272_v50  ;;  %v8352_v50 = vcombine.low %v3525_v52, %v3529_v24  ;;  %v3733_v52 = vld [vmem:[#allocation6 + $0x988] sm:$0xff] }
 0x30c   :  { %6468 = vmatpush1.bf16.msra.mxu1 %v8664_v49  ;;  %6342 = vmatprep.subr.bf16.mxu0 %v8265_v32  ;;  %v8298_v49 = vcombine.low %v3470_v1, %v3474_v4  ;;  %v8345_v32 = vcombine.high %v3517_v29, %v3521_v43  ;;  %v3737_v24 = vld [vmem:[#allocation6 + $0x9a8] sm:$0xff]  ;;  %v3550_v1 = vld [vmem:[#allocation6 + $0x3d0] sm:$0xff] }
 0x30d   :  { %6469 = vmatprep.subr.bf16.mxu1 %v8657_v33  ;;  %v8291_v33 = vcombine.high %v3462_v30, %v3466_v7  ;;  %v3554_v4 = vld [vmem:[#allocation6 + $0x3f0] sm:$0xff] }
 0x30f   :  { %6343 = vmatpush1.bf16.msra.mxu0 %v8264_v54  ;;  %v8344_v54 = vcombine.low %v3517_v29, %v3521_v43  ;;  %v3725_v29 = vld [vmem:[#allocation6 + $0x948] sm:$0xff] }
 0x310   :  { %6470 = vmatpush1.bf16.msra.mxu1 %v8656_v56  ;;  %6344 = vmatprep.subr.bf16.mxu0 %v8257_v8  ;;  %v8290_v56 = vcombine.low %v3462_v30, %v3466_v7  ;;  %v8337_v8 = vcombine.high %v3509_v37, %v3513_v42  ;;  %v3729_v43 = vld [vmem:[#allocation6 + $0x968] sm:$0xff]  ;;  %v3542_v30 = vld [vmem:[#allocation6 + $0x390] sm:$0xff] }
 0x311   :  { %6471 = vmatprep.subr.bf16.mxu1 %v8649_v41  ;;  %v8283_v41 = vcombine.high %v3454_v48, %v3458_v51  ;;  %v3546_v7 = vld [vmem:[#allocation6 + $0x3b0] sm:$0xff] }
 0x313   :  { %6345 = vmatpush1.bf16.msra.mxu0 %v8256_v63  ;;  %v8336_v63 = vcombine.low %v3509_v37, %v3513_v42  ;;  %v3717_v37 = vld [vmem:[#allocation6 + $0x908] sm:$0xff] }
 0x314   :  { %6472 = vmatpush1.bf16.msra.mxu1 %v8648_v0  ;;  %6346 = vmatprep.subr.bf16.mxu0 %v8377_v2  ;;  %v8282_v0 = vcombine.low %v3454_v48, %v3458_v51  ;;  %v8329_v2 = vcombine.high %v3501_v12, %v3505_v45  ;;  %v3721_v42 = vld [vmem:[#allocation6 + $0x928] sm:$0xff]  ;;  %v3534_v48 = vld [vmem:[#allocation6 + $0x350] sm:$0xff] }
 0x315   :  { %6473 = vmatprep.subr.bf16.mxu1 %v8641_v38  ;;  %v8275_v38 = vcombine.high %v3446_v46, %v3450_v19  ;;  %v3538_v51 = vld [vmem:[#allocation6 + $0x370] sm:$0xff] }
 0x317   :  { %6347 = vmatpush2.bf16.msra.mxu0 %v8376_v20  ;;  %v8328_v20 = vcombine.low %v3501_v12, %v3505_v45  ;;  %v3709_v12 = vld [vmem:[#allocation6 + $0x8c8] sm:$0xff] }
 0x318   :  { %6474 = vmatpush1.bf16.msra.mxu1 %v8640_v21  ;;  %6348 = vmatprep.subr.bf16.mxu0 %v8369_v13  ;;  %v8274_v21 = vcombine.low %v3446_v46, %v3450_v19  ;;  %v8321_v13 = vcombine.high %v3493_v3, %v3497_v5  ;;  %v3713_v45 = vld [vmem:[#allocation6 + $0x8e8] sm:$0xff]  ;;  %v3526_v46 = vld [vmem:[#allocation6 + $0x310] sm:$0xff] }
 0x319   :  { %6502 = vmatprep.subr.bf16.mxu1 %v8315_v16  ;;  %v8267_v16 = vcombine.high %v3438_v6, %v3442_v11  ;;  %v3530_v19 = vld [vmem:[#allocation6 + $0x330] sm:$0xff] }
 0x31b   :  { %6349 = vmatpush2.bf16.msra.mxu0 %v8368_v15  ;;  %6492 = vmatmul.mubr.bf16.vlgmr.msra.gmra.mxu1 %v10249_v55  ;;  %v8320_v15 = vcombine.low %v3493_v3, %v3497_v5  ;;  %v3701_v3 = vld [vmem:[#allocation6 + $0x888] sm:$0xff] }
 0x31c   :  { %6503 = vmatpush1.bf16.msra.mxu1 %v8314_v35  ;;  %6534 = vmatprep.mubr.bf16.mxu1 %v10158_v39  ;;  %v8266_v35 = vcombine.low %v3438_v6, %v3442_v11  ;;  %v3705_v5 = vld [vmem:[#allocation6 + $0x8a8] sm:$0xff]  ;;  %v3518_v6 = vld [vmem:[#allocation6 + $0x2d0] sm:$0xff] }
 0x31d   :  { %6350 = vmatprep.subr.bf16.mxu0 %v8361_v23  ;;  %6504 = vmatprep.subr.bf16.mxu1 %v8307_v47  ;;  %v8569_v23 = vcombine.high %v3741_v17, %v3745_v34  ;;  %v8259_v47 = vcombine.high %v3430_v18, %v3434_v26  ;;  %v3522_v11 = vld [vmem:[#allocation6 + $0x2f0] sm:$0xff] }
 0x31f   :  { %6351 = vmatpush2.bf16.msra.mxu0 %v8360_v25  ;;  %v8568_v25 = vcombine.low %v3741_v17, %v3745_v34  ;;  %v3693_v17 = vld [vmem:[#allocation6 + $0x848] sm:$0xff] }
 0x320   :  { %6505 = vmatpush1.bf16.msra.mxu1 %v8306_v36  ;;  %6352 = vmatprep.subr.bf16.mxu0 %v8353_v27  ;;  %v8258_v36 = vcombine.low %v3430_v18, %v3434_v26  ;;  %v8561_v27 = vcombine.high %v3733_v52, %v3737_v24  ;;  %v3697_v34 = vld [vmem:[#allocation6 + $0x868] sm:$0xff]  ;;  %v3510_v18 = vld [vmem:[#allocation6 + $0x290] sm:$0xff] }
 0x321   :  { %6506 = vmatprep.subr.bf16.mxu1 %v8299_v28  ;;  %v8379_v28 = vcombine.high %v3550_v1, %v3554_v4  ;;  %v3514_v26 = vld [vmem:[#allocation6 + $0x2b0] sm:$0xff] }
 0x323   :  { %6353 = vmatpush2.bf16.msra.mxu0 %v8352_v50  ;;  %v8560_v50 = vcombine.low %v3733_v52, %v3737_v24  ;;  %v3685_v52 = vld [vmem:[#allocation6 + $0x808] sm:$0xff] }
 0x324   :  { %6507 = vmatpush1.bf16.msra.mxu1 %v8298_v49  ;;  %6354 = vmatprep.subr.bf16.mxu0 %v8345_v32  ;;  %v8378_v49 = vcombine.low %v3550_v1, %v3554_v4  ;;  %v8553_v32 = vcombine.high %v3725_v29, %v3729_v43  ;;  %v3689_v24 = vld [vmem:[#allocation6 + $0x828] sm:$0xff]  ;;  %v3502_v1 = vld [vmem:[#allocation6 + $0x250] sm:$0xff] }
 0x325   :  { %6508 = vmatprep.subr.bf16.mxu1 %v8291_v33  ;;  %v8371_v33 = vcombine.high %v3542_v30, %v3546_v7  ;;  %v3506_v4 = vld [vmem:[#allocation6 + $0x270] sm:$0xff] }
 0x327   :  { %6355 = vmatpush2.bf16.msra.mxu0 %v8344_v54  ;;  %v8552_v54 = vcombine.low %v3725_v29, %v3729_v43  ;;  %v3805_v29 = vld [vmem:[#allocation6 + $0xbc8] sm:$0xff] }
 0x328   :  { %6509 = vmatpush1.bf16.msra.mxu1 %v8290_v56  ;;  %6356 = vmatprep.subr.bf16.mxu0 %v8337_v8  ;;  %v8370_v56 = vcombine.low %v3542_v30, %v3546_v7  ;;  %v8545_v8 = vcombine.high %v3717_v37, %v3721_v42  ;;  %v3809_v43 = vld [vmem:[#allocation6 + $0xbe8] sm:$0xff]  ;;  %v3494_v30 = vld [vmem:[#allocation6 + $0x210] sm:$0xff] }
 0x329   :  { %6510 = vmatprep.subr.bf16.mxu1 %v8283_v41  ;;  %v8363_v41 = vcombine.high %v3534_v48, %v3538_v51  ;;  %v3498_v7 = vld [vmem:[#allocation6 + $0x230] sm:$0xff] }
 0x32b   :  { %6357 = vmatpush2.bf16.msra.mxu0 %v8336_v63  ;;  %v8544_v63 = vcombine.low %v3717_v37, %v3721_v42  ;;  %v3797_v37 = vld [vmem:[#allocation6 + $0xb88] sm:$0xff] }
 0x32c   :  { %6511 = vmatpush1.bf16.msra.mxu1 %v8282_v0  ;;  %6358 = vmatprep.subr.bf16.mxu0 %v8329_v2  ;;  %v8362_v0 = vcombine.low %v3534_v48, %v3538_v51  ;;  %v8537_v2 = vcombine.high %v3709_v12, %v3713_v45  ;;  %v3801_v42 = vld [vmem:[#allocation6 + $0xba8] sm:$0xff]  ;;  %v3742_v48 = vld [vmem:[#allocation6 + $0x9d0] sm:$0xff] }
 0x32d   :  { %6512 = vmatprep.subr.bf16.mxu1 %v8275_v38  ;;  %v8355_v38 = vcombine.high %v3526_v46, %v3530_v19  ;;  %v3746_v51 = vld [vmem:[#allocation6 + $0x9f0] sm:$0xff] }
 0x32f   :  { %6359 = vmatpush2.bf16.msra.mxu0 %v8328_v20  ;;  %v8536_v20 = vcombine.low %v3709_v12, %v3713_v45  ;;  %v3789_v12 = vld [vmem:[#allocation6 + $0xb48] sm:$0xff] }
 0x330   :  { %6513 = vmatpush1.bf16.msra.mxu1 %v8274_v21  ;;  %6360 = vmatprep.subr.bf16.mxu0 %v8321_v13  ;;  %v8354_v21 = vcombine.low %v3526_v46, %v3530_v19  ;;  %v8529_v13 = vcombine.high %v3701_v3, %v3705_v5  ;;  %v3793_v45 = vld [vmem:[#allocation6 + $0xb68] sm:$0xff]  ;;  %v3734_v46 = vld [vmem:[#allocation6 + $0x990] sm:$0xff] }
 0x331   :  { %6514 = vmatprep.subr.bf16.mxu1 %v8267_v16  ;;  %v8347_v16 = vcombine.high %v3518_v6, %v3522_v11  ;;  %v3738_v19 = vld [vmem:[#allocation6 + $0x9b0] sm:$0xff] }
 0x333   :  { %6361 = vmatpush2.bf16.msra.mxu0 %v8320_v15  ;;  %v8528_v15 = vcombine.low %v3701_v3, %v3705_v5  ;;  %v3781_v3 = vld [vmem:[#allocation6 + $0xb08] sm:$0xff] }
 0x334   :  { %6515 = vmatpush1.bf16.msra.mxu1 %v8266_v35  ;;  %6416 = vmatprep.subr.bf16.mxu0 %v8569_v23  ;;  %v8346_v35 = vcombine.low %v3518_v6, %v3522_v11  ;;  %v8521_v23 = vcombine.high %v3693_v17, %v3697_v34  ;;  %v3785_v5 = vld [vmem:[#allocation6 + $0xb28] sm:$0xff]  ;;  %v3726_v6 = vld [vmem:[#allocation6 + $0x950] sm:$0xff] }
 0x335   :  { %6516 = vmatprep.subr.bf16.mxu1 %v8259_v47  ;;  %v8339_v47 = vcombine.high %v3510_v18, %v3514_v26  ;;  %v3730_v11 = vld [vmem:[#allocation6 + $0x970] sm:$0xff] }
 0x336   :  { %6363 = vmatmul.mubr.bf16.vlgmr.msra.gmra.mxu0 %v10134_v60 }
 0x337   :  { %6417 = vmatpush1.bf16.msra.mxu0 %v8568_v25  ;;  %6448 = vmatprep.mubr.bf16.mxu0 %v10236_v40  ;;  %v8520_v25 = vcombine.low %v3693_v17, %v3697_v34  ;;  %v3773_v17 = vld [vmem:[#allocation6 + $0xac8] sm:$0xff] }
 0x338   :  { %6517 = vmatpush1.bf16.msra.mxu1 %v8258_v36  ;;  %6418 = vmatprep.subr.bf16.mxu0 %v8561_v27  ;;  %v8338_v36 = vcombine.low %v3510_v18, %v3514_v26  ;;  %v8513_v27 = vcombine.high %v3685_v52, %v3689_v24  ;;  %v3777_v34 = vld [vmem:[#allocation6 + $0xae8] sm:$0xff]  ;;  %v3718_v18 = vld [vmem:[#allocation6 + $0x910] sm:$0xff] }
 0x339   :  { %6518 = vmatprep.subr.bf16.mxu1 %v8379_v28  ;;  %v8331_v28 = vcombine.high %v3502_v1, %v3506_v4  ;;  %v3722_v26 = vld [vmem:[#allocation6 + $0x930] sm:$0xff] }
 0x33b   :  { %6419 = vmatpush1.bf16.msra.mxu0 %v8560_v50  ;;  %v8512_v50 = vcombine.low %v3685_v52, %v3689_v24  ;;  %v3765_v52 = vld [vmem:[#allocation6 + $0xa88] sm:$0xff] }
 0x33c   :  { %6519 = vmatpush2.bf16.msra.mxu1 %v8378_v49  ;;  %6420 = vmatprep.subr.bf16.mxu0 %v8553_v32  ;;  %v8330_v49 = vcombine.low %v3502_v1, %v3506_v4  ;;  %v8633_v32 = vcombine.high %v3805_v29, %v3809_v43  ;;  %v3769_v24 = vld [vmem:[#allocation6 + $0xaa8] sm:$0xff]  ;;  %v3710_v1 = vld [vmem:[#allocation6 + $0x8d0] sm:$0xff] }
 0x33d   :  { %6520 = vmatprep.subr.bf16.mxu1 %v8371_v33  ;;  %v8323_v33 = vcombine.high %v3494_v30, %v3498_v7  ;;  %v3714_v4 = vld [vmem:[#allocation6 + $0x8f0] sm:$0xff] }
 0x33f   :  { %6421 = vmatpush1.bf16.msra.mxu0 %v8552_v54  ;;  %v8632_v54 = vcombine.low %v3805_v29, %v3809_v43  ;;  %v3757_v29 = vld [vmem:[#allocation6 + $0xa48] sm:$0xff] }
 0x340   :  { %6521 = vmatpush2.bf16.msra.mxu1 %v8370_v56  ;;  %6422 = vmatprep.subr.bf16.mxu0 %v8545_v8  ;;  %v8322_v56 = vcombine.low %v3494_v30, %v3498_v7  ;;  %v8625_v8 = vcombine.high %v3797_v37, %v3801_v42  ;;  %v3761_v43 = vld [vmem:[#allocation6 + $0xa68] sm:$0xff]  ;;  %v3702_v30 = vld [vmem:[#allocation6 + $0x890] sm:$0xff] }
 0x341   :  { %6522 = vmatprep.subr.bf16.mxu1 %v8363_v41  ;;  %v8571_v41 = vcombine.high %v3742_v48, %v3746_v51  ;;  %v3706_v7 = vld [vmem:[#allocation6 + $0x8b0] sm:$0xff] }
 0x343   :  { %6423 = vmatpush1.bf16.msra.mxu0 %v8544_v63  ;;  %v8624_v63 = vcombine.low %v3797_v37, %v3801_v42  ;;  %v3749_v37 = vld [vmem:[#allocation6 + $0xa08] sm:$0xff] }
 0x344   :  { %6523 = vmatpush2.bf16.msra.mxu1 %v8362_v0  ;;  %6424 = vmatprep.subr.bf16.mxu0 %v8537_v2  ;;  %v8570_v0 = vcombine.low %v3742_v48, %v3746_v51  ;;  %v8617_v2 = vcombine.high %v3789_v12, %v3793_v45  ;;  %v3753_v42 = vld [vmem:[#allocation6 + $0xa28] sm:$0xff]  ;;  %v3694_v48 = vld [vmem:[#allocation6 + $0x850] sm:$0xff] }
 0x345   :  { %6524 = vmatprep.subr.bf16.mxu1 %v8355_v38  ;;  %v8563_v38 = vcombine.high %v3734_v46, %v3738_v19  ;;  %v3698_v51 = vld [vmem:[#allocation6 + $0x870] sm:$0xff] }
 0x347   :  { %6425 = vmatpush1.bf16.msra.mxu0 %v8536_v20  ;;  %v8616_v20 = vcombine.low %v3789_v12, %v3793_v45  ;;  %v3614_v12 = vld [vmem:[#allocation6 + $0x5d0] sm:$0xff] }
 0x348   :  { %6525 = vmatpush2.bf16.msra.mxu1 %v8354_v21  ;;  %6426 = vmatprep.subr.bf16.mxu0 %v8529_v13  ;;  %v8562_v21 = vcombine.low %v3734_v46, %v3738_v19  ;;  %v8609_v13 = vcombine.high %v3781_v3, %v3785_v5  ;;  %v3618_v45 = vld [vmem:[#allocation6 + $0x5f0] sm:$0xff] }
 0x349   :  { %6526 = vmatprep.subr.bf16.mxu1 %v8347_v16  ;;  %v8555_v16 = vcombine.high %v3726_v6, %v3730_v11  ;;  %v3686_v46 = vld [vmem:[#allocation6 + $0x810] sm:$0xff] }
 0x34a   :  { %v3690_v19 = vld [vmem:[#allocation6 + $0x830] sm:$0xff] }
 0x34b   :  { %6427 = vmatpush1.bf16.msra.mxu0 %v8528_v15  ;;  %v8608_v15 = vcombine.low %v3781_v3, %v3785_v5  ;;  %v3606_v3 = vld [vmem:[#allocation6 + $0x590] sm:$0xff] }
 0x34c   :  { %6527 = vmatpush2.bf16.msra.mxu1 %v8346_v35  ;;  %6428 = vmatprep.subr.bf16.mxu0 %v8521_v23  ;;  %v8554_v35 = vcombine.low %v3726_v6, %v3730_v11  ;;  %v8601_v23 = vcombine.high %v3773_v17, %v3777_v34  ;;  %v3610_v5 = vld [vmem:[#allocation6 + $0x5b0] sm:$0xff] }
 0x34d   :  { %6528 = vmatprep.subr.bf16.mxu1 %v8339_v47  ;;  %v8547_v47 = vcombine.high %v3718_v18, %v3722_v26  ;;  %v3806_v6 = vld [vmem:[#allocation6 + $0xbd0] sm:$0xff] }
 0x34e   :  { %v3810_v11 = vld [vmem:[#allocation6 + $0xbf0] sm:$0xff] }
 0x34f   :  { %6429 = vmatpush1.bf16.msra.mxu0 %v8520_v25  ;;  %v8600_v25 = vcombine.low %v3773_v17, %v3777_v34  ;;  %v3598_v17 = vld [vmem:[#allocation6 + $0x550] sm:$0xff] }
 0x350   :  { %6529 = vmatpush2.bf16.msra.mxu1 %v8338_v36  ;;  %6430 = vmatprep.subr.bf16.mxu0 %v8513_v27  ;;  %v8546_v36 = vcombine.low %v3718_v18, %v3722_v26  ;;  %v8593_v27 = vcombine.high %v3765_v52, %v3769_v24  ;;  %v3602_v34 = vld [vmem:[#allocation6 + $0x570] sm:$0xff] }
 0x351   :  { %6530 = vmatprep.subr.bf16.mxu1 %v8331_v28  ;;  %v8539_v28 = vcombine.high %v3710_v1, %v3714_v4  ;;  %v3798_v18 = vld [vmem:[#allocation6 + $0xb90] sm:$0xff] }
 0x352   :  { %v3802_v26 = vld [vmem:[#allocation6 + $0xbb0] sm:$0xff] }
 0x353   :  { %6431 = vmatpush1.bf16.msra.mxu0 %v8512_v50  ;;  %v8592_v50 = vcombine.low %v3765_v52, %v3769_v24  ;;  %v3590_v52 = vld [vmem:[#allocation6 + $0x510] sm:$0xff] }
 0x354   :  { %6531 = vmatpush2.bf16.msra.mxu1 %v8330_v49  ;;  %6432 = vmatprep.subr.bf16.mxu0 %v8633_v32  ;;  %v8538_v49 = vcombine.low %v3710_v1, %v3714_v4  ;;  %v8585_v32 = vcombine.high %v3757_v29, %v3761_v43  ;;  %v3594_v24 = vld [vmem:[#allocation6 + $0x530] sm:$0xff] }
 0x355   :  { %6532 = vmatprep.subr.bf16.mxu1 %v8323_v33  ;;  %v8531_v33 = vcombine.high %v3702_v30, %v3706_v7  ;;  %v3790_v1 = vld [vmem:[#allocation6 + $0xb50] sm:$0xff] }
 0x356   :  { %v3794_v4 = vld [vmem:[#allocation6 + $0xb70] sm:$0xff] }
 0x357   :  { %6433 = vmatpush2.bf16.msra.mxu0 %v8632_v54  ;;  %v8584_v54 = vcombine.low %v3757_v29, %v3761_v43  ;;  %v3582_v29 = vld [vmem:[#allocation6 + $0x4d0] sm:$0xff] }
 0x358   :  { %6533 = vmatpush2.bf16.msra.mxu1 %v8322_v56  ;;  %6434 = vmatprep.subr.bf16.mxu0 %v8625_v8  ;;  %v8530_v56 = vcombine.low %v3702_v30, %v3706_v7  ;;  %v8577_v8 = vcombine.high %v3749_v37, %v3753_v42  ;;  %v3586_v43 = vld [vmem:[#allocation6 + $0x4f0] sm:$0xff] }
 0x359   :  { %6588 = vmatprep.subr.bf16.mxu1 %v8571_v41  ;;  %v8523_v41 = vcombine.high %v3694_v48, %v3698_v51  ;;  %v3782_v30 = vld [vmem:[#allocation6 + $0xb10] sm:$0xff] }
 0x35a   :  { %v3786_v7 = vld [vmem:[#allocation6 + $0xb30] sm:$0xff] }
 0x35b   :  { %6435 = vmatpush2.bf16.msra.mxu0 %v8624_v63  ;;  %6535 = vmatmul.mubr.bf16.vlgmr.msra.gmra.mxu1 %v10134_v60  ;;  %v8576_v63 = vcombine.low %v3749_v37, %v3753_v42  ;;  %v3574_v37 = vld [vmem:[#allocation6 + $0x490] sm:$0xff] }
 0x35c   :  { %6589 = vmatpush1.bf16.msra.mxu1 %v8570_v0  ;;  %6620 = vmatprep.mubr.bf16.mxu1 %v10236_v40  ;;  %v8522_v0 = vcombine.low %v3694_v48, %v3698_v51  ;;  %v3578_v42 = vld [vmem:[#allocation6 + $0x4b0] sm:$0xff] }
 0x35d   :  { %6436 = vmatprep.subr.bf16.mxu0 %v8617_v2  ;;  %6590 = vmatprep.subr.bf16.mxu1 %v8563_v38  ;;  %v8443_v2 = vcombine.high %v3614_v12, %v3618_v45  ;;  %v8515_v38 = vcombine.high %v3686_v46, %v3690_v19  ;;  %v3774_v48 = vld [vmem:[#allocation6 + $0xad0] sm:$0xff] }
 0x35e   :  { %v3778_v51 = vld [vmem:[#allocation6 + $0xaf0] sm:$0xff] }
 0x35f   :  { %6437 = vmatpush2.bf16.msra.mxu0 %v8616_v20  ;;  %v8442_v20 = vcombine.low %v3614_v12, %v3618_v45  ;;  %v3566_v12 = vld [vmem:[#allocation6 + $0x450] sm:$0xff] }
 0x360   :  { %6591 = vmatpush1.bf16.msra.mxu1 %v8562_v21  ;;  %6438 = vmatprep.subr.bf16.mxu0 %v8609_v13  ;;  %v8514_v21 = vcombine.low %v3686_v46, %v3690_v19  ;;  %v8435_v13 = vcombine.high %v3606_v3, %v3610_v5  ;;  %v3570_v45 = vld [vmem:[#allocation6 + $0x470] sm:$0xff] }
 0x361   :  { %6592 = vmatprep.subr.bf16.mxu1 %v8555_v16  ;;  %v8635_v16 = vcombine.high %v3806_v6, %v3810_v11  ;;  %v3766_v46 = vld [vmem:[#allocation6 + $0xa90] sm:$0xff] }
 0x362   :  { %v3770_v19 = vld [vmem:[#allocation6 + $0xab0] sm:$0xff] }
 0x363   :  { %6439 = vmatpush2.bf16.msra.mxu0 %v8608_v15  ;;  %v8434_v15 = vcombine.low %v3606_v3, %v3610_v5  ;;  %v3558_v3 = vld [vmem:[#allocation6 + $0x410] sm:$0xff] }
 0x364   :  { %6593 = vmatpush1.bf16.msra.mxu1 %v8554_v35  ;;  %6440 = vmatprep.subr.bf16.mxu0 %v8601_v23  ;;  %v8634_v35 = vcombine.low %v3806_v6, %v3810_v11  ;;  %v8427_v23 = vcombine.high %v3598_v17, %v3602_v34  ;;  %v3562_v5 = vld [vmem:[#allocation6 + $0x430] sm:$0xff] }
 0x365   :  { %6594 = vmatprep.subr.bf16.mxu1 %v8547_v47  ;;  %v8627_v47 = vcombine.high %v3798_v18, %v3802_v26  ;;  %v3758_v6 = vld [vmem:[#allocation6 + $0xa50] sm:$0xff] }
 0x366   :  { %v3762_v11 = vld [vmem:[#allocation6 + $0xa70] sm:$0xff] }
 0x367   :  { %6441 = vmatpush2.bf16.msra.mxu0 %v8600_v25  ;;  %v8426_v25 = vcombine.low %v3598_v17, %v3602_v34  ;;  %v3678_v17 = vld [vmem:[#allocation6 + $0x7d0] sm:$0xff] }
 0x368   :  { %6595 = vmatpush1.bf16.msra.mxu1 %v8546_v36  ;;  %6442 = vmatprep.subr.bf16.mxu0 %v8593_v27  ;;  %v8626_v36 = vcombine.low %v3798_v18, %v3802_v26  ;;  %v8419_v27 = vcombine.high %v3590_v52, %v3594_v24  ;;  %v3682_v34 = vld [vmem:[#allocation6 + $0x7f0] sm:$0xff] }
 0x369   :  { %6596 = vmatprep.subr.bf16.mxu1 %v8539_v28  ;;  %v8619_v28 = vcombine.high %v3790_v1, %v3794_v4  ;;  %v3750_v18 = vld [vmem:[#allocation6 + $0xa10] sm:$0xff] }
 0x36a   :  { %v3754_v26 = vld [vmem:[#allocation6 + $0xa30] sm:$0xff] }
 0x36b   :  { %6443 = vmatpush2.bf16.msra.mxu0 %v8592_v50  ;;  %v8418_v50 = vcombine.low %v3590_v52, %v3594_v24  ;;  %v3670_v52 = vld [vmem:[#allocation6 + $0x790] sm:$0xff] }
 0x36c   :  { %6597 = vmatpush1.bf16.msra.mxu1 %v8538_v49  ;;  %6444 = vmatprep.subr.bf16.mxu0 %v8585_v32  ;;  %v8618_v49 = vcombine.low %v3790_v1, %v3794_v4  ;;  %v8411_v32 = vcombine.high %v3582_v29, %v3586_v43  ;;  %v3674_v24 = vld [vmem:[#allocation6 + $0x7b0] sm:$0xff]  ;;  %v3615_v1 = vld [vmem:[#allocation6 + $0x5d8] sm:$0xff] }
 0x36d   :  { %6598 = vmatprep.subr.bf16.mxu1 %v8531_v33  ;;  %v8611_v33 = vcombine.high %v3782_v30, %v3786_v7  ;;  %v3619_v4 = vld [vmem:[#allocation6 + $0x5f8] sm:$0xff] }
 0x36f   :  { %6445 = vmatpush2.bf16.msra.mxu0 %v8584_v54  ;;  %v8410_v54 = vcombine.low %v3582_v29, %v3586_v43  ;;  %v3662_v29 = vld [vmem:[#allocation6 + $0x750] sm:$0xff] }
 0x370   :  { %6599 = vmatpush1.bf16.msra.mxu1 %v8530_v56  ;;  %6446 = vmatprep.subr.bf16.mxu0 %v8577_v8  ;;  %v8610_v56 = vcombine.low %v3782_v30, %v3786_v7  ;;  %v8403_v8 = vcombine.high %v3574_v37, %v3578_v42  ;;  %v3666_v43 = vld [vmem:[#allocation6 + $0x770] sm:$0xff]  ;;  %v3607_v30 = vld [vmem:[#allocation6 + $0x598] sm:$0xff] }
 0x371   :  { %6600 = vmatprep.subr.bf16.mxu1 %v8523_v41  ;;  %v8603_v41 = vcombine.high %v3774_v48, %v3778_v51  ;;  %v3611_v7 = vld [vmem:[#allocation6 + $0x5b8] sm:$0xff] }
 0x373   :  { %6447 = vmatpush2.bf16.msra.mxu0 %v8576_v63  ;;  %v8402_v63 = vcombine.low %v3574_v37, %v3578_v42  ;;  %v3654_v37 = vld [vmem:[#allocation6 + $0x710] sm:$0xff] }
 0x374   :  { %6601 = vmatpush1.bf16.msra.mxu1 %v8522_v0  ;;  %6545 = vmatprep.subr.bf16.mxu0 %v8443_v2  ;;  %v8602_v0 = vcombine.low %v3774_v48, %v3778_v51  ;;  %v8395_v2 = vcombine.high %v3566_v12, %v3570_v45  ;;  %v3658_v42 = vld [vmem:[#allocation6 + $0x730] sm:$0xff]  ;;  %v3599_v48 = vld [vmem:[#allocation6 + $0x558] sm:$0xff] }
 0x375   :  { %6602 = vmatprep.subr.bf16.mxu1 %v8515_v38  ;;  %v8595_v38 = vcombine.high %v3766_v46, %v3770_v19  ;;  %v3603_v51 = vld [vmem:[#allocation6 + $0x578] sm:$0xff] }
 0x376   :  { %6449 = vmatmul.mubr.bf16.vlgmr.msra.gmra.mxu0 %v10240_v44 }
 0x377   :  { %6546 = vmatpush1.bf16.msra.mxu0 %v8442_v20  ;;  %6577 = vmatprep.mubr.bf16.mxu0 %v10194_v62  ;;  %v8394_v20 = vcombine.low %v3566_v12, %v3570_v45  ;;  %v3646_v12 = vld [vmem:[#allocation6 + $0x6d0] sm:$0xff] }
 0x378   :  { %6603 = vmatpush1.bf16.msra.mxu1 %v8514_v21  ;;  %6547 = vmatprep.subr.bf16.mxu0 %v8435_v13  ;;  %v8594_v21 = vcombine.low %v3766_v46, %v3770_v19  ;;  %v8387_v13 = vcombine.high %v3558_v3, %v3562_v5  ;;  %v3650_v45 = vld [vmem:[#allocation6 + $0x6f0] sm:$0xff]  ;;  %v3591_v46 = vld [vmem:[#allocation6 + $0x518] sm:$0xff] }
 0x379   :  { %6604 = vmatprep.subr.bf16.mxu1 %v8635_v16  ;;  %v8587_v16 = vcombine.high %v3758_v6, %v3762_v11  ;;  %v3595_v19 = vld [vmem:[#allocation6 + $0x538] sm:$0xff] }
 0x37b   :  { %6548 = vmatpush1.bf16.msra.mxu0 %v8434_v15  ;;  %v8386_v15 = vcombine.low %v3558_v3, %v3562_v5  ;;  %v3638_v3 = vld [vmem:[#allocation6 + $0x690] sm:$0xff] }
 0x37c   :  { %6605 = vmatpush2.bf16.msra.mxu1 %v8634_v35  ;;  %6549 = vmatprep.subr.bf16.mxu0 %v8427_v23  ;;  %v8586_v35 = vcombine.low %v3758_v6, %v3762_v11  ;;  %v8507_v23 = vcombine.high %v3678_v17, %v3682_v34  ;;  %v3642_v5 = vld [vmem:[#allocation6 + $0x6b0] sm:$0xff]  ;;  %v3587_v6 = vld [vmem:[#allocation6 + $0x4f8] sm:$0xff]  ;;  %v8474_v11 = vcombine.low %v3646_v12, %v3650_v45 }
 0x37d   :  { %6606 = vmatprep.subr.bf16.mxu1 %v8627_v47  ;;  %v8579_v47 = vcombine.high %v3750_v18, %v3754_v26 }
 0x37f   :  { %6550 = vmatpush1.bf16.msra.mxu0 %v8426_v25  ;;  %v8506_v25 = vcombine.low %v3678_v17, %v3682_v34  ;;  %v3634_v17 = vld [vmem:[#allocation6 + $0x670] sm:$0xff]  ;;  %v3575_v34 = vld [vmem:[#allocation6 + $0x498] sm:$0xff] }
 0x380   :  { %6607 = vmatpush2.bf16.msra.mxu1 %v8626_v36  ;;  %6551 = vmatprep.subr.bf16.mxu0 %v8419_v27  ;;  %v8578_v36 = vcombine.low %v3750_v18, %v3754_v26  ;;  %v8499_v27 = vcombine.high %v3670_v52, %v3674_v24  ;;  %v3579_v18 = vld [vmem:[#allocation6 + $0x4b8] sm:$0xff]  ;;  %v8466_v26 = vcombine.low %v3638_v3, %v3642_v5 }
 0x381   :  { %6608 = vmatprep.subr.bf16.mxu1 %v8619_v28  ;;  %v8445_v28 = vcombine.high %v3615_v1, %v3619_v4 }
 0x383   :  { %6552 = vmatpush1.bf16.msra.mxu0 %v8418_v50  ;;  %v8498_v50 = vcombine.low %v3670_v52, %v3674_v24  ;;  %v3626_v52 = vld [vmem:[#allocation6 + $0x630] sm:$0xff]  ;;  %v3567_v24 = vld [vmem:[#allocation6 + $0x458] sm:$0xff] }
 0x384   :  { %6609 = vmatpush2.bf16.msra.mxu1 %v8618_v49  ;;  %6553 = vmatprep.subr.bf16.mxu0 %v8411_v32  ;;  %v8444_v49 = vcombine.low %v3615_v1, %v3619_v4  ;;  %v8491_v32 = vcombine.high %v3662_v29, %v3666_v43  ;;  %v3571_v1 = vld [vmem:[#allocation6 + $0x478] sm:$0xff] }
 0x385   :  { %6610 = vmatprep.subr.bf16.mxu1 %v8611_v33  ;;  %v8437_v33 = vcombine.high %v3607_v30, %v3611_v7 }
 0x387   :  { %6554 = vmatpush1.bf16.msra.mxu0 %v8410_v54  ;;  %v8490_v54 = vcombine.low %v3662_v29, %v3666_v43  ;;  %v3874_v29 = vld [vmem:[#allocation6 + $0xdf0] sm:$0xff]  ;;  %v3559_v43 = vld [vmem:[#allocation6 + $0x418] sm:$0xff] }
 0x388   :  { %6611 = vmatpush2.bf16.msra.mxu1 %v8610_v56  ;;  %6555 = vmatprep.subr.bf16.mxu0 %v8403_v8  ;;  %v8436_v56 = vcombine.low %v3607_v30, %v3611_v7  ;;  %v8483_v8 = vcombine.high %v3654_v37, %v3658_v42  ;;  %v3563_v30 = vld [vmem:[#allocation6 + $0x438] sm:$0xff] }
 0x389   :  { %6612 = vmatprep.subr.bf16.mxu1 %v8603_v41  ;;  %v8429_v41 = vcombine.high %v3599_v48, %v3603_v51 }
 0x38b   :  { %6556 = vmatpush1.bf16.msra.mxu0 %v8402_v63  ;;  %v8482_v63 = vcombine.low %v3654_v37, %v3658_v42  ;;  %v3866_v37 = vld [vmem:[#allocation6 + $0xdb0] sm:$0xff]  ;;  %v3679_v42 = vld [vmem:[#allocation6 + $0x7d8] sm:$0xff] }
 0x38c   :  { %6613 = vmatpush2.bf16.msra.mxu1 %v8602_v0  ;;  %6557 = vmatprep.subr.bf16.mxu0 %v8395_v2  ;;  %v8428_v0 = vcombine.low %v3599_v48, %v3603_v51  ;;  %v8475_v2 = vcombine.high %v3646_v12, %v3650_v45  ;;  %v3683_v48 = vld [vmem:[#allocation6 + $0x7f8] sm:$0xff]  ;;  %v3858_v12 = vld [vmem:[#allocation6 + $0xd70] sm:$0xff] }
 0x38d   :  { %6614 = vmatprep.subr.bf16.mxu1 %v8595_v38  ;;  %v8421_v38 = vcombine.high %v3591_v46, %v3595_v19  ;;  %v3671_v45 = vld [vmem:[#allocation6 + $0x798] sm:$0xff] }
 0x38f   :  { %6558 = vmatpush1.bf16.msra.mxu0 %v8394_v20  ;;  %v8420_v20 = vcombine.low %v3591_v46, %v3595_v19  ;;  %v3675_v46 = vld [vmem:[#allocation6 + $0x7b8] sm:$0xff] }
 0x390   :  { %6615 = vmatpush2.bf16.msra.mxu1 %v8594_v21  ;;  %6559 = vmatprep.subr.bf16.mxu0 %v8387_v13  ;;  %v8467_v21 = vcombine.high %v3638_v3, %v3642_v5  ;;  %v3850_v3 = vld [vmem:[#allocation6 + $0xd30] sm:$0xff]  ;;  %v3663_v5 = vld [vmem:[#allocation6 + $0x758] sm:$0xff] }
 0x391   :  { %6616 = vmatprep.subr.bf16.mxu1 %v8587_v16  ;;  %v3630_v16 = vld [vmem:[#allocation6 + $0x650] sm:$0xff] }
 0x392   :  { %v8458_v4 = vcombine.low %v3630_v16, %v3634_v17 }
 0x393   :  { %6560 = vmatpush1.bf16.msra.mxu0 %v8386_v15 }
 0x394   :  { %6617 = vmatpush2.bf16.msra.mxu1 %v8586_v35  ;;  %6561 = vmatprep.subr.bf16.mxu0 %v8507_v23  ;;  %v8459_v35 = vcombine.high %v3630_v16, %v3634_v17  ;;  %v8405_v23 = vcombine.high %v3575_v34, %v3579_v18  ;;  %v3842_v16 = vld [vmem:[#allocation6 + $0xcf0] sm:$0xff]  ;;  %v3655_v17 = vld [vmem:[#allocation6 + $0x718] sm:$0xff] }
 0x395   :  { %6618 = vmatprep.subr.bf16.mxu1 %v8579_v47  ;;  %v3622_v47 = vld [vmem:[#allocation6 + $0x610] sm:$0xff] }
 0x396   :  { %v8450_v7 = vcombine.low %v3622_v47, %v3626_v52 }
 0x397   :  { %6562 = vmatpush2.bf16.msra.mxu0 %v8506_v25  ;;  %v8404_v25 = vcombine.low %v3575_v34, %v3579_v18  ;;  %v3659_v34 = vld [vmem:[#allocation6 + $0x738] sm:$0xff] }
 0x398   :  { %6619 = vmatpush2.bf16.msra.mxu1 %v8578_v36  ;;  %6563 = vmatprep.subr.bf16.mxu0 %v8499_v27  ;;  %v8451_v36 = vcombine.high %v3622_v47, %v3626_v52  ;;  %v8397_v27 = vcombine.high %v3567_v24, %v3571_v1  ;;  %v3834_v47 = vld [vmem:[#allocation6 + $0xcb0] sm:$0xff]  ;;  %v3647_v52 = vld [vmem:[#allocation6 + $0x6d8] sm:$0xff] }
 0x399   :  { %6717 = vmatprep.subr.bf16.mxu1 %v8445_v28  ;;  %v3870_v28 = vld [vmem:[#allocation6 + $0xdd0] sm:$0xff] }
 0x39a   :  { %v8698_v51 = vcombine.low %v3870_v28, %v3874_v29 }
 0x39b   :  { %6564 = vmatpush2.bf16.msra.mxu0 %v8498_v50  ;;  %6621 = vmatmul.mubr.bf16.vlgmr.msra.gmra.mxu1 %v10240_v44  ;;  %v8396_v50 = vcombine.low %v3567_v24, %v3571_v1  ;;  %v3651_v24 = vld [vmem:[#allocation6 + $0x6f8] sm:$0xff] }
 0x39c   :  { %6718 = vmatpush1.bf16.msra.mxu1 %v8444_v49  ;;  %6749 = vmatprep.mubr.bf16.mxu1 %v10194_v62  ;;  %v3583_v62 = vld [vmem:[#allocation6 + $0x4d8] sm:$0xff]  ;;  %v8699_v49 = vcombine.high %v3870_v28, %v3874_v29  ;;  %v3826_v28 = vld [vmem:[#allocation6 + $0xc70] sm:$0xff] }
 0x39d   :  { %6565 = vmatprep.subr.bf16.mxu0 %v8491_v32  ;;  %6719 = vmatprep.subr.bf16.mxu1 %v8437_v33  ;;  %v8413_v13 = vcombine.high %v3583_v62, %v3587_v6  ;;  %v8412_v15 = vcombine.low %v3583_v62, %v3587_v6  ;;  %v8389_v32 = vcombine.high %v3559_v43, %v3563_v30  ;;  %v3862_v33 = vld [vmem:[#allocation6 + $0xd90] sm:$0xff]  ;;  %v3667_v62 = vld [vmem:[#allocation6 + $0x778] sm:$0xff] }
 0x39e   :  { %v8690_v19 = vcombine.low %v3862_v33, %v3866_v37  ;;  %v3639_v29 = vld [vmem:[#allocation6 + $0x698] sm:$0xff] }
 0x39f   :  { %6566 = vmatpush2.bf16.msra.mxu0 %v8490_v54  ;;  %v8388_v54 = vcombine.low %v3559_v43, %v3563_v30  ;;  %v3643_v43 = vld [vmem:[#allocation6 + $0x6b8] sm:$0xff] }
 0x3a0   :  { %6720 = vmatpush1.bf16.msra.mxu1 %v8436_v56  ;;  %6567 = vmatprep.subr.bf16.mxu0 %v8483_v8  ;;  %v8691_v56 = vcombine.high %v3862_v33, %v3866_v37  ;;  %v8509_v8 = vcombine.high %v3679_v42, %v3683_v48  ;;  %v3818_v33 = vld [vmem:[#allocation6 + $0xc30] sm:$0xff]  ;;  %v3631_v37 = vld [vmem:[#allocation6 + $0x658] sm:$0xff] }
 0x3a1   :  { %6721 = vmatprep.subr.bf16.mxu1 %v8429_v41  ;;  %v3854_v41 = vld [vmem:[#allocation6 + $0xd50] sm:$0xff] }
 0x3a2   :  { %v8682_v6 = vcombine.low %v3854_v41, %v3858_v12 }
 0x3a3   :  { %6568 = vmatpush2.bf16.msra.mxu0 %v8482_v63  ;;  %v8508_v63 = vcombine.low %v3679_v42, %v3683_v48  ;;  %v3635_v42 = vld [vmem:[#allocation6 + $0x678] sm:$0xff] }
 0x3a4   :  { %6722 = vmatpush1.bf16.msra.mxu1 %v8428_v0  ;;  %6569 = vmatprep.subr.bf16.mxu0 %v8475_v2  ;;  %v8683_v0 = vcombine.high %v3854_v41, %v3858_v12  ;;  %v8501_v2 = vcombine.high %v3671_v45, %v3675_v46  ;;  %v3491_v41 = vld [vmem:[#allocation6 + $0x1f8] sm:$0xff] }
 0x3a5   :  { %6723 = vmatprep.subr.bf16.mxu1 %v8421_v38  ;;  %v3846_v38 = vld [vmem:[#allocation6 + $0xd10] sm:$0xff]  ;;  %v3623_v12 = vld [vmem:[#allocation6 + $0x618] sm:$0xff] }
 0x3a6   :  { %v8674_v18 = vcombine.low %v3846_v38, %v3850_v3 }
 0x3a7   :  { %6570 = vmatpush2.bf16.msra.mxu0 %v8474_v11  ;;  %v8500_v11 = vcombine.low %v3671_v45, %v3675_v46  ;;  %v3627_v45 = vld [vmem:[#allocation6 + $0x638] sm:$0xff] }
 0x3a8   :  { %6724 = vmatpush1.bf16.msra.mxu1 %v8420_v20  ;;  %6571 = vmatprep.subr.bf16.mxu0 %v8467_v21  ;;  %v8675_v20 = vcombine.high %v3846_v38, %v3850_v3  ;;  %v8493_v21 = vcombine.high %v3663_v5, %v3667_v62  ;;  %v3483_v38 = vld [vmem:[#allocation6 + $0x1b8] sm:$0xff] }
 0x3a9   :  { %6725 = vmatprep.subr.bf16.mxu1 %v8413_v13  ;;  %v3838_v13 = vld [vmem:[#allocation6 + $0xcd0] sm:$0xff]  ;;  %v3871_v3 = vld [vmem:[#allocation6 + $0xdd8] sm:$0xff] }
 0x3aa   :  { %v8666_v1 = vcombine.low %v3838_v13, %v3842_v16 }
 0x3ab   :  { %6572 = vmatpush2.bf16.msra.mxu0 %v8466_v26  ;;  %v8492_v26 = vcombine.low %v3663_v5, %v3667_v62  ;;  %v3875_v5 = vld [vmem:[#allocation6 + $0xdf8] sm:$0xff]  ;;  %v10270_v62 = vpop.f32.mrf.mxu1 }
 0x3ac   :  { %6726 = vmatpush1.bf16.msra.mxu1 %v8412_v15  ;;  %6573 = vmatprep.subr.bf16.mxu0 %v8459_v35  ;;  %v8667_v15 = vcombine.high %v3838_v13, %v3842_v16  ;;  %v8485_v35 = vcombine.high %v3655_v17, %v3659_v34  ;;  %v8701_v13 = vcombine.high %v3871_v3, %v3875_v5  ;;  %v3471_v16 = vld [vmem:[#allocation6 + $0x158] sm:$0xff] }
 0x3ad   :  { %6727 = vmatprep.subr.bf16.mxu1 %v8405_v23  ;;  %v3830_v23 = vld [vmem:[#allocation6 + $0xc90] sm:$0xff] }
 0x3ae   :  { %v8658_v30 = vcombine.low %v3830_v23, %v3834_v47 }
 0x3af   :  { %6574 = vmatpush2.bf16.msra.mxu0 %v8458_v4  ;;  %v8484_v4 = vcombine.low %v3655_v17, %v3659_v34  ;;  %v3475_v17 = vld [vmem:[#allocation6 + $0x178] sm:$0xff] }
 0x3b0   :  { %6728 = vmatpush1.bf16.msra.mxu1 %v8404_v25  ;;  %6575 = vmatprep.subr.bf16.mxu0 %v8451_v36  ;;  %v8659_v25 = vcombine.high %v3830_v23, %v3834_v47  ;;  %v8477_v36 = vcombine.high %v3647_v52, %v3651_v24  ;;  %v3863_v34 = vld [vmem:[#allocation6 + $0xd98] sm:$0xff]  ;;  %v8301_v23 = vcombine.high %v3471_v16, %v3475_v17 }
 0x3b1   :  { %6729 = vmatprep.subr.bf16.mxu1 %v8397_v27  ;;  %v3822_v27 = vld [vmem:[#allocation6 + $0xc50] sm:$0xff] }
 0x3b2   :  { %v8650_v48 = vcombine.low %v3822_v27, %v3826_v28 }
 0x3b3   :  { %6576 = vmatpush2.bf16.msra.mxu0 %v8450_v7  ;;  %v8476_v7 = vcombine.low %v3647_v52, %v3651_v24  ;;  %v3463_v24 = vld [vmem:[#allocation6 + $0x118] sm:$0xff] }
 0x3b4   :  { %6730 = vmatpush1.bf16.msra.mxu1 %v8396_v50  ;;  %6631 = vmatprep.subr.bf16.mxu0 %v8699_v49  ;;  %v8651_v50 = vcombine.high %v3822_v27, %v3826_v28  ;;  %v8469_v49 = vcombine.high %v3639_v29, %v3643_v43  ;;  %v8300_v27 = vcombine.low %v3471_v16, %v3475_v17 }
 0x3b5   :  { %6731 = vmatprep.subr.bf16.mxu1 %v8389_v32  ;;  %v3814_v32 = vld [vmem:[#allocation6 + $0xc10] sm:$0xff] }
 0x3b6   :  { %6578 = vmatmul.mubr.bf16.vlgmr.msra.gmra.mxu0 %v10210_v10  ;;  %v8642_v46 = vcombine.low %v3814_v32, %v3818_v33 }
 0x3b7   :  { %6632 = vmatpush1.bf16.msra.mxu0 %v8698_v51  ;;  %6663 = vmatprep.mubr.bf16.mxu0 %v9916_v14  ;;  %v8468_v51 = vcombine.low %v3639_v29, %v3643_v43 }
 0x3b8   :  { %6732 = vmatpush1.bf16.msra.mxu1 %v8388_v54  ;;  %6633 = vmatprep.subr.bf16.mxu0 %v8691_v56  ;;  %v8643_v54 = vcombine.high %v3814_v32, %v3818_v33  ;;  %v8461_v56 = vcombine.high %v3631_v37, %v3635_v42 }
 0x3b9   :  { %6733 = vmatprep.subr.bf16.mxu1 %v8509_v8  ;;  %v3487_v8 = vld [vmem:[#allocation6 + $0x1d8] sm:$0xff] }
 0x3bb   :  { %6634 = vmatpush1.bf16.msra.mxu0 %v8690_v19  ;;  %v8460_v19 = vcombine.low %v3631_v37, %v3635_v42 }
 0x3bc   :  { %6734 = vmatpush2.bf16.msra.mxu1 %v8508_v63  ;;  %6635 = vmatprep.subr.bf16.mxu0 %v8683_v0  ;;  %v8317_v63 = vcombine.high %v3487_v8, %v3491_v41  ;;  %v8453_v0 = vcombine.high %v3623_v12, %v3627_v45 }
 0x3bd   :  { %6735 = vmatprep.subr.bf16.mxu1 %v8501_v2  ;;  %v3479_v2 = vld [vmem:[#allocation6 + $0x198] sm:$0xff] }
 0x3bf   :  { %6636 = vmatpush1.bf16.msra.mxu0 %v8682_v6  ;;  %v8316_v6 = vcombine.low %v3487_v8, %v3491_v41  ;;  %v3839_v8 = vld [vmem:[#allocation6 + $0xcd8] sm:$0xff] }
 0x3c0   :  { %6736 = vmatpush2.bf16.msra.mxu1 %v8500_v11  ;;  %6637 = vmatprep.subr.bf16.mxu0 %v8675_v20  ;;  %v8452_v11 = vcombine.low %v3623_v12, %v3627_v45  ;;  %v8309_v20 = vcombine.high %v3479_v2, %v3483_v38  ;;  %v3843_v41 = vld [vmem:[#allocation6 + $0xcf8] sm:$0xff] }
 0x3c1   :  { %6737 = vmatprep.subr.bf16.mxu1 %v8493_v21  ;;  %v10272_v21 = vpop.f32.mrf.mxu0 }
 0x3c3   :  { %6638 = vmatpush1.bf16.msra.mxu0 %v8674_v18  ;;  %v3867_v18 = vld [vmem:[#allocation6 + $0xdb8] sm:$0xff]  ;;  %v10278_v47 = vpop.f32.mrf.mxu0 }
 0x3c4   :  { %6738 = vmatpush2.bf16.msra.mxu1 %v8492_v26  ;;  %6639 = vmatprep.subr.bf16.mxu0 %v8667_v15  ;;  %v10275_v26 = vpop.f32.mrf.mxu1  ;;  %v8308_v15 = vcombine.low %v3479_v2, %v3483_v38  ;;  %v8693_v52 = vcombine.high %v3863_v34, %v3867_v18  ;;  %v3443_v2 = vld [vmem:[#allocation6 + $0x78] sm:$0xff] }
 0x3c5   :  { %6739 = vmatprep.subr.bf16.mxu1 %v8485_v35  ;;  %v8700_v35 = vcombine.low %v3871_v3, %v3875_v5  ;;  %v10283_v29 = vpop.f32.mrf.mxu0  ;;  %v3831_v38 = vld [vmem:[#allocation6 + $0xc98] sm:$0xff] }
 0x3c6   :  { %v3835_v3 = vld [vmem:[#allocation6 + $0xcb8] sm:$0xff] }
 0x3c7   :  { %6640 = vmatpush1.bf16.msra.mxu0 %v8666_v1  ;;  %v3467_v1 = vld [vmem:[#allocation6 + $0x138] sm:$0xff]  ;;  %v6241_v42 = vpop.f32.mrf.mxu0 }
 0x3c8   :  { %6740 = vmatpush2.bf16.msra.mxu1 %v8484_v4  ;;  %6641 = vmatprep.subr.bf16.mxu0 %v8659_v25  ;;  %v3855_v4 = vld [vmem:[#allocation6 + $0xd58] sm:$0xff]  ;;  %v8293_v28 = vcombine.high %v3463_v24, %v3467_v1  ;;  %v8292_v33 = vcombine.low %v3463_v24, %v3467_v1 }
 0x3c9   :  { %6741 = vmatprep.subr.bf16.mxu1 %v8477_v36  ;;  %v3859_v25 = vld [vmem:[#allocation6 + $0xd78] sm:$0xff]  ;;  %v10280_v36 = vpop.f32.mrf.mxu1  ;;  %v10288_v12 = vpop.f32.mrf.mxu0 }
 0x3ca   :  { %v8685_v43 = vcombine.high %v3855_v4, %v3859_v25 }
 0x3cb   :  { %6642 = vmatpush1.bf16.msra.mxu0 %v8658_v30  ;;  %v3455_v30 = vld [vmem:[#allocation6 + $0xd8] sm:$0xff]  ;;  %v6198_v32 = vpop.f32.mrf.mxu1  ;;  %v6323_v5 = vpop.f32.mrf.mxu0 }
 0x3cc   :  { %6742 = vmatpush2.bf16.msra.mxu1 %v8476_v7  ;;  %6643 = vmatprep.subr.bf16.mxu0 %v8651_v50  ;;  %v3459_v7 = vld [vmem:[#allocation6 + $0xf8] sm:$0xff] }
 0x3cd   :  { %6743 = vmatprep.subr.bf16.mxu1 %v8469_v49  ;;  %v3847_v50 = vld [vmem:[#allocation6 + $0xd18] sm:$0xff]  ;;  %v8285_v37 = vcombine.high %v3455_v30, %v3459_v7 }
 0x3ce   :  { %v3851_v49 = vld [vmem:[#allocation6 + $0xd38] sm:$0xff] }
 0x3cf   :  { %6644 = vmatpush1.bf16.msra.mxu0 %v8650_v48  ;;  %v10286_v48 = vpop.f32.mrf.mxu1  ;;  %v8676_v45 = vcombine.low %v3847_v50, %v3851_v49 }
 0x3d0   :  { %6744 = vmatpush2.bf16.msra.mxu1 %v8468_v51  ;;  %6645 = vmatprep.subr.bf16.mxu0 %v8643_v54  ;;  %v8677_v51 = vcombine.high %v3847_v50, %v3851_v49  ;;  %v3447_v54 = vld [vmem:[#allocation6 + $0x98] sm:$0xff] }
 0x3d1   :  { %6745 = vmatprep.subr.bf16.mxu1 %v8461_v56  ;;  %v3451_v56 = vld [vmem:[#allocation6 + $0xb8] sm:$0xff] }
 0x3d2   :  { %v3819_v50 = vld [vmem:[#allocation6 + $0xc38] sm:$0xff] }
 0x3d3   :  { %6646 = vmatpush1.bf16.msra.mxu0 %v8642_v46  ;;  %v8277_v46 = vcombine.high %v3447_v54, %v3451_v56 }
 0x3d4   :  { %6746 = vmatpush2.bf16.msra.mxu1 %v8460_v19  ;;  %6674 = vmatprep.subr.bf16.mxu0 %v8317_v63  ;;  %v6280_v19 = vpop.f32.mrf.mxu1  ;;  %v8669_v63 = vcombine.high %v3839_v8, %v3843_v41 }
 0x3d5   :  { %6747 = vmatprep.subr.bf16.mxu1 %v8453_v0  ;;  %v3439_v0 = vld [vmem:[#allocation6 + $0x58] sm:$0xff] }
 0x3d6   :  { %6664 = vmatmul.mubr.bf16.vlgmr.msra.gmra.mxu0 %v10249_v55  ;;  %v10295_v17 = vpop.f32.mrf.mxu1  ;;  %v8268_v24 = vcombine.low %v3439_v0, %v3443_v2 }
 0x3d7   :  { %6675 = vmatpush1.bf16.msra.mxu0 %v8316_v6  ;;  %6706 = vmatprep.mubr.bf16.mxu0 %v10158_v39  ;;  %v8692_v39 = vcombine.low %v3863_v34, %v3867_v18  ;;  %v8276_v6 = vcombine.low %v3447_v54, %v3451_v56  ;;  %v8661_v34 = vcombine.high %v3831_v38, %v3835_v3  ;;  %v3431_v18 = vld [vmem:[#allocation6 + $0x18] sm:$0xff] }
 0x3d8   :  { %6748 = vmatpush2.bf16.msra.mxu1 %v8452_v11  ;;  %6676 = vmatprep.subr.bf16.mxu0 %v8309_v20  ;;  %v10290_v11 = vld [vmem:[#allocation7] sm:$0xff]  ;;  %v8668_v20 = vcombine.low %v3839_v8, %v3843_v41  ;;  %v3543_v54 = vld [vmem:[#allocation6 + $0x398] sm:$0xff] }
 0x3d9   :  { %6803 = vmatprep.subr.bf16.mxu1 %v8701_v13  ;;  %v8269_v13 = vcombine.high %v3439_v0, %v3443_v2  ;;  %v3885_v16 = vrot.slane %v10290_v11, %v646_v58  ;;  %v6284_v58 = vpop.f32.mrf.mxu1  ;;  %v3547_v56 = vld [vmem:[#allocation6 + $0x3b8] sm:$0xff] }
 0x3da   :  { %v3535_v0 = vld [vmem:[#allocation6 + $0x358] sm:$0xff] }
 0x3db   :  { %6677 = vmatpush1.bf16.msra.mxu0 %v8308_v15  ;;  %6750 = vmatmul.mubr.bf16.vlgmr.msra.gmra.mxu1 %v10210_v10  ;;  %v8684_v10 = vcombine.low %v3855_v4, %v3859_v25  ;;  %v3435_v15 = vld [vmem:[#allocation6 + $0x38] sm:$0xff]  ;;  %v6199_v1 = vadd.f32 %v6198_v32, %v3885_v16  ;;  %v8660_v4 = vcombine.low %v3831_v38, %v3835_v3 }
 0x3dc   :  { %6804 = vmatpush1.bf16.msra.mxu1 %v8700_v35  ;;  %6678 = vmatprep.subr.bf16.mxu0 %v8301_v23  ;;  %v3823_v35 = vld [vmem:[#allocation6 + $0xc58] sm:$0xff]  ;;  %v8261_v25 = vcombine.high %v3431_v18, %v3435_v15  ;;  %v8372_v38 = vcombine.low %v3543_v54, %v3547_v56 }
 0x3dd   :  { %6805 = vmatprep.subr.bf16.mxu1 %v8693_v52  ;;  %6835 = vmatprep.mubr.bf16.mxu1 %v9916_v14  ;;  %v8284_v14 = vcombine.low %v3455_v30, %v3459_v7  ;;  %v3827_v23 = vld [vmem:[#allocation6 + $0xc78] sm:$0xff]  ;;  %v10297_v52 = vpop.f32.mrf.mxu0  ;;  %v6242_v30 = vadd.f32 %v6241_v42, %v6199_v1 }
 0x3de   :  { %v3815_v7 = vld [vmem:[#allocation6 + $0xc18] sm:$0xff] }
 0x3df   :  { %6679 = vmatpush1.bf16.msra.mxu0 %v8300_v27  ;;  %v6195_v27 = vadd.f32 %v10275_v26, %v3885_v16  ;;  %v6285_v32 = vadd.f32 %v6284_v58, %v6242_v30  ;;  %v8645_v26 = vcombine.high %v3815_v7, %v3819_v50  ;;  %v3539_v2 = vld [vmem:[#allocation6 + $0x378] sm:$0xff]  ;;  %v9602_v30 = vld [vmem:[%s10569_s5 + $0x58] sm:$0xff]  }
 0x3e0   :  { %6806 = vmatpush1.bf16.msra.mxu1 %v8692_v39  ;;  %6680 = vmatprep.subr.bf16.mxu0 %v8293_v28  ;;  %v8653_v39 = vcombine.high %v3823_v35, %v3827_v23  ;;  %v3551_v28 = vld [vmem:[#allocation6 + $0x3d8] sm:$0xff] }
 0x3e1   :  { %6807 = vmatprep.subr.bf16.mxu1 %v8685_v43  ;;  %v3555_v43 = vld [vmem:[#allocation6 + $0x3f8] sm:$0xff]  ;;  %v6238_v49 = vadd.f32 %v10278_v47, %v6195_v27  ;;  %v8644_v47 = vcombine.low %v3815_v7, %v3819_v50 }
 0x3e2   :  { %v8380_v42 = vcombine.low %v3551_v28, %v3555_v43  ;;  %v3511_v27 = vld [vmem:[#allocation6 + $0x298] sm:$0xff] }
 0x3e3   :  { %6681 = vmatpush1.bf16.msra.mxu0 %v8292_v33  ;;  %v6327_v33 = vpop.f32.mrf.mxu0  ;;  %v6281_v8 = vadd.f32 %v6280_v19, %v6238_v49  ;;  %v9595_v19 = vld [vmem:[%s10569_s5 + $0x38] sm:$0xff]   ;;  %v3515_v58 = vld [vmem:[#allocation6 + $0x2b8] sm:$0xff] }
 0x3e4   :  { %6808 = vmatpush1.bf16.msra.mxu1 %v8684_v10  ;;  %6682 = vmatprep.subr.bf16.mxu0 %v8285_v37  ;;  %v8260_v10 = vcombine.low %v3431_v18, %v3435_v15  ;;  %v8652_v37 = vcombine.low %v3823_v35, %v3827_v23  ;;  %v6328_v41 = vadd.f32 %v6327_v33, %v6285_v32  ;;  %v9597_v18 = vld [vmem:[%s10569_s5 + $0x30] sm:$0xff]   ;;  %v9598_v35 = vld [vmem:[%s10569_s5 + $0x68] sm:$0xff]   ;;  %v3519_v23 = vld [vmem:[#allocation6 + $0x2d8] sm:$0xff] }
 0x3e5   :  { %6809 = vmatprep.subr.bf16.mxu1 %v8677_v51  ;;  %v8381_v51 = vcombine.high %v3551_v28, %v3555_v43  ;;  %v9601_v28 = vld [vmem:[%s10569_s5 + $0x20] sm:$0xff]   ;;  %v8341_v43 = vcombine.high %v3511_v27, %v3515_v58  ;;  %v8340_v49 = vcombine.low %v3511_v27, %v3515_v58  ;;  %v9603_v33 = vld [vmem:[%s10569_s5 + $0x18] sm:$0xff]   ;;  %v3881_v32 = vrot.slane %v10290_v11, %v642_v22 }
 0x3e6   :  { %v3503_v7 = vld [vmem:[#allocation6 + $0x258] sm:$0xff] }
 0x3e7   :  { %6683 = vmatpush1.bf16.msra.mxu0 %v8284_v14  ;;  %v6324_v14 = vadd.f32 %v6323_v5, %v6281_v8  ;;  %v8365_v5 = vcombine.high %v3535_v0, %v3539_v2  ;;  %v3507_v50 = vld [vmem:[#allocation6 + $0x278] sm:$0xff]  ;;  %v9605_v8 = vld [vmem:[%s10569_s5 + $0x10] sm:$0xff]   ;;  %v6193_v22 = vadd.f32 %v10270_v62, %v3881_v32  ;;  %v9607_v62 = vld [vmem:[%s10569_s5 + $0x8] sm:$0xff]  }
 0x3e8   :  { %6810 = vmatpush1.bf16.msra.mxu1 %v8676_v45  ;;  %6684 = vmatprep.subr.bf16.mxu0 %v8277_v46  ;;  %v8373_v45 = vcombine.high %v3543_v54, %v3547_v56  ;;  %v9594_v46 = vld [vmem:[%s10569_s5 + $0x78] sm:$0xff]   ;;  %v6197_v54 = vadd.f32 %v10280_v36, %v3881_v32  ;;  %v8332_v56 = vcombine.low %v3503_v7, %v3507_v50  ;;  %v3747_v36 = vld [vmem:[#allocation6 + $0x9f8] sm:$0xff] }
 0x3e9   :  { %6811 = vmatprep.subr.bf16.mxu1 %v8669_v63  ;;  %v6855_v63 = vmax.f32 %v6328_v41, 0.0  ;;  %v6847_v3 = vmax.f32 %v6324_v14, 0.0  ;;  %v9606_v14 = vld [vmem:[%s10569_s5 + $0x48] sm:$0xff]   ;;  %v9634_v32 = vld [vmem:[%s10569_s5 + $0x158] sm:$0xff]  }
 0x3eb   :  { %6685 = vmatpush1.bf16.msra.mxu0 %v8276_v6  ;;  %v9596_v6 = vld [vmem:[%s10569_s5 + $0x70] sm:$0xff]   ;;  %v6863_v16 = vpack.c.bf16 %v6855_v63, %v6847_v3 }
 0x3ec   :  { %6812 = vmatpush1.bf16.msra.mxu1 %v8668_v20  ;;  %6686 = vmatprep.subr.bf16.mxu0 %v8269_v13  ;;  %v3527_v20 = vld [vmem:[#allocation6 + $0x318] sm:$0xff] }
 0x3ed   :  { %6813 = vmatprep.subr.bf16.mxu1 %v8661_v34  ;;  %v3531_v13 = vld [vmem:[#allocation6 + $0x338] sm:$0xff]  ;;  %v8364_v34 = vcombine.low %v3535_v0, %v3539_v2 }
 0x3ee   :  { %v8357_v15 = vcombine.high %v3527_v20, %v3531_v13  ;;  %v8356_v1 = vcombine.low %v3527_v20, %v3531_v13  ;;  %v3731_v20 = vld [vmem:[#allocation6 + $0x978] sm:$0xff]  ;;  %v9626_v13 = vld [vmem:[%s10569_s5 + $0x178] sm:$0xff]  }
 0x3ef   :  { %6687 = vmatpush1.bf16.msra.mxu0 %v8268_v24  ;;  %v3523_v24 = vld [vmem:[#allocation6 + $0x2f8] sm:$0xff] }
 0x3f0   :  { %6814 = vmatpush1.bf16.msra.mxu1 %v8660_v4  ;;  %6688 = vmatprep.subr.bf16.mxu0 %v8261_v25  ;;  %v8349_v4 = vcombine.high %v3519_v23, %v3523_v24  ;;  %v9600_v25 = vld [vmem:[%s10569_s5 + $0x60] sm:$0xff]  }
 0x3f1   :  { %6815 = vmatprep.subr.bf16.mxu1 %v8653_v39  ;;  %v8348_v39 = vcombine.low %v3519_v23, %v3523_v24  ;;  %v3723_v23 = vld [vmem:[#allocation6 + $0x938] sm:$0xff] }
 0x3f3   :  { %6689 = vmatpush1.bf16.msra.mxu0 %v8260_v10  ;;  %v8333_v10 = vcombine.high %v3503_v7, %v3507_v50 }
 0x3f4   :  { %6816 = vmatpush1.bf16.msra.mxu1 %v8652_v37  ;;  %6690 = vmatprep.subr.bf16.mxu0 %v8381_v51  ;;  %v9604_v37 = vld [vmem:[%s10569_s5 + $0x50] sm:$0xff]   ;;  %v3495_v51 = vld [vmem:[#allocation6 + $0x218] sm:$0xff] }
 0x3f5   :  { %6817 = vmatprep.subr.bf16.mxu1 %v8645_v26  ;;  %v3499_v26 = vld [vmem:[#allocation6 + $0x238] sm:$0xff] }
 0x3f6   :  { %v8325_v41 = vcombine.high %v3495_v51, %v3499_v26  ;;  %v8324_v63 = vcombine.low %v3495_v51, %v3499_v26  ;;  %v9635_v26 = vld [vmem:[%s10569_s5 + $0x118] sm:$0xff]  }
 0x3f7   :  { %6691 = vmatpush2.bf16.msra.mxu0 %v8380_v42  ;;  %v6240_v42 = vadd.f32 %v10283_v29, %v6197_v54  ;;  %v3687_v54 = vld [vmem:[#allocation6 + $0x818] sm:$0xff] }
 0x3f8   :  { %6818 = vmatpush1.bf16.msra.mxu1 %v8644_v47  ;;  %6692 = vmatprep.subr.bf16.mxu0 %v8373_v45  ;;  %v3743_v47 = vld [vmem:[#allocation6 + $0x9d8] sm:$0xff]  ;;  %v6236_v45 = vadd.f32 %v10272_v21, %v6193_v22  ;;  %v10396_v22 = vpop.f32.mrf.mxu0 }
 0x3f9   :  { %8854 = vmatprep.subr.bf16.mxu1 %v9594_v46  ;;  %v6283_v46 = vadd.f32 %v10295_v17, %v6240_v42  ;;  %v8573_v29 = vcombine.high %v3743_v47, %v3747_v36  ;;  %v9608_v21 = vld [vmem:[%s10569_s5 + $0x40] sm:$0xff]  }
 0x3fa   :  { %v6279_v0 = vadd.f32 %v10286_v48, %v6236_v45  ;;  %v3739_v17 = vld [vmem:[#allocation6 + $0x9b8] sm:$0xff]  ;;  %v9638_v45 = vld [vmem:[%s10569_s5 + $0x148] sm:$0xff]  }
 0x3fb   :  { %6693 = vmatpush2.bf16.msra.mxu0 %v8372_v38  ;;  %6836 = vmatmul.mubr.bf16.vlgmr.msra.gmra.mxu1 %v10249_v55  ;;  %v9599_v55 = vld [vmem:[%s10569_s5 + $0x28] sm:$0xff]   ;;  %v6326_v2 = vadd.f32 %v10297_v52, %v6283_v46  ;;  %v3735_v38 = vld [vmem:[#allocation6 + $0x998] sm:$0xff] }
 0x3fc   :  { %8855 = vmatpush3.bf16.msra.mxu1 %v9595_v19  ;;  %7421 = vmatprep.mubr.bf16.mxu1 %v6863_v16  ;;  %v6322_v3 = vadd.f32 %v10288_v12, %v6279_v0  ;;  %v8572_v19 = vcombine.low %v3743_v47, %v3747_v36  ;;  %v8565_v48 = vcombine.high %v3735_v38, %v3739_v17  ;;  %v3727_v52 = vld [vmem:[#allocation6 + $0x958] sm:$0xff] }
 0x3fd   :  { %6694 = vmatprep.subr.bf16.mxu0 %v8365_v5  ;;  %8856 = vmatprep.subr.bf16.mxu1 %v9596_v6  ;;  %v9609_v5 = vld [vmem:[%s10569_s5] sm:$0xff]   ;;  %v6854_v6 = vmax.f32 %v6326_v2, 0.0  ;;  %v8564_v16 = vcombine.low %v3735_v38, %v3739_v17  ;;  %v8556_v24 = vcombine.low %v3727_v52, %v3731_v20  ;;  %v10410_v38 = vpop.f32.mrf.mxu1 }
 0x3fe   :  { %v6846_v12 = vmax.f32 %v6322_v3, 0.0  ;;  %v3807_v47 = vld [vmem:[#allocation6 + $0xbd8] sm:$0xff] }
 0x3ff   :  { %6695 = vmatpush2.bf16.msra.mxu0 %v8364_v34  ;;  %v8557_v34 = vcombine.high %v3727_v52, %v3731_v20  ;;  %v3811_v36 = vld [vmem:[#allocation6 + $0xbf8] sm:$0xff]  ;;  %v6409_v52 = vpop.f32.mrf.mxu1 }
 0x400   :  { %8857 = vmatpush3.bf16.msra.mxu1 %v9597_v18  ;;  %6696 = vmatprep.subr.bf16.mxu0 %v8357_v15  ;;  %v9627_v18 = vld [vmem:[%s10569_s5 + $0x138] sm:$0xff]   ;;  %v6862_v15 = vpack.c.bf16 %v6854_v6, %v6846_v12  ;;  %v3799_v0 = vld [vmem:[#allocation6 + $0xb98] sm:$0xff]  ;;  %v8636_v17 = vcombine.low %v3807_v47, %v3811_v36 }
 0x401   :  { %8858 = vmatprep.subr.bf16.mxu1 %v9598_v35  ;;  %v3719_v35 = vld [vmem:[#allocation6 + $0x918] sm:$0xff] }
 0x402   :  { %v8548_v27 = vcombine.low %v3719_v35, %v3723_v23  ;;  %v3803_v2 = vld [vmem:[#allocation6 + $0xbb8] sm:$0xff] }
 0x403   :  { %6697 = vmatpush2.bf16.msra.mxu0 %v8356_v1  ;;  %v9629_v1 = vld [vmem:[%s10569_s5 + $0x130] sm:$0xff]   ;;  %v3795_v6 = vld [vmem:[#allocation6 + $0xb78] sm:$0xff]  ;;  %v8628_v20 = vcombine.low %v3799_v0, %v3803_v2 }
 0x404   :  { %8859 = vmatpush3.bf16.msra.mxu1 %v9599_v55  ;;  %6698 = vmatprep.subr.bf16.mxu0 %v8349_v4  ;;  %v3711_v55 = vld [vmem:[#allocation6 + $0x8d8] sm:$0xff] }
 0x405   :  { %8860 = vmatprep.subr.bf16.mxu1 %v9600_v25  ;;  %v3715_v4 = vld [vmem:[#allocation6 + $0x8f8] sm:$0xff]  ;;  %v9630_v25 = vld [vmem:[%s10569_s5 + $0x168] sm:$0xff]  }
 0x406   :  { %v8541_v58 = vcombine.high %v3711_v55, %v3715_v4  ;;  %v8540_v7 = vcombine.low %v3711_v55, %v3715_v4 }
 0x407   :  { %6699 = vmatpush2.bf16.msra.mxu0 %v8348_v39  ;;  %v9631_v39 = vld [vmem:[%s10569_s5 + $0x128] sm:$0xff]  }
 0x408   :  { %8861 = vmatpush3.bf16.msra.mxu1 %v9601_v28  ;;  %6700 = vmatprep.subr.bf16.mxu0 %v8341_v43  ;;  %v3703_v28 = vld [vmem:[#allocation6 + $0x898] sm:$0xff] }
 0x409   :  { %8862 = vmatprep.subr.bf16.mxu1 %v9602_v30  ;;  %v3707_v43 = vld [vmem:[#allocation6 + $0x8b8] sm:$0xff] }
 0x40a   :  { %v9632_v30 = vld [vmem:[%s10569_s5 + $0x160] sm:$0xff]   ;;  %v8533_v50 = vcombine.high %v3703_v28, %v3707_v43 }
 0x40b   :  { %6701 = vmatpush2.bf16.msra.mxu0 %v8340_v49  ;;  %v9633_v49 = vld [vmem:[%s10569_s5 + $0x120] sm:$0xff]  }
 0x40c   :  { %8863 = vmatpush3.bf16.msra.mxu1 %v9603_v33  ;;  %6702 = vmatprep.subr.bf16.mxu0 %v8333_v10  ;;  %v3695_v33 = vld [vmem:[#allocation6 + $0x858] sm:$0xff] }
 0x40d   :  { %8864 = vmatprep.subr.bf16.mxu1 %v9604_v37  ;;  %v3699_v10 = vld [vmem:[#allocation6 + $0x878] sm:$0xff]  ;;  %v8532_v37 = vcombine.low %v3703_v28, %v3707_v43 }
 0x40e   :  { %v8525_v51 = vcombine.high %v3695_v33, %v3699_v10 }
 0x40f   :  { %6703 = vmatpush2.bf16.msra.mxu0 %v8332_v56  ;;  %v3691_v56 = vld [vmem:[#allocation6 + $0x838] sm:$0xff] }
 0x410   :  { %8865 = vmatpush3.bf16.msra.mxu1 %v9605_v8  ;;  %6704 = vmatprep.subr.bf16.mxu0 %v8325_v41  ;;  %v9636_v8 = vld [vmem:[%s10569_s5 + $0x150] sm:$0xff]   ;;  %v8524_v41 = vcombine.low %v3695_v33, %v3699_v10  ;;  %v8517_v42 = vcombine.high %v3687_v54, %v3691_v56  ;;  %v8516_v46 = vcombine.low %v3687_v54, %v3691_v56  ;;  %v3759_v33 = vld [vmem:[#allocation6 + $0xa58] sm:$0xff] }
 0x411   :  { %8866 = vmatprep.subr.bf16.mxu1 %v9606_v14  ;;  %v9637_v14 = vld [vmem:[%s10569_s5 + $0x110] sm:$0xff]   ;;  %v3763_v10 = vld [vmem:[#allocation6 + $0xa78] sm:$0xff] }
 0x413   :  { %6705 = vmatpush2.bf16.msra.mxu0 %v8324_v63  ;;  %v6366_v63 = vpop.f32.mrf.mxu0 }
 0x414   :  { %8867 = vmatpush3.bf16.msra.mxu1 %v9607_v62  ;;  %6760 = vmatprep.subr.bf16.mxu0 %v8573_v29  ;;  %v8637_v62 = vcombine.high %v3807_v47, %v3811_v36  ;;  %v9639_v29 = vld [vmem:[%s10569_s5 + $0x108] sm:$0xff]  }
 0x415   :  { %8868 = vmatprep.subr.bf16.mxu1 %v9608_v21  ;;  %v9640_v21 = vld [vmem:[%s10569_s5 + $0x140] sm:$0xff]   ;;  %v10412_v3 = vpop.f32.mrf.mxu0 }
 0x416   :  { %6707 = vmatmul.mubr.bf16.vlgmr.msra.gmra.mxu0 %v10134_v60  ;;  %v9628_v60 = vld [vmem:[%s10569_s5 + $0x170] sm:$0xff]  }
 0x417   :  { %6761 = vmatpush1.bf16.msra.mxu0 %v8572_v19  ;;  %6792 = vmatprep.mubr.bf16.mxu0 %v10236_v40  ;;  %v8549_v40 = vcombine.high %v3719_v35, %v3723_v23  ;;  %v8629_v19 = vcombine.high %v3799_v0, %v3803_v2  ;;  %v9611_v2 = vld [vmem:[%s10569_s5 + $0xb8] sm:$0xff]  }
 0x418   :  { %8869 = vmatpush3.bf16.msra.mxu1 %v9609_v5  ;;  %6762 = vmatprep.subr.bf16.mxu0 %v8565_v48  ;;  %v9641_v5 = vld [vmem:[%s10569_s5 + $0x100] sm:$0xff]  }
 0x419   :  { %8898 = vmatprep.subr.bf16.mxu1 %v9626_v13  ;;  %v3791_v48 = vld [vmem:[#allocation6 + $0xb58] sm:$0xff]  ;;  %v6370_v13 = vpop.f32.mrf.mxu0 }
 0x41a   :  { %v8621_v12 = vcombine.high %v3791_v48, %v3795_v6  ;;  %v8620_v35 = vcombine.low %v3791_v48, %v3795_v6  ;;  %v9615_v48 = vld [vmem:[%s10569_s5 + $0xa8] sm:$0xff]   ;;  %v9617_v6 = vld [vmem:[%s10569_s5 + $0xa0] sm:$0xff]  }
 0x41b   :  { %6763 = vmatpush1.bf16.msra.mxu0 %v8564_v16  ;;  %7422 = vmatmul.mubr.bf16.vlgmr.msra.gmra.mxu1 %v6862_v15  ;;  %v3783_v16 = vld [vmem:[#allocation6 + $0xb18] sm:$0xff] }
 0x41c   :  { %6764 = vmatprep.subr.bf16.mxu0 %v8557_v34  ;;  %8899 = vmatpush3.bf16.msra.mxu1 %v9627_v18  ;;  %v3787_v34 = vld [vmem:[#allocation6 + $0xb38] sm:$0xff]  ;;  %v10417_v18 = vpop.f32.mrf.mxu1 }
 0x41d   :  { %8900 = vmatprep.subr.bf16.mxu1 %v9628_v60  ;;  %v8613_v23 = vcombine.high %v3783_v16, %v3787_v34  ;;  %v3775_v60 = vld [vmem:[#allocation6 + $0xad8] sm:$0xff]  ;;  %v8612_v55 = vcombine.low %v3783_v16, %v3787_v34  ;;  %v9620_v34 = vld [vmem:[%s10569_s5 + $0xd0] sm:$0xff]  }
 0x41f   :  { %6765 = vmatpush1.bf16.msra.mxu0 %v8556_v24  ;;  %v3779_v24 = vld [vmem:[#allocation6 + $0xaf8] sm:$0xff] }
 0x420   :  { %6766 = vmatprep.subr.bf16.mxu0 %v8549_v40  ;;  %8901 = vmatpush3.bf16.msra.mxu1 %v9629_v1  ;;  %v6413_v40 = vpop.f32.mrf.mxu1 }
 0x421   :  { %8902 = vmatprep.subr.bf16.mxu1 %v9630_v25  ;;  %v8605_v25 = vcombine.high %v3775_v60, %v3779_v24 }
 0x422   :  { %v10421_v4 = vpop.f32.mrf.mxu1 }
 0x423   :  { %6767 = vmatpush1.bf16.msra.mxu0 %v8548_v27  ;;  %v3893_v27 = vrot.slane %v10290_v11, %v654_v53  ;;  %v8589_v53 = vcombine.high %v3759_v33, %v3763_v10 }
 0x424   :  { %6768 = vmatprep.subr.bf16.mxu0 %v8541_v58  ;;  %8903 = vmatpush3.bf16.msra.mxu1 %v9631_v39  ;;  %v3767_v58 = vld [vmem:[#allocation6 + $0xa98] sm:$0xff] }
 0x425   :  { %8904 = vmatprep.subr.bf16.mxu1 %v9632_v30  ;;  %v3771_v39 = vld [vmem:[#allocation6 + $0xab8] sm:$0xff]  ;;  %v6371_v43 = vadd.f32 %v6370_v13, %v3893_v27  ;;  %v8604_v30 = vcombine.low %v3775_v60, %v3779_v24 }
 0x427   :  { %6769 = vmatpush1.bf16.msra.mxu0 %v8540_v7  ;;  %v6495_v7 = vpop.f32.mrf.mxu1 }
 0x428   :  { %6770 = vmatprep.subr.bf16.mxu0 %v8533_v50  ;;  %8905 = vmatpush3.bf16.msra.mxu1 %v9633_v49  ;;  %v8597_v50 = vcombine.high %v3767_v58, %v3771_v39  ;;  %v6367_v49 = vadd.f32 %v6366_v63, %v3893_v27  ;;  %v9643_v27 = vld [vmem:[%s10569_s5 + $0x1b8] sm:$0xff]  }
 0x429   :  { %8906 = vmatprep.subr.bf16.mxu1 %v9634_v32 }
 0x42a   :  { %v6410_v54 = vadd.f32 %v6409_v52, %v6367_v49  ;;  %v3889_v52 = vrot.slane %v10290_v11, %v650_v31 }
 0x42b   :  { %6771 = vmatpush1.bf16.msra.mxu0 %v8532_v37  ;;  %v6414_v37 = vadd.f32 %v6413_v40, %v6371_v43  ;;  %v9647_v43 = vld [vmem:[%s10569_s5 + $0x1a8] sm:$0xff]  }
 0x42c   :  { %6772 = vmatprep.subr.bf16.mxu0 %v8525_v51  ;;  %8907 = vmatpush3.bf16.msra.mxu1 %v9635_v26  ;;  %v8596_v51 = vcombine.low %v3767_v58, %v3771_v39  ;;  %v6497_v26 = vpop.f32.mrf.mxu1  ;;  %v6369_v13 = vadd.f32 %v10412_v3, %v3889_v52  ;;  %v6365_v16 = vadd.f32 %v10396_v22, %v3889_v52  ;;  %v9622_v22 = vld [vmem:[%s10569_s5 + $0xc8] sm:$0xff]   ;;  %v9645_v39 = vld [vmem:[%s10569_s5 + $0x1b0] sm:$0xff]  }
 0x42d   :  { %8908 = vmatprep.subr.bf16.mxu1 %v9636_v8  ;;  %v3751_v8 = vld [vmem:[#allocation6 + $0xa18] sm:$0xff] }
 0x42e   :  { %v6499_v47 = vpop.f32.mrf.mxu1  ;;  %v6412_v31 = vadd.f32 %v10417_v18, %v6369_v13  ;;  %v6408_v3 = vadd.f32 %v10410_v38, %v6365_v16  ;;  %v9623_v18 = vld [vmem:[%s10569_s5 + $0x88] sm:$0xff]   ;;  %v9624_v38 = vld [vmem:[%s10569_s5 + $0xc0] sm:$0xff]  }
 0x42f   :  { %6773 = vmatpush1.bf16.msra.mxu0 %v8524_v41  ;;  %v3755_v41 = vld [vmem:[#allocation6 + $0xa38] sm:$0xff]  ;;  %v9654_v16 = vld [vmem:[%s10569_s5 + $0x1c8] sm:$0xff]  }
 0x430   :  { %6774 = vmatprep.subr.bf16.mxu0 %v8517_v42  ;;  %8909 = vmatpush3.bf16.msra.mxu1 %v9637_v14  ;;  %v8588_v14 = vcombine.low %v3759_v33, %v3763_v10  ;;  %v8581_v36 = vcombine.high %v3751_v8, %v3755_v41  ;;  %v8580_v63 = vcombine.low %v3751_v8, %v3755_v41 }
 0x431   :  { %8910 = vmatprep.subr.bf16.mxu1 %v9638_v45 }
 0x433   :  { %6775 = vmatpush1.bf16.msra.mxu0 %v8516_v46 }
 0x434   :  { %6776 = vmatprep.subr.bf16.mxu0 %v8637_v62  ;;  %8911 = vmatpush3.bf16.msra.mxu1 %v9639_v29  ;;  %v9610_v62 = vld [vmem:[%s10569_s5 + $0xf8] sm:$0xff]  }
 0x435   :  { %8912 = vmatprep.subr.bf16.mxu1 %v9640_v21  ;;  %v9612_v21 = vld [vmem:[%s10569_s5 + $0xf0] sm:$0xff]  }
 0x436   :  { %v10419_v15 = vpop.f32.mrf.mxu0 }
 0x437   :  { %6777 = vmatpush2.bf16.msra.mxu0 %v8636_v17  ;;  %v6451_v60 = vadd.f32 %v10419_v15, %v6408_v3  ;;  %v9642_v15 = vld [vmem:[%s10569_s5 + $0x1f8] sm:$0xff]  }
 0x438   :  { %6778 = vmatprep.subr.bf16.mxu0 %v8629_v19  ;;  %8913 = vmatpush3.bf16.msra.mxu1 %v9641_v5  ;;  %v6452_v1 = vpop.f32.mrf.mxu0  ;;  %v9613_v19 = vld [vmem:[%s10569_s5 + $0xb0] sm:$0xff]   ;;  %v9614_v5 = vld [vmem:[%s10569_s5 + $0xe8] sm:$0xff]  }
 0x439   :  { %v6453_v42 = vadd.f32 %v6452_v1, %v6410_v54  ;;  %v6494_v40 = vadd.f32 %v10421_v4, %v6451_v60  ;;  %v9625_v1 = vld [vmem:[%s10569_s5 + $0x80] sm:$0xff]   ;;  %v9644_v4 = vld [vmem:[%s10569_s5 + $0x1f0] sm:$0xff]  }
 0x43a   :  { %v10426_v28 = vpop.f32.mrf.mxu0  ;;  %v9656_v60 = vld [vmem:[%s10569_s5 + $0x1c0] sm:$0xff]  }
 0x43b   :  { %6779 = vmatpush2.bf16.msra.mxu0 %v8628_v20  ;;  %v6496_v46 = vadd.f32 %v6495_v7, %v6453_v42  ;;  %v9618_v20 = vld [vmem:[%s10569_s5 + $0xd8] sm:$0xff]   ;;  %v9649_v7 = vld [vmem:[%s10569_s5 + $0x1a0] sm:$0xff]  }
 0x43c   :  { %6780 = vmatprep.subr.bf16.mxu0 %v8621_v12  ;;  %v6456_v32 = vpop.f32.mrf.mxu0  ;;  %v9619_v12 = vld [vmem:[%s10569_s5 + $0x98] sm:$0xff]  }
 0x43d   :  { %v6457_v56 = vadd.f32 %v6456_v32, %v6414_v37  ;;  %v6849_v0 = vmax.f32 %v6496_v46, 0.0 }
 0x43f   :  { %6781 = vmatpush2.bf16.msra.mxu0 %v8620_v35  ;;  %v6500_v45 = vadd.f32 %v6499_v47, %v6457_v56  ;;  %v9621_v35 = vld [vmem:[%s10569_s5 + $0x90] sm:$0xff]   ;;  %v9650_v47 = vld [vmem:[%s10569_s5 + $0x1d8] sm:$0xff]  }
 0x440   :  { %6782 = vmatprep.subr.bf16.mxu0 %v8613_v23  ;;  %v6455_v23 = vadd.f32 %v10426_v28, %v6412_v31  ;;  %v9646_v28 = vld [vmem:[%s10569_s5 + $0x1e8] sm:$0xff]  }
 0x441   :  { %v6857_v29 = vmax.f32 %v6500_v45, 0.0  ;;  %v9655_v31 = vld [vmem:[%s10569_s5 + $0x188] sm:$0xff]  }
 0x442   :  { %v6498_v24 = vadd.f32 %v6497_v26, %v6455_v23  ;;  %v3901_v26 = vrot.slane %v10290_v11, %v662_v57  ;;  %v9651_v57 = vld [vmem:[%s10569_s5 + $0x198] sm:$0xff]  }
 0x443   :  { %6783 = vmatpush2.bf16.msra.mxu0 %v8612_v55  ;;  %v6865_v17 = vpack.c.bf16 %v6857_v29, %v6849_v0 }
 0x444   :  { %6784 = vmatprep.subr.bf16.mxu0 %v8605_v25  ;;  %v6856_v55 = vmax.f32 %v6498_v24, 0.0  ;;  %v6848_v25 = vmax.f32 %v6494_v40, 0.0  ;;  %v9657_v24 = vld [vmem:[%s10569_s5 + $0x180] sm:$0xff]  }
 0x446   :  { %v6864_v58 = vpack.c.bf16 %v6856_v55, %v6848_v25 }
 0x447   :  { %6785 = vmatpush2.bf16.msra.mxu0 %v8604_v30  ;;  %v9648_v30 = vld [vmem:[%s10569_s5 + $0x1e0] sm:$0xff]  }
 0x448   :  { %6786 = vmatprep.subr.bf16.mxu0 %v8597_v50  ;;  %v6536_v50 = vpop.f32.mrf.mxu1 }
 0x44a   :  { %v6538_v49 = vpop.f32.mrf.mxu1 }
 0x44b   :  { %6787 = vmatpush2.bf16.msra.mxu0 %v8596_v51  ;;  %v6539_v8 = vadd.f32 %v6538_v49, %v3901_v26 }
 0x44c   :  { %6788 = vmatprep.subr.bf16.mxu0 %v8589_v53  ;;  %v6540_v33 = vpop.f32.mrf.mxu1  ;;  %v3897_v53 = vrot.slane %v10290_v11, %v658_v59 }
 0x44e   :  { %v6542_v32 = vpop.f32.mrf.mxu1  ;;  %v6541_v41 = vadd.f32 %v6540_v33, %v3897_v53  ;;  %v6537_v42 = vadd.f32 %v6536_v50, %v3897_v53 }
 0x44f   :  { %6789 = vmatpush2.bf16.msra.mxu0 %v8588_v14 }
 0x450   :  { %6790 = vmatprep.subr.bf16.mxu0 %v8581_v36  ;;  %v6543_v36 = vadd.f32 %v6542_v32, %v3901_v26 }
 0x453   :  { %6791 = vmatpush2.bf16.msra.mxu0 %v8580_v63 }
 0x454   :  { %8876 = vmatprep.subr.bf16.mxu0 %v9610_v62 }
 0x456   :  { %6793 = vmatmul.mubr.bf16.vlgmr.msra.gmra.mxu0 %v10240_v44  ;;  %v9616_v44 = vld [vmem:[%s10569_s5 + $0xe0] sm:$0xff]  }
 0x457   :  { %8877 = vmatpush3.bf16.msra.mxu0 %v9611_v2  ;;  %7462 = vmatprep.mubr.bf16.mxu0 %v6865_v17  ;;  %v9652_v2 = vld [vmem:[%s10569_s5 + $0x1d0] sm:$0xff]  }
 0x458   :  { %8878 = vmatprep.subr.bf16.mxu0 %v9612_v21 }
 0x45b   :  { %8879 = vmatpush3.bf16.msra.mxu0 %v9613_v19  ;;  %v6622_v51 = vpop.f32.mrf.mxu1  ;;  %v9653_v19 = vld [vmem:[%s10569_s5 + $0x190] sm:$0xff]  }
 0x45c   :  { %8880 = vmatprep.subr.bf16.mxu0 %v9614_v5 }
 0x45d   :  { %v6624_v56 = vpop.f32.mrf.mxu1 }
 0x45f   :  { %8881 = vmatpush3.bf16.msra.mxu0 %v9615_v48  ;;  %v6626_v63 = vpop.f32.mrf.mxu1 }
 0x460   :  { %8882 = vmatprep.subr.bf16.mxu0 %v9616_v44 }
 0x461   :  { %v6628_v5 = vpop.f32.mrf.mxu1 }
 0x463   :  { %8883 = vmatpush3.bf16.msra.mxu0 %v9617_v6 }
 0x464   :  { %8884 = vmatprep.subr.bf16.mxu0 %v9618_v20 }
 0x467   :  { %8885 = vmatpush3.bf16.msra.mxu0 %v9619_v12 }
 0x468   :  { %8886 = vmatprep.subr.bf16.mxu0 %v9620_v34 }
 0x46b   :  { %8887 = vmatpush3.bf16.msra.mxu0 %v9621_v35 }
 0x46c   :  { %8888 = vmatprep.subr.bf16.mxu0 %v9622_v22 }
 0x46f   :  { %8889 = vmatpush3.bf16.msra.mxu0 %v9623_v18 }
 0x470   :  { %8890 = vmatprep.subr.bf16.mxu0 %v9624_v38 }
 0x473   :  { %8891 = vmatpush3.bf16.msra.mxu0 %v9625_v1 }
 0x474   :  { %8920 = vmatprep.subr.bf16.mxu0 %v9642_v15  ;;  %v3908_v15 = vsub.s32 7, %v10082_v9 }
 0x476   :  { %7463 = vmatmul.mubr.bf16.vlgmr.msra.gmra.mxu0 %v6864_v58  ;;  %v6579_v10 = vpop.f32.mrf.mxu0  ;;  %v3909_v58 = vrot.slane %v10290_v11, %v3908_v15 }
 0x477   :  { %8921 = vmatpush3.bf16.msra.mxu0 %v9643_v27  ;;  %v6580_v62 = vadd.f32 %v6579_v10, %v6537_v42 }
 0x478   :  { %8922 = vmatprep.subr.bf16.mxu0 %v9644_v4  ;;  %v6581_v37 = vpop.f32.mrf.mxu0 }
 0x479   :  { %v6582_v45 = vadd.f32 %v6581_v37, %v6539_v8  ;;  %v6623_v48 = vadd.f32 %v6622_v51, %v6580_v62 }
 0x47a   :  { %v6583_v54 = vpop.f32.mrf.mxu0 }
 0x47b   :  { %8923 = vmatpush3.bf16.msra.mxu0 %v9645_v39  ;;  %v6584_v46 = vadd.f32 %v6583_v54, %v6541_v41  ;;  %v6625_v21 = vadd.f32 %v6624_v56, %v6582_v45  ;;  %v3905_v39 = vrot.slane %v10290_v11, %v666_v61 }
 0x47c   :  { %8924 = vmatprep.subr.bf16.mxu0 %v9646_v28  ;;  %v6585_v14 = vpop.f32.mrf.mxu0 }
 0x47d   :  { %v6586_v29 = vadd.f32 %v6585_v14, %v6543_v36  ;;  %v6627_v17 = vadd.f32 %v6626_v63, %v6584_v46 }
 0x47f   :  { %8925 = vmatpush3.bf16.msra.mxu0 %v9647_v43  ;;  %v6629_v20 = vadd.f32 %v6628_v5, %v6586_v29 }
 0x480   :  { %8926 = vmatprep.subr.bf16.mxu0 %v9648_v30 }
 0x483   :  { %8927 = vmatpush3.bf16.msra.mxu0 %v9649_v7 }
 0x484   :  { %8928 = vmatprep.subr.bf16.mxu0 %v9650_v47 }
 0x487   :  { %8929 = vmatpush3.bf16.msra.mxu0 %v9651_v57 }
 0x488   :  { %8930 = vmatprep.subr.bf16.mxu0 %v9652_v2  ;;  %v7557_v2 = vld [vmem:[#allocation10 + $0x10] sm:$0xf] }
 0x489   :  { %8977 = vmatprep.subr.msk.mxu1 %vm7572_vm1, %v7557_v2 }
 0x48b   :  { %8931 = vmatpush3.bf16.msra.mxu0 %v9653_v19 }
 0x48c   :  { %8932 = vmatprep.subr.bf16.mxu0 %v9654_v16 }
 0x48f   :  { %8933 = vmatpush3.bf16.msra.mxu0 %v9655_v31 }
 0x490   :  { %8934 = vmatprep.subr.bf16.mxu0 %v9656_v60 }
 0x493   :  { %8935 = vmatpush3.bf16.msra.mxu0 %v9657_v24 }
 0x496   :  { %v6665_v59 = vpop.f32.mrf.mxu0 }
 0x497   :  { %v6666_v13 = vadd.f32 %v6665_v59, %v6623_v48 }
 0x498   :  { %v6667_v0 = vpop.f32.mrf.mxu0 }
 0x499   :  { %v6668_v6 = vadd.f32 %v6667_v0, %v6625_v21  ;;  %v6850_v22 = vmax.f32 %v6666_v13, 0.0  ;;  %v7556_v21 = vld [vmem:[#allocation10 + $0x8] sm:$0xff] }
 0x49a   :  { %v6669_v44 = vpop.f32.mrf.mxu0 }
 0x49b   :  { %v6670_v52 = vadd.f32 %v6669_v44, %v6627_v17  ;;  %v6851_v3 = vmax.f32 %v6668_v6, 0.0  ;;  %v6751_v40 = vpop.f32.mrf.mxu1  ;;  %v7555_v17 = vld [vmem:[#allocation10] sm:$0xff] }
 0x49c   :  { %v6671_v12 = vpop.f32.mrf.mxu0 }
 0x49d   :  { %v6672_v34 = vadd.f32 %v6671_v12, %v6629_v20  ;;  %v6858_v35 = vmax.f32 %v6670_v52, 0.0  ;;  %v6753_v1 = vpop.f32.mrf.mxu1 }
 0x49f   :  { %v6859_v23 = vmax.f32 %v6672_v34, 0.0  ;;  %v6866_v38 = vpack.c.bf16 %v6858_v35, %v6850_v22  ;;  %v6755_v25 = vpop.f32.mrf.mxu1  ;;  %v8702_v34 = vld [vmem:[#allocation9] ss:$0 sm:$0xff] }
 0x4a1   :  { %v6867_v18 = vpack.c.bf16 %v6859_v23, %v6851_v3  ;;  %v6757_v4 = vpop.f32.mrf.mxu1 }
 0x4a3   :  { %7503 = vmatprep.mubr.bf16.mxu1 %v6867_v18 }
 0x4a4   :  { %7504 = vmatmul.mubr.bf16.vlgmr.msra.gmra.mxu1 %v6866_v38 }
 0x4a5   :  { %8978 = vmatpush3.msk.msra.mxu1 %vm7572_vm1, %v7557_v2 }
 0x4a6   :  { %8979 = vmatprep.subr.mxu1 %v7556_v21 }
 0x4a7   :  { %8980 = vmatpush3.msra.mxu1 %v7556_v21 }
 0x4a8   :  { %8981 = vmatprep.subr.mxu1 %v7555_v17 }
 0x4a9   :  { %8982 = vmatpush3.msra.mxu1 %v7555_v17 }
 0x4bb   :  { %v6837_v43 = vpop.f32.mrf.mxu1 }
 0x4bd   :  { %v6839_v33 = vpop.f32.mrf.mxu1 }
 0x4bf   :  { %v6841_v56 = vpop.f32.mrf.mxu1 }
 0x4c1   :  { %v6843_v36 = vpop.f32.mrf.mxu1 }
 0x4d6   :  { %v6708_v55 = vpop.f32.mrf.mxu0 }
 0x4d7   :  { %v6709_v7 = vadd.f32 %v6708_v55, %v3905_v39 }
 0x4d8   :  { %v6710_v27 = vpop.f32.mrf.mxu0 }
 0x4d9   :  { %v6711_v30 = vadd.f32 %v6710_v27, %v3909_v58  ;;  %v6752_v51 = vadd.f32 %v6751_v40, %v6709_v7 }
 0x4da   :  { %v6712_v28 = vpop.f32.mrf.mxu0 }
 0x4db   :  { %v6713_v49 = vadd.f32 %v6712_v28, %v3905_v39  ;;  %v6754_v37 = vadd.f32 %v6753_v1, %v6711_v30  ;;  %v8870_v19 = vpop.f32.mrf.mxu1 }
 0x4dc   :  { %v6714_v50 = vpop.f32.mrf.mxu0 }
 0x4dd   :  { %v6715_v32 = vadd.f32 %v6714_v50, %v3909_v58  ;;  %v6756_v54 = vadd.f32 %v6755_v25, %v6713_v49  ;;  %v8871_v5 = vpop.f32.mrf.mxu1 }
 0x4de   :  { %v8872_v16 = vadd.f32 %v8871_v5, %v8870_v19 }
 0x4df   :  { %v6758_v42 = vadd.f32 %v6757_v4, %v6715_v32  ;;  %v8873_v48 = vpop.f32.mrf.mxu1  ;;  %v7653_v32 = vld [vmem:[#allocation13] sm:$0xff] }
 0x4e0   :  { %v7424_v23 = vadd.f32 %v8872_v16, %v8702_v34 }
 0x4e1   :  { %v8874_v44 = vpop.f32.mrf.mxu1 }
 0x4e2   :  { %v8875_v22 = vadd.f32 %v8874_v44, %v8873_v48 }
 0x4e4   :  { %v7427_v55 = vadd.f32 %v8875_v22, %v8702_v34 }
 0x516   :  { %v6794_v10 = vpop.f32.mrf.mxu0 }
 0x517   :  { %v6795_v8 = vadd.f32 %v6794_v10, %v6752_v51  ;;  %v7654_v10 = vld [vmem:[#allocation13 + $0x8] sm:$0xff] }
 0x518   :  { %v6796_v26 = vpop.f32.mrf.mxu0 }
 0x519   :  { %v6797_v53 = vadd.f32 %v6796_v26, %v6754_v37  ;;  %v6838_v45 = vadd.f32 %v6837_v43, %v6795_v8  ;;  %v8767_v37 = vld [vmem:[#allocation12] ss:$0 sm:$0xff] }
 0x51a   :  { %v6798_v41 = vpop.f32.mrf.mxu0 }
 0x51b   :  { %v6799_v9 = vadd.f32 %v6798_v41, %v6756_v54  ;;  %v6840_v11 = vadd.f32 %v6839_v33, %v6797_v53  ;;  %v6852_v59 = vmax.f32 %v6838_v45, 0.0  ;;  %v7655_v33 = vld [vmem:[#allocation13 + $0x10] sm:$0xf]  ;;  %v7751_v41 = vld [vmem:[#allocation16 + $0x10] sm:$0xf] }
 0x51c   :  { %v6800_v61 = vpop.f32.mrf.mxu0  ;;  %8986 = vmatprep.subr.msk.mxu1 %vm7572_vm1, %v7655_v33 }
 0x51d   :  { %v6842_v14 = vadd.f32 %v6841_v56, %v6799_v9  ;;  %v6801_v47 = vadd.f32 %v6800_v61, %v6758_v42  ;;  %v6853_v63 = vmax.f32 %v6840_v11, 0.0  ;;  %v7750_v9 = vld [vmem:[#allocation16 + $0x8] sm:$0xff]  ;;  %v7749_v42 = vld [vmem:[#allocation16] sm:$0xff]  ;;  %v8771_v61 = vld [vmem:[#allocation15] ss:$0 sm:$0xff] }
 0x51f   :  { %v6844_v46 = vadd.f32 %v6843_v36, %v6801_v47  ;;  %v6860_v57 = vmax.f32 %v6842_v14, 0.0 }
 0x521   :  { %v6861_v62 = vmax.f32 %v6844_v46, 0.0  ;;  %v6868_v0 = vpack.c.bf16 %v6860_v57, %v6852_v59  ;;  %v8775_v57 = vld [vmem:[#allocation18] ss:$0 sm:$0xff] }
 0x523   :  { %v6869_v29 = vpack.c.bf16 %v6861_v62, %v6853_v63 }
 0x525   :  { %7544 = vmatprep.mubr.bf16.mxu0 %v6869_v29 }
 0x526   :  { %7545 = vmatmul.mubr.bf16.vlgmr.msra.gmra.mxu0 %v6868_v0 }
 0x536   :  { %v8892_v6 = vpop.f32.mrf.mxu0 }
 0x538   :  { %v8893_v20 = vpop.f32.mrf.mxu0 }
 0x539   :  { %v8894_v35 = vadd.f32 %v8893_v20, %v8892_v6 }
 0x53a   :  { %v8895_v12 = vpop.f32.mrf.mxu0 }
 0x53b   :  { %v7465_v38 = vadd.f32 %v8894_v35, %v7424_v23 }
 0x53c   :  { %v8896_v3 = vpop.f32.mrf.mxu0 }
 0x53d   :  { %v8897_v40 = vadd.f32 %v8896_v3, %v8895_v12 }
 0x53f   :  { %v7468_v4 = vadd.f32 %v8897_v40, %v7427_v55 }
 0x564   :  { %v8914_v52 = vpop.f32.mrf.mxu1 }
 0x566   :  { %v8915_v13 = vpop.f32.mrf.mxu1 }
 0x567   :  { %v8916_v60 = vadd.f32 %v8915_v13, %v8914_v52 }
 0x568   :  { %v8917_v31 = vpop.f32.mrf.mxu1 }
 0x569   :  { %v7506_v15 = vadd.f32 %v8916_v60, %v7465_v38 }
 0x56a   :  { %v8918_v18 = vpop.f32.mrf.mxu1 }
 0x56b   :  { %v8919_v25 = vadd.f32 %v8918_v18, %v8917_v31 }
 0x56d   :  { %v7509_v43 = vadd.f32 %v8919_v25, %v7468_v4 }
 0x5e6   :  { %v8936_v24 = vpop.f32.mrf.mxu0 }
 0x5e8   :  { %v8937_v1 = vpop.f32.mrf.mxu0 }
 0x5e9   :  { %v8938_v27 = vadd.f32 %v8937_v1, %v8936_v24 }
 0x5ea   :  { %v8939_v58 = vpop.f32.mrf.mxu0 }
 0x5eb   :  { %v7547_v39 = vadd.f32 %v8938_v27, %v7506_v15 }
 0x5ec   :  { %v8940_v28 = vpop.f32.mrf.mxu0 }
 0x5ed   :  { %v7553_v30 = vmax.f32 %v7547_v39, 0.0  ;;  %v8941_v7 = vadd.f32 %v8940_v28, %v8939_v58 }
 0x5ef   :  { %v7550_v50 = vadd.f32 %v8941_v7, %v7509_v43  ;;  %8983 = vmatprep.mubr.msk.f32.mxu1 %vm7565_vm2, %v7553_v30 }
 0x5f1   :  { %v7554_v49 = vmax.f32 %v7550_v50, 0.0 }
 0x5f3   :  { %8984 = vmatmul.mubr.msk.f32.vlgmr.msra.gmra.mxu1 %vm7565_vm2, %v7554_v49 }
 0x5f4   :  { %8987 = vmatpush3.msk.msra.mxu1 %vm7572_vm1, %v7655_v33 }
 0x5f5   :  { %8988 = vmatprep.subr.mxu1 %v7654_v10 }
 0x5f6   :  { %8989 = vmatpush3.msra.mxu1 %v7654_v10 }
 0x5f7   :  { %8990 = vmatprep.subr.mxu1 %v7653_v32 }
 0x5f8   :  { %8991 = vmatpush3.msra.mxu1 %v7653_v32 }
 0x5f9   :  { %8995 = vmatprep.subr.msk.mxu1 %vm7572_vm1, %v7751_v41 }
 0x6b3   :  { %v8985_v51 = vpop.f32.mrf.mxu1 }
 0x6b4   :  { %v7648_v26 = vadd.f32 %v8985_v51, %v8767_v37 }
 0x6b5   :  { %v7642_v53 = vpop.f32.mrf.mxu1 }
 0x6b6   :  { %v7643_v54 = vadd.f32 %v8767_v37, %v7642_v53  ;;  %v7652_v8 = vmax.f32 %v7648_v26, 0.0 }
 0x6b8   :  { %v7651_v56 = vmax.f32 %v7643_v54, 0.0 }
 0x6ba   :  { %8992 = vmatprep.mubr.msk.f32.mxu1 %vm7565_vm2, %v7651_v56 }
 0x6bb   :  { %8993 = vmatmul.mubr.msk.f32.vlgmr.msra.gmra.mxu1 %vm7565_vm2, %v7652_v8 }
 0x6bc   :  { %8996 = vmatpush3.msk.msra.mxu1 %vm7572_vm1, %v7751_v41 }
 0x6bd   :  { %8997 = vmatprep.subr.mxu1 %v7750_v9 }
 0x6be   :  { %8998 = vmatpush3.msra.mxu1 %v7750_v9 }
 0x6bf   :  { %8999 = vmatprep.subr.mxu1 %v7749_v42 }
 0x6c0   :  { %9000 = vmatpush3.msra.mxu1 %v7749_v42 }
 0x77b   :  { %v8994_v11 = vpop.f32.mrf.mxu1 }
 0x77c   :  { %v7744_v14 = vadd.f32 %v8994_v11, %v8771_v61 }
 0x77d   :  { %v7738_v47 = vpop.f32.mrf.mxu1 }
 0x77e   :  { %v7739_v36 = vadd.f32 %v8771_v61, %v7738_v47  ;;  %v7748_v46 = vmax.f32 %v7744_v14, 0.0 }
 0x780   :  { %v7747_v45 = vmax.f32 %v7739_v36, 0.0 }
 0x782   :  { %9001 = vmatprep.mubr.msk.f32.mxu1 %vm7565_vm2, %v7747_v45 }
 0x783   :  { %9002 = vmatmul.mubr.msk.f32.vlgmr.msra.gmra.mxu1 %vm7565_vm2, %v7748_v46 }
 0x843   :  { %v9003_v63 = vpop.f32.mrf.mxu1 }
 0x844   :  { %v7840_v62 = vadd.f32 %v9003_v63, %v8775_v57 }
 0x845   :  { %v7834_v59 = vpop.f32.mrf.mxu1 }
 0x846   :  { %7844 = vst [vmem:[%s10577_s13 + $0x8] sm:$0xff] %v7840_v62  ;;  %v7835_v29 = vadd.f32 %v8775_v57, %v7834_v59 }
 0x848   :  { %7843 = vst [vmem:[%s10577_s13] sm:$0xff] %v7835_v29 }
 0x849   :  { %7849 = vsyncpa [#allocation3], 1 }
 0x84a   :  { %7850 = vsyncpa [#allocation5], 1 }
 0x84b   :  { %7851 = vsyncpa [#allocation8], 1 }
 0x84c   :  { %7852 = vsyncpa [#allocation11], 1 }
 0x84d   :  { %7853 = vsyncpa [#allocation14], 1 }
 0x84e   :  { %7854 = vsyncpa [#allocation17], 1 }

</bundles_post_ra>
